<compile_context>
chip_gen: v6e
topology: v6e:2x2x1
jax: 0.10.0
libtpu: 0.0.40
codegen_flags: <defaults>
</compile_context>

<pallas_src>
import jax
import jax.numpy as jnp
from jax.experimental import pallas as pl
from jax.experimental.pallas import tpu as pltpu

_BN_EPS = 1e-5
CPAD = 128            # every internal activation is padded to 128 channels
_BF16 = jnp.bfloat16


# -----------------------------------------------------------------------------
# Small helpers
# -----------------------------------------------------------------------------
def _pad_to(a, axis, size):
    if a.shape[axis] == size:
        return a
    pads = [(0, 0)] * a.ndim
    pads[axis] = (0, size - a.shape[axis])
    return jnp.pad(a, pads)


def _pad_vec(v, size, value):
    if v.shape[0] == size:
        return v
    return jnp.pad(v, (0, size - v.shape[0]), constant_values=value)


def _choose_tm(m):
    """Row tile: up to 256 rows/step, and >=2 grid steps when possible (v7x megacore)."""
    if m <= 64:
        return m
    for tm in (256, 128, 64, 32, 16, 8):
        if m % tm == 0 and m // tm >= 2:
            return tm
    return m


# -----------------------------------------------------------------------------
# Pallas kernels
# -----------------------------------------------------------------------------
def _make_fused_matmul_kernel(T, relu, id_mode):
    """y = act((sum_t tap_t @ w[t]) * scale + shift [+ identity term]).

    refs: [tap_0..tap_{T-1}, w(T,K,N), scale(1,N), shift(1,N),
           id_mode==1: identity(tm,N)
           id_mode==2: id_x(tm,Kid), id_w(Kid,N), id_scale(1,N), id_shift(1,N),
           out(tm,N)]
    """

    def kernel(*refs):
        o_ref = refs[-1]
        w_ref = refs[T]
        s_ref = refs[T + 1]
        b_ref = refs[T + 2]

        # bf16 x bf16 on the MXU, f32 accumulation; tap loop is the conv reduction.
        acc = jnp.dot(refs[0][...], w_ref[0], preferred_element_type=jnp.float32)
        for t in range(1, T):
            acc = acc + jnp.dot(refs[t][...], w_ref[t],
                                preferred_element_type=jnp.float32)
        y = acc * s_ref[...] + b_ref[...]

        if id_mode == 1:       # plain residual (identity already has N channels)
            y = y + refs[T + 3][...].astype(jnp.float32)
        elif id_mode == 2:     # projected residual: fused 1x1 downsample matmul
            id_acc = jnp.dot(refs[T + 3][...], refs[T + 4][...],
                             preferred_element_type=jnp.float32)
            y = y + id_acc * refs[T + 5][...] + refs[T + 6][...]

        if relu:
            y = jnp.maximum(y, 0.0)
        o_ref[...] = y.astype(o_ref.dtype)

    return kernel


def _make_max_kernel(T):
    def kernel(*refs):
        o_ref = refs[-1]
        m = refs[0][...].astype(jnp.float32)
        for t in range(1, T):
            m = jnp.maximum(m, refs[t][...].astype(jnp.float32))
        o_ref[...] = m.astype(o_ref.dtype)
    return kernel


def fused_matmul(taps, w, scale, shift, *, relu, identity=None,
                 id_x=None, id_w=None, id_scale=None, id_shift=None,
                 out_dtype=_BF16):
    """taps: list of T (M, K) bf16 slabs; w: (T, K, N) bf16; scale/shift: (1, N) f32."""
    T = len(taps)
    M, K = taps[0].shape
    Tw, Kw, N = w.shape
    assert Tw == T and Kw == K, (w.shape, T, K)
    tm = _choose_tm(M)

    in_specs = [pl.BlockSpec((tm, K), lambda i: (i, 0)) for _ in range(T)]
    in_specs += [
        pl.BlockSpec((T, K, N), lambda i: (0, 0, 0)),
        pl.BlockSpec((1, N), lambda i: (0, 0)),
        pl.BlockSpec((1, N), lambda i: (0, 0)),
    ]
    args = list(taps) + [w, scale, shift]

    id_mode = 0
    if identity is not None:
        id_mode = 1
        in_specs.append(pl.BlockSpec((tm, N), lambda i: (i, 0)))
        args.append(identity)
    elif id_x is not None:
        id_mode = 2
        Kid = id_x.shape[1]
        in_specs += [
            pl.BlockSpec((tm, Kid), lambda i: (i, 0)),
            pl.BlockSpec((Kid, N), lambda i: (0, 0)),
            pl.BlockSpec((1, N), lambda i: (0, 0)),
            pl.BlockSpec((1, N), lambda i: (0, 0)),
        ]
        args += [id_x, id_w, id_scale, id_shift]

    return pl.pallas_call(
        _make_fused_matmul_kernel(T, relu, id_mode),
        out_shape=jax.ShapeDtypeStruct((M, N), out_dtype),
        grid=(M // tm,),
        in_specs=in_specs,
        out_specs=pl.BlockSpec((tm, N), lambda i: (i, 0)),
        compiler_params=pltpu.CompilerParams(dimension_semantics=("parallel",)),
    )(*args)


def maxpool3x3_s2_p1(x):
    """MaxPool2d(kernel=3, stride=2, padding=1) on NHWC; 9 taps reduced in-kernel."""
    B, H, W, C = x.shape
    xp = jnp.pad(x, ((0, 0), (1, 1), (1, 1), (0, 0)), constant_values=-jnp.inf)
    Ho = (H - 1) // 2 + 1
    Wo = (W - 1) // 2 + 1
    M = B * Ho * Wo
    taps = [xp[:, i:i + 2 * Ho:2, j:j + 2 * Wo:2, :].reshape(M, C)
            for i in range(3) for j in range(3)]
    tm = _choose_tm(M)
    y = pl.pallas_call(
        _make_max_kernel(len(taps)),
        out_shape=jax.ShapeDtypeStruct((M, C), x.dtype),
        grid=(M // tm,),
        in_specs=[pl.BlockSpec((tm, C), lambda i: (i, 0)) for _ in taps],
        out_specs=pl.BlockSpec((tm, C), lambda i: (i, 0)),
        compiler_params=pltpu.CompilerParams(dimension_semantics=("parallel",)),
    )(*taps)
    return y.reshape(B, Ho, Wo, C)


# -----------------------------------------------------------------------------
# Conv glue (tap views only; no im2col concat for the 3x3 convs)
# -----------------------------------------------------------------------------
def _conv3x3_taps(x, stride):
    B, H, W, C = x.shape
    xp = jnp.pad(x, ((0, 0), (1, 1), (1, 1), (0, 0)))
    Ho = (H - 1) // stride + 1
    Wo = (W - 1) // stride + 1
    M = B * Ho * Wo
    taps = [xp[:, i:i + stride * Ho:stride, j:j + stride * Wo:stride, :].reshape(M, C)
            for i in range(3) for j in range(3)]
    return taps, (Ho, Wo)


def _conv1_patches(x, k_pad=64):
    """7x7 stride-2 pad-3 im2col on the 1-channel input (cheap: Cin=1), K padded."""
    B, H, W, _ = x.shape
    xp = jnp.pad(x, ((0, 0), (3, 3), (3, 3), (0, 0)))
    Ho = (H - 1) // 2 + 1
    Wo = (W - 1) // 2 + 1
    cols = [xp[:, i:i + 2 * Ho:2, j:j + 2 * Wo:2, :]
            for i in range(7) for j in range(7)]
    patches = jnp.concatenate(cols, axis=-1)           # (B, Ho, Wo, 49)
    patches = _pad_to(patches, 3, k_pad)               # (B, Ho, Wo, 64)
    return patches.reshape(B * Ho * Wo, k_pad), (Ho, Wo)


# -----------------------------------------------------------------------------
# Parameter preparation (weight layouts / folded BN done ONCE here)
# -----------------------------------------------------------------------------
def _bn_fold(c):
    gamma = jnp.ones((c,), jnp.float32)
    beta = jnp.zeros((c,), jnp.float32)
    mean = jnp.zeros((c,), jnp.float32)
    var = jnp.ones((c,), jnp.float32)
    scale = gamma / jnp.sqrt(var + _BN_EPS)
    shift = beta - mean * scale
    return scale, shift


def _prep_conv3x3(w_oihw, bn_scale, bn_shift, cin_pad, cout_pad):
    cout, cin, kh, kw = w_oihw.shape
    wt = jnp.transpose(w_oihw, (2, 3, 1, 0)).reshape(kh * kw, cin, cout)
    wt = _pad_to(_pad_to(wt, 1, cin_pad), 2, cout_pad).astype(_BF16)
    s = _pad_vec(bn_scale, cout_pad, 1.0).reshape(1, cout_pad)
    b = _pad_vec(bn_shift, cout_pad, 0.0).reshape(1, cout_pad)
    return {"w": wt, "s": s, "b": b}


def _prep_conv1(w_oihw, bn_scale, bn_shift, k_pad, cout_pad):
    cout, cin, kh, kw = w_oihw.shape                   # (64, 1, 7, 7)
    wt = jnp.transpose(w_oihw, (2, 3, 1, 0)).reshape(kh * kw * cin, cout)
    wt = _pad_to(_pad_to(wt, 0, k_pad), 1, cout_pad)
    wt = wt.reshape(1, k_pad, cout_pad).astype(_BF16)
    s = _pad_vec(bn_scale, cout_pad, 1.0).reshape(1, cout_pad)
    b = _pad_vec(bn_shift, cout_pad, 0.0).reshape(1, cout_pad)
    return {"w": wt, "s": s, "b": b}


def _prep_conv1x1(w_oihw, bn_scale, bn_shift, cin_pad, cout_pad):
    wt = jnp.transpose(w_oihw[:, :, 0, 0], (1, 0))     # (cin, cout)
    wt = _pad_to(_pad_to(wt, 0, cin_pad), 1, cout_pad).astype(_BF16)
    s = _pad_vec(bn_scale, cout_pad, 1.0).reshape(1, cout_pad)
    b = _pad_vec(bn_shift, cout_pad, 0.0).reshape(1, cout_pad)
    return {"w": wt, "s": s, "b": b}


def _prep_deconv(w_iohw, bias, bn_scale, bn_shift, cin_pad, cout_pad):
    cin, cout, kh, kw = w_iohw.shape                   # kh == kw == 2
    wt = jnp.transpose(w_iohw, (0, 2, 3, 1))           # (cin, 2, 2, cout)
    wt = _pad_to(wt, 3, cout_pad).reshape(cin, kh * kw * cout_pad)
    wt = _pad_to(wt, 0, cin_pad).reshape(1, cin_pad, kh * kw * cout_pad).astype(_BF16)
    sc = _pad_vec(bn_scale, cout_pad, 1.0)
    sh = _pad_vec(bn_scale * bias + bn_shift, cout_pad, 0.0)   # fold bias into BN shift
    s = jnp.tile(sc, kh * kw).reshape(1, kh * kw * cout_pad)
    b = jnp.tile(sh, kh * kw).reshape(1, kh * kw * cout_pad)
    return {"w": wt, "s": s, "b": b}


def init_params(key):
    keys = iter(jax.random.split(key, 32))

    def w(shape):
        return jax.random.normal(next(keys), shape, jnp.float32) * 0.05

    p = {}
    # ResNet18 stem (conv1 weight summed over RGB -> single input channel)
    p["conv1"] = _prep_conv1(w((64, 1, 7, 7)), *_bn_fold(64), k_pad=64, cout_pad=CPAD)

    # layer1: 2 BasicBlocks, 64 ch, stride 1 (channels padded to 128)
    p["layer1"] = []
    for _ in range(2):
        p["layer1"].append({
            "c1": _prep_conv3x3(w((64, 64, 3, 3)), *_bn_fold(64), CPAD, CPAD),
            "c2": _prep_conv3x3(w((64, 64, 3, 3)), *_bn_fold(64), CPAD, CPAD),
        })

    # layer2: 2 BasicBlocks, 128 ch, first block stride 2 with 1x1 downsample
    blk0 = {
        "c1": _prep_conv3x3(w((128, 64, 3, 3)), *_bn_fold(128), CPAD, CPAD),
        "c2": _prep_conv3x3(w((128, 128, 3, 3)), *_bn_fold(128), CPAD, CPAD),
        "ds": _prep_conv1x1(w((128, 64, 1, 1)), *_bn_fold(128), CPAD, CPAD),
    }
    blk1 = {
        "c1": _prep_conv3x3(w((128, 128, 3, 3)), *_bn_fold(128), CPAD, CPAD),
        "c2": _prep_conv3x3(w((128, 128, 3, 3)), *_bn_fold(128), CPAD, CPAD),
    }
    p["layer2"] = [blk0, blk1]

    # decoder: ConvTranspose2d(128->128)+BN+ReLU, (128->64)+BN+ReLU, (64->2)
    p["dec1"] = _prep_deconv(w((128, 128, 2, 2)), w((128,)), *_bn_fold(128), CPAD, CPAD)
    p["dec2"] = _prep_deconv(w((128, 64, 2, 2)), w((64,)), *_bn_fold(64), CPAD, CPAD)
    ones2 = jnp.ones((2,), jnp.float32)
    zeros2 = jnp.zeros((2,), jnp.float32)
    p["dec3"] = _prep_deconv(w((64, 2, 2, 2)), w((2,)), ones2, zeros2, CPAD, 32)
    return p


# -----------------------------------------------------------------------------
# Forward pass
# -----------------------------------------------------------------------------
def basic_block(x, bp, *, stride):
    """ResNet BasicBlock (eval-mode BN); residual (and downsample) fused into conv2."""
    B, H, W, C = x.shape
    taps1, (Ho, Wo) = _conv3x3_taps(x, stride)
    out = fused_matmul(taps1, bp["c1"]["w"], bp["c1"]["s"], bp["c1"]["b"], relu=True)
    taps2, _ = _conv3x3_taps(out.reshape(B, Ho, Wo, C), 1)
    if "ds" in bp:
        id_x = x[:, ::stride, ::stride, :].reshape(B * Ho * Wo, C)
        y = fused_matmul(taps2, bp["c2"]["w"], bp["c2"]["s"], bp["c2"]["b"], relu=True,
                         id_x=id_x, id_w=bp["ds"]["w"],
                         id_scale=bp["ds"]["s"], id_shift=bp["ds"]["b"])
    else:
        y = fused_matmul(taps2, bp["c2"]["w"], bp["c2"]["s"], bp["c2"]["b"], relu=True,
                         identity=x.reshape(B * H * W, C))
    return y.reshape(B, Ho, Wo, C)


def colorization_net_forward(x_nchw, p):
    B = x_nchw.shape[0]
    x = jnp.transpose(x_nchw, (0, 2, 3, 1)).astype(_BF16)      # NCHW -> NHWC, bf16

    # --- midlevel_resnet = resnet18 children[0:6] ---
    x2d, (Ho, Wo) = _conv1_patches(x)
    y = fused_matmul([x2d], p["conv1"]["w"], p["conv1"]["s"], p["conv1"]["b"], relu=True)
    x = y.reshape(B, Ho, Wo, CPAD)
    x = maxpool3x3_s2_p1(x)

    x = basic_block(x, p["layer1"][0], stride=1)
    x = basic_block(x, p["layer1"][1], stride=1)
    x = basic_block(x, p["layer2"][0], stride=2)
    x = basic_block(x, p["layer2"][1], stride=1)

    # --- decoder: 3x ConvTranspose2d(2x2, stride 2) as per-pixel matmuls.
    #     Pixel shuffles are deferred; one tiny transpose at the end builds NCHW. ---
    Bv, H1, W1, C = x.shape
    h = x.reshape(Bv * H1 * W1, C)
    h = fused_matmul([h], p["dec1"]["w"], p["dec1"]["s"], p["dec1"]["b"], relu=True)
    h = h.reshape(-1, CPAD)
    h = fused_matmul([h], p["dec2"]["w"], p["dec2"]["s"], p["dec2"]["b"], relu=True)
    h = h.reshape(-1, CPAD)
    h = fused_matmul([h], p["dec3"]["w"], p["dec3"]["s"], p["dec3"]["b"], relu=False,
                     out_dtype=jnp.float32)

    # rows: (b, h1, w1, d1i, d1j, d2i, d2j); cols: (d3i, d3j, c[0:32), 2 real channels)
    y = h.reshape(Bv, H1, W1, 2, 2, 2, 2, 2, 2, 32)[..., :2]
    y = jnp.transpose(y, (0, 9, 1, 3, 5, 7, 2, 4, 6, 8))
    return y.reshape(Bv, 2, H1 * 8, W1 * 8).astype(jnp.float32)


# -----------------------------------------------------------------------------
if __name__ == "__main__":
    key = jax.random.PRNGKey(0)
    # Grayscale input (conv1 weights were summed over RGB in the PyTorch module)
    x = jax.random.normal(key, (2, 1, 32, 32), jnp.float32)
    params = init_params(jax.random.PRNGKey(42))

    fwd = jax.jit(colorization_net_forward)
    out = jax.block_until_ready(fwd(x, params))

    assert out.shape == (2, 2, 32, 32), out.shape
    assert out.dtype == jnp.float32
    print("KERNEL_OK")
</pallas_src>

<mosaic_0001>
module attributes {stable_mosaic.version = 11 : i64} {
  func.func @kernel(%arg0: i32, %arg1: memref<256x64xbf16, #tpu.memory_space<vmem>>, %arg2: memref<1x64x128xbf16, #tpu.memory_space<vmem>>, %arg3: memref<1x128xf32, #tpu.memory_space<vmem>>, %arg4: memref<1x128xf32, #tpu.memory_space<vmem>>, %arg5: memref<256x128xbf16, #tpu.memory_space<vmem>>) attributes {dimension_semantics = [#tpu.dimension_semantics<parallel>], iteration_bounds = array<i64: 2>, scalar_prefetch = 0 : i64, scratch_operands = 0 : i64, tpu.core_type = #tpu.core_type<tc>, window_params = [{transform_indices = @transform_0, window_bounds = array<i64: 256, 64>}, {pipeline_mode = #tpu.pipeline_mode<synchronous>, transform_indices = @transform_1, window_bounds = array<i64: 1, 64, 128>}, {pipeline_mode = #tpu.pipeline_mode<synchronous>, transform_indices = @transform_2, window_bounds = array<i64: 1, 128>}, {pipeline_mode = #tpu.pipeline_mode<synchronous>, transform_indices = @transform_3, window_bounds = array<i64: 1, 128>}, {transform_indices = @transform_4, window_bounds = array<i64: 256, 128>}]} {
    %c0 = arith.constant 0 : index
    %c0_0 = arith.constant 0 : index
    %0 = vector.load %arg1[%c0, %c0_0] : memref<256x64xbf16, #tpu.memory_space<vmem>>, vector<256x64xbf16>
    %c0_1 = arith.constant 0 : index
    %c0_2 = arith.constant 0 : index
    %c0_3 = arith.constant 0 : index
    %1 = vector.load %arg2[%c0_1, %c0_2, %c0_3] : memref<1x64x128xbf16, #tpu.memory_space<vmem>>, vector<1x64x128xbf16>
    %2 = vector.shape_cast %1 : vector<1x64x128xbf16> to vector<64x128xbf16>
    %cst = arith.constant dense<0.000000e+00> : vector<256x128xf32>
    %3 = tpu.matmul %0, %2, %cst {dimension_numbers = #tpu.dot_dimension_numbers<[1], [0], [0], [1], [0, 0, 1, 1], [], []>} : vector<256x64xbf16>, vector<64x128xbf16>, vector<256x128xf32> -> vector<256x128xf32>
    %c0_4 = arith.constant 0 : index
    %c0_5 = arith.constant 0 : index
    %4 = vector.load %arg3[%c0_4, %c0_5] : memref<1x128xf32, #tpu.memory_space<vmem>>, vector<1x128xf32>
    %5 = vector.broadcast %4 : vector<1x128xf32> to vector<256x128xf32>
    %6 = arith.mulf %3, %5 : vector<256x128xf32>
    %c0_6 = arith.constant 0 : index
    %c0_7 = arith.constant 0 : index
    %7 = vector.load %arg4[%c0_6, %c0_7] : memref<1x128xf32, #tpu.memory_space<vmem>>, vector<1x128xf32>
    %8 = vector.broadcast %7 : vector<1x128xf32> to vector<256x128xf32>
    %9 = arith.addf %6, %8 : vector<256x128xf32>
    %cst_8 = arith.constant 0.000000e+00 : f32
    %10 = vector.broadcast %cst_8 : f32 to vector<256x128xf32>
    %11 = arith.maximumf %9, %10 : vector<256x128xf32>
    %12 = arith.truncf %11 : vector<256x128xf32> to vector<256x128xbf16>
    %c0_9 = arith.constant 0 : index
    %c0_10 = arith.constant 0 : index
    %13 = vector.load %arg5[%c0_9, %c0_10] : memref<256x128xbf16, #tpu.memory_space<vmem>>, vector<256x128xbf16>
    tpu.vector_store %arg5[%c0_9, %c0_10], %12 {strides = array<i32>} : memref<256x128xbf16, #tpu.memory_space<vmem>>, vector<256x128xbf16>,
    return
  }
  func.func @transform_0(%arg0: i32) -> (i32, i32) {
    %c0_i32 = arith.constant 0 : i32
    %c0_i32_0 = arith.constant 0 : i32
    return %arg0, %c0_i32 : i32, i32
  }
  func.func @transform_1(%arg0: i32) -> (i32, i32, i32) {
    %c0_i32 = arith.constant 0 : i32
    %c0_i32_0 = arith.constant 0 : i32
    %c0_i32_1 = arith.constant 0 : i32
    %c0_i32_2 = arith.constant 0 : i32
    return %c0_i32, %c0_i32_0, %c0_i32_1 : i32, i32, i32
  }
  func.func @transform_2(%arg0: i32) -> (i32, i32) {
    %c0_i32 = arith.constant 0 : i32
    %c0_i32_0 = arith.constant 0 : i32
    %c0_i32_1 = arith.constant 0 : i32
    return %c0_i32, %c0_i32_0 : i32, i32
  }
  func.func @transform_3(%arg0: i32) -> (i32, i32) {
    %c0_i32 = arith.constant 0 : i32
    %c0_i32_0 = arith.constant 0 : i32
    %c0_i32_1 = arith.constant 0 : i32
    return %c0_i32, %c0_i32_0 : i32, i32
  }
  func.func @transform_4(%arg0: i32) -> (i32, i32) {
    %c0_i32 = arith.constant 0 : i32
    %c0_i32_0 = arith.constant 0 : i32
    return %arg0, %c0_i32 : i32, i32
  }
}

module attributes {stable_mosaic.version = 11 : i64} {
  func.func @kernel(%arg0: i32, %arg1: memref<64x128xbf16, #tpu.memory_space<vmem>>, %arg2: memref<64x128xbf16, #tpu.memory_space<vmem>>, %arg3: memref<64x128xbf16, #tpu.memory_space<vmem>>, %arg4: memref<64x128xbf16, #tpu.memory_space<vmem>>, %arg5: memref<64x128xbf16, #tpu.memory_space<vmem>>, %arg6: memref<64x128xbf16, #tpu.memory_space<vmem>>, %arg7: memref<64x128xbf16, #tpu.memory_space<vmem>>, %arg8: memref<64x128xbf16, #tpu.memory_space<vmem>>, %arg9: memref<64x128xbf16, #tpu.memory_space<vmem>>, %arg10: memref<9x128x128xbf16, #tpu.memory_space<vmem>>, %arg11: memref<1x128xf32, #tpu.memory_space<vmem>>, %arg12: memref<1x128xf32, #tpu.memory_space<vmem>>, %arg13: memref<64x128xbf16, #tpu.memory_space<vmem>>) attributes {dimension_semantics = [#tpu.dimension_semantics<parallel>], iteration_bounds = array<i64: 2>, scalar_prefetch = 0 : i64, scratch_operands = 0 : i64, tpu.core_type = #tpu.core_type<tc>, window_params = [{transform_indices = @transform_0, window_bounds = array<i64: 64, 128>}, {transform_indices = @transform_1, window_bounds = array<i64: 64, 128>}, {transform_indices = @transform_2, window_bounds = array<i64: 64, 128>}, {transform_indices = @transform_3, window_bounds = array<i64: 64, 128>}, {transform_indices = @transform_4, window_bounds = array<i64: 64, 128>}, {transform_indices = @transform_5, window_bounds = array<i64: 64, 128>}, {transform_indices = @transform_6, window_bounds = array<i64: 64, 128>}, {transform_indices = @transform_7, window_bounds = array<i64: 64, 128>}, {transform_indices = @transform_8, window_bounds = array<i64: 64, 128>}, {pipeline_mode = #tpu.pipeline_mode<synchronous>, transform_indices = @transform_9, window_bounds = array<i64: 9, 128, 128>}, {pipeline_mode = #tpu.pipeline_mode<synchronous>, transform_indices = @transform_10, window_bounds = array<i64: 1, 128>}, {pipeline_mode = #tpu.pipeline_mode<synchronous>, transform_indices = @transform_11, window_bounds = array<i64: 1, 128>}, {transform_indices = @transform_12, window_bounds = array<i64: 64, 128>}]} {
    %c0 = arith.constant 0 : index
    %c0_0 = arith.constant 0 : index
    %0 = vector.load %arg1[%c0, %c0_0] : memref<64x128xbf16, #tpu.memory_space<vmem>>, vector<64x128xbf16>
    %c0_1 = arith.constant 0 : index
    %c0_2 = arith.constant 0 : index
    %c0_3 = arith.constant 0 : index
    %1 = vector.load %arg10[%c0_1, %c0_2, %c0_3] : memref<9x128x128xbf16, #tpu.memory_space<vmem>>, vector<1x128x128xbf16>
    %2 = vector.shape_cast %1 : vector<1x128x128xbf16> to vector<128x128xbf16>
    %cst = arith.constant dense<0.000000e+00> : vector<64x128xf32>
    %3 = tpu.matmul %0, %2, %cst {dimension_numbers = #tpu.dot_dimension_numbers<[1], [0], [0], [1], [0, 0, 1, 1], [], []>} : vector<64x128xbf16>, vector<128x128xbf16>, vector<64x128xf32> -> vector<64x128xf32>
    %c0_4 = arith.constant 0 : index
    %c0_5 = arith.constant 0 : index
    %4 = vector.load %arg2[%c0_4, %c0_5] : memref<64x128xbf16, #tpu.memory_space<vmem>>, vector<64x128xbf16>
    %c1 = arith.constant 1 : index
    %c0_6 = arith.constant 0 : index
    %c0_7 = arith.constant 0 : index
    %5 = vector.load %arg10[%c1, %c0_6, %c0_7] : memref<9x128x128xbf16, #tpu.memory_space<vmem>>, vector<1x128x128xbf16>
    %6 = vector.shape_cast %5 : vector<1x128x128xbf16> to vector<128x128xbf16>
    %cst_8 = arith.constant dense<0.000000e+00> : vector<64x128xf32>
    %7 = tpu.matmul %4, %6, %cst_8 {dimension_numbers = #tpu.dot_dimension_numbers<[1], [0], [0], [1], [0, 0, 1, 1], [], []>} : vector<64x128xbf16>, vector<128x128xbf16>, vector<64x128xf32> -> vector<64x128xf32>
    %8 = arith.addf %3, %7 : vector<64x128xf32>
    %c0_9 = arith.constant 0 : index
    %c0_10 = arith.constant 0 : index
    %9 = vector.load %arg3[%c0_9, %c0_10] : memref<64x128xbf16, #tpu.memory_space<vmem>>, vector<64x128xbf16>
    %c2 = arith.constant 2 : index
    %c0_11 = arith.constant 0 : index
    %c0_12 = arith.constant 0 : index
    %10 = vector.load %arg10[%c2, %c0_11, %c0_12] : memref<9x128x128xbf16, #tpu.memory_space<vmem>>, vector<1x128x128xbf16>
    %11 = vector.shape_cast %10 : vector<1x128x128xbf16> to vector<128x128xbf16>
    %cst_13 = arith.constant dense<0.000000e+00> : vector<64x128xf32>
    %12 = tpu.matmul %9, %11, %cst_13 {dimension_numbers = #tpu.dot_dimension_numbers<[1], [0], [0], [1], [0, 0, 1, 1], [], []>} : vector<64x128xbf16>, vector<128x128xbf16>, vector<64x128xf32> -> vector<64x128xf32>
    %13 = arith.addf %8, %12 : vector<64x128xf32>
    %c0_14 = arith.constant 0 : index
    %c0_15 = arith.constant 0 : index
    %14 = vector.load %arg4[%c0_14, %c0_15] : memref<64x128xbf16, #tpu.memory_space<vmem>>, vector<64x128xbf16>
    %c3 = arith.constant 3 : index
    %c0_16 = arith.constant 0 : index
    %c0_17 = arith.constant 0 : index
    %15 = vector.load %arg10[%c3, %c0_16, %c0_17] : memref<9x128x128xbf16, #tpu.memory_space<vmem>>, vector<1x128x128xbf16>
    %16 = vector.shape_cast %15 : vector<1x128x128xbf16> to vector<128x128xbf16>
    %cst_18 = arith.constant dense<0.000000e+00> : vector<64x128xf32>
    %17 = tpu.matmul %14, %16, %cst_18 {dimension_numbers = #tpu.dot_dimension_numbers<[1], [0], [0], [1], [0, 0, 1, 1], [], []>} : vector<64x128xbf16>, vector<128x128xbf16>, vector<64x128xf32> -> vector<64x128xf32>
    %18 = arith.addf %13, %17 : vector<64x128xf32>
    %c0_19 = arith.constant 0 : index
    %c0_20 = arith.constant 0 : index
    %19 = vector.load %arg5[%c0_19, %c0_20] : memref<64x128xbf16, #tpu.memory_space<vmem>>, vector<64x128xbf16>
    %c4 = arith.constant 4 : index
    %c0_21 = arith.constant 0 : index
    %c0_22 = arith.constant 0 : index
    %20 = vector.load %arg10[%c4, %c0_21, %c0_22] : memref<9x128x128xbf16, #tpu.memory_space<vmem>>, vector<1x128x128xbf16>
    %21 = vector.shape_cast %20 : vector<1x128x128xbf16> to vector<128x128xbf16>
    %cst_23 = arith.constant dense<0.000000e+00> : vector<64x128xf32>
    %22 = tpu.matmul %19, %21, %cst_23 {dimension_numbers = #tpu.dot_dimension_numbers<[1], [0], [0], [1], [0, 0, 1, 1], [], []>} : vector<64x128xbf16>, vector<128x128xbf16>, vector<64x128xf32> -> vector<64x128xf32>
    %23 = arith.addf %18, %22 : vector<64x128xf32>
    %c0_24 = arith.constant 0 : index
    %c0_25 = arith.constant 0 : index
    %24 = vector.load %arg6[%c0_24, %c0_25] : memref<64x128xbf16, #tpu.memory_space<vmem>>, vector<64x128xbf16>
    %c5 = arith.constant 5 : index
    %c0_26 = arith.constant 0 : index
    %c0_27 = arith.constant 0 : index
    %25 = vector.load %arg10[%c5, %c0_26, %c0_27] : memref<9x128x128xbf16, #tpu.memory_space<vmem>>, vector<1x128x128xbf16>
    %26 = vector.shape_cast %25 : vector<1x128x128xbf16> to vector<128x128xbf16>
    %cst_28 = arith.constant dense<0.000000e+00> : vector<64x128xf32>
    %27 = tpu.matmul %24, %26, %cst_28 {dimension_numbers = #tpu.dot_dimension_numbers<[1], [0], [0], [1], [0, 0, 1, 1], [], []>} : vector<64x128xbf16>, vector<128x128xbf16>, vector<64x128xf32> -> vector<64x128xf32>
    %28 = arith.addf %23, %27 : vector<64x128xf32>
    %c0_29 = arith.constant 0 : index
    %c0_30 = arith.constant 0 : index
    %29 = vector.load %arg7[%c0_29, %c0_30] : memref<64x128xbf16, #tpu.memory_space<vmem>>, vector<64x128xbf16>
    %c6 = arith.constant 6 : index
    %c0_31 = arith.constant 0 : index
    %c0_32 = arith.constant 0 : index
    %30 = vector.load %arg10[%c6, %c0_31, %c0_32] : memref<9x128x128xbf16, #tpu.memory_space<vmem>>, vector<1x128x128xbf16>
    %31 = vector.shape_cast %30 : vector<1x128x128xbf16> to vector<128x128xbf16>
    %cst_33 = arith.constant dense<0.000000e+00> : vector<64x128xf32>
    %32 = tpu.matmul %29, %31, %cst_33 {dimension_numbers = #tpu.dot_dimension_numbers<[1], [0], [0], [1], [0, 0, 1, 1], [], []>} : vector<64x128xbf16>, vector<128x128xbf16>, vector<64x128xf32> -> vector<64x128xf32>
    %33 = arith.addf %28, %32 : vector<64x128xf32>
    %c0_34 = arith.constant 0 : index
    %c0_35 = arith.constant 0 : index
    %34 = vector.load %arg8[%c0_34, %c0_35] : memref<64x128xbf16, #tpu.memory_space<vmem>>, vector<64x128xbf16>
    %c7 = arith.constant 7 : index
    %c0_36 = arith.constant 0 : index
    %c0_37 = arith.constant 0 : index
    %35 = vector.load %arg10[%c7, %c0_36, %c0_37] : memref<9x128x128xbf16, #tpu.memory_space<vmem>>, vector<1x128x128xbf16>
    %36 = vector.shape_cast %35 : vector<1x128x128xbf16> to vector<128x128xbf16>
    %cst_38 = arith.constant dense<0.000000e+00> : vector<64x128xf32>
    %37 = tpu.matmul %34, %36, %cst_38 {dimension_numbers = #tpu.dot_dimension_numbers<[1], [0], [0], [1], [0, 0, 1, 1], [], []>} : vector<64x128xbf16>, vector<128x128xbf16>, vector<64x128xf32> -> vector<64x128xf32>
    %38 = arith.addf %33, %37 : vector<64x128xf32>
    %c0_39 = arith.constant 0 : index
    %c0_40 = arith.constant 0 : index
    %39 = vector.load %arg9[%c0_39, %c0_40] : memref<64x128xbf16, #tpu.memory_space<vmem>>, vector<64x128xbf16>
    %c8 = arith.constant 8 : index
    %c0_41 = arith.constant 0 : index
    %c0_42 = arith.constant 0 : index
    %40 = vector.load %arg10[%c8, %c0_41, %c0_42] : memref<9x128x128xbf16, #tpu.memory_space<vmem>>, vector<1x128x128xbf16>
    %41 = vector.shape_cast %40 : vector<1x128x128xbf16> to vector<128x128xbf16>
    %cst_43 = arith.constant dense<0.000000e+00> : vector<64x128xf32>
    %42 = tpu.matmul %39, %41, %cst_43 {dimension_numbers = #tpu.dot_dimension_numbers<[1], [0], [0], [1], [0, 0, 1, 1], [], []>} : vector<64x128xbf16>, vector<128x128xbf16>, vector<64x128xf32> -> vector<64x128xf32>
    %43 = arith.addf %38, %42 : vector<64x128xf32>
    %c0_44 = arith.constant 0 : index
    %c0_45 = arith.constant 0 : index
    %44 = vector.load %arg11[%c0_44, %c0_45] : memref<1x128xf32, #tpu.memory_space<vmem>>, vector<1x128xf32>
    %45 = vector.broadcast %44 : vector<1x128xf32> to vector<64x128xf32>
    %46 = arith.mulf %43, %45 : vector<64x128xf32>
    %c0_46 = arith.constant 0 : index
    %c0_47 = arith.constant 0 : index
    %47 = vector.load %arg12[%c0_46, %c0_47] : memref<1x128xf32, #tpu.memory_space<vmem>>, vector<1x128xf32>
    %48 = vector.broadcast %47 : vector<1x128xf32> to vector<64x128xf32>
    %49 = arith.addf %46, %48 : vector<64x128xf32>
    %cst_48 = arith.constant 0.000000e+00 : f32
    %50 = vector.broadcast %cst_48 : f32 to vector<64x128xf32>
    %51 = arith.maximumf %49, %50 : vector<64x128xf32>
    %52 = arith.truncf %51 : vector<64x128xf32> to vector<64x128xbf16>
    %c0_49 = arith.constant 0 : index
    %c0_50 = arith.constant 0 : index
    %53 = vector.load %arg13[%c0_49, %c0_50] : memref<64x128xbf16, #tpu.memory_space<vmem>>, vector<64x128xbf16>
    tpu.vector_store %arg13[%c0_49, %c0_50], %52 {strides = array<i32>} : memref<64x128xbf16, #tpu.memory_space<vmem>>, vector<64x128xbf16>,
    return
  }
  func.func @transform_0(%arg0: i32) -> (i32, i32) {
    %c0_i32 = arith.constant 0 : i32
    %c0_i32_0 = arith.constant 0 : i32
    return %arg0, %c0_i32 : i32, i32
  }
  func.func @transform_1(%arg0: i32) -> (i32, i32) {
    %c0_i32 = arith.constant 0 : i32
    %c0_i32_0 = arith.constant 0 : i32
    return %arg0, %c0_i32 : i32, i32
  }
  func.func @transform_2(%arg0: i32) -> (i32, i32) {
    %c0_i32 = arith.constant 0 : i32
    %c0_i32_0 = arith.constant 0 : i32
    return %arg0, %c0_i32 : i32, i32
  }
  func.func @transform_3(%arg0: i32) -> (i32, i32) {
    %c0_i32 = arith.constant 0 : i32
    %c0_i32_0 = arith.constant 0 : i32
    return %arg0, %c0_i32 : i32, i32
  }
  func.func @transform_4(%arg0: i32) -> (i32, i32) {
    %c0_i32 = arith.constant 0 : i32
    %c0_i32_0 = arith.constant 0 : i32
    return %arg0, %c0_i32 : i32, i32
  }
  func.func @transform_5(%arg0: i32) -> (i32, i32) {
    %c0_i32 = arith.constant 0 : i32
    %c0_i32_0 = arith.constant 0 : i32
    return %arg0, %c0_i32 : i32, i32
  }
  func.func @transform_6(%arg0: i32) -> (i32, i32) {
    %c0_i32 = arith.constant 0 : i32
    %c0_i32_0 = arith.constant 0 : i32
    return %arg0, %c0_i32 : i32, i32
  }
  func.func @transform_7(%arg0: i32) -> (i32, i32) {
    %c0_i32 = arith.constant 0 : i32
    %c0_i32_0 = arith.constant 0 : i32
    return %arg0, %c0_i32 : i32, i32
  }
  func.func @transform_8(%arg0: i32) -> (i32, i32) {
    %c0_i32 = arith.constant 0 : i32
    %c0_i32_0 = arith.constant 0 : i32
    return %arg0, %c0_i32 : i32, i32
  }
  func.func @transform_9(%arg0: i32) -> (i32, i32, i32) {
    %c0_i32 = arith.constant 0 : i32
    %c0_i32_0 = arith.constant 0 : i32
    %c0_i32_1 = arith.constant 0 : i32
    %c0_i32_2 = arith.constant 0 : i32
    return %c0_i32, %c0_i32_0, %c0_i32_1 : i32, i32, i32
  }
  func.func @transform_10(%arg0: i32) -> (i32, i32) {
    %c0_i32 = arith.constant 0 : i32
    %c0_i32_0 = arith.constant 0 : i32
    %c0_i32_1 = arith.constant 0 : i32
    return %c0_i32, %c0_i32_0 : i32, i32
  }
  func.func @transform_11(%arg0: i32) -> (i32, i32) {
    %c0_i32 = arith.constant 0 : i32
    %c0_i32_0 = arith.constant 0 : i32
    %c0_i32_1 = arith.constant 0 : i32
    return %c0_i32, %c0_i32_0 : i32, i32
  }
  func.func @transform_12(%arg0: i32) -> (i32, i32) {
    %c0_i32 = arith.constant 0 : i32
    %c0_i32_0 = arith.constant 0 : i32
    return %arg0, %c0_i32 : i32, i32
  }
}

module attributes {stable_mosaic.version = 11 : i64} {
  func.func @kernel(%arg0: i32, %arg1: memref<64x128xbf16, #tpu.memory_space<vmem>>, %arg2: memref<64x128xbf16, #tpu.memory_space<vmem>>, %arg3: memref<64x128xbf16, #tpu.memory_space<vmem>>, %arg4: memref<64x128xbf16, #tpu.memory_space<vmem>>, %arg5: memref<64x128xbf16, #tpu.memory_space<vmem>>, %arg6: memref<64x128xbf16, #tpu.memory_space<vmem>>, %arg7: memref<64x128xbf16, #tpu.memory_space<vmem>>, %arg8: memref<64x128xbf16, #tpu.memory_space<vmem>>, %arg9: memref<64x128xbf16, #tpu.memory_space<vmem>>, %arg10: memref<64x128xbf16, #tpu.memory_space<vmem>>) attributes {dimension_semantics = [#tpu.dimension_semantics<parallel>], iteration_bounds = array<i64: 2>, scalar_prefetch = 0 : i64, scratch_operands = 0 : i64, tpu.core_type = #tpu.core_type<tc>, window_params = [{transform_indices = @transform_0, window_bounds = array<i64: 64, 128>}, {transform_indices = @transform_1, window_bounds = array<i64: 64, 128>}, {transform_indices = @transform_2, window_bounds = array<i64: 64, 128>}, {transform_indices = @transform_3, window_bounds = array<i64: 64, 128>}, {transform_indices = @transform_4, window_bounds = array<i64: 64, 128>}, {transform_indices = @transform_5, window_bounds = array<i64: 64, 128>}, {transform_indices = @transform_6, window_bounds = array<i64: 64, 128>}, {transform_indices = @transform_7, window_bounds = array<i64: 64, 128>}, {transform_indices = @transform_8, window_bounds = array<i64: 64, 128>}, {transform_indices = @transform_9, window_bounds = array<i64: 64, 128>}]} {
    %c0 = arith.constant 0 : index
    %c0_0 = arith.constant 0 : index
    %0 = vector.load %arg1[%c0, %c0_0] : memref<64x128xbf16, #tpu.memory_space<vmem>>, vector<64x128xbf16>
    %1 = arith.extf %0 : vector<64x128xbf16> to vector<64x128xf32>
    %c0_1 = arith.constant 0 : index
    %c0_2 = arith.constant 0 : index
    %2 = vector.load %arg2[%c0_1, %c0_2] : memref<64x128xbf16, #tpu.memory_space<vmem>>, vector<64x128xbf16>
    %3 = arith.extf %2 : vector<64x128xbf16> to vector<64x128xf32>
    %4 = arith.maximumf %1, %3 : vector<64x128xf32>
    %c0_3 = arith.constant 0 : index
    %c0_4 = arith.constant 0 : index
    %5 = vector.load %arg3[%c0_3, %c0_4] : memref<64x128xbf16, #tpu.memory_space<vmem>>, vector<64x128xbf16>
    %6 = arith.extf %5 : vector<64x128xbf16> to vector<64x128xf32>
    %7 = arith.maximumf %4, %6 : vector<64x128xf32>
    %c0_5 = arith.constant 0 : index
    %c0_6 = arith.constant 0 : index
    %8 = vector.load %arg4[%c0_5, %c0_6] : memref<64x128xbf16, #tpu.memory_space<vmem>>, vector<64x128xbf16>
    %9 = arith.extf %8 : vector<64x128xbf16> to vector<64x128xf32>
    %10 = arith.maximumf %7, %9 : vector<64x128xf32>
    %c0_7 = arith.constant 0 : index
    %c0_8 = arith.constant 0 : index
    %11 = vector.load %arg5[%c0_7, %c0_8] : memref<64x128xbf16, #tpu.memory_space<vmem>>, vector<64x128xbf16>
    %12 = arith.extf %11 : vector<64x128xbf16> to vector<64x128xf32>
    %13 = arith.maximumf %10, %12 : vector<64x128xf32>
    %c0_9 = arith.constant 0 : index
    %c0_10 = arith.constant 0 : index
    %14 = vector.load %arg6[%c0_9, %c0_10] : memref<64x128xbf16, #tpu.memory_space<vmem>>, vector<64x128xbf16>
    %15 = arith.extf %14 : vector<64x128xbf16> to vector<64x128xf32>
    %16 = arith.maximumf %13, %15 : vector<64x128xf32>
    %c0_11 = arith.constant 0 : index
    %c0_12 = arith.constant 0 : index
    %17 = vector.load %arg7[%c0_11, %c0_12] : memref<64x128xbf16, #tpu.memory_space<vmem>>, vector<64x128xbf16>
    %18 = arith.extf %17 : vector<64x128xbf16> to vector<64x128xf32>
    %19 = arith.maximumf %16, %18 : vector<64x128xf32>
    %c0_13 = arith.constant 0 : index
    %c0_14 = arith.constant 0 : index
    %20 = vector.load %arg8[%c0_13, %c0_14] : memref<64x128xbf16, #tpu.memory_space<vmem>>, vector<64x128xbf16>
    %21 = arith.extf %20 : vector<64x128xbf16> to vector<64x128xf32>
    %22 = arith.maximumf %19, %21 : vector<64x128xf32>
    %c0_15 = arith.constant 0 : index
    %c0_16 = arith.constant 0 : index
    %23 = vector.load %arg9[%c0_15, %c0_16] : memref<64x128xbf16, #tpu.memory_space<vmem>>, vector<64x128xbf16>
    %24 = arith.extf %23 : vector<64x128xbf16> to vector<64x128xf32>
    %25 = arith.maximumf %22, %24 : vector<64x128xf32>
    %26 = arith.truncf %25 : vector<64x128xf32> to vector<64x128xbf16>
    %c0_17 = arith.constant 0 : index
    %c0_18 = arith.constant 0 : index
    %27 = vector.load %arg10[%c0_17, %c0_18] : memref<64x128xbf16, #tpu.memory_space<vmem>>, vector<64x128xbf16>
    tpu.vector_store %arg10[%c0_17, %c0_18], %26 {strides = array<i32>} : memref<64x128xbf16, #tpu.memory_space<vmem>>, vector<64x128xbf16>,
    return
  }
  func.func @transform_0(%arg0: i32) -> (i32, i32) {
    %c0_i32 = arith.constant 0 : i32
    %c0_i32_0 = arith.constant 0 : i32
    return %arg0, %c0_i32 : i32, i32
  }
  func.func @transform_1(%arg0: i32) -> (i32, i32) {
    %c0_i32 = arith.constant 0 : i32
    %c0_i32_0 = arith.constant 0 : i32
    return %arg0, %c0_i32 : i32, i32
  }
  func.func @transform_2(%arg0: i32) -> (i32, i32) {
    %c0_i32 = arith.constant 0 : i32
    %c0_i32_0 = arith.constant 0 : i32
    return %arg0, %c0_i32 : i32, i32
  }
  func.func @transform_3(%arg0: i32) -> (i32, i32) {
    %c0_i32 = arith.constant 0 : i32
    %c0_i32_0 = arith.constant 0 : i32
    return %arg0, %c0_i32 : i32, i32
  }
  func.func @transform_4(%arg0: i32) -> (i32, i32) {
    %c0_i32 = arith.constant 0 : i32
    %c0_i32_0 = arith.constant 0 : i32
    return %arg0, %c0_i32 : i32, i32
  }
  func.func @transform_5(%arg0: i32) -> (i32, i32) {
    %c0_i32 = arith.constant 0 : i32
    %c0_i32_0 = arith.constant 0 : i32
    return %arg0, %c0_i32 : i32, i32
  }
  func.func @transform_6(%arg0: i32) -> (i32, i32) {
    %c0_i32 = arith.constant 0 : i32
    %c0_i32_0 = arith.constant 0 : i32
    return %arg0, %c0_i32 : i32, i32
  }
  func.func @transform_7(%arg0: i32) -> (i32, i32) {
    %c0_i32 = arith.constant 0 : i32
    %c0_i32_0 = arith.constant 0 : i32
    return %arg0, %c0_i32 : i32, i32
  }
  func.func @transform_8(%arg0: i32) -> (i32, i32) {
    %c0_i32 = arith.constant 0 : i32
    %c0_i32_0 = arith.constant 0 : i32
    return %arg0, %c0_i32 : i32, i32
  }
  func.func @transform_9(%arg0: i32) -> (i32, i32) {
    %c0_i32 = arith.constant 0 : i32
    %c0_i32_0 = arith.constant 0 : i32
    return %arg0, %c0_i32 : i32, i32
  }
}

module attributes {stable_mosaic.version = 11 : i64} {
  func.func @kernel(%arg0: i32, %arg1: memref<64x128xbf16, #tpu.memory_space<vmem>>, %arg2: memref<64x128xbf16, #tpu.memory_space<vmem>>, %arg3: memref<64x128xbf16, #tpu.memory_space<vmem>>, %arg4: memref<64x128xbf16, #tpu.memory_space<vmem>>, %arg5: memref<64x128xbf16, #tpu.memory_space<vmem>>, %arg6: memref<64x128xbf16, #tpu.memory_space<vmem>>, %arg7: memref<64x128xbf16, #tpu.memory_space<vmem>>, %arg8: memref<64x128xbf16, #tpu.memory_space<vmem>>, %arg9: memref<64x128xbf16, #tpu.memory_space<vmem>>, %arg10: memref<9x128x128xbf16, #tpu.memory_space<vmem>>, %arg11: memref<1x128xf32, #tpu.memory_space<vmem>>, %arg12: memref<1x128xf32, #tpu.memory_space<vmem>>, %arg13: memref<64x128xbf16, #tpu.memory_space<vmem>>, %arg14: memref<64x128xbf16, #tpu.memory_space<vmem>>) attributes {dimension_semantics = [#tpu.dimension_semantics<parallel>], iteration_bounds = array<i64: 2>, scalar_prefetch = 0 : i64, scratch_operands = 0 : i64, tpu.core_type = #tpu.core_type<tc>, window_params = [{transform_indices = @transform_0, window_bounds = array<i64: 64, 128>}, {transform_indices = @transform_1, window_bounds = array<i64: 64, 128>}, {transform_indices = @transform_2, window_bounds = array<i64: 64, 128>}, {transform_indices = @transform_3, window_bounds = array<i64: 64, 128>}, {transform_indices = @transform_4, window_bounds = array<i64: 64, 128>}, {transform_indices = @transform_5, window_bounds = array<i64: 64, 128>}, {transform_indices = @transform_6, window_bounds = array<i64: 64, 128>}, {transform_indices = @transform_7, window_bounds = array<i64: 64, 128>}, {transform_indices = @transform_8, window_bounds = array<i64: 64, 128>}, {pipeline_mode = #tpu.pipeline_mode<synchronous>, transform_indices = @transform_9, window_bounds = array<i64: 9, 128, 128>}, {pipeline_mode = #tpu.pipeline_mode<synchronous>, transform_indices = @transform_10, window_bounds = array<i64: 1, 128>}, {pipeline_mode = #tpu.pipeline_mode<synchronous>, transform_indices = @transform_11, window_bounds = array<i64: 1, 128>}, {transform_indices = @transform_12, window_bounds = array<i64: 64, 128>}, {transform_indices = @transform_13, window_bounds = array<i64: 64, 128>}]} {
    %c0 = arith.constant 0 : index
    %c0_0 = arith.constant 0 : index
    %0 = vector.load %arg1[%c0, %c0_0] : memref<64x128xbf16, #tpu.memory_space<vmem>>, vector<64x128xbf16>
    %c0_1 = arith.constant 0 : index
    %c0_2 = arith.constant 0 : index
    %c0_3 = arith.constant 0 : index
    %1 = vector.load %arg10[%c0_1, %c0_2, %c0_3] : memref<9x128x128xbf16, #tpu.memory_space<vmem>>, vector<1x128x128xbf16>
    %2 = vector.shape_cast %1 : vector<1x128x128xbf16> to vector<128x128xbf16>
    %cst = arith.constant dense<0.000000e+00> : vector<64x128xf32>
    %3 = tpu.matmul %0, %2, %cst {dimension_numbers = #tpu.dot_dimension_numbers<[1], [0], [0], [1], [0, 0, 1, 1], [], []>} : vector<64x128xbf16>, vector<128x128xbf16>, vector<64x128xf32> -> vector<64x128xf32>
    %c0_4 = arith.constant 0 : index
    %c0_5 = arith.constant 0 : index
    %4 = vector.load %arg2[%c0_4, %c0_5] : memref<64x128xbf16, #tpu.memory_space<vmem>>, vector<64x128xbf16>
    %c1 = arith.constant 1 : index
    %c0_6 = arith.constant 0 : index
    %c0_7 = arith.constant 0 : index
    %5 = vector.load %arg10[%c1, %c0_6, %c0_7] : memref<9x128x128xbf16, #tpu.memory_space<vmem>>, vector<1x128x128xbf16>
    %6 = vector.shape_cast %5 : vector<1x128x128xbf16> to vector<128x128xbf16>
    %cst_8 = arith.constant dense<0.000000e+00> : vector<64x128xf32>
    %7 = tpu.matmul %4, %6, %cst_8 {dimension_numbers = #tpu.dot_dimension_numbers<[1], [0], [0], [1], [0, 0, 1, 1], [], []>} : vector<64x128xbf16>, vector<128x128xbf16>, vector<64x128xf32> -> vector<64x128xf32>
    %8 = arith.addf %3, %7 : vector<64x128xf32>
    %c0_9 = arith.constant 0 : index
    %c0_10 = arith.constant 0 : index
    %9 = vector.load %arg3[%c0_9, %c0_10] : memref<64x128xbf16, #tpu.memory_space<vmem>>, vector<64x128xbf16>
    %c2 = arith.constant 2 : index
    %c0_11 = arith.constant 0 : index
    %c0_12 = arith.constant 0 : index
    %10 = vector.load %arg10[%c2, %c0_11, %c0_12] : memref<9x128x128xbf16, #tpu.memory_space<vmem>>, vector<1x128x128xbf16>
    %11 = vector.shape_cast %10 : vector<1x128x128xbf16> to vector<128x128xbf16>
    %cst_13 = arith.constant dense<0.000000e+00> : vector<64x128xf32>
    %12 = tpu.matmul %9, %11, %cst_13 {dimension_numbers = #tpu.dot_dimension_numbers<[1], [0], [0], [1], [0, 0, 1, 1], [], []>} : vector<64x128xbf16>, vector<128x128xbf16>, vector<64x128xf32> -> vector<64x128xf32>
    %13 = arith.addf %8, %12 : vector<64x128xf32>
    %c0_14 = arith.constant 0 : index
    %c0_15 = arith.constant 0 : index
    %14 = vector.load %arg4[%c0_14, %c0_15] : memref<64x128xbf16, #tpu.memory_space<vmem>>, vector<64x128xbf16>
    %c3 = arith.constant 3 : index
    %c0_16 = arith.constant 0 : index
    %c0_17 = arith.constant 0 : index
    %15 = vector.load %arg10[%c3, %c0_16, %c0_17] : memref<9x128x128xbf16, #tpu.memory_space<vmem>>, vector<1x128x128xbf16>
    %16 = vector.shape_cast %15 : vector<1x128x128xbf16> to vector<128x128xbf16>
    %cst_18 = arith.constant dense<0.000000e+00> : vector<64x128xf32>
    %17 = tpu.matmul %14, %16, %cst_18 {dimension_numbers = #tpu.dot_dimension_numbers<[1], [0], [0], [1], [0, 0, 1, 1], [], []>} : vector<64x128xbf16>, vector<128x128xbf16>, vector<64x128xf32> -> vector<64x128xf32>
    %18 = arith.addf %13, %17 : vector<64x128xf32>
    %c0_19 = arith.constant 0 : index
    %c0_20 = arith.constant 0 : index
    %19 = vector.load %arg5[%c0_19, %c0_20] : memref<64x128xbf16, #tpu.memory_space<vmem>>, vector<64x128xbf16>
    %c4 = arith.constant 4 : index
    %c0_21 = arith.constant 0 : index
    %c0_22 = arith.constant 0 : index
    %20 = vector.load %arg10[%c4, %c0_21, %c0_22] : memref<9x128x128xbf16, #tpu.memory_space<vmem>>, vector<1x128x128xbf16>
    %21 = vector.shape_cast %20 : vector<1x128x128xbf16> to vector<128x128xbf16>
    %cst_23 = arith.constant dense<0.000000e+00> : vector<64x128xf32>
    %22 = tpu.matmul %19, %21, %cst_23 {dimension_numbers = #tpu.dot_dimension_numbers<[1], [0], [0], [1], [0, 0, 1, 1], [], []>} : vector<64x128xbf16>, vector<128x128xbf16>, vector<64x128xf32> -> vector<64x128xf32>
    %23 = arith.addf %18, %22 : vector<64x128xf32>
    %c0_24 = arith.constant 0 : index
    %c0_25 = arith.constant 0 : index
    %24 = vector.load %arg6[%c0_24, %c0_25] : memref<64x128xbf16, #tpu.memory_space<vmem>>, vector<64x128xbf16>
    %c5 = arith.constant 5 : index
    %c0_26 = arith.constant 0 : index
    %c0_27 = arith.constant 0 : index
    %25 = vector.load %arg10[%c5, %c0_26, %c0_27] : memref<9x128x128xbf16, #tpu.memory_space<vmem>>, vector<1x128x128xbf16>
    %26 = vector.shape_cast %25 : vector<1x128x128xbf16> to vector<128x128xbf16>
    %cst_28 = arith.constant dense<0.000000e+00> : vector<64x128xf32>
    %27 = tpu.matmul %24, %26, %cst_28 {dimension_numbers = #tpu.dot_dimension_numbers<[1], [0], [0], [1], [0, 0, 1, 1], [], []>} : vector<64x128xbf16>, vector<128x128xbf16>, vector<64x128xf32> -> vector<64x128xf32>
    %28 = arith.addf %23, %27 : vector<64x128xf32>
    %c0_29 = arith.constant 0 : index
    %c0_30 = arith.constant 0 : index
    %29 = vector.load %arg7[%c0_29, %c0_30] : memref<64x128xbf16, #tpu.memory_space<vmem>>, vector<64x128xbf16>
    %c6 = arith.constant 6 : index
    %c0_31 = arith.constant 0 : index
    %c0_32 = arith.constant 0 : index
    %30 = vector.load %arg10[%c6, %c0_31, %c0_32] : memref<9x128x128xbf16, #tpu.memory_space<vmem>>, vector<1x128x128xbf16>
    %31 = vector.shape_cast %30 : vector<1x128x128xbf16> to vector<128x128xbf16>
    %cst_33 = arith.constant dense<0.000000e+00> : vector<64x128xf32>
    %32 = tpu.matmul %29, %31, %cst_33 {dimension_numbers = #tpu.dot_dimension_numbers<[1], [0], [0], [1], [0, 0, 1, 1], [], []>} : vector<64x128xbf16>, vector<128x128xbf16>, vector<64x128xf32> -> vector<64x128xf32>
    %33 = arith.addf %28, %32 : vector<64x128xf32>
    %c0_34 = arith.constant 0 : index
    %c0_35 = arith.constant 0 : index
    %34 = vector.load %arg8[%c0_34, %c0_35] : memref<64x128xbf16, #tpu.memory_space<vmem>>, vector<64x128xbf16>
    %c7 = arith.constant 7 : index
    %c0_36 = arith.constant 0 : index
    %c0_37 = arith.constant 0 : index
    %35 = vector.load %arg10[%c7, %c0_36, %c0_37] : memref<9x128x128xbf16, #tpu.memory_space<vmem>>, vector<1x128x128xbf16>
    %36 = vector.shape_cast %35 : vector<1x128x128xbf16> to vector<128x128xbf16>
    %cst_38 = arith.constant dense<0.000000e+00> : vector<64x128xf32>
    %37 = tpu.matmul %34, %36, %cst_38 {dimension_numbers = #tpu.dot_dimension_numbers<[1], [0], [0], [1], [0, 0, 1, 1], [], []>} : vector<64x128xbf16>, vector<128x128xbf16>, vector<64x128xf32> -> vector<64x128xf32>
    %38 = arith.addf %33, %37 : vector<64x128xf32>
    %c0_39 = arith.constant 0 : index
    %c0_40 = arith.constant 0 : index
    %39 = vector.load %arg9[%c0_39, %c0_40] : memref<64x128xbf16, #tpu.memory_space<vmem>>, vector<64x128xbf16>
    %c8 = arith.constant 8 : index
    %c0_41 = arith.constant 0 : index
    %c0_42 = arith.constant 0 : index
    %40 = vector.load %arg10[%c8, %c0_41, %c0_42] : memref<9x128x128xbf16, #tpu.memory_space<vmem>>, vector<1x128x128xbf16>
    %41 = vector.shape_cast %40 : vector<1x128x128xbf16> to vector<128x128xbf16>
    %cst_43 = arith.constant dense<0.000000e+00> : vector<64x128xf32>
    %42 = tpu.matmul %39, %41, %cst_43 {dimension_numbers = #tpu.dot_dimension_numbers<[1], [0], [0], [1], [0, 0, 1, 1], [], []>} : vector<64x128xbf16>, vector<128x128xbf16>, vector<64x128xf32> -> vector<64x128xf32>
    %43 = arith.addf %38, %42 : vector<64x128xf32>
    %c0_44 = arith.constant 0 : index
    %c0_45 = arith.constant 0 : index
    %44 = vector.load %arg11[%c0_44, %c0_45] : memref<1x128xf32, #tpu.memory_space<vmem>>, vector<1x128xf32>
    %45 = vector.broadcast %44 : vector<1x128xf32> to vector<64x128xf32>
    %46 = arith.mulf %43, %45 : vector<64x128xf32>
    %c0_46 = arith.constant 0 : index
    %c0_47 = arith.constant 0 : index
    %47 = vector.load %arg12[%c0_46, %c0_47] : memref<1x128xf32, #tpu.memory_space<vmem>>, vector<1x128xf32>
    %48 = vector.broadcast %47 : vector<1x128xf32> to vector<64x128xf32>
    %49 = arith.addf %46, %48 : vector<64x128xf32>
    %c0_48 = arith.constant 0 : index
    %c0_49 = arith.constant 0 : index
    %50 = vector.load %arg13[%c0_48, %c0_49] : memref<64x128xbf16, #tpu.memory_space<vmem>>, vector<64x128xbf16>
    %51 = arith.extf %50 : vector<64x128xbf16> to vector<64x128xf32>
    %52 = arith.addf %49, %51 : vector<64x128xf32>
    %cst_50 = arith.constant 0.000000e+00 : f32
    %53 = vector.broadcast %cst_50 : f32 to vector<64x128xf32>
    %54 = arith.maximumf %52, %53 : vector<64x128xf32>
    %55 = arith.truncf %54 : vector<64x128xf32> to vector<64x128xbf16>
    %c0_51 = arith.constant 0 : index
    %c0_52 = arith.constant 0 : index
    %56 = vector.load %arg14[%c0_51, %c0_52] : memref<64x128xbf16, #tpu.memory_space<vmem>>, vector<64x128xbf16>
    tpu.vector_store %arg14[%c0_51, %c0_52], %55 {strides = array<i32>} : memref<64x128xbf16, #tpu.memory_space<vmem>>, vector<64x128xbf16>,
    return
  }
  func.func @transform_0(%arg0: i32) -> (i32, i32) {
    %c0_i32 = arith.constant 0 : i32
    %c0_i32_0 = arith.constant 0 : i32
    return %arg0, %c0_i32 : i32, i32
  }
  func.func @transform_1(%arg0: i32) -> (i32, i32) {
    %c0_i32 = arith.constant 0 : i32
    %c0_i32_0 = arith.constant 0 : i32
    return %arg0, %c0_i32 : i32, i32
  }
  func.func @transform_2(%arg0: i32) -> (i32, i32) {
    %c0_i32 = arith.constant 0 : i32
    %c0_i32_0 = arith.constant 0 : i32
    return %arg0, %c0_i32 : i32, i32
  }
  func.func @transform_3(%arg0: i32) -> (i32, i32) {
    %c0_i32 = arith.constant 0 : i32
    %c0_i32_0 = arith.constant 0 : i32
    return %arg0, %c0_i32 : i32, i32
  }
  func.func @transform_4(%arg0: i32) -> (i32, i32) {
    %c0_i32 = arith.constant 0 : i32
    %c0_i32_0 = arith.constant 0 : i32
    return %arg0, %c0_i32 : i32, i32
  }
  func.func @transform_5(%arg0: i32) -> (i32, i32) {
    %c0_i32 = arith.constant 0 : i32
    %c0_i32_0 = arith.constant 0 : i32
    return %arg0, %c0_i32 : i32, i32
  }
  func.func @transform_6(%arg0: i32) -> (i32, i32) {
    %c0_i32 = arith.constant 0 : i32
    %c0_i32_0 = arith.constant 0 : i32
    return %arg0, %c0_i32 : i32, i32
  }
  func.func @transform_7(%arg0: i32) -> (i32, i32) {
    %c0_i32 = arith.constant 0 : i32
    %c0_i32_0 = arith.constant 0 : i32
    return %arg0, %c0_i32 : i32, i32
  }
  func.func @transform_8(%arg0: i32) -> (i32, i32) {
    %c0_i32 = arith.constant 0 : i32
    %c0_i32_0 = arith.constant 0 : i32
    return %arg0, %c0_i32 : i32, i32
  }
  func.func @transform_9(%arg0: i32) -> (i32, i32, i32) {
    %c0_i32 = arith.constant 0 : i32
    %c0_i32_0 = arith.constant 0 : i32
    %c0_i32_1 = arith.constant 0 : i32
    %c0_i32_2 = arith.constant 0 : i32
    return %c0_i32, %c0_i32_0, %c0_i32_1 : i32, i32, i32
  }
  func.func @transform_10(%arg0: i32) -> (i32, i32) {
    %c0_i32 = arith.constant 0 : i32
    %c0_i32_0 = arith.constant 0 : i32
    %c0_i32_1 = arith.constant 0 : i32
    return %c0_i32, %c0_i32_0 : i32, i32
  }
  func.func @transform_11(%arg0: i32) -> (i32, i32) {
    %c0_i32 = arith.constant 0 : i32
    %c0_i32_0 = arith.constant 0 : i32
    %c0_i32_1 = arith.constant 0 : i32
    return %c0_i32, %c0_i32_0 : i32, i32
  }
  func.func @transform_12(%arg0: i32) -> (i32, i32) {
    %c0_i32 = arith.constant 0 : i32
    %c0_i32_0 = arith.constant 0 : i32
    return %arg0, %c0_i32 : i32, i32
  }
  func.func @transform_13(%arg0: i32) -> (i32, i32) {
    %c0_i32 = arith.constant 0 : i32
    %c0_i32_0 = arith.constant 0 : i32
    return %arg0, %c0_i32 : i32, i32
  }
}

module attributes {stable_mosaic.version = 11 : i64} {
  func.func @kernel(%arg0: i32, %arg1: memref<32x128xbf16, #tpu.memory_space<vmem>>, %arg2: memref<32x128xbf16, #tpu.memory_space<vmem>>, %arg3: memref<32x128xbf16, #tpu.memory_space<vmem>>, %arg4: memref<32x128xbf16, #tpu.memory_space<vmem>>, %arg5: memref<32x128xbf16, #tpu.memory_space<vmem>>, %arg6: memref<32x128xbf16, #tpu.memory_space<vmem>>, %arg7: memref<32x128xbf16, #tpu.memory_space<vmem>>, %arg8: memref<32x128xbf16, #tpu.memory_space<vmem>>, %arg9: memref<32x128xbf16, #tpu.memory_space<vmem>>, %arg10: memref<9x128x128xbf16, #tpu.memory_space<vmem>>, %arg11: memref<1x128xf32, #tpu.memory_space<vmem>>, %arg12: memref<1x128xf32, #tpu.memory_space<vmem>>, %arg13: memref<32x128xbf16, #tpu.memory_space<vmem>>) attributes {dimension_semantics = [#tpu.dimension_semantics<parallel>], iteration_bounds = array<i64: 1>, scalar_prefetch = 0 : i64, scratch_operands = 0 : i64, tpu.core_type = #tpu.core_type<tc>, window_params = [{transform_indices = @transform_0, window_bounds = array<i64: 32, 128>}, {transform_indices = @transform_1, window_bounds = array<i64: 32, 128>}, {transform_indices = @transform_2, window_bounds = array<i64: 32, 128>}, {transform_indices = @transform_3, window_bounds = array<i64: 32, 128>}, {transform_indices = @transform_4, window_bounds = array<i64: 32, 128>}, {transform_indices = @transform_5, window_bounds = array<i64: 32, 128>}, {transform_indices = @transform_6, window_bounds = array<i64: 32, 128>}, {transform_indices = @transform_7, window_bounds = array<i64: 32, 128>}, {transform_indices = @transform_8, window_bounds = array<i64: 32, 128>}, {pipeline_mode = #tpu.pipeline_mode<synchronous>, transform_indices = @transform_9, window_bounds = array<i64: 9, 128, 128>}, {pipeline_mode = #tpu.pipeline_mode<synchronous>, transform_indices = @transform_10, window_bounds = array<i64: 1, 128>}, {pipeline_mode = #tpu.pipeline_mode<synchronous>, transform_indices = @transform_11, window_bounds = array<i64: 1, 128>}, {transform_indices = @transform_12, window_bounds = array<i64: 32, 128>}]} {
    %c0 = arith.constant 0 : index
    %c0_0 = arith.constant 0 : index
    %0 = vector.load %arg1[%c0, %c0_0] : memref<32x128xbf16, #tpu.memory_space<vmem>>, vector<32x128xbf16>
    %c0_1 = arith.constant 0 : index
    %c0_2 = arith.constant 0 : index
    %c0_3 = arith.constant 0 : index
    %1 = vector.load %arg10[%c0_1, %c0_2, %c0_3] : memref<9x128x128xbf16, #tpu.memory_space<vmem>>, vector<1x128x128xbf16>
    %2 = vector.shape_cast %1 : vector<1x128x128xbf16> to vector<128x128xbf16>
    %cst = arith.constant dense<0.000000e+00> : vector<32x128xf32>
    %3 = tpu.matmul %0, %2, %cst {dimension_numbers = #tpu.dot_dimension_numbers<[1], [0], [0], [1], [0, 0, 1, 1], [], []>} : vector<32x128xbf16>, vector<128x128xbf16>, vector<32x128xf32> -> vector<32x128xf32>
    %c0_4 = arith.constant 0 : index
    %c0_5 = arith.constant 0 : index
    %4 = vector.load %arg2[%c0_4, %c0_5] : memref<32x128xbf16, #tpu.memory_space<vmem>>, vector<32x128xbf16>
    %c1 = arith.constant 1 : index
    %c0_6 = arith.constant 0 : index
    %c0_7 = arith.constant 0 : index
    %5 = vector.load %arg10[%c1, %c0_6, %c0_7] : memref<9x128x128xbf16, #tpu.memory_space<vmem>>, vector<1x128x128xbf16>
    %6 = vector.shape_cast %5 : vector<1x128x128xbf16> to vector<128x128xbf16>
    %cst_8 = arith.constant dense<0.000000e+00> : vector<32x128xf32>
    %7 = tpu.matmul %4, %6, %cst_8 {dimension_numbers = #tpu.dot_dimension_numbers<[1], [0], [0], [1], [0, 0, 1, 1], [], []>} : vector<32x128xbf16>, vector<128x128xbf16>, vector<32x128xf32> -> vector<32x128xf32>
    %8 = arith.addf %3, %7 : vector<32x128xf32>
    %c0_9 = arith.constant 0 : index
    %c0_10 = arith.constant 0 : index
    %9 = vector.load %arg3[%c0_9, %c0_10] : memref<32x128xbf16, #tpu.memory_space<vmem>>, vector<32x128xbf16>
    %c2 = arith.constant 2 : index
    %c0_11 = arith.constant 0 : index
    %c0_12 = arith.constant 0 : index
    %10 = vector.load %arg10[%c2, %c0_11, %c0_12] : memref<9x128x128xbf16, #tpu.memory_space<vmem>>, vector<1x128x128xbf16>
    %11 = vector.shape_cast %10 : vector<1x128x128xbf16> to vector<128x128xbf16>
    %cst_13 = arith.constant dense<0.000000e+00> : vector<32x128xf32>
    %12 = tpu.matmul %9, %11, %cst_13 {dimension_numbers = #tpu.dot_dimension_numbers<[1], [0], [0], [1], [0, 0, 1, 1], [], []>} : vector<32x128xbf16>, vector<128x128xbf16>, vector<32x128xf32> -> vector<32x128xf32>
    %13 = arith.addf %8, %12 : vector<32x128xf32>
    %c0_14 = arith.constant 0 : index
    %c0_15 = arith.constant 0 : index
    %14 = vector.load %arg4[%c0_14, %c0_15] : memref<32x128xbf16, #tpu.memory_space<vmem>>, vector<32x128xbf16>
    %c3 = arith.constant 3 : index
    %c0_16 = arith.constant 0 : index
    %c0_17 = arith.constant 0 : index
    %15 = vector.load %arg10[%c3, %c0_16, %c0_17] : memref<9x128x128xbf16, #tpu.memory_space<vmem>>, vector<1x128x128xbf16>
    %16 = vector.shape_cast %15 : vector<1x128x128xbf16> to vector<128x128xbf16>
    %cst_18 = arith.constant dense<0.000000e+00> : vector<32x128xf32>
    %17 = tpu.matmul %14, %16, %cst_18 {dimension_numbers = #tpu.dot_dimension_numbers<[1], [0], [0], [1], [0, 0, 1, 1], [], []>} : vector<32x128xbf16>, vector<128x128xbf16>, vector<32x128xf32> -> vector<32x128xf32>
    %18 = arith.addf %13, %17 : vector<32x128xf32>
    %c0_19 = arith.constant 0 : index
    %c0_20 = arith.constant 0 : index
    %19 = vector.load %arg5[%c0_19, %c0_20] : memref<32x128xbf16, #tpu.memory_space<vmem>>, vector<32x128xbf16>
    %c4 = arith.constant 4 : index
    %c0_21 = arith.constant 0 : index
    %c0_22 = arith.constant 0 : index
    %20 = vector.load %arg10[%c4, %c0_21, %c0_22] : memref<9x128x128xbf16, #tpu.memory_space<vmem>>, vector<1x128x128xbf16>
    %21 = vector.shape_cast %20 : vector<1x128x128xbf16> to vector<128x128xbf16>
    %cst_23 = arith.constant dense<0.000000e+00> : vector<32x128xf32>
    %22 = tpu.matmul %19, %21, %cst_23 {dimension_numbers = #tpu.dot_dimension_numbers<[1], [0], [0], [1], [0, 0, 1, 1], [], []>} : vector<32x128xbf16>, vector<128x128xbf16>, vector<32x128xf32> -> vector<32x128xf32>
    %23 = arith.addf %18, %22 : vector<32x128xf32>
    %c0_24 = arith.constant 0 : index
    %c0_25 = arith.constant 0 : index
    %24 = vector.load %arg6[%c0_24, %c0_25] : memref<32x128xbf16, #tpu.memory_space<vmem>>, vector<32x128xbf16>
    %c5 = arith.constant 5 : index
    %c0_26 = arith.constant 0 : index
    %c0_27 = arith.constant 0 : index
    %25 = vector.load %arg10[%c5, %c0_26, %c0_27] : memref<9x128x128xbf16, #tpu.memory_space<vmem>>, vector<1x128x128xbf16>
    %26 = vector.shape_cast %25 : vector<1x128x128xbf16> to vector<128x128xbf16>
    %cst_28 = arith.constant dense<0.000000e+00> : vector<32x128xf32>
    %27 = tpu.matmul %24, %26, %cst_28 {dimension_numbers = #tpu.dot_dimension_numbers<[1], [0], [0], [1], [0, 0, 1, 1], [], []>} : vector<32x128xbf16>, vector<128x128xbf16>, vector<32x128xf32> -> vector<32x128xf32>
    %28 = arith.addf %23, %27 : vector<32x128xf32>
    %c0_29 = arith.constant 0 : index
    %c0_30 = arith.constant 0 : index
    %29 = vector.load %arg7[%c0_29, %c0_30] : memref<32x128xbf16, #tpu.memory_space<vmem>>, vector<32x128xbf16>
    %c6 = arith.constant 6 : index
    %c0_31 = arith.constant 0 : index
    %c0_32 = arith.constant 0 : index
    %30 = vector.load %arg10[%c6, %c0_31, %c0_32] : memref<9x128x128xbf16, #tpu.memory_space<vmem>>, vector<1x128x128xbf16>
    %31 = vector.shape_cast %30 : vector<1x128x128xbf16> to vector<128x128xbf16>
    %cst_33 = arith.constant dense<0.000000e+00> : vector<32x128xf32>
    %32 = tpu.matmul %29, %31, %cst_33 {dimension_numbers = #tpu.dot_dimension_numbers<[1], [0], [0], [1], [0, 0, 1, 1], [], []>} : vector<32x128xbf16>, vector<128x128xbf16>, vector<32x128xf32> -> vector<32x128xf32>
    %33 = arith.addf %28, %32 : vector<32x128xf32>
    %c0_34 = arith.constant 0 : index
    %c0_35 = arith.constant 0 : index
    %34 = vector.load %arg8[%c0_34, %c0_35] : memref<32x128xbf16, #tpu.memory_space<vmem>>, vector<32x128xbf16>
    %c7 = arith.constant 7 : index
    %c0_36 = arith.constant 0 : index
    %c0_37 = arith.constant 0 : index
    %35 = vector.load %arg10[%c7, %c0_36, %c0_37] : memref<9x128x128xbf16, #tpu.memory_space<vmem>>, vector<1x128x128xbf16>
    %36 = vector.shape_cast %35 : vector<1x128x128xbf16> to vector<128x128xbf16>
    %cst_38 = arith.constant dense<0.000000e+00> : vector<32x128xf32>
    %37 = tpu.matmul %34, %36, %cst_38 {dimension_numbers = #tpu.dot_dimension_numbers<[1], [0], [0], [1], [0, 0, 1, 1], [], []>} : vector<32x128xbf16>, vector<128x128xbf16>, vector<32x128xf32> -> vector<32x128xf32>
    %38 = arith.addf %33, %37 : vector<32x128xf32>
    %c0_39 = arith.constant 0 : index
    %c0_40 = arith.constant 0 : index
    %39 = vector.load %arg9[%c0_39, %c0_40] : memref<32x128xbf16, #tpu.memory_space<vmem>>, vector<32x128xbf16>
    %c8 = arith.constant 8 : index
    %c0_41 = arith.constant 0 : index
    %c0_42 = arith.constant 0 : index
    %40 = vector.load %arg10[%c8, %c0_41, %c0_42] : memref<9x128x128xbf16, #tpu.memory_space<vmem>>, vector<1x128x128xbf16>
    %41 = vector.shape_cast %40 : vector<1x128x128xbf16> to vector<128x128xbf16>
    %cst_43 = arith.constant dense<0.000000e+00> : vector<32x128xf32>
    %42 = tpu.matmul %39, %41, %cst_43 {dimension_numbers = #tpu.dot_dimension_numbers<[1], [0], [0], [1], [0, 0, 1, 1], [], []>} : vector<32x128xbf16>, vector<128x128xbf16>, vector<32x128xf32> -> vector<32x128xf32>
    %43 = arith.addf %38, %42 : vector<32x128xf32>
    %c0_44 = arith.constant 0 : index
    %c0_45 = arith.constant 0 : index
    %44 = vector.load %arg11[%c0_44, %c0_45] : memref<1x128xf32, #tpu.memory_space<vmem>>, vector<1x128xf32>
    %45 = vector.broadcast %44 : vector<1x128xf32> to vector<32x128xf32>
    %46 = arith.mulf %43, %45 : vector<32x128xf32>
    %c0_46 = arith.constant 0 : index
    %c0_47 = arith.constant 0 : index
    %47 = vector.load %arg12[%c0_46, %c0_47] : memref<1x128xf32, #tpu.memory_space<vmem>>, vector<1x128xf32>
    %48 = vector.broadcast %47 : vector<1x128xf32> to vector<32x128xf32>
    %49 = arith.addf %46, %48 : vector<32x128xf32>
    %cst_48 = arith.constant 0.000000e+00 : f32
    %50 = vector.broadcast %cst_48 : f32 to vector<32x128xf32>
    %51 = arith.maximumf %49, %50 : vector<32x128xf32>
    %52 = arith.truncf %51 : vector<32x128xf32> to vector<32x128xbf16>
    %c0_49 = arith.constant 0 : index
    %c0_50 = arith.constant 0 : index
    %53 = vector.load %arg13[%c0_49, %c0_50] : memref<32x128xbf16, #tpu.memory_space<vmem>>, vector<32x128xbf16>
    tpu.vector_store %arg13[%c0_49, %c0_50], %52 {strides = array<i32>} : memref<32x128xbf16, #tpu.memory_space<vmem>>, vector<32x128xbf16>,
    return
  }
  func.func @transform_0(%arg0: i32) -> (i32, i32) {
    %c0_i32 = arith.constant 0 : i32
    %c0_i32_0 = arith.constant 0 : i32
    return %arg0, %c0_i32 : i32, i32
  }
  func.func @transform_1(%arg0: i32) -> (i32, i32) {
    %c0_i32 = arith.constant 0 : i32
    %c0_i32_0 = arith.constant 0 : i32
    return %arg0, %c0_i32 : i32, i32
  }
  func.func @transform_2(%arg0: i32) -> (i32, i32) {
    %c0_i32 = arith.constant 0 : i32
    %c0_i32_0 = arith.constant 0 : i32
    return %arg0, %c0_i32 : i32, i32
  }
  func.func @transform_3(%arg0: i32) -> (i32, i32) {
    %c0_i32 = arith.constant 0 : i32
    %c0_i32_0 = arith.constant 0 : i32
    return %arg0, %c0_i32 : i32, i32
  }
  func.func @transform_4(%arg0: i32) -> (i32, i32) {
    %c0_i32 = arith.constant 0 : i32
    %c0_i32_0 = arith.constant 0 : i32
    return %arg0, %c0_i32 : i32, i32
  }
  func.func @transform_5(%arg0: i32) -> (i32, i32) {
    %c0_i32 = arith.constant 0 : i32
    %c0_i32_0 = arith.constant 0 : i32
    return %arg0, %c0_i32 : i32, i32
  }
  func.func @transform_6(%arg0: i32) -> (i32, i32) {
    %c0_i32 = arith.constant 0 : i32
    %c0_i32_0 = arith.constant 0 : i32
    return %arg0, %c0_i32 : i32, i32
  }
  func.func @transform_7(%arg0: i32) -> (i32, i32) {
    %c0_i32 = arith.constant 0 : i32
    %c0_i32_0 = arith.constant 0 : i32
    return %arg0, %c0_i32 : i32, i32
  }
  func.func @transform_8(%arg0: i32) -> (i32, i32) {
    %c0_i32 = arith.constant 0 : i32
    %c0_i32_0 = arith.constant 0 : i32
    return %arg0, %c0_i32 : i32, i32
  }
  func.func @transform_9(%arg0: i32) -> (i32, i32, i32) {
    %c0_i32 = arith.constant 0 : i32
    %c0_i32_0 = arith.constant 0 : i32
    %c0_i32_1 = arith.constant 0 : i32
    %c0_i32_2 = arith.constant 0 : i32
    return %c0_i32, %c0_i32_0, %c0_i32_1 : i32, i32, i32
  }
  func.func @transform_10(%arg0: i32) -> (i32, i32) {
    %c0_i32 = arith.constant 0 : i32
    %c0_i32_0 = arith.constant 0 : i32
    %c0_i32_1 = arith.constant 0 : i32
    return %c0_i32, %c0_i32_0 : i32, i32
  }
  func.func @transform_11(%arg0: i32) -> (i32, i32) {
    %c0_i32 = arith.constant 0 : i32
    %c0_i32_0 = arith.constant 0 : i32
    %c0_i32_1 = arith.constant 0 : i32
    return %c0_i32, %c0_i32_0 : i32, i32
  }
  func.func @transform_12(%arg0: i32) -> (i32, i32) {
    %c0_i32 = arith.constant 0 : i32
    %c0_i32_0 = arith.constant 0 : i32
    return %arg0, %c0_i32 : i32, i32
  }
}

module attributes {stable_mosaic.version = 11 : i64} {
  func.func @kernel(%arg0: i32, %arg1: memref<32x128xbf16, #tpu.memory_space<vmem>>, %arg2: memref<32x128xbf16, #tpu.memory_space<vmem>>, %arg3: memref<32x128xbf16, #tpu.memory_space<vmem>>, %arg4: memref<32x128xbf16, #tpu.memory_space<vmem>>, %arg5: memref<32x128xbf16, #tpu.memory_space<vmem>>, %arg6: memref<32x128xbf16, #tpu.memory_space<vmem>>, %arg7: memref<32x128xbf16, #tpu.memory_space<vmem>>, %arg8: memref<32x128xbf16, #tpu.memory_space<vmem>>, %arg9: memref<32x128xbf16, #tpu.memory_space<vmem>>, %arg10: memref<9x128x128xbf16, #tpu.memory_space<vmem>>, %arg11: memref<1x128xf32, #tpu.memory_space<vmem>>, %arg12: memref<1x128xf32, #tpu.memory_space<vmem>>, %arg13: memref<32x128xbf16, #tpu.memory_space<vmem>>, %arg14: memref<128x128xbf16, #tpu.memory_space<vmem>>, %arg15: memref<1x128xf32, #tpu.memory_space<vmem>>, %arg16: memref<1x128xf32, #tpu.memory_space<vmem>>, %arg17: memref<32x128xbf16, #tpu.memory_space<vmem>>) attributes {dimension_semantics = [#tpu.dimension_semantics<parallel>], iteration_bounds = array<i64: 1>, scalar_prefetch = 0 : i64, scratch_operands = 0 : i64, tpu.core_type = #tpu.core_type<tc>, window_params = [{transform_indices = @transform_0, window_bounds = array<i64: 32, 128>}, {transform_indices = @transform_1, window_bounds = array<i64: 32, 128>}, {transform_indices = @transform_2, window_bounds = array<i64: 32, 128>}, {transform_indices = @transform_3, window_bounds = array<i64: 32, 128>}, {transform_indices = @transform_4, window_bounds = array<i64: 32, 128>}, {transform_indices = @transform_5, window_bounds = array<i64: 32, 128>}, {transform_indices = @transform_6, window_bounds = array<i64: 32, 128>}, {transform_indices = @transform_7, window_bounds = array<i64: 32, 128>}, {transform_indices = @transform_8, window_bounds = array<i64: 32, 128>}, {pipeline_mode = #tpu.pipeline_mode<synchronous>, transform_indices = @transform_9, window_bounds = array<i64: 9, 128, 128>}, {pipeline_mode = #tpu.pipeline_mode<synchronous>, transform_indices = @transform_10, window_bounds = array<i64: 1, 128>}, {pipeline_mode = #tpu.pipeline_mode<synchronous>, transform_indices = @transform_11, window_bounds = array<i64: 1, 128>}, {transform_indices = @transform_12, window_bounds = array<i64: 32, 128>}, {pipeline_mode = #tpu.pipeline_mode<synchronous>, transform_indices = @transform_13, window_bounds = array<i64: 128, 128>}, {pipeline_mode = #tpu.pipeline_mode<synchronous>, transform_indices = @transform_14, window_bounds = array<i64: 1, 128>}, {pipeline_mode = #tpu.pipeline_mode<synchronous>, transform_indices = @transform_15, window_bounds = array<i64: 1, 128>}, {transform_indices = @transform_16, window_bounds = array<i64: 32, 128>}]} {
    %c0 = arith.constant 0 : index
    %c0_0 = arith.constant 0 : index
    %0 = vector.load %arg1[%c0, %c0_0] : memref<32x128xbf16, #tpu.memory_space<vmem>>, vector<32x128xbf16>
    %c0_1 = arith.constant 0 : index
    %c0_2 = arith.constant 0 : index
    %c0_3 = arith.constant 0 : index
    %1 = vector.load %arg10[%c0_1, %c0_2, %c0_3] : memref<9x128x128xbf16, #tpu.memory_space<vmem>>, vector<1x128x128xbf16>
    %2 = vector.shape_cast %1 : vector<1x128x128xbf16> to vector<128x128xbf16>
    %cst = arith.constant dense<0.000000e+00> : vector<32x128xf32>
    %3 = tpu.matmul %0, %2, %cst {dimension_numbers = #tpu.dot_dimension_numbers<[1], [0], [0], [1], [0, 0, 1, 1], [], []>} : vector<32x128xbf16>, vector<128x128xbf16>, vector<32x128xf32> -> vector<32x128xf32>
    %c0_4 = arith.constant 0 : index
    %c0_5 = arith.constant 0 : index
    %4 = vector.load %arg2[%c0_4, %c0_5] : memref<32x128xbf16, #tpu.memory_space<vmem>>, vector<32x128xbf16>
    %c1 = arith.constant 1 : index
    %c0_6 = arith.constant 0 : index
    %c0_7 = arith.constant 0 : index
    %5 = vector.load %arg10[%c1, %c0_6, %c0_7] : memref<9x128x128xbf16, #tpu.memory_space<vmem>>, vector<1x128x128xbf16>
    %6 = vector.shape_cast %5 : vector<1x128x128xbf16> to vector<128x128xbf16>
    %cst_8 = arith.constant dense<0.000000e+00> : vector<32x128xf32>
    %7 = tpu.matmul %4, %6, %cst_8 {dimension_numbers = #tpu.dot_dimension_numbers<[1], [0], [0], [1], [0, 0, 1, 1], [], []>} : vector<32x128xbf16>, vector<128x128xbf16>, vector<32x128xf32> -> vector<32x128xf32>
    %8 = arith.addf %3, %7 : vector<32x128xf32>
    %c0_9 = arith.constant 0 : index
    %c0_10 = arith.constant 0 : index
    %9 = vector.load %arg3[%c0_9, %c0_10] : memref<32x128xbf16, #tpu.memory_space<vmem>>, vector<32x128xbf16>
    %c2 = arith.constant 2 : index
    %c0_11 = arith.constant 0 : index
    %c0_12 = arith.constant 0 : index
    %10 = vector.load %arg10[%c2, %c0_11, %c0_12] : memref<9x128x128xbf16, #tpu.memory_space<vmem>>, vector<1x128x128xbf16>
    %11 = vector.shape_cast %10 : vector<1x128x128xbf16> to vector<128x128xbf16>
    %cst_13 = arith.constant dense<0.000000e+00> : vector<32x128xf32>
    %12 = tpu.matmul %9, %11, %cst_13 {dimension_numbers = #tpu.dot_dimension_numbers<[1], [0], [0], [1], [0, 0, 1, 1], [], []>} : vector<32x128xbf16>, vector<128x128xbf16>, vector<32x128xf32> -> vector<32x128xf32>
    %13 = arith.addf %8, %12 : vector<32x128xf32>
    %c0_14 = arith.constant 0 : index
    %c0_15 = arith.constant 0 : index
    %14 = vector.load %arg4[%c0_14, %c0_15] : memref<32x128xbf16, #tpu.memory_space<vmem>>, vector<32x128xbf16>
    %c3 = arith.constant 3 : index
    %c0_16 = arith.constant 0 : index
    %c0_17 = arith.constant 0 : index
    %15 = vector.load %arg10[%c3, %c0_16, %c0_17] : memref<9x128x128xbf16, #tpu.memory_space<vmem>>, vector<1x128x128xbf16>
    %16 = vector.shape_cast %15 : vector<1x128x128xbf16> to vector<128x128xbf16>
    %cst_18 = arith.constant dense<0.000000e+00> : vector<32x128xf32>
    %17 = tpu.matmul %14, %16, %cst_18 {dimension_numbers = #tpu.dot_dimension_numbers<[1], [0], [0], [1], [0, 0, 1, 1], [], []>} : vector<32x128xbf16>, vector<128x128xbf16>, vector<32x128xf32> -> vector<32x128xf32>
    %18 = arith.addf %13, %17 : vector<32x128xf32>
    %c0_19 = arith.constant 0 : index
    %c0_20 = arith.constant 0 : index
    %19 = vector.load %arg5[%c0_19, %c0_20] : memref<32x128xbf16, #tpu.memory_space<vmem>>, vector<32x128xbf16>
    %c4 = arith.constant 4 : index
    %c0_21 = arith.constant 0 : index
    %c0_22 = arith.constant 0 : index
    %20 = vector.load %arg10[%c4, %c0_21, %c0_22] : memref<9x128x128xbf16, #tpu.memory_space<vmem>>, vector<1x128x128xbf16>
    %21 = vector.shape_cast %20 : vector<1x128x128xbf16> to vector<128x128xbf16>
    %cst_23 = arith.constant dense<0.000000e+00> : vector<32x128xf32>
    %22 = tpu.matmul %19, %21, %cst_23 {dimension_numbers = #tpu.dot_dimension_numbers<[1], [0], [0], [1], [0, 0, 1, 1], [], []>} : vector<32x128xbf16>, vector<128x128xbf16>, vector<32x128xf32> -> vector<32x128xf32>
    %23 = arith.addf %18, %22 : vector<32x128xf32>
    %c0_24 = arith.constant 0 : index
    %c0_25 = arith.constant 0 : index
    %24 = vector.load %arg6[%c0_24, %c0_25] : memref<32x128xbf16, #tpu.memory_space<vmem>>, vector<32x128xbf16>
    %c5 = arith.constant 5 : index
    %c0_26 = arith.constant 0 : index
    %c0_27 = arith.constant 0 : index
    %25 = vector.load %arg10[%c5, %c0_26, %c0_27] : memref<9x128x128xbf16, #tpu.memory_space<vmem>>, vector<1x128x128xbf16>
    %26 = vector.shape_cast %25 : vector<1x128x128xbf16> to vector<128x128xbf16>
    %cst_28 = arith.constant dense<0.000000e+00> : vector<32x128xf32>
    %27 = tpu.matmul %24, %26, %cst_28 {dimension_numbers = #tpu.dot_dimension_numbers<[1], [0], [0], [1], [0, 0, 1, 1], [], []>} : vector<32x128xbf16>, vector<128x128xbf16>, vector<32x128xf32> -> vector<32x128xf32>
    %28 = arith.addf %23, %27 : vector<32x128xf32>
    %c0_29 = arith.constant 0 : index
    %c0_30 = arith.constant 0 : index
    %29 = vector.load %arg7[%c0_29, %c0_30] : memref<32x128xbf16, #tpu.memory_space<vmem>>, vector<32x128xbf16>
    %c6 = arith.constant 6 : index
    %c0_31 = arith.constant 0 : index
    %c0_32 = arith.constant 0 : index
    %30 = vector.load %arg10[%c6, %c0_31, %c0_32] : memref<9x128x128xbf16, #tpu.memory_space<vmem>>, vector<1x128x128xbf16>
    %31 = vector.shape_cast %30 : vector<1x128x128xbf16> to vector<128x128xbf16>
    %cst_33 = arith.constant dense<0.000000e+00> : vector<32x128xf32>
    %32 = tpu.matmul %29, %31, %cst_33 {dimension_numbers = #tpu.dot_dimension_numbers<[1], [0], [0], [1], [0, 0, 1, 1], [], []>} : vector<32x128xbf16>, vector<128x128xbf16>, vector<32x128xf32> -> vector<32x128xf32>
    %33 = arith.addf %28, %32 : vector<32x128xf32>
    %c0_34 = arith.constant 0 : index
    %c0_35 = arith.constant 0 : index
    %34 = vector.load %arg8[%c0_34, %c0_35] : memref<32x128xbf16, #tpu.memory_space<vmem>>, vector<32x128xbf16>
    %c7 = arith.constant 7 : index
    %c0_36 = arith.constant 0 : index
    %c0_37 = arith.constant 0 : index
    %35 = vector.load %arg10[%c7, %c0_36, %c0_37] : memref<9x128x128xbf16, #tpu.memory_space<vmem>>, vector<1x128x128xbf16>
    %36 = vector.shape_cast %35 : vector<1x128x128xbf16> to vector<128x128xbf16>
    %cst_38 = arith.constant dense<0.000000e+00> : vector<32x128xf32>
    %37 = tpu.matmul %34, %36, %cst_38 {dimension_numbers = #tpu.dot_dimension_numbers<[1], [0], [0], [1], [0, 0, 1, 1], [], []>} : vector<32x128xbf16>, vector<128x128xbf16>, vector<32x128xf32> -> vector<32x128xf32>
    %38 = arith.addf %33, %37 : vector<32x128xf32>
    %c0_39 = arith.constant 0 : index
    %c0_40 = arith.constant 0 : index
    %39 = vector.load %arg9[%c0_39, %c0_40] : memref<32x128xbf16, #tpu.memory_space<vmem>>, vector<32x128xbf16>
    %c8 = arith.constant 8 : index
    %c0_41 = arith.constant 0 : index
    %c0_42 = arith.constant 0 : index
    %40 = vector.load %arg10[%c8, %c0_41, %c0_42] : memref<9x128x128xbf16, #tpu.memory_space<vmem>>, vector<1x128x128xbf16>
    %41 = vector.shape_cast %40 : vector<1x128x128xbf16> to vector<128x128xbf16>
    %cst_43 = arith.constant dense<0.000000e+00> : vector<32x128xf32>
    %42 = tpu.matmul %39, %41, %cst_43 {dimension_numbers = #tpu.dot_dimension_numbers<[1], [0], [0], [1], [0, 0, 1, 1], [], []>} : vector<32x128xbf16>, vector<128x128xbf16>, vector<32x128xf32> -> vector<32x128xf32>
    %43 = arith.addf %38, %42 : vector<32x128xf32>
    %c0_44 = arith.constant 0 : index
    %c0_45 = arith.constant 0 : index
    %44 = vector.load %arg11[%c0_44, %c0_45] : memref<1x128xf32, #tpu.memory_space<vmem>>, vector<1x128xf32>
    %45 = vector.broadcast %44 : vector<1x128xf32> to vector<32x128xf32>
    %46 = arith.mulf %43, %45 : vector<32x128xf32>
    %c0_46 = arith.constant 0 : index
    %c0_47 = arith.constant 0 : index
    %47 = vector.load %arg12[%c0_46, %c0_47] : memref<1x128xf32, #tpu.memory_space<vmem>>, vector<1x128xf32>
    %48 = vector.broadcast %47 : vector<1x128xf32> to vector<32x128xf32>
    %49 = arith.addf %46, %48 : vector<32x128xf32>
    %c0_48 = arith.constant 0 : index
    %c0_49 = arith.constant 0 : index
    %50 = vector.load %arg13[%c0_48, %c0_49] : memref<32x128xbf16, #tpu.memory_space<vmem>>, vector<32x128xbf16>
    %c0_50 = arith.constant 0 : index
    %c0_51 = arith.constant 0 : index
    %51 = vector.load %arg14[%c0_50, %c0_51] : memref<128x128xbf16, #tpu.memory_space<vmem>>, vector<128x128xbf16>
    %cst_52 = arith.constant dense<0.000000e+00> : vector<32x128xf32>
    %52 = tpu.matmul %50, %51, %cst_52 {dimension_numbers = #tpu.dot_dimension_numbers<[1], [0], [0], [1], [0, 0, 1, 1], [], []>} : vector<32x128xbf16>, vector<128x128xbf16>, vector<32x128xf32> -> vector<32x128xf32>
    %c0_53 = arith.constant 0 : index
    %c0_54 = arith.constant 0 : index
    %53 = vector.load %arg15[%c0_53, %c0_54] : memref<1x128xf32, #tpu.memory_space<vmem>>, vector<1x128xf32>
    %54 = vector.broadcast %53 : vector<1x128xf32> to vector<32x128xf32>
    %55 = arith.mulf %52, %54 : vector<32x128xf32>
    %56 = arith.addf %49, %55 : vector<32x128xf32>
    %c0_55 = arith.constant 0 : index
    %c0_56 = arith.constant 0 : index
    %57 = vector.load %arg16[%c0_55, %c0_56] : memref<1x128xf32, #tpu.memory_space<vmem>>, vector<1x128xf32>
    %58 = vector.broadcast %57 : vector<1x128xf32> to vector<32x128xf32>
    %59 = arith.addf %56, %58 : vector<32x128xf32>
    %cst_57 = arith.constant 0.000000e+00 : f32
    %60 = vector.broadcast %cst_57 : f32 to vector<32x128xf32>
    %61 = arith.maximumf %59, %60 : vector<32x128xf32>
    %62 = arith.truncf %61 : vector<32x128xf32> to vector<32x128xbf16>
    %c0_58 = arith.constant 0 : index
    %c0_59 = arith.constant 0 : index
    %63 = vector.load %arg17[%c0_58, %c0_59] : memref<32x128xbf16, #tpu.memory_space<vmem>>, vector<32x128xbf16>
    tpu.vector_store %arg17[%c0_58, %c0_59], %62 {strides = array<i32>} : memref<32x128xbf16, #tpu.memory_space<vmem>>, vector<32x128xbf16>,
    return
  }
  func.func @transform_0(%arg0: i32) -> (i32, i32) {
    %c0_i32 = arith.constant 0 : i32
    %c0_i32_0 = arith.constant 0 : i32
    return %arg0, %c0_i32 : i32, i32
  }
  func.func @transform_1(%arg0: i32) -> (i32, i32) {
    %c0_i32 = arith.constant 0 : i32
    %c0_i32_0 = arith.constant 0 : i32
    return %arg0, %c0_i32 : i32, i32
  }
  func.func @transform_2(%arg0: i32) -> (i32, i32) {
    %c0_i32 = arith.constant 0 : i32
    %c0_i32_0 = arith.constant 0 : i32
    return %arg0, %c0_i32 : i32, i32
  }
  func.func @transform_3(%arg0: i32) -> (i32, i32) {
    %c0_i32 = arith.constant 0 : i32
    %c0_i32_0 = arith.constant 0 : i32
    return %arg0, %c0_i32 : i32, i32
  }
  func.func @transform_4(%arg0: i32) -> (i32, i32) {
    %c0_i32 = arith.constant 0 : i32
    %c0_i32_0 = arith.constant 0 : i32
    return %arg0, %c0_i32 : i32, i32
  }
  func.func @transform_5(%arg0: i32) -> (i32, i32) {
    %c0_i32 = arith.constant 0 : i32
    %c0_i32_0 = arith.constant 0 : i32
    return %arg0, %c0_i32 : i32, i32
  }
  func.func @transform_6(%arg0: i32) -> (i32, i32) {
    %c0_i32 = arith.constant 0 : i32
    %c0_i32_0 = arith.constant 0 : i32
    return %arg0, %c0_i32 : i32, i32
  }
  func.func @transform_7(%arg0: i32) -> (i32, i32) {
    %c0_i32 = arith.constant 0 : i32
    %c0_i32_0 = arith.constant 0 : i32
    return %arg0, %c0_i32 : i32, i32
  }
  func.func @transform_8(%arg0: i32) -> (i32, i32) {
    %c0_i32 = arith.constant 0 : i32
    %c0_i32_0 = arith.constant 0 : i32
    return %arg0, %c0_i32 : i32, i32
  }
  func.func @transform_9(%arg0: i32) -> (i32, i32, i32) {
    %c0_i32 = arith.constant 0 : i32
    %c0_i32_0 = arith.constant 0 : i32
    %c0_i32_1 = arith.constant 0 : i32
    %c0_i32_2 = arith.constant 0 : i32
    return %c0_i32, %c0_i32_0, %c0_i32_1 : i32, i32, i32
  }
  func.func @transform_10(%arg0: i32) -> (i32, i32) {
    %c0_i32 = arith.constant 0 : i32
    %c0_i32_0 = arith.constant 0 : i32
    %c0_i32_1 = arith.constant 0 : i32
    return %c0_i32, %c0_i32_0 : i32, i32
  }
  func.func @transform_11(%arg0: i32) -> (i32, i32) {
    %c0_i32 = arith.constant 0 : i32
    %c0_i32_0 = arith.constant 0 : i32
    %c0_i32_1 = arith.constant 0 : i32
    return %c0_i32, %c0_i32_0 : i32, i32
  }
  func.func @transform_12(%arg0: i32) -> (i32, i32) {
    %c0_i32 = arith.constant 0 : i32
    %c0_i32_0 = arith.constant 0 : i32
    return %arg0, %c0_i32 : i32, i32
  }
  func.func @transform_13(%arg0: i32) -> (i32, i32) {
    %c0_i32 = arith.constant 0 : i32
    %c0_i32_0 = arith.constant 0 : i32
    %c0_i32_1 = arith.constant 0 : i32
    return %c0_i32, %c0_i32_0 : i32, i32
  }
  func.func @transform_14(%arg0: i32) -> (i32, i32) {
    %c0_i32 = arith.constant 0 : i32
    %c0_i32_0 = arith.constant 0 : i32
    %c0_i32_1 = arith.constant 0 : i32
    return %c0_i32, %c0_i32_0 : i32, i32
  }
  func.func @transform_15(%arg0: i32) -> (i32, i32) {
    %c0_i32 = arith.constant 0 : i32
    %c0_i32_0 = arith.constant 0 : i32
    %c0_i32_1 = arith.constant 0 : i32
    return %c0_i32, %c0_i32_0 : i32, i32
  }
  func.func @transform_16(%arg0: i32) -> (i32, i32) {
    %c0_i32 = arith.constant 0 : i32
    %c0_i32_0 = arith.constant 0 : i32
    return %arg0, %c0_i32 : i32, i32
  }
}

module attributes {stable_mosaic.version = 11 : i64} {
  func.func @kernel(%arg0: i32, %arg1: memref<32x128xbf16, #tpu.memory_space<vmem>>, %arg2: memref<32x128xbf16, #tpu.memory_space<vmem>>, %arg3: memref<32x128xbf16, #tpu.memory_space<vmem>>, %arg4: memref<32x128xbf16, #tpu.memory_space<vmem>>, %arg5: memref<32x128xbf16, #tpu.memory_space<vmem>>, %arg6: memref<32x128xbf16, #tpu.memory_space<vmem>>, %arg7: memref<32x128xbf16, #tpu.memory_space<vmem>>, %arg8: memref<32x128xbf16, #tpu.memory_space<vmem>>, %arg9: memref<32x128xbf16, #tpu.memory_space<vmem>>, %arg10: memref<9x128x128xbf16, #tpu.memory_space<vmem>>, %arg11: memref<1x128xf32, #tpu.memory_space<vmem>>, %arg12: memref<1x128xf32, #tpu.memory_space<vmem>>, %arg13: memref<32x128xbf16, #tpu.memory_space<vmem>>, %arg14: memref<32x128xbf16, #tpu.memory_space<vmem>>) attributes {dimension_semantics = [#tpu.dimension_semantics<parallel>], iteration_bounds = array<i64: 1>, scalar_prefetch = 0 : i64, scratch_operands = 0 : i64, tpu.core_type = #tpu.core_type<tc>, window_params = [{transform_indices = @transform_0, window_bounds = array<i64: 32, 128>}, {transform_indices = @transform_1, window_bounds = array<i64: 32, 128>}, {transform_indices = @transform_2, window_bounds = array<i64: 32, 128>}, {transform_indices = @transform_3, window_bounds = array<i64: 32, 128>}, {transform_indices = @transform_4, window_bounds = array<i64: 32, 128>}, {transform_indices = @transform_5, window_bounds = array<i64: 32, 128>}, {transform_indices = @transform_6, window_bounds = array<i64: 32, 128>}, {transform_indices = @transform_7, window_bounds = array<i64: 32, 128>}, {transform_indices = @transform_8, window_bounds = array<i64: 32, 128>}, {pipeline_mode = #tpu.pipeline_mode<synchronous>, transform_indices = @transform_9, window_bounds = array<i64: 9, 128, 128>}, {pipeline_mode = #tpu.pipeline_mode<synchronous>, transform_indices = @transform_10, window_bounds = array<i64: 1, 128>}, {pipeline_mode = #tpu.pipeline_mode<synchronous>, transform_indices = @transform_11, window_bounds = array<i64: 1, 128>}, {transform_indices = @transform_12, window_bounds = array<i64: 32, 128>}, {transform_indices = @transform_13, window_bounds = array<i64: 32, 128>}]} {
    %c0 = arith.constant 0 : index
    %c0_0 = arith.constant 0 : index
    %0 = vector.load %arg1[%c0, %c0_0] : memref<32x128xbf16, #tpu.memory_space<vmem>>, vector<32x128xbf16>
    %c0_1 = arith.constant 0 : index
    %c0_2 = arith.constant 0 : index
    %c0_3 = arith.constant 0 : index
    %1 = vector.load %arg10[%c0_1, %c0_2, %c0_3] : memref<9x128x128xbf16, #tpu.memory_space<vmem>>, vector<1x128x128xbf16>
    %2 = vector.shape_cast %1 : vector<1x128x128xbf16> to vector<128x128xbf16>
    %cst = arith.constant dense<0.000000e+00> : vector<32x128xf32>
    %3 = tpu.matmul %0, %2, %cst {dimension_numbers = #tpu.dot_dimension_numbers<[1], [0], [0], [1], [0, 0, 1, 1], [], []>} : vector<32x128xbf16>, vector<128x128xbf16>, vector<32x128xf32> -> vector<32x128xf32>
    %c0_4 = arith.constant 0 : index
    %c0_5 = arith.constant 0 : index
    %4 = vector.load %arg2[%c0_4, %c0_5] : memref<32x128xbf16, #tpu.memory_space<vmem>>, vector<32x128xbf16>
    %c1 = arith.constant 1 : index
    %c0_6 = arith.constant 0 : index
    %c0_7 = arith.constant 0 : index
    %5 = vector.load %arg10[%c1, %c0_6, %c0_7] : memref<9x128x128xbf16, #tpu.memory_space<vmem>>, vector<1x128x128xbf16>
    %6 = vector.shape_cast %5 : vector<1x128x128xbf16> to vector<128x128xbf16>
    %cst_8 = arith.constant dense<0.000000e+00> : vector<32x128xf32>
    %7 = tpu.matmul %4, %6, %cst_8 {dimension_numbers = #tpu.dot_dimension_numbers<[1], [0], [0], [1], [0, 0, 1, 1], [], []>} : vector<32x128xbf16>, vector<128x128xbf16>, vector<32x128xf32> -> vector<32x128xf32>
    %8 = arith.addf %3, %7 : vector<32x128xf32>
    %c0_9 = arith.constant 0 : index
    %c0_10 = arith.constant 0 : index
    %9 = vector.load %arg3[%c0_9, %c0_10] : memref<32x128xbf16, #tpu.memory_space<vmem>>, vector<32x128xbf16>
    %c2 = arith.constant 2 : index
    %c0_11 = arith.constant 0 : index
    %c0_12 = arith.constant 0 : index
    %10 = vector.load %arg10[%c2, %c0_11, %c0_12] : memref<9x128x128xbf16, #tpu.memory_space<vmem>>, vector<1x128x128xbf16>
    %11 = vector.shape_cast %10 : vector<1x128x128xbf16> to vector<128x128xbf16>
    %cst_13 = arith.constant dense<0.000000e+00> : vector<32x128xf32>
    %12 = tpu.matmul %9, %11, %cst_13 {dimension_numbers = #tpu.dot_dimension_numbers<[1], [0], [0], [1], [0, 0, 1, 1], [], []>} : vector<32x128xbf16>, vector<128x128xbf16>, vector<32x128xf32> -> vector<32x128xf32>
    %13 = arith.addf %8, %12 : vector<32x128xf32>
    %c0_14 = arith.constant 0 : index
    %c0_15 = arith.constant 0 : index
    %14 = vector.load %arg4[%c0_14, %c0_15] : memref<32x128xbf16, #tpu.memory_space<vmem>>, vector<32x128xbf16>
    %c3 = arith.constant 3 : index
    %c0_16 = arith.constant 0 : index
    %c0_17 = arith.constant 0 : index
    %15 = vector.load %arg10[%c3, %c0_16, %c0_17] : memref<9x128x128xbf16, #tpu.memory_space<vmem>>, vector<1x128x128xbf16>
    %16 = vector.shape_cast %15 : vector<1x128x128xbf16> to vector<128x128xbf16>
    %cst_18 = arith.constant dense<0.000000e+00> : vector<32x128xf32>
    %17 = tpu.matmul %14, %16, %cst_18 {dimension_numbers = #tpu.dot_dimension_numbers<[1], [0], [0], [1], [0, 0, 1, 1], [], []>} : vector<32x128xbf16>, vector<128x128xbf16>, vector<32x128xf32> -> vector<32x128xf32>
    %18 = arith.addf %13, %17 : vector<32x128xf32>
    %c0_19 = arith.constant 0 : index
    %c0_20 = arith.constant 0 : index
    %19 = vector.load %arg5[%c0_19, %c0_20] : memref<32x128xbf16, #tpu.memory_space<vmem>>, vector<32x128xbf16>
    %c4 = arith.constant 4 : index
    %c0_21 = arith.constant 0 : index
    %c0_22 = arith.constant 0 : index
    %20 = vector.load %arg10[%c4, %c0_21, %c0_22] : memref<9x128x128xbf16, #tpu.memory_space<vmem>>, vector<1x128x128xbf16>
    %21 = vector.shape_cast %20 : vector<1x128x128xbf16> to vector<128x128xbf16>
    %cst_23 = arith.constant dense<0.000000e+00> : vector<32x128xf32>
    %22 = tpu.matmul %19, %21, %cst_23 {dimension_numbers = #tpu.dot_dimension_numbers<[1], [0], [0], [1], [0, 0, 1, 1], [], []>} : vector<32x128xbf16>, vector<128x128xbf16>, vector<32x128xf32> -> vector<32x128xf32>
    %23 = arith.addf %18, %22 : vector<32x128xf32>
    %c0_24 = arith.constant 0 : index
    %c0_25 = arith.constant 0 : index
    %24 = vector.load %arg6[%c0_24, %c0_25] : memref<32x128xbf16, #tpu.memory_space<vmem>>, vector<32x128xbf16>
    %c5 = arith.constant 5 : index
    %c0_26 = arith.constant 0 : index
    %c0_27 = arith.constant 0 : index
    %25 = vector.load %arg10[%c5, %c0_26, %c0_27] : memref<9x128x128xbf16, #tpu.memory_space<vmem>>, vector<1x128x128xbf16>
    %26 = vector.shape_cast %25 : vector<1x128x128xbf16> to vector<128x128xbf16>
    %cst_28 = arith.constant dense<0.000000e+00> : vector<32x128xf32>
    %27 = tpu.matmul %24, %26, %cst_28 {dimension_numbers = #tpu.dot_dimension_numbers<[1], [0], [0], [1], [0, 0, 1, 1], [], []>} : vector<32x128xbf16>, vector<128x128xbf16>, vector<32x128xf32> -> vector<32x128xf32>
    %28 = arith.addf %23, %27 : vector<32x128xf32>
    %c0_29 = arith.constant 0 : index
    %c0_30 = arith.constant 0 : index
    %29 = vector.load %arg7[%c0_29, %c0_30] : memref<32x128xbf16, #tpu.memory_space<vmem>>, vector<32x128xbf16>
    %c6 = arith.constant 6 : index
    %c0_31 = arith.constant 0 : index
    %c0_32 = arith.constant 0 : index
    %30 = vector.load %arg10[%c6, %c0_31, %c0_32] : memref<9x128x128xbf16, #tpu.memory_space<vmem>>, vector<1x128x128xbf16>
    %31 = vector.shape_cast %30 : vector<1x128x128xbf16> to vector<128x128xbf16>
    %cst_33 = arith.constant dense<0.000000e+00> : vector<32x128xf32>
    %32 = tpu.matmul %29, %31, %cst_33 {dimension_numbers = #tpu.dot_dimension_numbers<[1], [0], [0], [1], [0, 0, 1, 1], [], []>} : vector<32x128xbf16>, vector<128x128xbf16>, vector<32x128xf32> -> vector<32x128xf32>
    %33 = arith.addf %28, %32 : vector<32x128xf32>
    %c0_34 = arith.constant 0 : index
    %c0_35 = arith.constant 0 : index
    %34 = vector.load %arg8[%c0_34, %c0_35] : memref<32x128xbf16, #tpu.memory_space<vmem>>, vector<32x128xbf16>
    %c7 = arith.constant 7 : index
    %c0_36 = arith.constant 0 : index
    %c0_37 = arith.constant 0 : index
    %35 = vector.load %arg10[%c7, %c0_36, %c0_37] : memref<9x128x128xbf16, #tpu.memory_space<vmem>>, vector<1x128x128xbf16>
    %36 = vector.shape_cast %35 : vector<1x128x128xbf16> to vector<128x128xbf16>
    %cst_38 = arith.constant dense<0.000000e+00> : vector<32x128xf32>
    %37 = tpu.matmul %34, %36, %cst_38 {dimension_numbers = #tpu.dot_dimension_numbers<[1], [0], [0], [1], [0, 0, 1, 1], [], []>} : vector<32x128xbf16>, vector<128x128xbf16>, vector<32x128xf32> -> vector<32x128xf32>
    %38 = arith.addf %33, %37 : vector<32x128xf32>
    %c0_39 = arith.constant 0 : index
    %c0_40 = arith.constant 0 : index
    %39 = vector.load %arg9[%c0_39, %c0_40] : memref<32x128xbf16, #tpu.memory_space<vmem>>, vector<32x128xbf16>
    %c8 = arith.constant 8 : index
    %c0_41 = arith.constant 0 : index
    %c0_42 = arith.constant 0 : index
    %40 = vector.load %arg10[%c8, %c0_41, %c0_42] : memref<9x128x128xbf16, #tpu.memory_space<vmem>>, vector<1x128x128xbf16>
    %41 = vector.shape_cast %40 : vector<1x128x128xbf16> to vector<128x128xbf16>
    %cst_43 = arith.constant dense<0.000000e+00> : vector<32x128xf32>
    %42 = tpu.matmul %39, %41, %cst_43 {dimension_numbers = #tpu.dot_dimension_numbers<[1], [0], [0], [1], [0, 0, 1, 1], [], []>} : vector<32x128xbf16>, vector<128x128xbf16>, vector<32x128xf32> -> vector<32x128xf32>
    %43 = arith.addf %38, %42 : vector<32x128xf32>
    %c0_44 = arith.constant 0 : index
    %c0_45 = arith.constant 0 : index
    %44 = vector.load %arg11[%c0_44, %c0_45] : memref<1x128xf32, #tpu.memory_space<vmem>>, vector<1x128xf32>
    %45 = vector.broadcast %44 : vector<1x128xf32> to vector<32x128xf32>
    %46 = arith.mulf %43, %45 : vector<32x128xf32>
    %c0_46 = arith.constant 0 : index
    %c0_47 = arith.constant 0 : index
    %47 = vector.load %arg12[%c0_46, %c0_47] : memref<1x128xf32, #tpu.memory_space<vmem>>, vector<1x128xf32>
    %48 = vector.broadcast %47 : vector<1x128xf32> to vector<32x128xf32>
    %49 = arith.addf %46, %48 : vector<32x128xf32>
    %c0_48 = arith.constant 0 : index
    %c0_49 = arith.constant 0 : index
    %50 = vector.load %arg13[%c0_48, %c0_49] : memref<32x128xbf16, #tpu.memory_space<vmem>>, vector<32x128xbf16>
    %51 = arith.extf %50 : vector<32x128xbf16> to vector<32x128xf32>
    %52 = arith.addf %49, %51 : vector<32x128xf32>
    %cst_50 = arith.constant 0.000000e+00 : f32
    %53 = vector.broadcast %cst_50 : f32 to vector<32x128xf32>
    %54 = arith.maximumf %52, %53 : vector<32x128xf32>
    %55 = arith.truncf %54 : vector<32x128xf32> to vector<32x128xbf16>
    %c0_51 = arith.constant 0 : index
    %c0_52 = arith.constant 0 : index
    %56 = vector.load %arg14[%c0_51, %c0_52] : memref<32x128xbf16, #tpu.memory_space<vmem>>, vector<32x128xbf16>
    tpu.vector_store %arg14[%c0_51, %c0_52], %55 {strides = array<i32>} : memref<32x128xbf16, #tpu.memory_space<vmem>>, vector<32x128xbf16>,
    return
  }
  func.func @transform_0(%arg0: i32) -> (i32, i32) {
    %c0_i32 = arith.constant 0 : i32
    %c0_i32_0 = arith.constant 0 : i32
    return %arg0, %c0_i32 : i32, i32
  }
  func.func @transform_1(%arg0: i32) -> (i32, i32) {
    %c0_i32 = arith.constant 0 : i32
    %c0_i32_0 = arith.constant 0 : i32
    return %arg0, %c0_i32 : i32, i32
  }
  func.func @transform_2(%arg0: i32) -> (i32, i32) {
    %c0_i32 = arith.constant 0 : i32
    %c0_i32_0 = arith.constant 0 : i32
    return %arg0, %c0_i32 : i32, i32
  }
  func.func @transform_3(%arg0: i32) -> (i32, i32) {
    %c0_i32 = arith.constant 0 : i32
    %c0_i32_0 = arith.constant 0 : i32
    return %arg0, %c0_i32 : i32, i32
  }
  func.func @transform_4(%arg0: i32) -> (i32, i32) {
    %c0_i32 = arith.constant 0 : i32
    %c0_i32_0 = arith.constant 0 : i32
    return %arg0, %c0_i32 : i32, i32
  }
  func.func @transform_5(%arg0: i32) -> (i32, i32) {
    %c0_i32 = arith.constant 0 : i32
    %c0_i32_0 = arith.constant 0 : i32
    return %arg0, %c0_i32 : i32, i32
  }
  func.func @transform_6(%arg0: i32) -> (i32, i32) {
    %c0_i32 = arith.constant 0 : i32
    %c0_i32_0 = arith.constant 0 : i32
    return %arg0, %c0_i32 : i32, i32
  }
  func.func @transform_7(%arg0: i32) -> (i32, i32) {
    %c0_i32 = arith.constant 0 : i32
    %c0_i32_0 = arith.constant 0 : i32
    return %arg0, %c0_i32 : i32, i32
  }
  func.func @transform_8(%arg0: i32) -> (i32, i32) {
    %c0_i32 = arith.constant 0 : i32
    %c0_i32_0 = arith.constant 0 : i32
    return %arg0, %c0_i32 : i32, i32
  }
  func.func @transform_9(%arg0: i32) -> (i32, i32, i32) {
    %c0_i32 = arith.constant 0 : i32
    %c0_i32_0 = arith.constant 0 : i32
    %c0_i32_1 = arith.constant 0 : i32
    %c0_i32_2 = arith.constant 0 : i32
    return %c0_i32, %c0_i32_0, %c0_i32_1 : i32, i32, i32
  }
  func.func @transform_10(%arg0: i32) -> (i32, i32) {
    %c0_i32 = arith.constant 0 : i32
    %c0_i32_0 = arith.constant 0 : i32
    %c0_i32_1 = arith.constant 0 : i32
    return %c0_i32, %c0_i32_0 : i32, i32
  }
  func.func @transform_11(%arg0: i32) -> (i32, i32) {
    %c0_i32 = arith.constant 0 : i32
    %c0_i32_0 = arith.constant 0 : i32
    %c0_i32_1 = arith.constant 0 : i32
    return %c0_i32, %c0_i32_0 : i32, i32
  }
  func.func @transform_12(%arg0: i32) -> (i32, i32) {
    %c0_i32 = arith.constant 0 : i32
    %c0_i32_0 = arith.constant 0 : i32
    return %arg0, %c0_i32 : i32, i32
  }
  func.func @transform_13(%arg0: i32) -> (i32, i32) {
    %c0_i32 = arith.constant 0 : i32
    %c0_i32_0 = arith.constant 0 : i32
    return %arg0, %c0_i32 : i32, i32
  }
}

module attributes {stable_mosaic.version = 11 : i64} {
  func.func @kernel(%arg0: i32, %arg1: memref<32x128xbf16, #tpu.memory_space<vmem>>, %arg2: memref<1x128x512xbf16, #tpu.memory_space<vmem>>, %arg3: memref<1x512xf32, #tpu.memory_space<vmem>>, %arg4: memref<1x512xf32, #tpu.memory_space<vmem>>, %arg5: memref<32x512xbf16, #tpu.memory_space<vmem>>) attributes {dimension_semantics = [#tpu.dimension_semantics<parallel>], iteration_bounds = array<i64: 1>, scalar_prefetch = 0 : i64, scratch_operands = 0 : i64, tpu.core_type = #tpu.core_type<tc>, window_params = [{transform_indices = @transform_0, window_bounds = array<i64: 32, 128>}, {pipeline_mode = #tpu.pipeline_mode<synchronous>, transform_indices = @transform_1, window_bounds = array<i64: 1, 128, 512>}, {pipeline_mode = #tpu.pipeline_mode<synchronous>, transform_indices = @transform_2, window_bounds = array<i64: 1, 512>}, {pipeline_mode = #tpu.pipeline_mode<synchronous>, transform_indices = @transform_3, window_bounds = array<i64: 1, 512>}, {transform_indices = @transform_4, window_bounds = array<i64: 32, 512>}]} {
    %c0 = arith.constant 0 : index
    %c0_0 = arith.constant 0 : index
    %0 = vector.load %arg1[%c0, %c0_0] : memref<32x128xbf16, #tpu.memory_space<vmem>>, vector<32x128xbf16>
    %c0_1 = arith.constant 0 : index
    %c0_2 = arith.constant 0 : index
    %c0_3 = arith.constant 0 : index
    %1 = vector.load %arg2[%c0_1, %c0_2, %c0_3] : memref<1x128x512xbf16, #tpu.memory_space<vmem>>, vector<1x128x512xbf16>
    %2 = vector.shape_cast %1 : vector<1x128x512xbf16> to vector<128x512xbf16>
    %cst = arith.constant dense<0.000000e+00> : vector<32x512xf32>
    %3 = tpu.matmul %0, %2, %cst {dimension_numbers = #tpu.dot_dimension_numbers<[1], [0], [0], [1], [0, 0, 1, 1], [], []>} : vector<32x128xbf16>, vector<128x512xbf16>, vector<32x512xf32> -> vector<32x512xf32>
    %c0_4 = arith.constant 0 : index
    %c0_5 = arith.constant 0 : index
    %4 = vector.load %arg3[%c0_4, %c0_5] : memref<1x512xf32, #tpu.memory_space<vmem>>, vector<1x512xf32>
    %5 = vector.broadcast %4 : vector<1x512xf32> to vector<32x512xf32>
    %6 = arith.mulf %3, %5 : vector<32x512xf32>
    %c0_6 = arith.constant 0 : index
    %c0_7 = arith.constant 0 : index
    %7 = vector.load %arg4[%c0_6, %c0_7] : memref<1x512xf32, #tpu.memory_space<vmem>>, vector<1x512xf32>
    %8 = vector.broadcast %7 : vector<1x512xf32> to vector<32x512xf32>
    %9 = arith.addf %6, %8 : vector<32x512xf32>
    %cst_8 = arith.constant 0.000000e+00 : f32
    %10 = vector.broadcast %cst_8 : f32 to vector<32x512xf32>
    %11 = arith.maximumf %9, %10 : vector<32x512xf32>
    %12 = arith.truncf %11 : vector<32x512xf32> to vector<32x512xbf16>
    %c0_9 = arith.constant 0 : index
    %c0_10 = arith.constant 0 : index
    %13 = vector.load %arg5[%c0_9, %c0_10] : memref<32x512xbf16, #tpu.memory_space<vmem>>, vector<32x512xbf16>
    tpu.vector_store %arg5[%c0_9, %c0_10], %12 {strides = array<i32>} : memref<32x512xbf16, #tpu.memory_space<vmem>>, vector<32x512xbf16>,
    return
  }
  func.func @transform_0(%arg0: i32) -> (i32, i32) {
    %c0_i32 = arith.constant 0 : i32
    %c0_i32_0 = arith.constant 0 : i32
    return %arg0, %c0_i32 : i32, i32
  }
  func.func @transform_1(%arg0: i32) -> (i32, i32, i32) {
    %c0_i32 = arith.constant 0 : i32
    %c0_i32_0 = arith.constant 0 : i32
    %c0_i32_1 = arith.constant 0 : i32
    %c0_i32_2 = arith.constant 0 : i32
    return %c0_i32, %c0_i32_0, %c0_i32_1 : i32, i32, i32
  }
  func.func @transform_2(%arg0: i32) -> (i32, i32) {
    %c0_i32 = arith.constant 0 : i32
    %c0_i32_0 = arith.constant 0 : i32
    %c0_i32_1 = arith.constant 0 : i32
    return %c0_i32, %c0_i32_0 : i32, i32
  }
  func.func @transform_3(%arg0: i32) -> (i32, i32) {
    %c0_i32 = arith.constant 0 : i32
    %c0_i32_0 = arith.constant 0 : i32
    %c0_i32_1 = arith.constant 0 : i32
    return %c0_i32, %c0_i32_0 : i32, i32
  }
  func.func @transform_4(%arg0: i32) -> (i32, i32) {
    %c0_i32 = arith.constant 0 : i32
    %c0_i32_0 = arith.constant 0 : i32
    return %arg0, %c0_i32 : i32, i32
  }
}

module attributes {stable_mosaic.version = 11 : i64} {
  func.func @kernel(%arg0: i32, %arg1: memref<64x128xbf16, #tpu.memory_space<vmem>>, %arg2: memref<1x128x512xbf16, #tpu.memory_space<vmem>>, %arg3: memref<1x512xf32, #tpu.memory_space<vmem>>, %arg4: memref<1x512xf32, #tpu.memory_space<vmem>>, %arg5: memref<64x512xbf16, #tpu.memory_space<vmem>>) attributes {dimension_semantics = [#tpu.dimension_semantics<parallel>], iteration_bounds = array<i64: 2>, scalar_prefetch = 0 : i64, scratch_operands = 0 : i64, tpu.core_type = #tpu.core_type<tc>, window_params = [{transform_indices = @transform_0, window_bounds = array<i64: 64, 128>}, {pipeline_mode = #tpu.pipeline_mode<synchronous>, transform_indices = @transform_1, window_bounds = array<i64: 1, 128, 512>}, {pipeline_mode = #tpu.pipeline_mode<synchronous>, transform_indices = @transform_2, window_bounds = array<i64: 1, 512>}, {pipeline_mode = #tpu.pipeline_mode<synchronous>, transform_indices = @transform_3, window_bounds = array<i64: 1, 512>}, {transform_indices = @transform_4, window_bounds = array<i64: 64, 512>}]} {
    %c0 = arith.constant 0 : index
    %c0_0 = arith.constant 0 : index
    %0 = vector.load %arg1[%c0, %c0_0] : memref<64x128xbf16, #tpu.memory_space<vmem>>, vector<64x128xbf16>
    %c0_1 = arith.constant 0 : index
    %c0_2 = arith.constant 0 : index
    %c0_3 = arith.constant 0 : index
    %1 = vector.load %arg2[%c0_1, %c0_2, %c0_3] : memref<1x128x512xbf16, #tpu.memory_space<vmem>>, vector<1x128x512xbf16>
    %2 = vector.shape_cast %1 : vector<1x128x512xbf16> to vector<128x512xbf16>
    %cst = arith.constant dense<0.000000e+00> : vector<64x512xf32>
    %3 = tpu.matmul %0, %2, %cst {dimension_numbers = #tpu.dot_dimension_numbers<[1], [0], [0], [1], [0, 0, 1, 1], [], []>} : vector<64x128xbf16>, vector<128x512xbf16>, vector<64x512xf32> -> vector<64x512xf32>
    %c0_4 = arith.constant 0 : index
    %c0_5 = arith.constant 0 : index
    %4 = vector.load %arg3[%c0_4, %c0_5] : memref<1x512xf32, #tpu.memory_space<vmem>>, vector<1x512xf32>
    %5 = vector.broadcast %4 : vector<1x512xf32> to vector<64x512xf32>
    %6 = arith.mulf %3, %5 : vector<64x512xf32>
    %c0_6 = arith.constant 0 : index
    %c0_7 = arith.constant 0 : index
    %7 = vector.load %arg4[%c0_6, %c0_7] : memref<1x512xf32, #tpu.memory_space<vmem>>, vector<1x512xf32>
    %8 = vector.broadcast %7 : vector<1x512xf32> to vector<64x512xf32>
    %9 = arith.addf %6, %8 : vector<64x512xf32>
    %cst_8 = arith.constant 0.000000e+00 : f32
    %10 = vector.broadcast %cst_8 : f32 to vector<64x512xf32>
    %11 = arith.maximumf %9, %10 : vector<64x512xf32>
    %12 = arith.truncf %11 : vector<64x512xf32> to vector<64x512xbf16>
    %c0_9 = arith.constant 0 : index
    %c0_10 = arith.constant 0 : index
    %13 = vector.load %arg5[%c0_9, %c0_10] : memref<64x512xbf16, #tpu.memory_space<vmem>>, vector<64x512xbf16>
    tpu.vector_store %arg5[%c0_9, %c0_10], %12 {strides = array<i32>} : memref<64x512xbf16, #tpu.memory_space<vmem>>, vector<64x512xbf16>,
    return
  }
  func.func @transform_0(%arg0: i32) -> (i32, i32) {
    %c0_i32 = arith.constant 0 : i32
    %c0_i32_0 = arith.constant 0 : i32
    return %arg0, %c0_i32 : i32, i32
  }
  func.func @transform_1(%arg0: i32) -> (i32, i32, i32) {
    %c0_i32 = arith.constant 0 : i32
    %c0_i32_0 = arith.constant 0 : i32
    %c0_i32_1 = arith.constant 0 : i32
    %c0_i32_2 = arith.constant 0 : i32
    return %c0_i32, %c0_i32_0, %c0_i32_1 : i32, i32, i32
  }
  func.func @transform_2(%arg0: i32) -> (i32, i32) {
    %c0_i32 = arith.constant 0 : i32
    %c0_i32_0 = arith.constant 0 : i32
    %c0_i32_1 = arith.constant 0 : i32
    return %c0_i32, %c0_i32_0 : i32, i32
  }
  func.func @transform_3(%arg0: i32) -> (i32, i32) {
    %c0_i32 = arith.constant 0 : i32
    %c0_i32_0 = arith.constant 0 : i32
    %c0_i32_1 = arith.constant 0 : i32
    return %c0_i32, %c0_i32_0 : i32, i32
  }
  func.func @transform_4(%arg0: i32) -> (i32, i32) {
    %c0_i32 = arith.constant 0 : i32
    %c0_i32_0 = arith.constant 0 : i32
    return %arg0, %c0_i32 : i32, i32
  }
}

module attributes {stable_mosaic.version = 11 : i64} {
  func.func @kernel(%arg0: i32, %arg1: memref<256x128xbf16, #tpu.memory_space<vmem>>, %arg2: memref<1x128x128xbf16, #tpu.memory_space<vmem>>, %arg3: memref<1x128xf32, #tpu.memory_space<vmem>>, %arg4: memref<1x128xf32, #tpu.memory_space<vmem>>, %arg5: memref<256x128xf32, #tpu.memory_space<vmem>>) attributes {dimension_semantics = [#tpu.dimension_semantics<parallel>], iteration_bounds = array<i64: 2>, scalar_prefetch = 0 : i64, scratch_operands = 0 : i64, tpu.core_type = #tpu.core_type<tc>, window_params = [{transform_indices = @transform_0, window_bounds = array<i64: 256, 128>}, {pipeline_mode = #tpu.pipeline_mode<synchronous>, transform_indices = @transform_1, window_bounds = array<i64: 1, 128, 128>}, {pipeline_mode = #tpu.pipeline_mode<synchronous>, transform_indices = @transform_2, window_bounds = array<i64: 1, 128>}, {pipeline_mode = #tpu.pipeline_mode<synchronous>, transform_indices = @transform_3, window_bounds = array<i64: 1, 128>}, {transform_indices = @transform_4, window_bounds = array<i64: 256, 128>}]} {
    %c0 = arith.constant 0 : index
    %c0_0 = arith.constant 0 : index
    %0 = vector.load %arg1[%c0, %c0_0] : memref<256x128xbf16, #tpu.memory_space<vmem>>, vector<256x128xbf16>
    %c0_1 = arith.constant 0 : index
    %c0_2 = arith.constant 0 : index
    %c0_3 = arith.constant 0 : index
    %1 = vector.load %arg2[%c0_1, %c0_2, %c0_3] : memref<1x128x128xbf16, #tpu.memory_space<vmem>>, vector<1x128x128xbf16>
    %2 = vector.shape_cast %1 : vector<1x128x128xbf16> to vector<128x128xbf16>
    %cst = arith.constant dense<0.000000e+00> : vector<256x128xf32>
    %3 = tpu.matmul %0, %2, %cst {dimension_numbers = #tpu.dot_dimension_numbers<[1], [0], [0], [1], [0, 0, 1, 1], [], []>} : vector<256x128xbf16>, vector<128x128xbf16>, vector<256x128xf32> -> vector<256x128xf32>
    %c0_4 = arith.constant 0 : index
    %c0_5 = arith.constant 0 : index
    %4 = vector.load %arg3[%c0_4, %c0_5] : memref<1x128xf32, #tpu.memory_space<vmem>>, vector<1x128xf32>
    %5 = vector.broadcast %4 : vector<1x128xf32> to vector<256x128xf32>
    %6 = arith.mulf %3, %5 : vector<256x128xf32>
    %c0_6 = arith.constant 0 : index
    %c0_7 = arith.constant 0 : index
    %7 = vector.load %arg4[%c0_6, %c0_7] : memref<1x128xf32, #tpu.memory_space<vmem>>, vector<1x128xf32>
    %8 = vector.broadcast %7 : vector<1x128xf32> to vector<256x128xf32>
    %9 = arith.addf %6, %8 : vector<256x128xf32>
    %c0_8 = arith.constant 0 : index
    %c0_9 = arith.constant 0 : index
    %10 = vector.load %arg5[%c0_8, %c0_9] : memref<256x128xf32, #tpu.memory_space<vmem>>, vector<256x128xf32>
    tpu.vector_store %arg5[%c0_8, %c0_9], %9 {strides = array<i32>} : memref<256x128xf32, #tpu.memory_space<vmem>>, vector<256x128xf32>,
    return
  }
  func.func @transform_0(%arg0: i32) -> (i32, i32) {
    %c0_i32 = arith.constant 0 : i32
    %c0_i32_0 = arith.constant 0 : i32
    return %arg0, %c0_i32 : i32, i32
  }
  func.func @transform_1(%arg0: i32) -> (i32, i32, i32) {
    %c0_i32 = arith.constant 0 : i32
    %c0_i32_0 = arith.constant 0 : i32
    %c0_i32_1 = arith.constant 0 : i32
    %c0_i32_2 = arith.constant 0 : i32
    return %c0_i32, %c0_i32_0, %c0_i32_1 : i32, i32, i32
  }
  func.func @transform_2(%arg0: i32) -> (i32, i32) {
    %c0_i32 = arith.constant 0 : i32
    %c0_i32_0 = arith.constant 0 : i32
    %c0_i32_1 = arith.constant 0 : i32
    return %c0_i32, %c0_i32_0 : i32, i32
  }
  func.func @transform_3(%arg0: i32) -> (i32, i32) {
    %c0_i32 = arith.constant 0 : i32
    %c0_i32_0 = arith.constant 0 : i32
    %c0_i32_1 = arith.constant 0 : i32
    return %c0_i32, %c0_i32_0 : i32, i32
  }
  func.func @transform_4(%arg0: i32) -> (i32, i32) {
    %c0_i32 = arith.constant 0 : i32
    %c0_i32_0 = arith.constant 0 : i32
    return %arg0, %c0_i32 : i32, i32
  }
}

</mosaic_0001>

<bundles_post_ra>
// kernel: colorization_net_forward.13
= control target key start
LH: loop header
LB: loop body
LE: loop exit
PB: predicated region body
PF: predicated region fallthrough
CT: control target
= control target key end

     0   :  { %s1219_s15 = smov 0   ;;  %s1381_s0 = inlined_call_operand.vmem [shape: bf16[512,64], index: 0, kind: input, shape index: {}]   ;;  %s1382_s1 = inlined_call_operand.vmem [shape: bf16[1,64,128], index: 1, kind: input, shape index: {}]   ;;  %s1383_s2 = inlined_call_operand.vmem [shape: f32[1,128], index: 2, kind: input, shape index: {}]   ;;  %s1384_s3 = inlined_call_operand.vmem [shape: f32[1,128], index: 3, kind: input, shape index: {}]   ;;  %s1385_s4 = inlined_call_operand.vmem [shape: bf16[512,128], index: 4, kind: output, shape index: {}]  }
   0x1 LB: > { %s882_s16 = sadd.s32 4294967295, %s1192_s15   ;;  %p886_p0 = scmp.ge.s32.totalorder %s1192_s15, 1  ;;  %s1192_s15 = sphi %s1219_s15, %s14_s15  }
   0x2   : > { %p163_p1 = scmp.lt.s32.totalorder %s1192_s15, 3 }
   0x4   : > { %p164_p2 = pnand %p886_p0, %p163_p1 }
   0x5   : > { %s887_s19 = sshll.u32 (!%p164_p2), %s882_s16, 5 }
   0x6   : > { %167 = sbr.rel (%p164_p2) target bundleno = 260 (0x104), region = 36  ;;  %p190_p3 = scmp.lt.s32.totalorder (!%p164_p2), %s887_s19, 63 }
   0xb   : > { %v1166_v0 = vld [vmem:[%s1382_s1 + $0x18] sm:$0xff]   ;;  %v1167_v1 = vld [vmem:[%s1382_s1 + $0x10] sm:$0xff]   ;;  %s1387_s19 = smov (!%p190_p3, %s887_s19), 63  ;;  %v1168_v2 = vld [vmem:[%s1382_s1 + $0x8] sm:$0xff]   ;;  %vm346_vm0 = vcmask 523264  }
   0xc   : > { %1110 = vmatprep.subr.bf16.mxu0 %v1166_v0  ;;  %1150 = vmatprep.subr.bf16.mxu1 %v1166_v0  ;;  %s888_s24 = sshll.u32 %s1387_s19, 2  ;;  %v1169_v3 = vld [vmem:[%s1382_s1] sm:$0xff]  }
   0xd   : > { %1111 = vmatpush3.bf16.msra.mxu0 %v1166_v0  ;;  %1154 = vmatpush3.bf16.msra.mxu1 %v1166_v0  ;;  %s1247_s29 = scalar_lea.vmem %s1381_s0, %s888_s24  ;;  %v1284_v20 = vld [vmem:[%s1383_s2] ss:$0 sm:$0xff]  ;;  %s1314_s10 = scalar_lea.vmem %s1385_s4, %s888_s24 }
   0xe   : > { %1112 = vmatprep.subr.bf16.mxu0 %v1167_v1  ;;  %1151 = vmatprep.subr.bf16.mxu1 %v1167_v1  ;;  %v1170_v4 = vld [vmem:[%s1247_s29] sm:$0xff]   ;;  %v1172_v6 = vld [vmem:[%s1247_s29 + $0x8] sm:$0xff]   ;;  %v1174_v8 = vld [vmem:[%s1247_s29 + $0x10] sm:$0xff]  }
   0xf   : > { %v1171_v5 = vld [vmem:[%s1247_s29 + $0x40] sm:$0xff]   ;;  %1118 = vmatprep.mubr.msk.bf16.mxu0 %vm346_vm0, %v1170_v4  ;;  %v1173_v7 = vld [vmem:[%s1247_s29 + $0x48] sm:$0xff]   ;;  %v1175_v9 = vld [vmem:[%s1247_s29 + $0x50] sm:$0xff]  }
  0x10   : > { %1134 = vmatprep.mubr.msk.bf16.mxu1 %vm346_vm0, %v1171_v5  ;;  %v1176_v10 = vld [vmem:[%s1247_s29 + $0x18] sm:$0xff]   ;;  %v1178_v12 = vld [vmem:[%s1247_s29 + $0x20] sm:$0xff]   ;;  %v1180_v14 = vld [vmem:[%s1247_s29 + $0x28] sm:$0xff]  }
  0x11   : > { %1113 = vmatpush3.bf16.msra.mxu0 %v1167_v1  ;;  %1155 = vmatpush3.bf16.msra.mxu1 %v1167_v1  ;;  %v1177_v11 = vld [vmem:[%s1247_s29 + $0x58] sm:$0xff]   ;;  %v1179_v13 = vld [vmem:[%s1247_s29 + $0x60] sm:$0xff]   ;;  %v1181_v15 = vld [vmem:[%s1247_s29 + $0x68] sm:$0xff]  }
  0x12   : > { %1114 = vmatprep.subr.bf16.mxu0 %v1168_v2  ;;  %1152 = vmatprep.subr.bf16.mxu1 %v1168_v2  ;;  %v1182_v16 = vld [vmem:[%s1247_s29 + $0x30] sm:$0xff]   ;;  %v1184_v18 = vld [vmem:[%s1247_s29 + $0x38] sm:$0xff]   ;;  %v1291_v25 = vld [vmem:[%s1384_s3] ss:$0 sm:$0xff] }
  0x13   : > { %v1183_v17 = vld [vmem:[%s1247_s29 + $0x70] sm:$0xff]   ;;  %v1185_v19 = vld [vmem:[%s1247_s29 + $0x78] sm:$0xff]  }
  0x15   : > { %1115 = vmatpush3.bf16.msra.mxu0 %v1168_v2  ;;  %1156 = vmatpush3.bf16.msra.mxu1 %v1168_v2 }
  0x16   : > { %1116 = vmatprep.subr.bf16.mxu0 %v1169_v3  ;;  %1153 = vmatprep.subr.bf16.mxu1 %v1169_v3 }
  0x19   : > { %1117 = vmatpush3.bf16.msra.mxu0 %v1169_v3  ;;  %1157 = vmatpush3.bf16.msra.mxu1 %v1169_v3 }
  0x1c   : > { %1119 = vmatmul.mubr.msk.bf16.vlgmr.msra.gmra.mxu0 %vm346_vm0, %v1172_v6  ;;  %1135 = vmatmul.mubr.msk.bf16.vlgmr.msra.gmra.mxu1 %vm346_vm0, %v1173_v7 }
  0x1d   : > { %1122 = vmatprep.mubr.msk.bf16.mxu0 %vm346_vm0, %v1174_v8  ;;  %1138 = vmatprep.mubr.msk.bf16.mxu1 %vm346_vm0, %v1175_v9 }
  0x24   : > { %1123 = vmatmul.mubr.msk.bf16.gmra.mxu0 %vm346_vm0, %v1176_v10  ;;  %1139 = vmatmul.mubr.msk.bf16.gmra.mxu1 %vm346_vm0, %v1177_v11 }
  0x25   : > { %1126 = vmatprep.mubr.msk.bf16.mxu0 %vm346_vm0, %v1178_v12  ;;  %1142 = vmatprep.mubr.msk.bf16.mxu1 %vm346_vm0, %v1179_v13 }
  0x2c   : > { %1127 = vmatmul.mubr.msk.bf16.gmra.mxu0 %vm346_vm0, %v1180_v14  ;;  %1143 = vmatmul.mubr.msk.bf16.gmra.mxu1 %vm346_vm0, %v1181_v15 }
  0x2d   : > { %1130 = vmatprep.mubr.msk.bf16.mxu0 %vm346_vm0, %v1182_v16  ;;  %1146 = vmatprep.mubr.msk.bf16.mxu1 %vm346_vm0, %v1183_v17 }
  0x34   : > { %1131 = vmatmul.mubr.msk.bf16.gmra.mxu0 %vm346_vm0, %v1184_v18  ;;  %1147 = vmatmul.mubr.msk.bf16.gmra.mxu1 %vm346_vm0, %v1185_v19 }
  0xdc   : > { %v1120_v21 = vpop.f32.mrf.mxu0  ;;  %v1136_v22 = vpop.f32.mrf.mxu1 }
  0xdd   : > { %v565_v23 = vmul.f32 %v1120_v21, %v1284_v20  ;;  %v581_v24 = vmul.f32 %v1136_v22, %v1284_v20 }
  0xde   : > { %v429_v26 = vpop.f32.mrf.mxu0  ;;  %v493_v27 = vpop.f32.mrf.mxu1 }
  0xdf   : > { %v563_v28 = vmul.f32 %v1284_v20, %v429_v26  ;;  %v579_v29 = vmul.f32 %v1284_v20, %v493_v27  ;;  %v604_v32 = vadd.f32 %v1291_v25, %v565_v23  ;;  %v620_v33 = vadd.f32 %v1291_v25, %v581_v24 }
  0xe0   : > { %v1121_v30 = vpop.f32.mrf.mxu0  ;;  %v1137_v31 = vpop.f32.mrf.mxu1 }
  0xe1   : > { %v566_v34 = vmul.f32 %v1121_v30, %v1284_v20  ;;  %v582_v35 = vmul.f32 %v1137_v31, %v1284_v20  ;;  %v602_v38 = vadd.f32 %v1291_v25, %v563_v28  ;;  %v618_v39 = vadd.f32 %v1291_v25, %v579_v29 }
  0xe2   : > { %v432_v36 = vpop.f32.mrf.mxu0  ;;  %v496_v37 = vpop.f32.mrf.mxu1  ;;  %v636_v46 = vmax.f32 %v604_v32, 0.0  ;;  %v652_v47 = vmax.f32 %v620_v33, 0.0 }
  0xe3   : > { %v564_v40 = vmul.f32 %v1284_v20, %v432_v36  ;;  %v580_v41 = vmul.f32 %v1284_v20, %v496_v37  ;;  %v605_v42 = vadd.f32 %v1291_v25, %v566_v34  ;;  %v621_v43 = vadd.f32 %v1291_v25, %v582_v35 }
  0xe4   : > { %v1124_v44 = vpop.f32.mrf.mxu0  ;;  %v1140_v45 = vpop.f32.mrf.mxu1  ;;  %v634_v56 = vmax.f32 %v602_v38, 0.0  ;;  %v650_v57 = vmax.f32 %v618_v39, 0.0 }
  0xe5   : > { %v603_v48 = vadd.f32 %v1291_v25, %v564_v40  ;;  %v619_v49 = vadd.f32 %v1291_v25, %v580_v41  ;;  %v637_v50 = vmax.f32 %v605_v42, 0.0  ;;  %v653_v51 = vmax.f32 %v621_v43, 0.0 }
  0xe6   : > { %v569_v52 = vmul.f32 %v1124_v44, %v1284_v20  ;;  %v585_v53 = vmul.f32 %v1140_v45, %v1284_v20  ;;  %v445_v54 = vpop.f32.mrf.mxu0  ;;  %v509_v55 = vpop.f32.mrf.mxu1 }
  0xe7   : > { %v635_v58 = vmax.f32 %v603_v48, 0.0  ;;  %v651_v59 = vmax.f32 %v619_v49, 0.0  ;;  %v1003_v60 = vpack.c.bf16 %v637_v50, %v636_v46  ;;  %v1043_v61 = vpack.c.bf16 %v653_v51, %v652_v47 }
  0xe8   : > { %v567_v62 = vmul.f32 %v1284_v20, %v445_v54  ;;  %v583_v63 = vmul.f32 %v1284_v20, %v509_v55  ;;  %v1125_v0 = vpop.f32.mrf.mxu0  ;;  %v1141_v1 = vpop.f32.mrf.mxu1  ;;  %v608_v4 = vadd.f32 %v1291_v25, %v569_v52  ;;  %v624_v5 = vadd.f32 %v1291_v25, %v585_v53 }
  0xe9   : > { %v998_v2 = vpack.c.bf16 %v635_v58, %v634_v56  ;;  %v1038_v3 = vpack.c.bf16 %v651_v59, %v650_v57  ;;  %1075 = vst [vmem:[%s1314_s10 + $0x8] sm:$0xff] %v1003_v60   ;;  %1083 = vst [vmem:[%s1314_s10 + $0x48] sm:$0xff] %v1043_v61   ;;  %v570_v6 = vmul.f32 %v1125_v0, %v1284_v20 }
  0xea   : > { %v586_v7 = vmul.f32 %v1141_v1, %v1284_v20  ;;  %v448_v8 = vpop.f32.mrf.mxu0  ;;  %v512_v9 = vpop.f32.mrf.mxu1  ;;  %v606_v10 = vadd.f32 %v1291_v25, %v567_v62  ;;  %v622_v11 = vadd.f32 %v1291_v25, %v583_v63  ;;  %v640_v23 = vmax.f32 %v608_v4, 0.0 }
  0xeb   : > { %999 = vst [vmem:[%s1314_s10] sm:$0xff] %v998_v2   ;;  %1082 = vst [vmem:[%s1314_s10 + $0x40] sm:$0xff] %v1038_v3   ;;  %v568_v12 = vmul.f32 %v1284_v20, %v448_v8  ;;  %v584_v13 = vmul.f32 %v1284_v20, %v512_v9  ;;  %v609_v14 = vadd.f32 %v1291_v25, %v570_v6  ;;  %v656_v24 = vmax.f32 %v624_v5, 0.0 }
  0xec   : > { %v625_v15 = vadd.f32 %v1291_v25, %v586_v7  ;;  %v1128_v16 = vpop.f32.mrf.mxu0  ;;  %v1144_v17 = vpop.f32.mrf.mxu1  ;;  %v638_v30 = vmax.f32 %v606_v10, 0.0  ;;  %v654_v31 = vmax.f32 %v622_v11, 0.0 }
  0xed   : > { %v607_v18 = vadd.f32 %v1291_v25, %v568_v12  ;;  %v623_v19 = vadd.f32 %v1291_v25, %v584_v13  ;;  %v573_v21 = vmul.f32 %v1128_v16, %v1284_v20  ;;  %v589_v22 = vmul.f32 %v1144_v17, %v1284_v20 }
  0xee   : > { %v641_v26 = vmax.f32 %v609_v14, 0.0  ;;  %v657_v27 = vmax.f32 %v625_v15, 0.0  ;;  %v461_v28 = vpop.f32.mrf.mxu0  ;;  %v525_v29 = vpop.f32.mrf.mxu1 }
  0xef   : > { %v639_v32 = vmax.f32 %v607_v18, 0.0  ;;  %v655_v33 = vmax.f32 %v623_v19, 0.0  ;;  %v571_v36 = vmul.f32 %v1284_v20, %v461_v28  ;;  %v587_v37 = vmul.f32 %v1284_v20, %v525_v29 }
  0xf0   : > { %v1013_v34 = vpack.c.bf16 %v641_v26, %v640_v23  ;;  %v1053_v35 = vpack.c.bf16 %v657_v27, %v656_v24  ;;  %v1129_v38 = vpop.f32.mrf.mxu0  ;;  %v1145_v39 = vpop.f32.mrf.mxu1  ;;  %v612_v42 = vadd.f32 %v1291_v25, %v573_v21  ;;  %v628_v43 = vadd.f32 %v1291_v25, %v589_v22 }
  0xf1   : > { %v1008_v40 = vpack.c.bf16 %v639_v32, %v638_v30  ;;  %v1048_v41 = vpack.c.bf16 %v655_v33, %v654_v31  ;;  %v574_v44 = vmul.f32 %v1129_v38, %v1284_v20  ;;  %v590_v45 = vmul.f32 %v1145_v39, %v1284_v20 }
  0xf2   : > { %1077 = vst [vmem:[%s1314_s10 + $0x18] sm:$0xff] %v1013_v34   ;;  %1085 = vst [vmem:[%s1314_s10 + $0x58] sm:$0xff] %v1053_v35   ;;  %v464_v46 = vpop.f32.mrf.mxu0  ;;  %v528_v47 = vpop.f32.mrf.mxu1  ;;  %v610_v48 = vadd.f32 %v1291_v25, %v571_v36  ;;  %v626_v49 = vadd.f32 %v1291_v25, %v587_v37  ;;  %v644_v56 = vmax.f32 %v612_v42, 0.0  ;;  %v660_v57 = vmax.f32 %v628_v43, 0.0 }
  0xf3   : > { %1076 = vst [vmem:[%s1314_s10 + $0x10] sm:$0xff] %v1008_v40   ;;  %1084 = vst [vmem:[%s1314_s10 + $0x50] sm:$0xff] %v1048_v41   ;;  %v572_v50 = vmul.f32 %v1284_v20, %v464_v46  ;;  %v588_v51 = vmul.f32 %v1284_v20, %v528_v47  ;;  %v613_v52 = vadd.f32 %v1291_v25, %v574_v44 }
  0xf4   : > { %v629_v53 = vadd.f32 %v1291_v25, %v590_v45  ;;  %v1132_v54 = vpop.f32.mrf.mxu0  ;;  %v1148_v55 = vpop.f32.mrf.mxu1  ;;  %v642_v2 = vmax.f32 %v610_v48, 0.0  ;;  %v658_v3 = vmax.f32 %v626_v49, 0.0 }
  0xf5   : > { %v611_v58 = vadd.f32 %v1291_v25, %v572_v50  ;;  %v627_v59 = vadd.f32 %v1291_v25, %v588_v51  ;;  %v645_v60 = vmax.f32 %v613_v52, 0.0  ;;  %v577_v62 = vmul.f32 %v1132_v54, %v1284_v20 }
  0xf6   : > { %v661_v61 = vmax.f32 %v629_v53, 0.0  ;;  %v593_v63 = vmul.f32 %v1148_v55, %v1284_v20  ;;  %v477_v0 = vpop.f32.mrf.mxu0  ;;  %v541_v1 = vpop.f32.mrf.mxu1 }
  0xf7   : > { %v643_v4 = vmax.f32 %v611_v58, 0.0  ;;  %v659_v5 = vmax.f32 %v627_v59, 0.0  ;;  %v1023_v6 = vpack.c.bf16 %v645_v60, %v644_v56  ;;  %v575_v8 = vmul.f32 %v1284_v20, %v477_v0 }
  0xf8   : > { %v1063_v7 = vpack.c.bf16 %v661_v61, %v660_v57  ;;  %v591_v9 = vmul.f32 %v1284_v20, %v541_v1  ;;  %v1133_v10 = vpop.f32.mrf.mxu0  ;;  %v1149_v11 = vpop.f32.mrf.mxu1  ;;  %v616_v14 = vadd.f32 %v1291_v25, %v577_v62  ;;  %v632_v15 = vadd.f32 %v1291_v25, %v593_v63 }
  0xf9   : > { %v1018_v12 = vpack.c.bf16 %v643_v4, %v642_v2  ;;  %v1058_v13 = vpack.c.bf16 %v659_v5, %v658_v3  ;;  %1079 = vst [vmem:[%s1314_s10 + $0x28] sm:$0xff] %v1023_v6   ;;  %v578_v16 = vmul.f32 %v1133_v10, %v1284_v20  ;;  %v594_v17 = vmul.f32 %v1149_v11, %v1284_v20 }
  0xfa   : > { %1087 = vst [vmem:[%s1314_s10 + $0x68] sm:$0xff] %v1063_v7   ;;  %v480_v18 = vpop.f32.mrf.mxu0  ;;  %v544_v19 = vpop.f32.mrf.mxu1  ;;  %v614_v21 = vadd.f32 %v1291_v25, %v575_v8  ;;  %v630_v22 = vadd.f32 %v1291_v25, %v591_v9  ;;  %v648_v30 = vmax.f32 %v616_v14, 0.0  ;;  %v664_v31 = vmax.f32 %v632_v15, 0.0 }
  0xfb   : > { %1078 = vst [vmem:[%s1314_s10 + $0x20] sm:$0xff] %v1018_v12   ;;  %1086 = vst [vmem:[%s1314_s10 + $0x60] sm:$0xff] %v1058_v13   ;;  %v576_v23 = vmul.f32 %v1284_v20, %v480_v18  ;;  %v592_v24 = vmul.f32 %v1284_v20, %v544_v19  ;;  %v617_v26 = vadd.f32 %v1291_v25, %v578_v16 }
  0xfc   : > { %v633_v27 = vadd.f32 %v1291_v25, %v594_v17  ;;  %v646_v34 = vmax.f32 %v614_v21, 0.0  ;;  %v662_v35 = vmax.f32 %v630_v22, 0.0 }
  0xfd   : > { %v615_v28 = vadd.f32 %v1291_v25, %v576_v23  ;;  %v631_v29 = vadd.f32 %v1291_v25, %v592_v24  ;;  %v649_v32 = vmax.f32 %v617_v26, 0.0 }
  0xfe   : > { %v665_v33 = vmax.f32 %v633_v27, 0.0 }
  0xff   : > { %v647_v36 = vmax.f32 %v615_v28, 0.0  ;;  %v663_v20 = vmax.f32 %v631_v29, 0.0  ;;  %v1033_v37 = vpack.c.bf16 %v649_v32, %v648_v30 }
 0x100   : > { %v1073_v38 = vpack.c.bf16 %v665_v33, %v664_v31 }
 0x101   : > { %v1028_v39 = vpack.c.bf16 %v647_v36, %v646_v34  ;;  %v1068_v40 = vpack.c.bf16 %v663_v20, %v662_v35  ;;  %1081 = vst [vmem:[%s1314_s10 + $0x38] sm:$0xff] %v1033_v37  }
 0x102   : > { %1089 = vst [vmem:[%s1314_s10 + $0x78] sm:$0xff] %v1073_v38  }
 0x103   : > { %1080 = vst [vmem:[%s1314_s10 + $0x30] sm:$0xff] %v1028_v39   ;;  %1088 = vst [vmem:[%s1314_s10 + $0x70] sm:$0xff] %v1068_v40  }
 0x104 PF: > { %s14_s15 = sadd.s32 1, %s1192_s15  }
 0x105   : > { %p11_p4 = scmp.ge.s32.totalorder %s14_s15, 4  }
 0x107   :  { %13 = sbr.rel (!%p11_p4) target bundleno = 1 (0x1), region = 66 }

// kernel: colorization_net_forward.14
= control target key start
LH: loop header
LB: loop body
LE: loop exit
PB: predicated region body
PF: predicated region fallthrough
CT: control target
= control target key end

     0   :  { %s1215_s30 = smov 0   ;;  %s1332_s0 = inlined_call_operand.vmem [shape: bf16[128,128], index: 0, kind: input, shape index: {}]   ;;  %s1333_s1 = inlined_call_operand.vmem [shape: bf16[128,128], index: 1, kind: input, shape index: {}]   ;;  %s1334_s2 = inlined_call_operand.vmem [shape: bf16[128,128], index: 2, kind: input, shape index: {}]   ;;  %s1335_s3 = inlined_call_operand.vmem [shape: bf16[128,128], index: 3, kind: input, shape index: {}]   ;;  %s1336_s4 = inlined_call_operand.vmem [shape: bf16[128,128], index: 4, kind: input, shape index: {}]   ;;  %s1337_s5 = inlined_call_operand.vmem [shape: bf16[128,128], index: 5, kind: input, shape index: {}]   ;;  %s1338_s6 = inlined_call_operand.vmem [shape: bf16[128,128], index: 6, kind: input, shape index: {}]   ;;  %s1339_s7 = inlined_call_operand.vmem [shape: bf16[128,128], index: 7, kind: input, shape index: {}]   ;;  %s1340_s8 = inlined_call_operand.vmem [shape: bf16[128,128], index: 8, kind: input, shape index: {}]   ;;  %s1341_s9 = inlined_call_operand.vmem [shape: bf16[128,128], index: 9, kind: output, shape index: {}]  }
   0x1 LB: > { %s912_s10 = sadd.s32 4294967295, %s1163_s30   ;;  %p916_p0 = scmp.ge.s32.totalorder %s1163_s30, 1  ;;  %s1163_s30 = sphi %s1215_s30, %s19_s30  }
   0x2   : > { %p376_p1 = scmp.lt.s32.totalorder %s1163_s30, 3 }
   0x4   : > { %p377_p2 = pnand %p916_p0, %p376_p1 }
   0x5   : > { %s917_s11 = sshll.u32 (!%p377_p2), %s912_s10, 3 }
   0x6   : > { %380 = sbr.rel (%p377_p2) target bundleno = 60 (0x3c), region = 56  ;;  %p453_p3 = scmp.lt.s32.totalorder (!%p377_p2), %s917_s11, 15 }
   0xb   : > { %s1343_s11 = smov (!%p453_p3, %s917_s11), 15 }
   0xc   : > { %s1223_s12 = sshll.u32 %s1343_s11, 2 }
   0xd   : > { %s1229_s15 = scalar_lea.vmem %s1332_s0, %s1223_s12  ;;  %s1235_s18 = scalar_lea.vmem %s1333_s1, %s1223_s12 }
   0xe   : > { %s1241_s21 = scalar_lea.vmem %s1334_s2, %s1223_s12  ;;  %s1247_s24 = scalar_lea.vmem %s1335_s3, %s1223_s12  ;;  %v956_v0 = vld [vmem:[%s1229_s15] sm:$0xff]   ;;  %v1119_v19 = vld [vmem:[%s1229_s15 + $0x8] sm:$0xff]   ;;  %v1120_v61 = vld [vmem:[%s1229_s15 + $0x10] sm:$0xff]  }
   0xf   : > { %v972_v1 = vld [vmem:[%s1235_s18] sm:$0xff]   ;;  %s1255_s27 = scalar_lea.vmem %s1336_s4, %s1223_s12  ;;  %s1261_s10 = scalar_lea.vmem %s1337_s5, %s1223_s12  ;;  %v957_v2 = vunpack.c.l.bf16 %v956_v0  ;;  %v958_v3 = vunpack.c.h.bf16 %v956_v0  ;;  %v1122_v25 = vld [vmem:[%s1235_s18 + $0x8] sm:$0xff]   ;;  %v961_v34 = vunpack.c.l.bf16 %v1119_v19  ;;  %v962_v35 = vunpack.c.h.bf16 %v1119_v19 }
  0x10   : > { %v973_v4 = vunpack.c.l.bf16 %v972_v1  ;;  %v974_v5 = vunpack.c.h.bf16 %v972_v1  ;;  %v988_v6 = vld [vmem:[%s1241_s21] sm:$0xff]   ;;  %s1269_s14 = scalar_lea.vmem %s1338_s6, %s1223_s12  ;;  %s1275_s19 = scalar_lea.vmem %s1339_s7, %s1223_s12  ;;  %v1125_v30 = vld [vmem:[%s1241_s21 + $0x8] sm:$0xff]   ;;  %v977_v38 = vunpack.c.l.bf16 %v1122_v25  ;;  %v978_v39 = vunpack.c.h.bf16 %v1122_v25  ;;  %v1132_v25 = vld [vmem:[%s1255_s27 + $0x10] sm:$0xff]  }
  0x11   : > { %v1004_v7 = vld [vmem:[%s1247_s24] sm:$0xff]   ;;  %v989_v8 = vunpack.c.l.bf16 %v988_v6  ;;  %v990_v9 = vunpack.c.h.bf16 %v988_v6  ;;  %s1283_s23 = scalar_lea.vmem %s1340_s8, %s1223_s12  ;;  %v1128_v31 = vld [vmem:[%s1247_s24 + $0x8] sm:$0xff]   ;;  %v993_v42 = vunpack.c.l.bf16 %v1125_v30  ;;  %v994_v43 = vunpack.c.h.bf16 %v1125_v30  ;;  %v1123_v6 = vld [vmem:[%s1235_s18 + $0x10] sm:$0xff]   ;;  %s1310_s28 = scalar_lea.vmem %s1341_s9, %s1223_s12 }
  0x12   : > { %v1005_v10 = vunpack.c.l.bf16 %v1004_v7  ;;  %v1020_v11 = vld [vmem:[%s1255_s27] sm:$0xff]   ;;  %v544_v13 = vmax.f32 %v957_v2, %v973_v4  ;;  %v545_v14 = vmax.f32 %v958_v3, %v974_v5  ;;  %v1006_v15 = vunpack.c.h.bf16 %v1004_v7  ;;  %v1131_v40 = vld [vmem:[%s1255_s27 + $0x8] sm:$0xff]   ;;  %v1126_v7 = vld [vmem:[%s1241_s21 + $0x10] sm:$0xff]  }
  0x13   : > { %v1036_v12 = vld [vmem:[%s1261_s10] sm:$0xff]   ;;  %v1021_v16 = vunpack.c.l.bf16 %v1020_v11  ;;  %v1022_v20 = vunpack.c.h.bf16 %v1020_v11  ;;  %v1134_v41 = vld [vmem:[%s1261_s10 + $0x8] sm:$0xff]   ;;  %v1009_v44 = vunpack.c.l.bf16 %v1128_v31  ;;  %v1010_v45 = vunpack.c.h.bf16 %v1128_v31  ;;  %v1135_v30 = vld [vmem:[%s1261_s10 + $0x10] sm:$0xff]  }
  0x14   : > { %v1052_v17 = vld [vmem:[%s1269_s14] sm:$0xff]   ;;  %v1037_v21 = vunpack.c.l.bf16 %v1036_v12  ;;  %v1038_v22 = vunpack.c.h.bf16 %v1036_v12  ;;  %v568_v26 = vmax.f32 %v544_v13, %v989_v8  ;;  %v569_v27 = vmax.f32 %v545_v14, %v990_v9  ;;  %v1137_v50 = vld [vmem:[%s1269_s14 + $0x8] sm:$0xff]  }
  0x15   : > { %v1068_v18 = vld [vmem:[%s1275_s19] sm:$0xff]   ;;  %v1053_v23 = vunpack.c.l.bf16 %v1052_v17  ;;  %v1054_v28 = vunpack.c.h.bf16 %v1052_v17  ;;  %v546_v48 = vmax.f32 %v961_v34, %v977_v38  ;;  %v547_v49 = vmax.f32 %v962_v35, %v978_v39  ;;  %v1140_v51 = vld [vmem:[%s1275_s19 + $0x8] sm:$0xff]   ;;  %v1138_v35 = vld [vmem:[%s1269_s14 + $0x10] sm:$0xff]  }
  0x16   : > { %v1289_v24 = vld [vmem:[%s1283_s23] sm:$0xff]   ;;  %v1069_v29 = vunpack.c.l.bf16 %v1068_v18  ;;  %v1070_v32 = vunpack.c.h.bf16 %v1068_v18  ;;  %v592_v36 = vmax.f32 %v568_v26, %v1005_v10  ;;  %v593_v37 = vmax.f32 %v569_v27, %v1006_v15  ;;  %v1143_v60 = vld [vmem:[%s1283_s23 + $0x8] sm:$0xff]  }
  0x17   : > { %v1085_v33 = vunpack.c.l.bf16 %v1289_v24  ;;  %v1086_v52 = vunpack.c.h.bf16 %v1289_v24  ;;  %v1025_v53 = vunpack.c.l.bf16 %v1131_v40  ;;  %v1026_v54 = vunpack.c.h.bf16 %v1131_v40  ;;  %v1141_v40 = vld [vmem:[%s1275_s19 + $0x10] sm:$0xff]  }
  0x18   : > { %v616_v46 = vmax.f32 %v592_v36, %v1021_v16  ;;  %v617_v47 = vmax.f32 %v593_v37, %v1022_v20  ;;  %v1041_v55 = vunpack.c.l.bf16 %v1134_v41  ;;  %v570_v58 = vmax.f32 %v546_v48, %v993_v42  ;;  %v1129_v16 = vld [vmem:[%s1247_s24 + $0x10] sm:$0xff]  }
  0x19   : > { %v571_v59 = vmax.f32 %v547_v49, %v994_v43  ;;  %v1042_v62 = vunpack.c.h.bf16 %v1134_v41  ;;  %v1057_v63 = vunpack.c.l.bf16 %v1137_v50  ;;  %v1058_v0 = vunpack.c.h.bf16 %v1137_v50  ;;  %v1124_v49 = vld [vmem:[%s1235_s18 + $0x18] sm:$0xff]  }
  0x1a   : > { %v640_v56 = vmax.f32 %v616_v46, %v1037_v21  ;;  %v641_v57 = vmax.f32 %v617_v47, %v1038_v22  ;;  %v1073_v1 = vunpack.c.l.bf16 %v1140_v51  ;;  %v594_v4 = vmax.f32 %v570_v58, %v1009_v44  ;;  %v1121_v44 = vld [vmem:[%s1229_s15 + $0x18] sm:$0xff]  }
  0x1b   : > { %v595_v5 = vmax.f32 %v571_v59, %v1010_v45  ;;  %v1074_v8 = vunpack.c.h.bf16 %v1140_v51  ;;  %v1089_v9 = vunpack.c.l.bf16 %v1143_v60  ;;  %v965_v10 = vunpack.c.l.bf16 %v1120_v61  ;;  %v1130_v59 = vld [vmem:[%s1247_s24 + $0x18] sm:$0xff]  }
  0x1c   : > { %v664_v2 = vmax.f32 %v640_v56, %v1053_v23  ;;  %v665_v3 = vmax.f32 %v641_v57, %v1054_v28  ;;  %v966_v11 = vunpack.c.h.bf16 %v1120_v61  ;;  %v618_v14 = vmax.f32 %v594_v4, %v1025_v53  ;;  %v1144_v61 = vld [vmem:[%s1283_s23 + $0x10] sm:$0xff]  }
  0x1d   : > { %v619_v15 = vmax.f32 %v595_v5, %v1026_v54  ;;  %v981_v17 = vunpack.c.l.bf16 %v1123_v6  ;;  %v982_v18 = vunpack.c.h.bf16 %v1123_v6  ;;  %v997_v19 = vunpack.c.l.bf16 %v1126_v7  ;;  %v1127_v54 = vld [vmem:[%s1241_s21 + $0x18] sm:$0xff]  }
  0x1e   : > { %v688_v12 = vmax.f32 %v664_v2, %v1069_v29  ;;  %v689_v13 = vmax.f32 %v665_v3, %v1070_v32  ;;  %v998_v20 = vunpack.c.h.bf16 %v1126_v7  ;;  %v642_v23 = vmax.f32 %v618_v14, %v1041_v55  ;;  %v1133_v5 = vld [vmem:[%s1255_s27 + $0x18] sm:$0xff]  }
  0x1f   : > { %v643_v24 = vmax.f32 %v619_v15, %v1042_v62  ;;  %v548_v26 = vmax.f32 %v965_v10, %v981_v17  ;;  %v549_v27 = vmax.f32 %v966_v11, %v982_v18  ;;  %v1013_v28 = vunpack.c.l.bf16 %v1129_v16  ;;  %v1136_v14 = vld [vmem:[%s1261_s10 + $0x18] sm:$0xff]  }
  0x20   : > { %v712_v21 = vmax.f32 %v688_v12, %v1085_v33  ;;  %v713_v22 = vmax.f32 %v689_v13, %v1086_v52  ;;  %v1014_v29 = vunpack.c.h.bf16 %v1129_v16  ;;  %v666_v32 = vmax.f32 %v642_v23, %v1057_v63 }
  0x21   : > { %v667_v33 = vmax.f32 %v643_v24, %v1058_v0  ;;  %v1090_v34 = vunpack.c.h.bf16 %v1143_v60  ;;  %v572_v36 = vmax.f32 %v548_v26, %v997_v19  ;;  %v573_v37 = vmax.f32 %v549_v27, %v998_v20 }
  0x22   : > { %v1102_v31 = vpack.c.bf16 %v713_v22, %v712_v21  ;;  %v1029_v38 = vunpack.c.l.bf16 %v1132_v25  ;;  %v1030_v39 = vunpack.c.h.bf16 %v1132_v25  ;;  %v690_v41 = vmax.f32 %v666_v32, %v1073_v1  ;;  %v1139_v21 = vld [vmem:[%s1269_s14 + $0x18] sm:$0xff]  }
  0x23   : > { %v691_v42 = vmax.f32 %v667_v33, %v1074_v8  ;;  %v1045_v43 = vunpack.c.l.bf16 %v1135_v30  ;;  %v596_v45 = vmax.f32 %v572_v36, %v1013_v28  ;;  %v597_v46 = vmax.f32 %v573_v37, %v1014_v29  ;;  %v1142_v28 = vld [vmem:[%s1275_s19 + $0x18] sm:$0xff]  }
  0x24   : > { %1103 = vst [vmem:[%s1310_s28] sm:$0xff] %v1102_v31   ;;  %v1046_v47 = vunpack.c.h.bf16 %v1135_v30  ;;  %v1061_v48 = vunpack.c.l.bf16 %v1138_v35  ;;  %v714_v50 = vmax.f32 %v690_v41, %v1089_v9  ;;  %v1062_v52 = vunpack.c.h.bf16 %v1138_v35 }
  0x25   : > { %v715_v51 = vmax.f32 %v691_v42, %v1090_v34  ;;  %v1077_v53 = vunpack.c.l.bf16 %v1141_v40  ;;  %v620_v55 = vmax.f32 %v596_v45, %v1029_v38  ;;  %v621_v56 = vmax.f32 %v597_v46, %v1030_v39  ;;  %v1145_v34 = vld [vmem:[%s1283_s23 + $0x18] sm:$0xff]  }
  0x26   : > { %v1078_v57 = vunpack.c.h.bf16 %v1141_v40  ;;  %v969_v58 = vunpack.c.l.bf16 %v1121_v44  ;;  %v970_v62 = vunpack.c.h.bf16 %v1121_v44  ;;  %v985_v63 = vunpack.c.l.bf16 %v1124_v49 }
  0x27   : > { %v1107_v60 = vpack.c.bf16 %v715_v51, %v714_v50  ;;  %v986_v0 = vunpack.c.h.bf16 %v1124_v49  ;;  %v644_v1 = vmax.f32 %v620_v55, %v1045_v43  ;;  %v645_v2 = vmax.f32 %v621_v56, %v1046_v47 }
  0x28   : > { %v1001_v3 = vunpack.c.l.bf16 %v1127_v54  ;;  %v1002_v4 = vunpack.c.h.bf16 %v1127_v54  ;;  %v550_v6 = vmax.f32 %v969_v58, %v985_v63  ;;  %v1017_v8 = vunpack.c.l.bf16 %v1130_v59 }
  0x29   : > { %1146 = vst [vmem:[%s1310_s28 + $0x8] sm:$0xff] %v1107_v60   ;;  %v551_v7 = vmax.f32 %v970_v62, %v986_v0  ;;  %v1018_v9 = vunpack.c.h.bf16 %v1130_v59  ;;  %v668_v10 = vmax.f32 %v644_v1, %v1061_v48  ;;  %v669_v11 = vmax.f32 %v645_v2, %v1062_v52 }
  0x2a   : > { %v1093_v12 = vunpack.c.l.bf16 %v1144_v61  ;;  %v1094_v13 = vunpack.c.h.bf16 %v1144_v61  ;;  %v574_v15 = vmax.f32 %v550_v6, %v1001_v3  ;;  %v1033_v17 = vunpack.c.l.bf16 %v1133_v5 }
  0x2b   : > { %v575_v16 = vmax.f32 %v551_v7, %v1002_v4  ;;  %v1034_v18 = vunpack.c.h.bf16 %v1133_v5  ;;  %v692_v19 = vmax.f32 %v668_v10, %v1077_v53  ;;  %v693_v20 = vmax.f32 %v669_v11, %v1078_v57 }
  0x2c   : > { %v598_v22 = vmax.f32 %v574_v15, %v1017_v8  ;;  %v1049_v24 = vunpack.c.l.bf16 %v1136_v14  ;;  %v1050_v25 = vunpack.c.h.bf16 %v1136_v14  ;;  %v1065_v31 = vunpack.c.l.bf16 %v1139_v21 }
  0x2d   : > { %v599_v23 = vmax.f32 %v575_v16, %v1018_v9  ;;  %v716_v26 = vmax.f32 %v692_v19, %v1093_v12  ;;  %v717_v27 = vmax.f32 %v693_v20, %v1094_v13  ;;  %v1066_v32 = vunpack.c.h.bf16 %v1139_v21 }
  0x2e   : > { %v622_v29 = vmax.f32 %v598_v22, %v1033_v17  ;;  %v1081_v37 = vunpack.c.l.bf16 %v1142_v28  ;;  %v1082_v38 = vunpack.c.h.bf16 %v1142_v28  ;;  %v1097_v41 = vunpack.c.l.bf16 %v1145_v34 }
  0x2f   : > { %v623_v30 = vmax.f32 %v599_v23, %v1034_v18  ;;  %v1112_v33 = vpack.c.bf16 %v717_v27, %v716_v26  ;;  %v1098_v42 = vunpack.c.h.bf16 %v1145_v34 }
  0x30   : > { %v646_v35 = vmax.f32 %v622_v29, %v1049_v24 }
  0x31   : > { %v647_v36 = vmax.f32 %v623_v30, %v1050_v25  ;;  %1147 = vst [vmem:[%s1310_s28 + $0x10] sm:$0xff] %v1112_v33  }
  0x32   : > { %v670_v39 = vmax.f32 %v646_v35, %v1065_v31 }
  0x33   : > { %v671_v40 = vmax.f32 %v647_v36, %v1066_v32 }
  0x34   : > { %v694_v43 = vmax.f32 %v670_v39, %v1081_v37 }
  0x35   : > { %v695_v44 = vmax.f32 %v671_v40, %v1082_v38 }
  0x36   : > { %v718_v45 = vmax.f32 %v694_v43, %v1097_v41 }
  0x37   : > { %v719_v46 = vmax.f32 %v695_v44, %v1098_v42 }
  0x39   : > { %v1117_v47 = vpack.c.bf16 %v719_v46, %v718_v45 }
  0x3b   : > { %1148 = vst [vmem:[%s1310_s28 + $0x18] sm:$0xff] %v1117_v47  }
  0x3c PF: > { %s19_s30 = sadd.s32 1, %s1163_s30  }
  0x3d   : > { %p16_p4 = scmp.ge.s32.totalorder %s19_s30, 4  }
  0x3f   :  { %18 = sbr.rel (!%p16_p4) target bundleno = 1 (0x1), region = 110 }

// kernel: colorization_net_forward.15
= control target key start
LH: loop header
LB: loop body
LE: loop exit
PB: predicated region body
PF: predicated region fallthrough
CT: control target
= control target key end

     0   :  { %s3170_s21 = smov 0   ;;  %s3511_s0 = inlined_call_operand.vmem [shape: bf16[128,128], index: 0, kind: input, shape index: {}]   ;;  %s3512_s1 = inlined_call_operand.vmem [shape: bf16[128,128], index: 1, kind: input, shape index: {}]   ;;  %s3513_s2 = inlined_call_operand.vmem [shape: bf16[128,128], index: 2, kind: input, shape index: {}]   ;;  %s3514_s3 = inlined_call_operand.vmem [shape: bf16[128,128], index: 3, kind: input, shape index: {}]   ;;  %s3515_s4 = inlined_call_operand.vmem [shape: bf16[128,128], index: 4, kind: input, shape index: {}]   ;;  %s3516_s5 = inlined_call_operand.vmem [shape: bf16[128,128], index: 5, kind: input, shape index: {}]   ;;  %s3517_s6 = inlined_call_operand.vmem [shape: bf16[128,128], index: 6, kind: input, shape index: {}]   ;;  %s3518_s7 = inlined_call_operand.vmem [shape: bf16[128,128], index: 7, kind: input, shape index: {}]   ;;  %s3519_s8 = inlined_call_operand.vmem [shape: bf16[128,128], index: 8, kind: input, shape index: {}]   ;;  %s3520_s9 = inlined_call_operand.vmem [shape: bf16[9,128,128], index: 9, kind: input, shape index: {}]   ;;  %s3521_s10 = inlined_call_operand.vmem [shape: f32[1,128], index: 10, kind: input, shape index: {}]   ;;  %s3522_s11 = inlined_call_operand.vmem [shape: f32[1,128], index: 11, kind: input, shape index: {}]   ;;  %s3523_s12 = inlined_call_operand.vmem [shape: bf16[128,128], index: 12, kind: output, shape index: {}]  }
   0x1 LB: > { %s2337_s22 = sadd.s32 4294967295, %s3103_s21   ;;  %p2341_p0 = scmp.ge.s32.totalorder %s3103_s21, 1  ;;  %s3103_s21 = sphi %s3170_s21, %s22_s21  }
   0x2   : > { %p451_p1 = scmp.lt.s32.totalorder %s3103_s21, 3 }
   0x4   : > { %p452_p2 = pnand %p2341_p0, %p451_p1 }
   0x6   : > { %455 = sbr.rel (%p452_p2) target bundleno = 383 (0x17f), region = 68 }
   0xb   : > { %v2989_v0 = vld [vmem:[%s3520_s9 + $0x78] sm:$0xff]   ;;  %s2342_s25 = sshll.u32 %s2337_s22, 3  ;;  %v2991_v2 = vld [vmem:[%s3520_s9 + $0x70] sm:$0xff]   ;;  %v2993_v4 = vld [vmem:[%s3520_s9 + $0x68] sm:$0xff]  }
   0xc   : > { %v2990_v1 = vld [vmem:[%s3520_s9 + $0x38] sm:$0xff]   ;;  %2749 = vmatprep.subr.bf16.mxu0 %v2989_v0  ;;  %p534_p3 = scmp.lt.s32.totalorder %s2342_s25, 15  ;;  %v2992_v3 = vld [vmem:[%s3520_s9 + $0x30] sm:$0xff]   ;;  %v2994_v5 = vld [vmem:[%s3520_s9 + $0x28] sm:$0xff]  }
   0xd   : > { %2773 = vmatprep.subr.bf16.mxu1 %v2990_v1  ;;  %2750 = vmatpush3.bf16.msra.mxu0 %v2989_v0  ;;  %v2995_v6 = vld [vmem:[%s3520_s9 + $0x60] sm:$0xff]   ;;  %v2997_v8 = vld [vmem:[%s3520_s9 + $0x58] sm:$0xff]   ;;  %v2999_v10 = vld [vmem:[%s3520_s9 + $0x50] sm:$0xff]  }
   0xe   : > { %2774 = vmatpush3.bf16.msra.mxu1 %v2990_v1  ;;  %2751 = vmatprep.subr.bf16.mxu0 %v2991_v2  ;;  %s3533_s25 = smov (!%p534_p3, %s2342_s25), 15  ;;  %v2996_v7 = vld [vmem:[%s3520_s9 + $0x20] sm:$0xff]   ;;  %v2998_v9 = vld [vmem:[%s3520_s9 + $0x18] sm:$0xff]   ;;  %v3000_v11 = vld [vmem:[%s3520_s9 + $0x10] sm:$0xff]  }
   0xf   : > { %2775 = vmatprep.subr.bf16.mxu1 %v2992_v3  ;;  %s3202_s23 = sshll.u32 %s3533_s25, 2  ;;  %v3001_v14 = vld [vmem:[%s3520_s9 + $0x48] sm:$0xff]   ;;  %v3003_v16 = vld [vmem:[%s3520_s9 + $0x40] sm:$0xff]   ;;  %v3009_v19 = vld [vmem:[%s3520_s9 + $0xb8] sm:$0xff]  }
  0x10   : > { %s3214_s13 = scalar_lea.vmem %s3512_s1, %s3202_s23  ;;  %s3223_s17 = scalar_lea.vmem %s3511_s0, %s3202_s23  ;;  %v3002_v15 = vld [vmem:[%s3520_s9 + $0x8] sm:$0xff]   ;;  %v3004_v17 = vld [vmem:[%s3520_s9] sm:$0xff]   ;;  %v3010_v20 = vld [vmem:[%s3520_s9 + $0xf8] sm:$0xff]  }
  0x11   : > { %2752 = vmatpush3.bf16.msra.mxu0 %v2991_v2  ;;  %v3005_v12 = vld [vmem:[%s3214_s13] sm:$0xff]   ;;  %v3007_v18 = vld [vmem:[%s3214_s13 + $0x8] sm:$0xff]   ;;  %v3011_v22 = vld [vmem:[%s3520_s9 + $0xb0] sm:$0xff]   ;;  %s3272_s15 = scalar_lea.vmem %s3513_s2, %s3202_s23  ;;  %s3279_s19 = scalar_lea.vmem %s3514_s3, %s3202_s23 }
  0x12   : > { %2776 = vmatpush3.bf16.msra.mxu1 %v2992_v3  ;;  %2753 = vmatprep.subr.bf16.mxu0 %v2993_v4  ;;  %v3006_v13 = vld [vmem:[%s3223_s17] sm:$0xff]   ;;  %v3008_v21 = vld [vmem:[%s3223_s17 + $0x8] sm:$0xff]   ;;  %v3012_v23 = vld [vmem:[%s3520_s9 + $0xf0] sm:$0xff]   ;;  %s3325_s16 = scalar_lea.vmem %s3515_s4, %s3202_s23  ;;  %s3421_s30 = scalar_lea.vmem %s3519_s8, %s3202_s23 }
  0x13   : > { %2777 = vmatprep.subr.bf16.mxu1 %v2994_v5  ;;  %2765 = vmatprep.mubr.bf16.mxu0 %v3005_v12  ;;  %v3019_v24 = vld [vmem:[%s3214_s13 + $0x10] sm:$0xff]   ;;  %v3013_v26 = vld [vmem:[%s3520_s9 + $0xa8] sm:$0xff]   ;;  %v3015_v28 = vld [vmem:[%s3520_s9 + $0xa0] sm:$0xff]   ;;  %s591_s29 = scalar_lea.vmem %s3523_s12, %s3202_s23 }
  0x14   : > { %2789 = vmatprep.mubr.bf16.mxu1 %v3006_v13  ;;  %v3020_v25 = vld [vmem:[%s3223_s17 + $0x10] sm:$0xff]   ;;  %v3014_v27 = vld [vmem:[%s3520_s9 + $0xe8] sm:$0xff]   ;;  %v3021_v29 = vld [vmem:[%s3214_s13 + $0x18] sm:$0xff]   ;;  %s3385_s13 = scalar_lea.vmem %s3518_s7, %s3202_s23 }
  0x15   : > { %2754 = vmatpush3.bf16.msra.mxu0 %v2993_v4  ;;  %v3022_v30 = vld [vmem:[%s3223_s17 + $0x18] sm:$0xff]   ;;  %v3016_v31 = vld [vmem:[%s3520_s9 + $0xe0] sm:$0xff]   ;;  %v3023_v36 = vld [vmem:[%s3520_s9 + $0x90] sm:$0xff]   ;;  %s3334_s17 = scalar_lea.vmem %s3516_s5, %s3202_s23 }
  0x16   : > { %2778 = vmatpush3.bf16.msra.mxu1 %v2994_v5  ;;  %2755 = vmatprep.subr.bf16.mxu0 %v2995_v6  ;;  %v3029_v32 = vld [vmem:[%s3272_s15] sm:$0xff]   ;;  %v3017_v34 = vld [vmem:[%s3520_s9 + $0x98] sm:$0xff]   ;;  %v3024_v37 = vld [vmem:[%s3520_s9 + $0xd0] sm:$0xff]  }
  0x17   : > { %2779 = vmatprep.subr.bf16.mxu1 %v2996_v7  ;;  %v3030_v33 = vld [vmem:[%s3279_s19] sm:$0xff]   ;;  %v3018_v35 = vld [vmem:[%s3520_s9 + $0xd8] sm:$0xff]   ;;  %v3025_v38 = vld [vmem:[%s3520_s9 + $0x88] sm:$0xff]  }
  0x18   : > { %v3026_v39 = vld [vmem:[%s3520_s9 + $0xc8] sm:$0xff]   ;;  %v3027_v40 = vld [vmem:[%s3520_s9 + $0x80] sm:$0xff]   ;;  %v3033_v43 = vld [vmem:[%s3520_s9 + $0x138] sm:$0xff]  }
  0x19   : > { %2756 = vmatpush3.bf16.msra.mxu0 %v2995_v6  ;;  %v3028_v41 = vld [vmem:[%s3520_s9 + $0xc0] sm:$0xff]   ;;  %v3031_v42 = vld [vmem:[%s3272_s15 + $0x8] sm:$0xff]   ;;  %v3034_v44 = vld [vmem:[%s3520_s9 + $0x178] sm:$0xff]  }
  0x1a   : > { %2780 = vmatpush3.bf16.msra.mxu1 %v2996_v7  ;;  %2757 = vmatprep.subr.bf16.mxu0 %v2997_v8  ;;  %v3032_v45 = vld [vmem:[%s3279_s19 + $0x8] sm:$0xff]   ;;  %v3035_v46 = vld [vmem:[%s3520_s9 + $0x130] sm:$0xff]   ;;  %v3038_v50 = vld [vmem:[%s3272_s15 + $0x18] sm:$0xff]  }
  0x1b   : > { %2781 = vmatprep.subr.bf16.mxu1 %v2998_v9  ;;  %v3036_v47 = vld [vmem:[%s3520_s9 + $0x170] sm:$0xff]   ;;  %v3039_v51 = vld [vmem:[%s3520_s9 + $0x128] sm:$0xff]   ;;  %v3042_v53 = vld [vmem:[%s3279_s19 + $0x18] sm:$0xff]  }
  0x1c   : > { %v3037_v48 = vld [vmem:[%s3272_s15 + $0x10] sm:$0xff]   ;;  %v3040_v52 = vld [vmem:[%s3520_s9 + $0x168] sm:$0xff]   ;;  %v3043_v54 = vld [vmem:[%s3520_s9 + $0x120] sm:$0xff]  }
  0x1d   : > { %2758 = vmatpush3.bf16.msra.mxu0 %v2997_v8  ;;  %v3041_v49 = vld [vmem:[%s3279_s19 + $0x10] sm:$0xff]   ;;  %v3044_v55 = vld [vmem:[%s3520_s9 + $0x160] sm:$0xff]   ;;  %v3045_v58 = vld [vmem:[%s3520_s9 + $0x118] sm:$0xff]   ;;  %s3376_s19 = scalar_lea.vmem %s3517_s6, %s3202_s23 }
  0x1e   : > { %2782 = vmatpush3.bf16.msra.mxu1 %v2998_v9  ;;  %2759 = vmatprep.subr.bf16.mxu0 %v2999_v10  ;;  %v3053_v56 = vld [vmem:[%s3325_s16] sm:$0xff]   ;;  %v3046_v59 = vld [vmem:[%s3520_s9 + $0x158] sm:$0xff]   ;;  %v3047_v60 = vld [vmem:[%s3520_s9 + $0x110] sm:$0xff]  }
  0x1f   : > { %2783 = vmatprep.subr.bf16.mxu1 %v3000_v11  ;;  %v3054_v57 = vld [vmem:[%s3334_s17] sm:$0xff]   ;;  %v3048_v61 = vld [vmem:[%s3520_s9 + $0x150] sm:$0xff]   ;;  %v3049_v62 = vld [vmem:[%s3520_s9 + $0x108] sm:$0xff]  }
  0x20   : > { %v3050_v63 = vld [vmem:[%s3520_s9 + $0x148] sm:$0xff]   ;;  %v3051_v0 = vld [vmem:[%s3520_s9 + $0x100] sm:$0xff]   ;;  %v3057_v3 = vld [vmem:[%s3520_s9 + $0x1b8] sm:$0xff]  }
  0x21   : > { %2760 = vmatpush3.bf16.msra.mxu0 %v2999_v10  ;;  %v3052_v1 = vld [vmem:[%s3520_s9 + $0x140] sm:$0xff]   ;;  %v3055_v2 = vld [vmem:[%s3325_s16 + $0x8] sm:$0xff]   ;;  %v3058_v4 = vld [vmem:[%s3520_s9 + $0x1f8] sm:$0xff]  }
  0x22   : > { %2784 = vmatpush3.bf16.msra.mxu1 %v3000_v11  ;;  %2761 = vmatprep.subr.bf16.mxu0 %v3001_v14  ;;  %v3056_v5 = vld [vmem:[%s3334_s17 + $0x8] sm:$0xff]   ;;  %v3059_v6 = vld [vmem:[%s3520_s9 + $0x1b0] sm:$0xff]   ;;  %v3062_v10 = vld [vmem:[%s3325_s16 + $0x18] sm:$0xff]  }
  0x23   : > { %2785 = vmatprep.subr.bf16.mxu1 %v3002_v15  ;;  %v3060_v7 = vld [vmem:[%s3520_s9 + $0x1f0] sm:$0xff]   ;;  %v3063_v11 = vld [vmem:[%s3520_s9 + $0x1a8] sm:$0xff]   ;;  %v3066_v13 = vld [vmem:[%s3334_s17 + $0x18] sm:$0xff]  }
  0x24   : > { %v3061_v8 = vld [vmem:[%s3325_s16 + $0x10] sm:$0xff]   ;;  %v3064_v12 = vld [vmem:[%s3520_s9 + $0x1e8] sm:$0xff]  }
  0x25   : > { %2762 = vmatpush3.bf16.msra.mxu0 %v3001_v14  ;;  %v3065_v9 = vld [vmem:[%s3334_s17 + $0x10] sm:$0xff]   ;;  %v3067_v14 = vld [vmem:[%s3520_s9 + $0x1a0] sm:$0xff]  }
  0x26   : > { %2786 = vmatpush3.bf16.msra.mxu1 %v3002_v15  ;;  %2763 = vmatprep.subr.bf16.mxu0 %v3003_v16  ;;  %v3068_v15 = vld [vmem:[%s3520_s9 + $0x1e0] sm:$0xff]  }
  0x27   : > { %2787 = vmatprep.subr.bf16.mxu1 %v3004_v17 }
  0x29   : > { %2764 = vmatpush3.bf16.msra.mxu0 %v3003_v16  ;;  %v3077_v16 = vld [vmem:[%s3376_s19] sm:$0xff]  }
  0x2a   : > { %2788 = vmatpush3.bf16.msra.mxu1 %v3004_v17  ;;  %2797 = vmatprep.subr.bf16.mxu0 %v3009_v19  ;;  %v3078_v17 = vld [vmem:[%s3385_s13] sm:$0xff]  }
  0x2b   : > { %2821 = vmatprep.subr.bf16.mxu1 %v3010_v20 }
  0x2c   : > { %2766 = vmatmul.mubr.bf16.vlgmr.msra.gmra.mxu0 %v3007_v18  ;;  %v3069_v18 = vld [vmem:[%s3520_s9 + $0x198] sm:$0xff]  }
  0x2d   : > { %2790 = vmatmul.mubr.bf16.vlgmr.msra.gmra.mxu1 %v3008_v21  ;;  %2798 = vmatpush3.bf16.msra.mxu0 %v3009_v19  ;;  %v3070_v19 = vld [vmem:[%s3520_s9 + $0x1d8] sm:$0xff]   ;;  %v3072_v21 = vld [vmem:[%s3520_s9 + $0x1d0] sm:$0xff]  }
  0x2e   : > { %2822 = vmatpush3.bf16.msra.mxu1 %v3010_v20  ;;  %2799 = vmatprep.subr.bf16.mxu0 %v3011_v22  ;;  %v3071_v20 = vld [vmem:[%s3520_s9 + $0x190] sm:$0xff]  }
  0x2f   : > { %2823 = vmatprep.subr.bf16.mxu1 %v3012_v23  ;;  %2769 = vmatprep.mubr.bf16.mxu0 %v3019_v24  ;;  %v3075_v24 = vld [vmem:[%s3520_s9 + $0x180] sm:$0xff]  }
  0x30   : > { %2793 = vmatprep.mubr.bf16.mxu1 %v3020_v25  ;;  %v3076_v25 = vld [vmem:[%s3520_s9 + $0x1c0] sm:$0xff]  }
  0x31   : > { %2800 = vmatpush3.bf16.msra.mxu0 %v3011_v22  ;;  %v3073_v22 = vld [vmem:[%s3520_s9 + $0x188] sm:$0xff]  }
  0x32   : > { %2824 = vmatpush3.bf16.msra.mxu1 %v3012_v23  ;;  %2801 = vmatprep.subr.bf16.mxu0 %v3013_v26  ;;  %v3074_v23 = vld [vmem:[%s3520_s9 + $0x1c8] sm:$0xff]  }
  0x33   : > { %2825 = vmatprep.subr.bf16.mxu1 %v3014_v27 }
  0x34   : > { %2770 = vmatmul.mubr.bf16.gmra.mxu0 %v3021_v29  ;;  %v3082_v29 = vld [vmem:[%s3520_s9 + $0x230] sm:$0xff]  }
  0x35   : > { %2802 = vmatpush3.bf16.msra.mxu0 %v3013_v26  ;;  %2794 = vmatmul.mubr.bf16.gmra.mxu1 %v3022_v30  ;;  %v3081_v26 = vld [vmem:[%s3520_s9 + $0x238] sm:$0xff]   ;;  %v3083_v30 = vld [vmem:[%s3376_s19 + $0x10] sm:$0xff]  }
  0x36   : > { %2826 = vmatpush3.bf16.msra.mxu1 %v3014_v27  ;;  %2803 = vmatprep.subr.bf16.mxu0 %v3015_v28  ;;  %v3079_v27 = vld [vmem:[%s3376_s19 + $0x8] sm:$0xff]  }
  0x37   : > { %2827 = vmatprep.subr.bf16.mxu1 %v3016_v31  ;;  %2813 = vmatprep.mubr.bf16.mxu0 %v3029_v32  ;;  %v3085_v32 = vld [vmem:[%s3520_s9 + $0x228] sm:$0xff]  }
  0x38   : > { %2837 = vmatprep.mubr.bf16.mxu1 %v3030_v33  ;;  %v3084_v33 = vld [vmem:[%s3376_s19 + $0x18] sm:$0xff]  }
  0x39   : > { %2804 = vmatpush3.bf16.msra.mxu0 %v3015_v28  ;;  %v3080_v28 = vld [vmem:[%s3385_s13 + $0x8] sm:$0xff]  }
  0x3a   : > { %2828 = vmatpush3.bf16.msra.mxu1 %v3016_v31  ;;  %2805 = vmatprep.subr.bf16.mxu0 %v3017_v34  ;;  %v3086_v31 = vld [vmem:[%s3385_s13 + $0x10] sm:$0xff]  }
  0x3b   : > { %2829 = vmatprep.subr.bf16.mxu1 %v3018_v35 }
  0x3d   : > { %2806 = vmatpush3.bf16.msra.mxu0 %v3017_v34  ;;  %v3087_v34 = vld [vmem:[%s3385_s13 + $0x18] sm:$0xff]  }
  0x3e   : > { %2830 = vmatpush3.bf16.msra.mxu1 %v3018_v35  ;;  %2807 = vmatprep.subr.bf16.mxu0 %v3023_v36  ;;  %v3088_v35 = vld [vmem:[%s3520_s9 + $0x220] sm:$0xff]  }
  0x3f   : > { %2831 = vmatprep.subr.bf16.mxu1 %v3024_v37 }
  0x41   : > { %2808 = vmatpush3.bf16.msra.mxu0 %v3023_v36  ;;  %v3093_v36 = vld [vmem:[%s3421_s30] sm:$0xff]  }
  0x42   : > { %2832 = vmatpush3.bf16.msra.mxu1 %v3024_v37  ;;  %2809 = vmatprep.subr.bf16.mxu0 %v3025_v38  ;;  %v3094_v37 = vld [vmem:[%s3421_s30 + $0x10] sm:$0xff]  }
  0x43   : > { %2833 = vmatprep.subr.bf16.mxu1 %v3026_v39 }
  0x45   : > { %2810 = vmatpush3.bf16.msra.mxu0 %v3025_v38  ;;  %v3089_v38 = vld [vmem:[%s3520_s9 + $0x218] sm:$0xff]  }
  0x46   : > { %2834 = vmatpush3.bf16.msra.mxu1 %v3026_v39  ;;  %2811 = vmatprep.subr.bf16.mxu0 %v3027_v40  ;;  %v3090_v39 = vld [vmem:[%s3520_s9 + $0x210] sm:$0xff]  }
  0x47   : > { %2835 = vmatprep.subr.bf16.mxu1 %v3028_v41 }
  0x49   : > { %2812 = vmatpush3.bf16.msra.mxu0 %v3027_v40  ;;  %v3091_v40 = vld [vmem:[%s3520_s9 + $0x208] sm:$0xff]  }
  0x4a   : > { %2836 = vmatpush3.bf16.msra.mxu1 %v3028_v41  ;;  %2845 = vmatprep.subr.bf16.mxu0 %v3033_v43  ;;  %v3092_v41 = vld [vmem:[%s3520_s9 + $0x200] sm:$0xff]  }
  0x4b   : > { %2869 = vmatprep.subr.bf16.mxu1 %v3034_v44 }
  0x4c   : > { %2814 = vmatmul.mubr.bf16.vlgmr.msra.gmra.mxu0 %v3031_v42  ;;  %v3095_v42 = vld [vmem:[%s3421_s30 + $0x8] sm:$0xff]  }
  0x4d   : > { %2838 = vmatmul.mubr.bf16.vlgmr.msra.gmra.mxu1 %v3032_v45  ;;  %2846 = vmatpush3.bf16.msra.mxu0 %v3033_v43  ;;  %v3096_v43 = vld [vmem:[%s3421_s30 + $0x18] sm:$0xff]  }
  0x4e   : > { %2870 = vmatpush3.bf16.msra.mxu1 %v3034_v44  ;;  %2847 = vmatprep.subr.bf16.mxu0 %v3035_v46 }
  0x4f   : > { %2871 = vmatprep.subr.bf16.mxu1 %v3036_v47  ;;  %2817 = vmatprep.mubr.bf16.mxu0 %v3037_v48 }
  0x50   : > { %2841 = vmatprep.mubr.bf16.mxu1 %v3041_v49 }
  0x51   : > { %2848 = vmatpush3.bf16.msra.mxu0 %v3035_v46 }
  0x52   : > { %2872 = vmatpush3.bf16.msra.mxu1 %v3036_v47  ;;  %2849 = vmatprep.subr.bf16.mxu0 %v3039_v51 }
  0x53   : > { %2873 = vmatprep.subr.bf16.mxu1 %v3040_v52 }
  0x54   : > { %2818 = vmatmul.mubr.bf16.gmra.mxu0 %v3038_v50 }
  0x55   : > { %2850 = vmatpush3.bf16.msra.mxu0 %v3039_v51  ;;  %2842 = vmatmul.mubr.bf16.gmra.mxu1 %v3042_v53 }
  0x56   : > { %2874 = vmatpush3.bf16.msra.mxu1 %v3040_v52  ;;  %2851 = vmatprep.subr.bf16.mxu0 %v3043_v54 }
  0x57   : > { %2875 = vmatprep.subr.bf16.mxu1 %v3044_v55  ;;  %2861 = vmatprep.mubr.bf16.mxu0 %v3053_v56 }
  0x58   : > { %2885 = vmatprep.mubr.bf16.mxu1 %v3054_v57 }
  0x59   : > { %2852 = vmatpush3.bf16.msra.mxu0 %v3043_v54 }
  0x5a   : > { %2876 = vmatpush3.bf16.msra.mxu1 %v3044_v55  ;;  %2853 = vmatprep.subr.bf16.mxu0 %v3045_v58 }
  0x5b   : > { %2877 = vmatprep.subr.bf16.mxu1 %v3046_v59 }
  0x5d   : > { %2854 = vmatpush3.bf16.msra.mxu0 %v3045_v58 }
  0x5e   : > { %2878 = vmatpush3.bf16.msra.mxu1 %v3046_v59  ;;  %2855 = vmatprep.subr.bf16.mxu0 %v3047_v60 }
  0x5f   : > { %2879 = vmatprep.subr.bf16.mxu1 %v3048_v61 }
  0x61   : > { %2856 = vmatpush3.bf16.msra.mxu0 %v3047_v60 }
  0x62   : > { %2880 = vmatpush3.bf16.msra.mxu1 %v3048_v61  ;;  %2857 = vmatprep.subr.bf16.mxu0 %v3049_v62 }
  0x63   : > { %2881 = vmatprep.subr.bf16.mxu1 %v3050_v63 }
  0x65   : > { %2858 = vmatpush3.bf16.msra.mxu0 %v3049_v62 }
  0x66   : > { %2882 = vmatpush3.bf16.msra.mxu1 %v3050_v63  ;;  %2859 = vmatprep.subr.bf16.mxu0 %v3051_v0 }
  0x67   : > { %2883 = vmatprep.subr.bf16.mxu1 %v3052_v1 }
  0x69   : > { %2860 = vmatpush3.bf16.msra.mxu0 %v3051_v0 }
  0x6a   : > { %2884 = vmatpush3.bf16.msra.mxu1 %v3052_v1  ;;  %2893 = vmatprep.subr.bf16.mxu0 %v3057_v3 }
  0x6b   : > { %2917 = vmatprep.subr.bf16.mxu1 %v3058_v4 }
  0x6c   : > { %2862 = vmatmul.mubr.bf16.vlgmr.msra.gmra.mxu0 %v3055_v2 }
  0x6d   : > { %2886 = vmatmul.mubr.bf16.vlgmr.msra.gmra.mxu1 %v3056_v5  ;;  %2894 = vmatpush3.bf16.msra.mxu0 %v3057_v3 }
  0x6e   : > { %2918 = vmatpush3.bf16.msra.mxu1 %v3058_v4  ;;  %2895 = vmatprep.subr.bf16.mxu0 %v3059_v6 }
  0x6f   : > { %2919 = vmatprep.subr.bf16.mxu1 %v3060_v7  ;;  %2865 = vmatprep.mubr.bf16.mxu0 %v3061_v8 }
  0x70   : > { %2889 = vmatprep.mubr.bf16.mxu1 %v3065_v9 }
  0x71   : > { %2896 = vmatpush3.bf16.msra.mxu0 %v3059_v6 }
  0x72   : > { %2920 = vmatpush3.bf16.msra.mxu1 %v3060_v7  ;;  %2897 = vmatprep.subr.bf16.mxu0 %v3063_v11 }
  0x73   : > { %2921 = vmatprep.subr.bf16.mxu1 %v3064_v12 }
  0x74   : > { %2866 = vmatmul.mubr.bf16.gmra.mxu0 %v3062_v10 }
  0x75   : > { %2898 = vmatpush3.bf16.msra.mxu0 %v3063_v11  ;;  %2890 = vmatmul.mubr.bf16.gmra.mxu1 %v3066_v13 }
  0x76   : > { %2922 = vmatpush3.bf16.msra.mxu1 %v3064_v12  ;;  %2899 = vmatprep.subr.bf16.mxu0 %v3067_v14 }
  0x77   : > { %2923 = vmatprep.subr.bf16.mxu1 %v3068_v15  ;;  %2909 = vmatprep.mubr.bf16.mxu0 %v3077_v16 }
  0x78   : > { %2933 = vmatprep.mubr.bf16.mxu1 %v3078_v17 }
  0x79   : > { %2900 = vmatpush3.bf16.msra.mxu0 %v3067_v14 }
  0x7a   : > { %2924 = vmatpush3.bf16.msra.mxu1 %v3068_v15  ;;  %2901 = vmatprep.subr.bf16.mxu0 %v3069_v18 }
  0x7b   : > { %2925 = vmatprep.subr.bf16.mxu1 %v3070_v19 }
  0x7d   : > { %2902 = vmatpush3.bf16.msra.mxu0 %v3069_v18 }
  0x7e   : > { %2926 = vmatpush3.bf16.msra.mxu1 %v3070_v19  ;;  %2903 = vmatprep.subr.bf16.mxu0 %v3071_v20 }
  0x7f   : > { %2927 = vmatprep.subr.bf16.mxu1 %v3072_v21 }
  0x81   : > { %2904 = vmatpush3.bf16.msra.mxu0 %v3071_v20 }
  0x82   : > { %2928 = vmatpush3.bf16.msra.mxu1 %v3072_v21  ;;  %2905 = vmatprep.subr.bf16.mxu0 %v3073_v22 }
  0x83   : > { %2929 = vmatprep.subr.bf16.mxu1 %v3074_v23 }
  0x85   : > { %2906 = vmatpush3.bf16.msra.mxu0 %v3073_v22 }
  0x86   : > { %2930 = vmatpush3.bf16.msra.mxu1 %v3074_v23  ;;  %2907 = vmatprep.subr.bf16.mxu0 %v3075_v24 }
  0x87   : > { %2931 = vmatprep.subr.bf16.mxu1 %v3076_v25 }
  0x89   : > { %2908 = vmatpush3.bf16.msra.mxu0 %v3075_v24 }
  0x8a   : > { %2932 = vmatpush3.bf16.msra.mxu1 %v3076_v25  ;;  %2941 = vmatprep.subr.bf16.mxu0 %v3081_v26 }
  0x8b   : > { %2965 = vmatprep.subr.bf16.mxu1 %v3081_v26 }
  0x8c   : > { %2910 = vmatmul.mubr.bf16.vlgmr.msra.gmra.mxu0 %v3079_v27 }
  0x8d   : > { %2934 = vmatmul.mubr.bf16.vlgmr.msra.gmra.mxu1 %v3080_v28  ;;  %2942 = vmatpush3.bf16.msra.mxu0 %v3081_v26 }
  0x8e   : > { %2973 = vmatpush3.bf16.msra.mxu1 %v3081_v26  ;;  %2943 = vmatprep.subr.bf16.mxu0 %v3082_v29 }
  0x8f   : > { %2966 = vmatprep.subr.bf16.mxu1 %v3082_v29  ;;  %2913 = vmatprep.mubr.bf16.mxu0 %v3083_v30 }
  0x90   : > { %2937 = vmatprep.mubr.bf16.mxu1 %v3086_v31 }
  0x91   : > { %2944 = vmatpush3.bf16.msra.mxu0 %v3082_v29 }
  0x92   : > { %2974 = vmatpush3.bf16.msra.mxu1 %v3082_v29  ;;  %2945 = vmatprep.subr.bf16.mxu0 %v3085_v32 }
  0x93   : > { %2967 = vmatprep.subr.bf16.mxu1 %v3085_v32 }
  0x94   : > { %2914 = vmatmul.mubr.bf16.gmra.mxu0 %v3084_v33 }
  0x95   : > { %2946 = vmatpush3.bf16.msra.mxu0 %v3085_v32  ;;  %2938 = vmatmul.mubr.bf16.gmra.mxu1 %v3087_v34 }
  0x96   : > { %2975 = vmatpush3.bf16.msra.mxu1 %v3085_v32  ;;  %2947 = vmatprep.subr.bf16.mxu0 %v3088_v35 }
  0x97   : > { %2968 = vmatprep.subr.bf16.mxu1 %v3088_v35  ;;  %2957 = vmatprep.mubr.bf16.mxu0 %v3093_v36 }
  0x98   : > { %2961 = vmatprep.mubr.bf16.mxu1 %v3094_v37 }
  0x99   : > { %2948 = vmatpush3.bf16.msra.mxu0 %v3088_v35 }
  0x9a   : > { %2976 = vmatpush3.bf16.msra.mxu1 %v3088_v35  ;;  %2949 = vmatprep.subr.bf16.mxu0 %v3089_v38 }
  0x9b   : > { %2969 = vmatprep.subr.bf16.mxu1 %v3089_v38 }
  0x9d   : > { %2950 = vmatpush3.bf16.msra.mxu0 %v3089_v38 }
  0x9e   : > { %2977 = vmatpush3.bf16.msra.mxu1 %v3089_v38  ;;  %2951 = vmatprep.subr.bf16.mxu0 %v3090_v39 }
  0x9f   : > { %2970 = vmatprep.subr.bf16.mxu1 %v3090_v39 }
  0xa1   : > { %2952 = vmatpush3.bf16.msra.mxu0 %v3090_v39 }
  0xa2   : > { %2978 = vmatpush3.bf16.msra.mxu1 %v3090_v39  ;;  %2953 = vmatprep.subr.bf16.mxu0 %v3091_v40 }
  0xa3   : > { %2971 = vmatprep.subr.bf16.mxu1 %v3091_v40 }
  0xa5   : > { %2954 = vmatpush3.bf16.msra.mxu0 %v3091_v40 }
  0xa6   : > { %2979 = vmatpush3.bf16.msra.mxu1 %v3091_v40  ;;  %2955 = vmatprep.subr.bf16.mxu0 %v3092_v41 }
  0xa7   : > { %2972 = vmatprep.subr.bf16.mxu1 %v3092_v41 }
  0xa9   : > { %2956 = vmatpush3.bf16.msra.mxu0 %v3092_v41 }
  0xaa   : > { %2980 = vmatpush3.bf16.msra.mxu1 %v3092_v41 }
  0xac   : > { %2958 = vmatmul.mubr.bf16.vlgmr.msra.gmra.mxu0 %v3095_v42 }
  0xad   : > { %2962 = vmatmul.mubr.bf16.vlgmr.msra.gmra.mxu1 %v3096_v43 }
  0xec   : > { %v2767_v44 = vpop.f32.mrf.mxu0 }
  0xed   : > { %v2791_v46 = vpop.f32.mrf.mxu1 }
  0xee   : > { %v749_v45 = vpop.f32.mrf.mxu0  ;;  %v895_v33 = vadd.f32 %v2791_v46, %v2767_v44 }
  0xef   : > { %v886_v48 = vpop.f32.mrf.mxu1 }
  0xf0   : > { %v2768_v47 = vpop.f32.mrf.mxu0  ;;  %v887_v37 = vadd.f32 %v886_v48, %v749_v45 }
  0xf1   : > { %v2792_v51 = vpop.f32.mrf.mxu1 }
  0xf2   : > { %v752_v49 = vpop.f32.mrf.mxu0  ;;  %v898_v41 = vadd.f32 %v2792_v51, %v2768_v47 }
  0xf3   : > { %v889_v53 = vpop.f32.mrf.mxu1 }
  0xf4   : > { %v2771_v50 = vpop.f32.mrf.mxu0  ;;  %v890_v46 = vadd.f32 %v889_v53, %v752_v49 }
  0xf5   : > { %v2795_v54 = vpop.f32.mrf.mxu1 }
  0xf6   : > { %v765_v52 = vpop.f32.mrf.mxu0  ;;  %v911_v35 = vadd.f32 %v2795_v54, %v2771_v50 }
  0xf7   : > { %v902_v56 = vpop.f32.mrf.mxu1 }
  0xf8   : > { %v2772_v55 = vpop.f32.mrf.mxu0  ;;  %v903_v39 = vadd.f32 %v902_v56, %v765_v52 }
  0xf9   : > { %v2796_v59 = vpop.f32.mrf.mxu1 }
  0xfa   : > { %v768_v57 = vpop.f32.mrf.mxu0 }
  0xfb   : > { %v905_v61 = vpop.f32.mrf.mxu1 }
  0xfc   : > { %v906_v45 = vadd.f32 %v905_v61, %v768_v57 }
 0x10c   : > { %v2815_v58 = vpop.f32.mrf.mxu0 }
 0x10d   : > { %v2839_v62 = vpop.f32.mrf.mxu1  ;;  %v1081_v38 = vadd.f32 %v2815_v58, %v895_v33 }
 0x10e   : > { %v1048_v60 = vpop.f32.mrf.mxu0 }
 0x10f   : > { %v1218_v0 = vpop.f32.mrf.mxu1  ;;  %v1079_v42 = vadd.f32 %v1048_v60, %v887_v37 }
 0x110   : > { %v2816_v63 = vpop.f32.mrf.mxu0 }
 0x111   : > { %v2840_v2 = vpop.f32.mrf.mxu1  ;;  %v1082_v50 = vadd.f32 %v2816_v63, %v898_v41  ;;  %v1249_v58 = vadd.f32 %v1218_v0, %v1079_v42 }
 0x112   : > { %v1051_v1 = vpop.f32.mrf.mxu0 }
 0x113   : > { %v1221_v4 = vpop.f32.mrf.mxu1  ;;  %v1080_v52 = vadd.f32 %v1051_v1, %v890_v46  ;;  %v1252_v60 = vadd.f32 %v2840_v2, %v1082_v50 }
 0x114   : > { %v2819_v3 = vpop.f32.mrf.mxu0 }
 0x115   : > { %v2843_v6 = vpop.f32.mrf.mxu1  ;;  %v1085_v40 = vadd.f32 %v2819_v3, %v911_v35 }
 0x116   : > { %v1064_v5 = vpop.f32.mrf.mxu0 }
 0x117   : > { %v1234_v8 = vpop.f32.mrf.mxu1  ;;  %v1255_v48 = vadd.f32 %v2843_v6, %v1085_v40 }
 0x118   : > { %v2820_v7 = vpop.f32.mrf.mxu0 }
 0x119   : > { %v2844_v10 = vpop.f32.mrf.mxu1 }
 0x11a   : > { %v1067_v9 = vpop.f32.mrf.mxu0 }
 0x11b   : > { %v1237_v12 = vpop.f32.mrf.mxu1  ;;  %v1084_v35 = vadd.f32 %v1067_v9, %v906_v45 }
 0x12c   : > { %v2863_v11 = vpop.f32.mrf.mxu0 }
 0x12d   : > { %v2887_v14 = vpop.f32.mrf.mxu1 }
 0x12e   : > { %v1388_v13 = vpop.f32.mrf.mxu0 }
 0x12f   : > { %v1558_v16 = vpop.f32.mrf.mxu1  ;;  %v1419_v37 = vadd.f32 %v1388_v13, %v1249_v58 }
 0x130   : > { %v2864_v15 = vpop.f32.mrf.mxu0 }
 0x131   : > { %v2888_v18 = vpop.f32.mrf.mxu1  ;;  %v1422_v53 = vadd.f32 %v2864_v15, %v1252_v60  ;;  %v1589_v6 = vadd.f32 %v1558_v16, %v1419_v37 }
 0x132   : > { %v1391_v17 = vpop.f32.mrf.mxu0 }
 0x133   : > { %v3486_v20 = vpop.f32.mrf.mxu1 }
 0x134   : > { %v2867_v19 = vpop.f32.mrf.mxu0  ;;  %3524 = vst [vmem:[#allocation2_spill] sm:$0xff] %v3486_v20  ;;  %v914_v20 = vadd.f32 %v2796_v59, %v2772_v55 }
 0x135   : > { %v2891_v21 = vpop.f32.mrf.mxu1  ;;  %v1425_v47 = vadd.f32 %v2867_v19, %v1255_v48  ;;  %v1592_v19 = vadd.f32 %v2888_v18, %v1422_v53 }
 0x136   : > { %v1404_v22 = vpop.f32.mrf.mxu0  ;;  %v1086_v33 = vadd.f32 %v2820_v7, %v914_v20 }
 0x137   : > { %v1574_v23 = vpop.f32.mrf.mxu1  ;;  %v1595_v63 = vadd.f32 %v2891_v21, %v1425_v47 }
 0x138   : > { %v2868_v24 = vpop.f32.mrf.mxu0  ;;  %v1256_v55 = vadd.f32 %v2844_v10, %v1086_v33 }
 0x139   : > { %v2892_v25 = vpop.f32.mrf.mxu1 }
 0x13a   : > { %v1407_v26 = vpop.f32.mrf.mxu0  ;;  %v1426_v57 = vadd.f32 %v2868_v24, %v1256_v55 }
 0x13b   : > { %v1577_v28 = vpop.f32.mrf.mxu1 }
 0x13c   : > { %v1596_v13 = vadd.f32 %v2892_v25, %v1426_v57 }
 0x14c   : > { %v2911_v27 = vpop.f32.mrf.mxu0 }
 0x14d   : > { %v2935_v29 = vpop.f32.mrf.mxu1 }
 0x14e   : > { %v1728_v30 = vpop.f32.mrf.mxu0 }
 0x14f   : > { %v3488_v31 = vpop.f32.mrf.mxu1  ;;  %v1759_v2 = vadd.f32 %v1728_v30, %v1589_v6 }
 0x150   : > { %3525 = vst [vmem:[#allocation3_spill] sm:$0xff] %v3488_v31  ;;  %v2912_v32 = vpop.f32.mrf.mxu0  ;;  %v1083_v31 = vadd.f32 %v1064_v5, %v903_v39  ;;  %v1250_v5 = vadd.f32 %v1221_v4, %v1080_v52 }
 0x151   : > { %v3490_v34 = vpop.f32.mrf.mxu1  ;;  %v1762_v15 = vadd.f32 %v2912_v32, %v1592_v19 }
 0x152   : > { %3526 = vst [vmem:[#allocation4_spill] sm:$0xff] %v3490_v34  ;;  %v1731_v36 = vpop.f32.mrf.mxu0  ;;  %v1251_v34 = vadd.f32 %v2839_v62, %v1081_v38  ;;  %v1253_v3 = vadd.f32 %v1234_v8, %v1083_v31  ;;  %v1254_v62 = vadd.f32 %v1237_v12, %v1084_v35  ;;  %v1420_v0 = vadd.f32 %v1391_v17, %v1250_v5  ;;  %v2598_v17 = vld [vmem:[%s3521_s10] ss:$0 sm:$0xff] }
 0x153   : > { %v3492_v43 = vpop.f32.mrf.mxu1 }
 0x154   : > { %3527 = vst [vmem:[#allocation5_spill] sm:$0xff] %v3492_v43  ;;  %v2915_v44 = vpop.f32.mrf.mxu0  ;;  %v1421_v56 = vadd.f32 %v2863_v11, %v1251_v34  ;;  %v1423_v59 = vadd.f32 %v1404_v22, %v1253_v3  ;;  %v1424_v9 = vadd.f32 %v1407_v26, %v1254_v62  ;;  %v3528_v22 = vld [vmem:[#allocation2_spill] sm:$0xff] }
 0x155   : > { %v2939_v54 = vpop.f32.mrf.mxu1  ;;  %v1765_v11 = vadd.f32 %v2915_v44, %v1595_v63  ;;  %v1590_v4 = vadd.f32 %v3528_v22, %v1420_v0  ;;  %v2599_v44 = vld [vmem:[%s3522_s11] ss:$0 sm:$0xff] }
 0x156   : > { %v1744_v51 = vpop.f32.mrf.mxu0  ;;  %v1591_v49 = vadd.f32 %v2887_v14, %v1421_v56  ;;  %v1593_v8 = vadd.f32 %v1574_v23, %v1423_v59  ;;  %v1594_v21 = vadd.f32 %v1577_v28, %v1424_v9 }
 0x157   : > { %v1914_v43 = vpop.f32.mrf.mxu1  ;;  %v1935_v24 = vadd.f32 %v2939_v54, %v1765_v11  ;;  %v3529_v23 = vld [vmem:[#allocation3_spill] sm:$0xff]  ;;  %v1760_v18 = vadd.f32 %v1731_v36, %v1590_v4 }
 0x158   : > { %v2916_v61 = vpop.f32.mrf.mxu0  ;;  %v1761_v1 = vadd.f32 %v2911_v27, %v1591_v49  ;;  %v1763_v20 = vadd.f32 %v1744_v51, %v1593_v8  ;;  %v1929_v26 = vadd.f32 %v3529_v23, %v1759_v2 }
 0x159   : > { %v2940_v7 = vpop.f32.mrf.mxu1  ;;  %v1766_v31 = vadd.f32 %v2916_v61, %v1596_v13 }
 0x15a   : > { %v1747_v10 = vpop.f32.mrf.mxu0  ;;  %v1931_v14 = vadd.f32 %v2935_v29, %v1761_v1  ;;  %v1933_v30 = vadd.f32 %v1914_v43, %v1763_v20  ;;  %v3530_v29 = vld [vmem:[#allocation4_spill] sm:$0xff] }
 0x15b   : > { %v1917_v12 = vpop.f32.mrf.mxu1  ;;  %v1764_v34 = vadd.f32 %v1747_v10, %v1594_v21  ;;  %v1932_v32 = vadd.f32 %v3530_v29, %v1762_v15  ;;  %v1936_v42 = vadd.f32 %v2940_v7, %v1766_v31  ;;  %v3531_v36 = vld [vmem:[#allocation5_spill] sm:$0xff] }
 0x15c   : > { %v1930_v45 = vadd.f32 %v3531_v36, %v1760_v18 }
 0x15d   : > { %v1934_v58 = vadd.f32 %v1917_v12, %v1764_v34 }
 0x16c   : > { %v2959_v16 = vpop.f32.mrf.mxu0 }
 0x16d   : > { %v2101_v27 = vadd.f32 %v2959_v16, %v1931_v14  ;;  %v2963_v25 = vpop.f32.mrf.mxu1 }
 0x16e   : > { %v2105_v38 = vadd.f32 %v2963_v25, %v1935_v24  ;;  %v2068_v39 = vpop.f32.mrf.mxu0 }
 0x16f   : > { %v2116_v40 = vmul.f32 %v2598_v17, %v2101_v27  ;;  %v2099_v28 = vadd.f32 %v2068_v39, %v1929_v26  ;;  %v2084_v41 = vpop.f32.mrf.mxu1 }
 0x170   : > { %v2120_v46 = vmul.f32 %v2598_v17, %v2105_v38  ;;  %v2103_v50 = vadd.f32 %v2084_v41, %v1933_v30  ;;  %v2960_v54 = vpop.f32.mrf.mxu0 }
 0x171   : > { %v2114_v48 = vmul.f32 %v2598_v17, %v2099_v28  ;;  %v2102_v43 = vadd.f32 %v2960_v54, %v1932_v32  ;;  %v2964_v33 = vpop.f32.mrf.mxu1  ;;  %v2131_v35 = vadd.f32 %v2599_v44, %v2116_v40 }
 0x172   : > { %v2118_v52 = vmul.f32 %v2598_v17, %v2103_v50  ;;  %v2106_v56 = vadd.f32 %v2964_v33, %v1936_v42  ;;  %v2071_v3 = vpop.f32.mrf.mxu0  ;;  %v2135_v37 = vadd.f32 %v2599_v44, %v2120_v46 }
 0x173   : > { %v2117_v47 = vmul.f32 %v2598_v17, %v2102_v43  ;;  %v2100_v51 = vadd.f32 %v2071_v3, %v1930_v45  ;;  %v2087_v60 = vpop.f32.mrf.mxu1  ;;  %v2129_v5 = vadd.f32 %v2599_v44, %v2114_v48  ;;  %v2139_v61 = vmax.f32 %v2131_v35, 0.0 }
 0x174   : > { %v2121_v55 = vmul.f32 %v2598_v17, %v2106_v56  ;;  %v2104_v59 = vadd.f32 %v2087_v60, %v1934_v58  ;;  %v2133_v62 = vadd.f32 %v2599_v44, %v2118_v52  ;;  %v2143_v1 = vmax.f32 %v2135_v37, 0.0 }
 0x175   : > { %v2132_v49 = vadd.f32 %v2599_v44, %v2117_v47  ;;  %v2115_v53 = vmul.f32 %v2598_v17, %v2100_v51  ;;  %v2137_v9 = vmax.f32 %v2129_v5, 0.0 }
 0x176   : > { %v2136_v63 = vadd.f32 %v2599_v44, %v2121_v55  ;;  %v2119_v57 = vmul.f32 %v2598_v17, %v2104_v59  ;;  %v2141_v2 = vmax.f32 %v2133_v62, 0.0 }
 0x177   : > { %v2140_v6 = vmax.f32 %v2132_v49, 0.0  ;;  %v2130_v0 = vadd.f32 %v2599_v44, %v2115_v53 }
 0x178   : > { %v2144_v7 = vmax.f32 %v2136_v63, 0.0  ;;  %v2134_v8 = vadd.f32 %v2599_v44, %v2119_v57 }
 0x179   : > { %v2626_v11 = vpack.c.bf16 %v2140_v6, %v2139_v61  ;;  %v2138_v19 = vmax.f32 %v2130_v0, 0.0 }
 0x17a   : > { %v2636_v13 = vpack.c.bf16 %v2144_v7, %v2143_v1  ;;  %v2142_v20 = vmax.f32 %v2134_v8, 0.0 }
 0x17b   : > { %2638 = vst [vmem:[%s591_s29 + $0x8] sm:$0xff] %v2626_v11   ;;  %v2621_v10 = vpack.c.bf16 %v2138_v19, %v2137_v9 }
 0x17c   : > { %2640 = vst [vmem:[%s591_s29 + $0x18] sm:$0xff] %v2636_v13   ;;  %v2631_v22 = vpack.c.bf16 %v2142_v20, %v2141_v2 }
 0x17d   : > { %2622 = vst [vmem:[%s591_s29] sm:$0xff] %v2621_v10  }
 0x17e   : > { %2639 = vst [vmem:[%s591_s29 + $0x10] sm:$0xff] %v2631_v22  }
 0x17f PF: > { %s22_s21 = sadd.s32 1, %s3103_s21  }
 0x180   : > { %p19_p4 = scmp.ge.s32.totalorder %s22_s21, 4  }
 0x182   :  { %21 = sbr.rel (!%p19_p4) target bundleno = 1 (0x1), region = 130 }

// kernel: colorization_net_forward.16
= control target key start
LH: loop header
LB: loop body
LE: loop exit
PB: predicated region body
PF: predicated region fallthrough
CT: control target
= control target key end

     0   :  { %s3281_s25 = smov 0   ;;  %s3639_s0 = inlined_call_operand.vmem [shape: bf16[128,128], index: 0, kind: input, shape index: {}]   ;;  %s3640_s1 = inlined_call_operand.vmem [shape: bf16[128,128], index: 1, kind: input, shape index: {}]   ;;  %s3641_s2 = inlined_call_operand.vmem [shape: bf16[128,128], index: 2, kind: input, shape index: {}]   ;;  %s3642_s3 = inlined_call_operand.vmem [shape: bf16[128,128], index: 3, kind: input, shape index: {}]   ;;  %s3643_s4 = inlined_call_operand.vmem [shape: bf16[128,128], index: 4, kind: input, shape index: {}]   ;;  %s3644_s5 = inlined_call_operand.vmem [shape: bf16[128,128], index: 5, kind: input, shape index: {}]   ;;  %s3645_s6 = inlined_call_operand.vmem [shape: bf16[128,128], index: 6, kind: input, shape index: {}]   ;;  %s3646_s7 = inlined_call_operand.vmem [shape: bf16[128,128], index: 7, kind: input, shape index: {}]   ;;  %s3647_s8 = inlined_call_operand.vmem [shape: bf16[128,128], index: 8, kind: input, shape index: {}]   ;;  %s3648_s9 = inlined_call_operand.vmem [shape: bf16[9,128,128], index: 9, kind: input, shape index: {}]   ;;  %s3649_s10 = inlined_call_operand.vmem [shape: f32[1,128], index: 10, kind: input, shape index: {}]   ;;  %s3650_s11 = inlined_call_operand.vmem [shape: f32[1,128], index: 11, kind: input, shape index: {}]   ;;  %s3651_s12 = inlined_call_operand.vmem [shape: bf16[128,128], index: 12, kind: input, shape index: {}]   ;;  %s3652_s13 = inlined_call_operand.vmem [shape: bf16[128,128], index: 13, kind: output, shape index: {}]  }
   0x1 LB: > { %s2422_s26 = sadd.s32 4294967295, %s3209_s25   ;;  %p2426_p0 = scmp.ge.s32.totalorder %s3209_s25, 1  ;;  %s3209_s25 = sphi %s3281_s25, %s23_s25  }
   0x2   : > { %p487_p1 = scmp.lt.s32.totalorder %s3209_s25, 3 }
   0x4   : > { %p488_p2 = pnand %p2426_p0, %p487_p1 }
   0x6   : > { %491 = sbr.rel (%p488_p2) target bundleno = 385 (0x181), region = 72 }
   0xb   : > { %v3095_v0 = vld [vmem:[%s3648_s9 + $0x78] sm:$0xff]   ;;  %s2427_s29 = sshll.u32 %s2422_s26, 3  ;;  %v3097_v2 = vld [vmem:[%s3648_s9 + $0x70] sm:$0xff]   ;;  %v3099_v4 = vld [vmem:[%s3648_s9 + $0x68] sm:$0xff]  }
   0xc   : > { %v3096_v1 = vld [vmem:[%s3648_s9 + $0x38] sm:$0xff]   ;;  %2855 = vmatprep.subr.bf16.mxu0 %v3095_v0  ;;  %p577_p3 = scmp.lt.s32.totalorder %s2427_s29, 15  ;;  %v3098_v3 = vld [vmem:[%s3648_s9 + $0x30] sm:$0xff]   ;;  %v3100_v5 = vld [vmem:[%s3648_s9 + $0x28] sm:$0xff]  }
   0xd   : > { %2879 = vmatprep.subr.bf16.mxu1 %v3096_v1  ;;  %2856 = vmatpush3.bf16.msra.mxu0 %v3095_v0  ;;  %v3101_v6 = vld [vmem:[%s3648_s9 + $0x60] sm:$0xff]   ;;  %v3103_v8 = vld [vmem:[%s3648_s9 + $0x58] sm:$0xff]   ;;  %v3105_v10 = vld [vmem:[%s3648_s9 + $0x50] sm:$0xff]  }
   0xe   : > { %2880 = vmatpush3.bf16.msra.mxu1 %v3096_v1  ;;  %2857 = vmatprep.subr.bf16.mxu0 %v3097_v2  ;;  %s3666_s29 = smov (!%p577_p3, %s2427_s29), 15  ;;  %v3102_v7 = vld [vmem:[%s3648_s9 + $0x20] sm:$0xff]   ;;  %v3104_v9 = vld [vmem:[%s3648_s9 + $0x18] sm:$0xff]   ;;  %v3106_v11 = vld [vmem:[%s3648_s9 + $0x10] sm:$0xff]  }
   0xf   : > { %2881 = vmatprep.subr.bf16.mxu1 %v3098_v3  ;;  %s3313_s28 = sshll.u32 %s3666_s29, 2  ;;  %v3107_v14 = vld [vmem:[%s3648_s9 + $0x48] sm:$0xff]   ;;  %v3109_v16 = vld [vmem:[%s3648_s9 + $0x40] sm:$0xff]   ;;  %v3115_v19 = vld [vmem:[%s3648_s9 + $0xb8] sm:$0xff]  }
  0x10   : > { %s3325_s19 = scalar_lea.vmem %s3640_s1, %s3313_s28  ;;  %s3334_s23 = scalar_lea.vmem %s3639_s0, %s3313_s28  ;;  %v3108_v15 = vld [vmem:[%s3648_s9 + $0x8] sm:$0xff]   ;;  %v3110_v17 = vld [vmem:[%s3648_s9] sm:$0xff]   ;;  %v3116_v20 = vld [vmem:[%s3648_s9 + $0xf8] sm:$0xff]  }
  0x11   : > { %2858 = vmatpush3.bf16.msra.mxu0 %v3097_v2  ;;  %v3111_v12 = vld [vmem:[%s3325_s19] sm:$0xff]   ;;  %v3113_v18 = vld [vmem:[%s3325_s19 + $0x8] sm:$0xff]   ;;  %v3117_v22 = vld [vmem:[%s3648_s9 + $0xb0] sm:$0xff]   ;;  %s3383_s24 = scalar_lea.vmem %s3641_s2, %s3313_s28  ;;  %s3390_s30 = scalar_lea.vmem %s3642_s3, %s3313_s28 }
  0x12   : > { %2882 = vmatpush3.bf16.msra.mxu1 %v3098_v3  ;;  %2859 = vmatprep.subr.bf16.mxu0 %v3099_v4  ;;  %v3112_v13 = vld [vmem:[%s3334_s23] sm:$0xff]   ;;  %v3114_v21 = vld [vmem:[%s3334_s23 + $0x8] sm:$0xff]   ;;  %v3118_v23 = vld [vmem:[%s3648_s9 + $0xf0] sm:$0xff]   ;;  %s3436_s14 = scalar_lea.vmem %s3643_s4, %s3313_s28  ;;  %s3445_s17 = scalar_lea.vmem %s3644_s5, %s3313_s28 }
  0x13   : > { %2883 = vmatprep.subr.bf16.mxu1 %v3100_v5  ;;  %2871 = vmatprep.mubr.bf16.mxu0 %v3111_v12  ;;  %v3125_v24 = vld [vmem:[%s3325_s19 + $0x10] sm:$0xff]   ;;  %v3119_v26 = vld [vmem:[%s3648_s9 + $0xa8] sm:$0xff]   ;;  %v3121_v28 = vld [vmem:[%s3648_s9 + $0xa0] sm:$0xff]   ;;  %s3487_s15 = scalar_lea.vmem %s3645_s6, %s3313_s28  ;;  %s3496_s29 = scalar_lea.vmem %s3646_s7, %s3313_s28 }
  0x14   : > { %2895 = vmatprep.mubr.bf16.mxu1 %v3112_v13  ;;  %v3126_v25 = vld [vmem:[%s3334_s23 + $0x10] sm:$0xff]   ;;  %v3120_v27 = vld [vmem:[%s3648_s9 + $0xe8] sm:$0xff]   ;;  %v3127_v29 = vld [vmem:[%s3325_s19 + $0x18] sm:$0xff]  }
  0x15   : > { %2860 = vmatpush3.bf16.msra.mxu0 %v3099_v4  ;;  %v3128_v30 = vld [vmem:[%s3334_s23 + $0x18] sm:$0xff]   ;;  %v3122_v31 = vld [vmem:[%s3648_s9 + $0xe0] sm:$0xff]   ;;  %v3129_v36 = vld [vmem:[%s3648_s9 + $0x90] sm:$0xff]  }
  0x16   : > { %2884 = vmatpush3.bf16.msra.mxu1 %v3100_v5  ;;  %2861 = vmatprep.subr.bf16.mxu0 %v3101_v6  ;;  %v3135_v32 = vld [vmem:[%s3383_s24] sm:$0xff]   ;;  %v3123_v34 = vld [vmem:[%s3648_s9 + $0x98] sm:$0xff]   ;;  %v3130_v37 = vld [vmem:[%s3648_s9 + $0xd0] sm:$0xff]  }
  0x17   : > { %2885 = vmatprep.subr.bf16.mxu1 %v3102_v7  ;;  %v3136_v33 = vld [vmem:[%s3390_s30] sm:$0xff]   ;;  %v3124_v35 = vld [vmem:[%s3648_s9 + $0xd8] sm:$0xff]   ;;  %v3131_v38 = vld [vmem:[%s3648_s9 + $0x88] sm:$0xff]  }
  0x18   : > { %v3132_v39 = vld [vmem:[%s3648_s9 + $0xc8] sm:$0xff]   ;;  %v3133_v40 = vld [vmem:[%s3648_s9 + $0x80] sm:$0xff]   ;;  %v3139_v43 = vld [vmem:[%s3648_s9 + $0x138] sm:$0xff]  }
  0x19   : > { %2862 = vmatpush3.bf16.msra.mxu0 %v3101_v6  ;;  %v3134_v41 = vld [vmem:[%s3648_s9 + $0xc0] sm:$0xff]   ;;  %v3137_v42 = vld [vmem:[%s3383_s24 + $0x8] sm:$0xff]   ;;  %v3140_v44 = vld [vmem:[%s3648_s9 + $0x178] sm:$0xff]  }
  0x1a   : > { %2886 = vmatpush3.bf16.msra.mxu1 %v3102_v7  ;;  %2863 = vmatprep.subr.bf16.mxu0 %v3103_v8  ;;  %v3138_v45 = vld [vmem:[%s3390_s30 + $0x8] sm:$0xff]   ;;  %v3141_v46 = vld [vmem:[%s3648_s9 + $0x130] sm:$0xff]   ;;  %v3144_v50 = vld [vmem:[%s3383_s24 + $0x18] sm:$0xff]  }
  0x1b   : > { %2887 = vmatprep.subr.bf16.mxu1 %v3104_v9  ;;  %v3142_v47 = vld [vmem:[%s3648_s9 + $0x170] sm:$0xff]   ;;  %v3145_v51 = vld [vmem:[%s3648_s9 + $0x128] sm:$0xff]   ;;  %v3148_v53 = vld [vmem:[%s3390_s30 + $0x18] sm:$0xff]  }
  0x1c   : > { %v3143_v48 = vld [vmem:[%s3383_s24 + $0x10] sm:$0xff]   ;;  %v3146_v52 = vld [vmem:[%s3648_s9 + $0x168] sm:$0xff]   ;;  %v3149_v54 = vld [vmem:[%s3648_s9 + $0x120] sm:$0xff]   ;;  %s634_s24 = scalar_lea.vmem %s3651_s12, %s3313_s28 }
  0x1d   : > { %2864 = vmatpush3.bf16.msra.mxu0 %v3103_v8  ;;  %v3147_v49 = vld [vmem:[%s3390_s30 + $0x10] sm:$0xff]   ;;  %v3150_v55 = vld [vmem:[%s3648_s9 + $0x160] sm:$0xff]   ;;  %v3151_v58 = vld [vmem:[%s3648_s9 + $0x118] sm:$0xff]   ;;  %s3532_s30 = scalar_lea.vmem %s3647_s8, %s3313_s28 }
  0x1e   : > { %2888 = vmatpush3.bf16.msra.mxu1 %v3104_v9  ;;  %2865 = vmatprep.subr.bf16.mxu0 %v3105_v10  ;;  %v3159_v56 = vld [vmem:[%s3436_s14] sm:$0xff]   ;;  %v3152_v59 = vld [vmem:[%s3648_s9 + $0x158] sm:$0xff]   ;;  %v3153_v60 = vld [vmem:[%s3648_s9 + $0x110] sm:$0xff]  }
  0x1f   : > { %2889 = vmatprep.subr.bf16.mxu1 %v3106_v11  ;;  %v3160_v57 = vld [vmem:[%s3445_s17] sm:$0xff]   ;;  %v3154_v61 = vld [vmem:[%s3648_s9 + $0x150] sm:$0xff]   ;;  %v3155_v62 = vld [vmem:[%s3648_s9 + $0x108] sm:$0xff]  }
  0x20   : > { %v3156_v63 = vld [vmem:[%s3648_s9 + $0x148] sm:$0xff]   ;;  %v3157_v0 = vld [vmem:[%s3648_s9 + $0x100] sm:$0xff]   ;;  %v3163_v3 = vld [vmem:[%s3648_s9 + $0x1b8] sm:$0xff]  }
  0x21   : > { %2866 = vmatpush3.bf16.msra.mxu0 %v3105_v10  ;;  %v3158_v1 = vld [vmem:[%s3648_s9 + $0x140] sm:$0xff]   ;;  %v3161_v2 = vld [vmem:[%s3436_s14 + $0x8] sm:$0xff]   ;;  %v3164_v4 = vld [vmem:[%s3648_s9 + $0x1f8] sm:$0xff]  }
  0x22   : > { %2890 = vmatpush3.bf16.msra.mxu1 %v3106_v11  ;;  %2867 = vmatprep.subr.bf16.mxu0 %v3107_v14  ;;  %v3162_v5 = vld [vmem:[%s3445_s17 + $0x8] sm:$0xff]   ;;  %v3165_v6 = vld [vmem:[%s3648_s9 + $0x1b0] sm:$0xff]   ;;  %v3168_v10 = vld [vmem:[%s3436_s14 + $0x18] sm:$0xff]  }
  0x23   : > { %2891 = vmatprep.subr.bf16.mxu1 %v3108_v15  ;;  %v3166_v7 = vld [vmem:[%s3648_s9 + $0x1f0] sm:$0xff]   ;;  %v3169_v11 = vld [vmem:[%s3648_s9 + $0x1a8] sm:$0xff]   ;;  %v3172_v13 = vld [vmem:[%s3445_s17 + $0x18] sm:$0xff]  }
  0x24   : > { %v3167_v8 = vld [vmem:[%s3436_s14 + $0x10] sm:$0xff]   ;;  %v3170_v12 = vld [vmem:[%s3648_s9 + $0x1e8] sm:$0xff]  }
  0x25   : > { %2868 = vmatpush3.bf16.msra.mxu0 %v3107_v14  ;;  %v3171_v9 = vld [vmem:[%s3445_s17 + $0x10] sm:$0xff]   ;;  %v3173_v14 = vld [vmem:[%s3648_s9 + $0x1a0] sm:$0xff]  }
  0x26   : > { %2892 = vmatpush3.bf16.msra.mxu1 %v3108_v15  ;;  %2869 = vmatprep.subr.bf16.mxu0 %v3109_v16  ;;  %v3174_v15 = vld [vmem:[%s3648_s9 + $0x1e0] sm:$0xff]  }
  0x27   : > { %2893 = vmatprep.subr.bf16.mxu1 %v3110_v17 }
  0x29   : > { %2870 = vmatpush3.bf16.msra.mxu0 %v3109_v16  ;;  %v3183_v16 = vld [vmem:[%s3487_s15] sm:$0xff]  }
  0x2a   : > { %2894 = vmatpush3.bf16.msra.mxu1 %v3110_v17  ;;  %2903 = vmatprep.subr.bf16.mxu0 %v3115_v19  ;;  %v3184_v17 = vld [vmem:[%s3496_s29] sm:$0xff]  }
  0x2b   : > { %2927 = vmatprep.subr.bf16.mxu1 %v3116_v20 }
  0x2c   : > { %2872 = vmatmul.mubr.bf16.vlgmr.msra.gmra.mxu0 %v3113_v18  ;;  %v3175_v18 = vld [vmem:[%s3648_s9 + $0x198] sm:$0xff]  }
  0x2d   : > { %2896 = vmatmul.mubr.bf16.vlgmr.msra.gmra.mxu1 %v3114_v21  ;;  %2904 = vmatpush3.bf16.msra.mxu0 %v3115_v19  ;;  %v3176_v19 = vld [vmem:[%s3648_s9 + $0x1d8] sm:$0xff]   ;;  %v3178_v21 = vld [vmem:[%s3648_s9 + $0x1d0] sm:$0xff]  }
  0x2e   : > { %2928 = vmatpush3.bf16.msra.mxu1 %v3116_v20  ;;  %2905 = vmatprep.subr.bf16.mxu0 %v3117_v22  ;;  %v3177_v20 = vld [vmem:[%s3648_s9 + $0x190] sm:$0xff]  }
  0x2f   : > { %2929 = vmatprep.subr.bf16.mxu1 %v3118_v23  ;;  %2875 = vmatprep.mubr.bf16.mxu0 %v3125_v24  ;;  %v3181_v24 = vld [vmem:[%s3648_s9 + $0x180] sm:$0xff]  }
  0x30   : > { %2899 = vmatprep.mubr.bf16.mxu1 %v3126_v25  ;;  %v3182_v25 = vld [vmem:[%s3648_s9 + $0x1c0] sm:$0xff]  }
  0x31   : > { %2906 = vmatpush3.bf16.msra.mxu0 %v3117_v22  ;;  %v3179_v22 = vld [vmem:[%s3648_s9 + $0x188] sm:$0xff]  }
  0x32   : > { %2930 = vmatpush3.bf16.msra.mxu1 %v3118_v23  ;;  %2907 = vmatprep.subr.bf16.mxu0 %v3119_v26  ;;  %v3180_v23 = vld [vmem:[%s3648_s9 + $0x1c8] sm:$0xff]  }
  0x33   : > { %2931 = vmatprep.subr.bf16.mxu1 %v3120_v27 }
  0x34   : > { %2876 = vmatmul.mubr.bf16.gmra.mxu0 %v3127_v29  ;;  %v3188_v29 = vld [vmem:[%s3648_s9 + $0x230] sm:$0xff]  }
  0x35   : > { %2908 = vmatpush3.bf16.msra.mxu0 %v3119_v26  ;;  %2900 = vmatmul.mubr.bf16.gmra.mxu1 %v3128_v30  ;;  %v3187_v26 = vld [vmem:[%s3648_s9 + $0x238] sm:$0xff]   ;;  %v3189_v30 = vld [vmem:[%s3487_s15 + $0x10] sm:$0xff]  }
  0x36   : > { %2932 = vmatpush3.bf16.msra.mxu1 %v3120_v27  ;;  %2909 = vmatprep.subr.bf16.mxu0 %v3121_v28  ;;  %v3185_v27 = vld [vmem:[%s3487_s15 + $0x8] sm:$0xff]  }
  0x37   : > { %2933 = vmatprep.subr.bf16.mxu1 %v3122_v31  ;;  %2919 = vmatprep.mubr.bf16.mxu0 %v3135_v32  ;;  %v3191_v32 = vld [vmem:[%s3648_s9 + $0x228] sm:$0xff]  }
  0x38   : > { %2943 = vmatprep.mubr.bf16.mxu1 %v3136_v33  ;;  %v3190_v33 = vld [vmem:[%s3487_s15 + $0x18] sm:$0xff]   ;;  %s640_s15 = scalar_lea.vmem %s3652_s13, %s3313_s28 }
  0x39   : > { %2910 = vmatpush3.bf16.msra.mxu0 %v3121_v28  ;;  %v3186_v28 = vld [vmem:[%s3496_s29 + $0x8] sm:$0xff]  }
  0x3a   : > { %2934 = vmatpush3.bf16.msra.mxu1 %v3122_v31  ;;  %2911 = vmatprep.subr.bf16.mxu0 %v3123_v34  ;;  %v3192_v31 = vld [vmem:[%s3496_s29 + $0x10] sm:$0xff]  }
  0x3b   : > { %2935 = vmatprep.subr.bf16.mxu1 %v3124_v35 }
  0x3d   : > { %2912 = vmatpush3.bf16.msra.mxu0 %v3123_v34  ;;  %v3193_v34 = vld [vmem:[%s3496_s29 + $0x18] sm:$0xff]  }
  0x3e   : > { %2936 = vmatpush3.bf16.msra.mxu1 %v3124_v35  ;;  %2913 = vmatprep.subr.bf16.mxu0 %v3129_v36  ;;  %v3194_v35 = vld [vmem:[%s3648_s9 + $0x220] sm:$0xff]  }
  0x3f   : > { %2937 = vmatprep.subr.bf16.mxu1 %v3130_v37 }
  0x41   : > { %2914 = vmatpush3.bf16.msra.mxu0 %v3129_v36  ;;  %v3199_v36 = vld [vmem:[%s3532_s30] sm:$0xff]  }
  0x42   : > { %2938 = vmatpush3.bf16.msra.mxu1 %v3130_v37  ;;  %2915 = vmatprep.subr.bf16.mxu0 %v3131_v38  ;;  %v3200_v37 = vld [vmem:[%s3532_s30 + $0x10] sm:$0xff]  }
  0x43   : > { %2939 = vmatprep.subr.bf16.mxu1 %v3132_v39 }
  0x45   : > { %2916 = vmatpush3.bf16.msra.mxu0 %v3131_v38  ;;  %v3195_v38 = vld [vmem:[%s3648_s9 + $0x218] sm:$0xff]  }
  0x46   : > { %2940 = vmatpush3.bf16.msra.mxu1 %v3132_v39  ;;  %2917 = vmatprep.subr.bf16.mxu0 %v3133_v40  ;;  %v3196_v39 = vld [vmem:[%s3648_s9 + $0x210] sm:$0xff]  }
  0x47   : > { %2941 = vmatprep.subr.bf16.mxu1 %v3134_v41 }
  0x49   : > { %2918 = vmatpush3.bf16.msra.mxu0 %v3133_v40  ;;  %v3197_v40 = vld [vmem:[%s3648_s9 + $0x208] sm:$0xff]  }
  0x4a   : > { %2942 = vmatpush3.bf16.msra.mxu1 %v3134_v41  ;;  %2951 = vmatprep.subr.bf16.mxu0 %v3139_v43  ;;  %v3198_v41 = vld [vmem:[%s3648_s9 + $0x200] sm:$0xff]  }
  0x4b   : > { %2975 = vmatprep.subr.bf16.mxu1 %v3140_v44 }
  0x4c   : > { %2920 = vmatmul.mubr.bf16.vlgmr.msra.gmra.mxu0 %v3137_v42  ;;  %v3201_v42 = vld [vmem:[%s3532_s30 + $0x8] sm:$0xff]  }
  0x4d   : > { %2944 = vmatmul.mubr.bf16.vlgmr.msra.gmra.mxu1 %v3138_v45  ;;  %2952 = vmatpush3.bf16.msra.mxu0 %v3139_v43  ;;  %v3202_v43 = vld [vmem:[%s3532_s30 + $0x18] sm:$0xff]  }
  0x4e   : > { %2976 = vmatpush3.bf16.msra.mxu1 %v3140_v44  ;;  %2953 = vmatprep.subr.bf16.mxu0 %v3141_v46 }
  0x4f   : > { %2977 = vmatprep.subr.bf16.mxu1 %v3142_v47  ;;  %2923 = vmatprep.mubr.bf16.mxu0 %v3143_v48 }
  0x50   : > { %2947 = vmatprep.mubr.bf16.mxu1 %v3147_v49 }
  0x51   : > { %2954 = vmatpush3.bf16.msra.mxu0 %v3141_v46 }
  0x52   : > { %2978 = vmatpush3.bf16.msra.mxu1 %v3142_v47  ;;  %2955 = vmatprep.subr.bf16.mxu0 %v3145_v51 }
  0x53   : > { %2979 = vmatprep.subr.bf16.mxu1 %v3146_v52 }
  0x54   : > { %2924 = vmatmul.mubr.bf16.gmra.mxu0 %v3144_v50 }
  0x55   : > { %2956 = vmatpush3.bf16.msra.mxu0 %v3145_v51  ;;  %2948 = vmatmul.mubr.bf16.gmra.mxu1 %v3148_v53 }
  0x56   : > { %2980 = vmatpush3.bf16.msra.mxu1 %v3146_v52  ;;  %2957 = vmatprep.subr.bf16.mxu0 %v3149_v54 }
  0x57   : > { %2981 = vmatprep.subr.bf16.mxu1 %v3150_v55  ;;  %2967 = vmatprep.mubr.bf16.mxu0 %v3159_v56 }
  0x58   : > { %2991 = vmatprep.mubr.bf16.mxu1 %v3160_v57 }
  0x59   : > { %2958 = vmatpush3.bf16.msra.mxu0 %v3149_v54 }
  0x5a   : > { %2982 = vmatpush3.bf16.msra.mxu1 %v3150_v55  ;;  %2959 = vmatprep.subr.bf16.mxu0 %v3151_v58 }
  0x5b   : > { %2983 = vmatprep.subr.bf16.mxu1 %v3152_v59 }
  0x5d   : > { %2960 = vmatpush3.bf16.msra.mxu0 %v3151_v58 }
  0x5e   : > { %2984 = vmatpush3.bf16.msra.mxu1 %v3152_v59  ;;  %2961 = vmatprep.subr.bf16.mxu0 %v3153_v60 }
  0x5f   : > { %2985 = vmatprep.subr.bf16.mxu1 %v3154_v61 }
  0x61   : > { %2962 = vmatpush3.bf16.msra.mxu0 %v3153_v60 }
  0x62   : > { %2986 = vmatpush3.bf16.msra.mxu1 %v3154_v61  ;;  %2963 = vmatprep.subr.bf16.mxu0 %v3155_v62 }
  0x63   : > { %2987 = vmatprep.subr.bf16.mxu1 %v3156_v63 }
  0x65   : > { %2964 = vmatpush3.bf16.msra.mxu0 %v3155_v62 }
  0x66   : > { %2988 = vmatpush3.bf16.msra.mxu1 %v3156_v63  ;;  %2965 = vmatprep.subr.bf16.mxu0 %v3157_v0 }
  0x67   : > { %2989 = vmatprep.subr.bf16.mxu1 %v3158_v1 }
  0x69   : > { %2966 = vmatpush3.bf16.msra.mxu0 %v3157_v0 }
  0x6a   : > { %2990 = vmatpush3.bf16.msra.mxu1 %v3158_v1  ;;  %2999 = vmatprep.subr.bf16.mxu0 %v3163_v3 }
  0x6b   : > { %3023 = vmatprep.subr.bf16.mxu1 %v3164_v4 }
  0x6c   : > { %2968 = vmatmul.mubr.bf16.vlgmr.msra.gmra.mxu0 %v3161_v2 }
  0x6d   : > { %2992 = vmatmul.mubr.bf16.vlgmr.msra.gmra.mxu1 %v3162_v5  ;;  %3000 = vmatpush3.bf16.msra.mxu0 %v3163_v3 }
  0x6e   : > { %3024 = vmatpush3.bf16.msra.mxu1 %v3164_v4  ;;  %3001 = vmatprep.subr.bf16.mxu0 %v3165_v6 }
  0x6f   : > { %3025 = vmatprep.subr.bf16.mxu1 %v3166_v7  ;;  %2971 = vmatprep.mubr.bf16.mxu0 %v3167_v8 }
  0x70   : > { %2995 = vmatprep.mubr.bf16.mxu1 %v3171_v9 }
  0x71   : > { %3002 = vmatpush3.bf16.msra.mxu0 %v3165_v6 }
  0x72   : > { %3026 = vmatpush3.bf16.msra.mxu1 %v3166_v7  ;;  %3003 = vmatprep.subr.bf16.mxu0 %v3169_v11 }
  0x73   : > { %3027 = vmatprep.subr.bf16.mxu1 %v3170_v12 }
  0x74   : > { %2972 = vmatmul.mubr.bf16.gmra.mxu0 %v3168_v10 }
  0x75   : > { %3004 = vmatpush3.bf16.msra.mxu0 %v3169_v11  ;;  %2996 = vmatmul.mubr.bf16.gmra.mxu1 %v3172_v13 }
  0x76   : > { %3028 = vmatpush3.bf16.msra.mxu1 %v3170_v12  ;;  %3005 = vmatprep.subr.bf16.mxu0 %v3173_v14 }
  0x77   : > { %3029 = vmatprep.subr.bf16.mxu1 %v3174_v15  ;;  %3015 = vmatprep.mubr.bf16.mxu0 %v3183_v16 }
  0x78   : > { %3039 = vmatprep.mubr.bf16.mxu1 %v3184_v17 }
  0x79   : > { %3006 = vmatpush3.bf16.msra.mxu0 %v3173_v14 }
  0x7a   : > { %3030 = vmatpush3.bf16.msra.mxu1 %v3174_v15  ;;  %3007 = vmatprep.subr.bf16.mxu0 %v3175_v18 }
  0x7b   : > { %3031 = vmatprep.subr.bf16.mxu1 %v3176_v19 }
  0x7d   : > { %3008 = vmatpush3.bf16.msra.mxu0 %v3175_v18 }
  0x7e   : > { %3032 = vmatpush3.bf16.msra.mxu1 %v3176_v19  ;;  %3009 = vmatprep.subr.bf16.mxu0 %v3177_v20 }
  0x7f   : > { %3033 = vmatprep.subr.bf16.mxu1 %v3178_v21 }
  0x81   : > { %3010 = vmatpush3.bf16.msra.mxu0 %v3177_v20 }
  0x82   : > { %3034 = vmatpush3.bf16.msra.mxu1 %v3178_v21  ;;  %3011 = vmatprep.subr.bf16.mxu0 %v3179_v22 }
  0x83   : > { %3035 = vmatprep.subr.bf16.mxu1 %v3180_v23 }
  0x85   : > { %3012 = vmatpush3.bf16.msra.mxu0 %v3179_v22 }
  0x86   : > { %3036 = vmatpush3.bf16.msra.mxu1 %v3180_v23  ;;  %3013 = vmatprep.subr.bf16.mxu0 %v3181_v24 }
  0x87   : > { %3037 = vmatprep.subr.bf16.mxu1 %v3182_v25 }
  0x89   : > { %3014 = vmatpush3.bf16.msra.mxu0 %v3181_v24 }
  0x8a   : > { %3038 = vmatpush3.bf16.msra.mxu1 %v3182_v25  ;;  %3047 = vmatprep.subr.bf16.mxu0 %v3187_v26 }
  0x8b   : > { %3071 = vmatprep.subr.bf16.mxu1 %v3187_v26 }
  0x8c   : > { %3016 = vmatmul.mubr.bf16.vlgmr.msra.gmra.mxu0 %v3185_v27 }
  0x8d   : > { %3040 = vmatmul.mubr.bf16.vlgmr.msra.gmra.mxu1 %v3186_v28  ;;  %3048 = vmatpush3.bf16.msra.mxu0 %v3187_v26 }
  0x8e   : > { %3079 = vmatpush3.bf16.msra.mxu1 %v3187_v26  ;;  %3049 = vmatprep.subr.bf16.mxu0 %v3188_v29 }
  0x8f   : > { %3072 = vmatprep.subr.bf16.mxu1 %v3188_v29  ;;  %3019 = vmatprep.mubr.bf16.mxu0 %v3189_v30 }
  0x90   : > { %3043 = vmatprep.mubr.bf16.mxu1 %v3192_v31 }
  0x91   : > { %3050 = vmatpush3.bf16.msra.mxu0 %v3188_v29 }
  0x92   : > { %3080 = vmatpush3.bf16.msra.mxu1 %v3188_v29  ;;  %3051 = vmatprep.subr.bf16.mxu0 %v3191_v32 }
  0x93   : > { %3073 = vmatprep.subr.bf16.mxu1 %v3191_v32 }
  0x94   : > { %3020 = vmatmul.mubr.bf16.gmra.mxu0 %v3190_v33 }
  0x95   : > { %3052 = vmatpush3.bf16.msra.mxu0 %v3191_v32  ;;  %3044 = vmatmul.mubr.bf16.gmra.mxu1 %v3193_v34 }
  0x96   : > { %3081 = vmatpush3.bf16.msra.mxu1 %v3191_v32  ;;  %3053 = vmatprep.subr.bf16.mxu0 %v3194_v35 }
  0x97   : > { %3074 = vmatprep.subr.bf16.mxu1 %v3194_v35  ;;  %3063 = vmatprep.mubr.bf16.mxu0 %v3199_v36 }
  0x98   : > { %3067 = vmatprep.mubr.bf16.mxu1 %v3200_v37 }
  0x99   : > { %3054 = vmatpush3.bf16.msra.mxu0 %v3194_v35 }
  0x9a   : > { %3082 = vmatpush3.bf16.msra.mxu1 %v3194_v35  ;;  %3055 = vmatprep.subr.bf16.mxu0 %v3195_v38 }
  0x9b   : > { %3075 = vmatprep.subr.bf16.mxu1 %v3195_v38 }
  0x9d   : > { %3056 = vmatpush3.bf16.msra.mxu0 %v3195_v38 }
  0x9e   : > { %3083 = vmatpush3.bf16.msra.mxu1 %v3195_v38  ;;  %3057 = vmatprep.subr.bf16.mxu0 %v3196_v39 }
  0x9f   : > { %3076 = vmatprep.subr.bf16.mxu1 %v3196_v39 }
  0xa1   : > { %3058 = vmatpush3.bf16.msra.mxu0 %v3196_v39 }
  0xa2   : > { %3084 = vmatpush3.bf16.msra.mxu1 %v3196_v39  ;;  %3059 = vmatprep.subr.bf16.mxu0 %v3197_v40 }
  0xa3   : > { %3077 = vmatprep.subr.bf16.mxu1 %v3197_v40 }
  0xa5   : > { %3060 = vmatpush3.bf16.msra.mxu0 %v3197_v40 }
  0xa6   : > { %3085 = vmatpush3.bf16.msra.mxu1 %v3197_v40  ;;  %3061 = vmatprep.subr.bf16.mxu0 %v3198_v41 }
  0xa7   : > { %3078 = vmatprep.subr.bf16.mxu1 %v3198_v41 }
  0xa9   : > { %3062 = vmatpush3.bf16.msra.mxu0 %v3198_v41 }
  0xaa   : > { %3086 = vmatpush3.bf16.msra.mxu1 %v3198_v41 }
  0xac   : > { %3064 = vmatmul.mubr.bf16.vlgmr.msra.gmra.mxu0 %v3201_v42 }
  0xad   : > { %3068 = vmatmul.mubr.bf16.vlgmr.msra.gmra.mxu1 %v3202_v43 }
  0xec   : > { %v2873_v44 = vpop.f32.mrf.mxu0 }
  0xed   : > { %v2897_v46 = vpop.f32.mrf.mxu1 }
  0xee   : > { %v798_v45 = vpop.f32.mrf.mxu0  ;;  %v944_v33 = vadd.f32 %v2897_v46, %v2873_v44 }
  0xef   : > { %v935_v48 = vpop.f32.mrf.mxu1 }
  0xf0   : > { %v2874_v47 = vpop.f32.mrf.mxu0  ;;  %v936_v37 = vadd.f32 %v935_v48, %v798_v45 }
  0xf1   : > { %v2898_v51 = vpop.f32.mrf.mxu1 }
  0xf2   : > { %v801_v49 = vpop.f32.mrf.mxu0  ;;  %v947_v41 = vadd.f32 %v2898_v51, %v2874_v47 }
  0xf3   : > { %v938_v53 = vpop.f32.mrf.mxu1 }
  0xf4   : > { %v2877_v50 = vpop.f32.mrf.mxu0 }
  0xf5   : > { %v2901_v54 = vpop.f32.mrf.mxu1 }
  0xf6   : > { %v814_v52 = vpop.f32.mrf.mxu0  ;;  %v960_v35 = vadd.f32 %v2901_v54, %v2877_v50 }
  0xf7   : > { %v951_v56 = vpop.f32.mrf.mxu1 }
  0xf8   : > { %v2878_v55 = vpop.f32.mrf.mxu0  ;;  %v952_v39 = vadd.f32 %v951_v56, %v814_v52 }
  0xf9   : > { %v2902_v59 = vpop.f32.mrf.mxu1 }
  0xfa   : > { %v817_v57 = vpop.f32.mrf.mxu0 }
  0xfb   : > { %v954_v61 = vpop.f32.mrf.mxu1 }
  0xfc   : > { %v955_v50 = vadd.f32 %v954_v61, %v817_v57 }
 0x10c   : > { %v2921_v58 = vpop.f32.mrf.mxu0 }
 0x10d   : > { %v2945_v62 = vpop.f32.mrf.mxu1  ;;  %v1130_v38 = vadd.f32 %v2921_v58, %v944_v33 }
 0x10e   : > { %v1097_v60 = vpop.f32.mrf.mxu0 }
 0x10f   : > { %v1267_v0 = vpop.f32.mrf.mxu1  ;;  %v1128_v42 = vadd.f32 %v1097_v60, %v936_v37  ;;  %v1300_v44 = vadd.f32 %v2945_v62, %v1130_v38  ;;  %v2742_v38 = vld [vmem:[%s634_s24 + $0x10] sm:$0xff]  }
 0x110   : > { %v2922_v63 = vpop.f32.mrf.mxu0 }
 0x111   : > { %v2946_v2 = vpop.f32.mrf.mxu1  ;;  %v1131_v46 = vadd.f32 %v2922_v63, %v947_v41  ;;  %v1298_v45 = vadd.f32 %v1267_v0, %v1128_v42 }
 0x112   : > { %v1100_v1 = vpop.f32.mrf.mxu0 }
 0x113   : > { %v1270_v4 = vpop.f32.mrf.mxu1  ;;  %v1301_v51 = vadd.f32 %v2946_v2, %v1131_v46 }
 0x114   : > { %v2925_v3 = vpop.f32.mrf.mxu0 }
 0x115   : > { %v2949_v6 = vpop.f32.mrf.mxu1  ;;  %v1134_v40 = vadd.f32 %v2925_v3, %v960_v35 }
 0x116   : > { %v1113_v5 = vpop.f32.mrf.mxu0 }
 0x117   : > { %v1283_v8 = vpop.f32.mrf.mxu1  ;;  %v1304_v54 = vadd.f32 %v2949_v6, %v1134_v40 }
 0x118   : > { %v2926_v7 = vpop.f32.mrf.mxu0 }
 0x119   : > { %v2950_v10 = vpop.f32.mrf.mxu1 }
 0x11a   : > { %v1116_v9 = vpop.f32.mrf.mxu0 }
 0x11b   : > { %v1286_v12 = vpop.f32.mrf.mxu1  ;;  %v1133_v52 = vadd.f32 %v1116_v9, %v955_v50 }
 0x11d   : > { %v1303_v63 = vadd.f32 %v1286_v12, %v1133_v52 }
 0x12c   : > { %v2969_v11 = vpop.f32.mrf.mxu0 }
 0x12d   : > { %v2993_v14 = vpop.f32.mrf.mxu1  ;;  %v1470_v33 = vadd.f32 %v2969_v11, %v1300_v44 }
 0x12e   : > { %v1437_v13 = vpop.f32.mrf.mxu0 }
 0x12f   : > { %v1607_v16 = vpop.f32.mrf.mxu1  ;;  %v1468_v60 = vadd.f32 %v1437_v13, %v1298_v45 }
 0x130   : > { %v2970_v15 = vpop.f32.mrf.mxu0 }
 0x131   : > { %v3597_v18 = vpop.f32.mrf.mxu1  ;;  %v1471_v62 = vadd.f32 %v2970_v15, %v1301_v51  ;;  %v1638_v0 = vadd.f32 %v1607_v16, %v1468_v60  ;;  %v3616_v15 = vld [vmem:[%s634_s24 + $0x8] sm:$0xff]  }
 0x132   : > { %v1440_v17 = vpop.f32.mrf.mxu0  ;;  %3653 = vst [vmem:[#allocation2_spill] sm:$0xff] %v3597_v18 }
 0x133   : > { %v3599_v20 = vpop.f32.mrf.mxu1 }
 0x134   : > { %v2973_v19 = vpop.f32.mrf.mxu0  ;;  %3654 = vst [vmem:[#allocation3_spill] sm:$0xff] %v3599_v20  ;;  %v1132_v20 = vadd.f32 %v1113_v5, %v952_v39 }
 0x135   : > { %v2997_v21 = vpop.f32.mrf.mxu1  ;;  %v1474_v56 = vadd.f32 %v2973_v19, %v1304_v54 }
 0x136   : > { %v1453_v22 = vpop.f32.mrf.mxu0  ;;  %v1302_v58 = vadd.f32 %v1283_v8, %v1132_v20 }
 0x137   : > { %v1623_v23 = vpop.f32.mrf.mxu1  ;;  %v1644_v57 = vadd.f32 %v2997_v21, %v1474_v56 }
 0x138   : > { %v2974_v24 = vpop.f32.mrf.mxu0  ;;  %v1472_v3 = vadd.f32 %v1453_v22, %v1302_v58  ;;  %v2743_v22 = vld [vmem:[%s634_s24 + $0x18] sm:$0xff]  }
 0x139   : > { %v2998_v25 = vpop.f32.mrf.mxu1  ;;  %v2719_v42 = vunpack.c.l.bf16 %v2743_v22 }
 0x13a   : > { %v1456_v26 = vpop.f32.mrf.mxu0  ;;  %v1642_v2 = vadd.f32 %v1623_v23, %v1472_v3 }
 0x13b   : > { %v3601_v28 = vpop.f32.mrf.mxu1  ;;  %v1473_v8 = vadd.f32 %v1456_v26, %v1303_v63  ;;  %v3660_v19 = vld [vmem:[#allocation3_spill] sm:$0xff] }
 0x13c   : > { %3655 = vst [vmem:[#allocation4_spill] sm:$0xff] %v3601_v28  ;;  %v963_v28 = vadd.f32 %v2902_v59, %v2878_v55 }
 0x14c   : > { %v3017_v27 = vpop.f32.mrf.mxu0 }
 0x14d   : > { %v3041_v29 = vpop.f32.mrf.mxu1 }
 0x14e   : > { %v1777_v30 = vpop.f32.mrf.mxu0 }
 0x14f   : > { %v3603_v31 = vpop.f32.mrf.mxu1 }
 0x150   : > { %3656 = vst [vmem:[#allocation5_spill] sm:$0xff] %v3603_v31  ;;  %v3018_v32 = vpop.f32.mrf.mxu0  ;;  %v939_v31 = vadd.f32 %v938_v53, %v801_v49  ;;  %v1640_v53 = vadd.f32 %v2993_v14, %v1470_v33 }
 0x151   : > { %v3605_v34 = vpop.f32.mrf.mxu1 }
 0x152   : > { %3657 = vst [vmem:[#allocation6_spill] sm:$0xff] %v3605_v34  ;;  %v3607_v36 = vpop.f32.mrf.mxu0  ;;  %v1129_v48 = vadd.f32 %v1100_v1, %v939_v31  ;;  %v1810_v6 = vadd.f32 %v3017_v27, %v1640_v53 }
 0x153   : > { %3658 = vst [vmem:[#allocation7_spill] sm:$0xff] %v3607_v36  ;;  %v3609_v43 = vpop.f32.mrf.mxu1  ;;  %v1135_v36 = vadd.f32 %v2926_v7, %v963_v28 }
 0x154   : > { %v3021_v18 = vpop.f32.mrf.mxu0  ;;  %v1299_v49 = vadd.f32 %v1270_v4, %v1129_v48  ;;  %v1808_v4 = vadd.f32 %v1777_v30, %v1638_v0 }
 0x155   : > { %v3045_v34 = vpop.f32.mrf.mxu1  ;;  %v1305_v59 = vadd.f32 %v2950_v10, %v1135_v36  ;;  %v1814_v9 = vadd.f32 %v3021_v18, %v1644_v57  ;;  %v3659_v10 = vld [vmem:[#allocation2_spill] sm:$0xff] }
 0x156   : > { %v1793_v47 = vpop.f32.mrf.mxu0  ;;  %v1469_v1 = vadd.f32 %v1440_v17, %v1299_v49  ;;  %v1641_v11 = vadd.f32 %v3659_v10, %v1471_v62  ;;  %v1980_v17 = vadd.f32 %v3041_v29, %v1810_v6  ;;  %v2685_v18 = vld [vmem:[%s3649_s10] ss:$0 sm:$0xff]  ;;  %v2711_v29 = vunpack.c.l.bf16 %v3616_v15 }
 0x157   : > { %v1963_v55 = vpop.f32.mrf.mxu1  ;;  %v1475_v61 = vadd.f32 %v2974_v24, %v1305_v59  ;;  %v1812_v14 = vadd.f32 %v1793_v47, %v1642_v2  ;;  %v3661_v24 = vld [vmem:[#allocation4_spill] sm:$0xff]  ;;  %v1984_v28 = vadd.f32 %v3045_v34, %v1814_v9  ;;  %v3662_v30 = vld [vmem:[#allocation5_spill] sm:$0xff]  ;;  %v2686_v34 = vld [vmem:[%s3650_s11] ss:$0 sm:$0xff]  ;;  %v2715_v47 = vunpack.c.l.bf16 %v2742_v38 }
 0x158   : > { %v3022_v5 = vpop.f32.mrf.mxu0  ;;  %v1639_v16 = vadd.f32 %v3660_v19, %v1469_v1  ;;  %v1811_v20 = vadd.f32 %v3018_v32, %v1641_v11  ;;  %v1643_v27 = vadd.f32 %v3661_v24, %v1473_v8  ;;  %v1978_v31 = vadd.f32 %v3662_v30, %v1808_v4 }
 0x159   : > { %v3046_v7 = vpop.f32.mrf.mxu1  ;;  %v1645_v13 = vadd.f32 %v2998_v25, %v1475_v61  ;;  %v2706_v25 = vld [vmem:[%s634_s24] sm:$0xff]   ;;  %v1982_v39 = vadd.f32 %v1963_v55, %v1812_v14  ;;  %v2712_v1 = vunpack.c.h.bf16 %v3616_v15  ;;  %v2720_v9 = vunpack.c.h.bf16 %v2743_v22 }
 0x15a   : > { %v1796_v12 = vpop.f32.mrf.mxu0  ;;  %v3663_v35 = vld [vmem:[#allocation7_spill] sm:$0xff]  ;;  %v3664_v46 = vld [vmem:[#allocation6_spill] sm:$0xff]  ;;  %v2707_v48 = vunpack.c.l.bf16 %v2706_v25 }
 0x15b   : > { %v1966_v21 = vpop.f32.mrf.mxu1  ;;  %v1815_v23 = vadd.f32 %v3022_v5, %v1645_v13  ;;  %v1809_v36 = vadd.f32 %v3663_v35, %v1639_v16  ;;  %v1813_v40 = vadd.f32 %v1796_v12, %v1643_v27  ;;  %v1981_v50 = vadd.f32 %v3664_v46, %v1811_v20 }
 0x15c   : > { %v2708_v13 = vunpack.c.h.bf16 %v2706_v25  ;;  %v2716_v16 = vunpack.c.h.bf16 %v2742_v38 }
 0x15d   : > { %v1985_v58 = vadd.f32 %v3046_v7, %v1815_v23  ;;  %v1979_v60 = vadd.f32 %v3609_v43, %v1809_v36  ;;  %v1983_v53 = vadd.f32 %v1966_v21, %v1813_v40 }
 0x16c   : > { %v3065_v26 = vpop.f32.mrf.mxu0 }
 0x16d   : > { %v2150_v37 = vadd.f32 %v3065_v26, %v1980_v17  ;;  %v3069_v32 = vpop.f32.mrf.mxu1 }
 0x16e   : > { %v2154_v41 = vadd.f32 %v3069_v32, %v1984_v28  ;;  %v2117_v44 = vpop.f32.mrf.mxu0 }
 0x16f   : > { %v2165_v54 = vmul.f32 %v2685_v18, %v2150_v37  ;;  %v2148_v45 = vadd.f32 %v2117_v44, %v1978_v31  ;;  %v2133_v33 = vpop.f32.mrf.mxu1 }
 0x170   : > { %v2169_v52 = vmul.f32 %v2685_v18, %v2154_v41  ;;  %v2152_v56 = vadd.f32 %v2133_v33, %v1982_v39  ;;  %v3066_v51 = vpop.f32.mrf.mxu0 }
 0x171   : > { %v2180_v55 = vadd.f32 %v2686_v34, %v2165_v54  ;;  %v2163_v59 = vmul.f32 %v2685_v18, %v2148_v45  ;;  %v2151_v3 = vadd.f32 %v3066_v51, %v1981_v50  ;;  %v3070_v49 = vpop.f32.mrf.mxu1 }
 0x172   : > { %v2184_v62 = vadd.f32 %v2686_v34, %v2169_v52  ;;  %v2167_v63 = vmul.f32 %v2685_v18, %v2152_v56  ;;  %v2155_v57 = vadd.f32 %v3070_v49, %v1985_v58  ;;  %v2120_v61 = vpop.f32.mrf.mxu0 }
 0x173   : > { %v2178_v5 = vadd.f32 %v2686_v34, %v2163_v59  ;;  %v2166_v0 = vmul.f32 %v2685_v18, %v2151_v3  ;;  %v2149_v6 = vadd.f32 %v2120_v61, %v1979_v60  ;;  %v2136_v7 = vpop.f32.mrf.mxu1  ;;  %v2204_v43 = vadd.f32 %v2711_v29, %v2180_v55 }
 0x174   : > { %v2182_v2 = vadd.f32 %v2686_v34, %v2167_v63  ;;  %v2170_v8 = vmul.f32 %v2685_v18, %v2155_v57  ;;  %v2153_v10 = vadd.f32 %v2136_v7, %v1983_v53  ;;  %v2208_v14 = vadd.f32 %v2719_v42, %v2184_v62 }
 0x175   : > { %v2181_v11 = vadd.f32 %v2686_v34, %v2166_v0  ;;  %v2164_v4 = vmul.f32 %v2685_v18, %v2149_v6  ;;  %v2202_v17 = vadd.f32 %v2707_v48, %v2178_v5  ;;  %v2212_v28 = vmax.f32 %v2204_v43, 0.0 }
 0x176   : > { %v2185_v12 = vadd.f32 %v2686_v34, %v2170_v8  ;;  %v2168_v19 = vmul.f32 %v2685_v18, %v2153_v10  ;;  %v2206_v24 = vadd.f32 %v2715_v47, %v2182_v2  ;;  %v2216_v22 = vmax.f32 %v2208_v14, 0.0 }
 0x177   : > { %v2205_v20 = vadd.f32 %v2712_v1, %v2181_v11  ;;  %v2179_v21 = vadd.f32 %v2686_v34, %v2164_v4  ;;  %v2210_v31 = vmax.f32 %v2202_v17, 0.0 }
 0x178   : > { %v2209_v15 = vadd.f32 %v2720_v9, %v2185_v12  ;;  %v2183_v27 = vadd.f32 %v2686_v34, %v2168_v19  ;;  %v2214_v36 = vmax.f32 %v2206_v24, 0.0 }
 0x179   : > { %v2213_v23 = vmax.f32 %v2205_v20, 0.0  ;;  %v2203_v26 = vadd.f32 %v2708_v13, %v2179_v21 }
 0x17a   : > { %v2217_v30 = vmax.f32 %v2209_v15, 0.0  ;;  %v2207_v25 = vadd.f32 %v2716_v16, %v2183_v27 }
 0x17b   : > { %v2729_v35 = vpack.c.bf16 %v2213_v23, %v2212_v28  ;;  %v2211_v18 = vmax.f32 %v2203_v26, 0.0 }
 0x17c   : > { %v2739_v37 = vpack.c.bf16 %v2217_v30, %v2216_v22  ;;  %v2215_v29 = vmax.f32 %v2207_v25, 0.0 }
 0x17d   : > { %2744 = vst [vmem:[%s640_s15 + $0x8] sm:$0xff] %v2729_v35   ;;  %v2724_v32 = vpack.c.bf16 %v2211_v18, %v2210_v31 }
 0x17e   : > { %2746 = vst [vmem:[%s640_s15 + $0x18] sm:$0xff] %v2739_v37   ;;  %v2734_v38 = vpack.c.bf16 %v2215_v29, %v2214_v36 }
 0x17f   : > { %2725 = vst [vmem:[%s640_s15] sm:$0xff] %v2724_v32  }
 0x180   : > { %2745 = vst [vmem:[%s640_s15 + $0x10] sm:$0xff] %v2734_v38  }
 0x181 PF: > { %s23_s25 = sadd.s32 1, %s3209_s25  }
 0x182   : > { %p20_p4 = scmp.ge.s32.totalorder %s23_s25, 4  }
 0x184   :  { %22 = sbr.rel (!%p20_p4) target bundleno = 1 (0x1), region = 137 }

// kernel: colorization_net_forward.19
= control target key start
LH: loop header
LB: loop body
LE: loop exit
PB: predicated region body
PF: predicated region fallthrough
CT: control target
= control target key end

     0   :  { %s2235_s9 = inlined_call_operand.vmem [shape: bf16[9,128,128], index: 9, kind: input, shape index: {}]   ;;  %s2236_s1 = inlined_call_operand.vmem [shape: bf16[32,128], index: 1, kind: input, shape index: {}]   ;;  %s2237_s0 = inlined_call_operand.vmem [shape: bf16[32,128], index: 0, kind: input, shape index: {}]   ;;  %s2238_s2 = inlined_call_operand.vmem [shape: bf16[32,128], index: 2, kind: input, shape index: {}]   ;;  %s2239_s3 = inlined_call_operand.vmem [shape: bf16[32,128], index: 3, kind: input, shape index: {}]   ;;  %s2240_s4 = inlined_call_operand.vmem [shape: bf16[32,128], index: 4, kind: input, shape index: {}]   ;;  %s2241_s5 = inlined_call_operand.vmem [shape: bf16[32,128], index: 5, kind: input, shape index: {}]   ;;  %s2242_s6 = inlined_call_operand.vmem [shape: bf16[32,128], index: 6, kind: input, shape index: {}]   ;;  %s2243_s7 = inlined_call_operand.vmem [shape: bf16[32,128], index: 7, kind: input, shape index: {}]   ;;  %s2244_s8 = inlined_call_operand.vmem [shape: bf16[32,128], index: 8, kind: input, shape index: {}]   ;;  %s2245_s10 = inlined_call_operand.vmem [shape: f32[1,128], index: 10, kind: input, shape index: {}]   ;;  %s2246_s11 = inlined_call_operand.vmem [shape: f32[1,128], index: 11, kind: input, shape index: {}]   ;;  %s2247_s12 = inlined_call_operand.vmem [shape: bf16[32,128], index: 12, kind: output, shape index: {}]  }
   0x1   :  { %v1798_v0 = vld [vmem:[%s2235_s9 + $0x78] sm:$0xff]   ;;  %v1800_v2 = vld [vmem:[%s2235_s9 + $0x70] sm:$0xff]   ;;  %v1802_v4 = vld [vmem:[%s2235_s9 + $0x68] sm:$0xff]  }
   0x2   :  { %v1799_v1 = vld [vmem:[%s2235_s9 + $0x38] sm:$0xff]   ;;  %1618 = vmatprep.subr.bf16.mxu0 %v1798_v0  ;;  %v1801_v3 = vld [vmem:[%s2235_s9 + $0x30] sm:$0xff]   ;;  %v1803_v5 = vld [vmem:[%s2235_s9 + $0x28] sm:$0xff]  }
   0x3   :  { %1638 = vmatprep.subr.bf16.mxu1 %v1799_v1  ;;  %1619 = vmatpush3.bf16.msra.mxu0 %v1798_v0  ;;  %v1804_v6 = vld [vmem:[%s2235_s9 + $0x60] sm:$0xff]   ;;  %v1806_v8 = vld [vmem:[%s2235_s9 + $0x58] sm:$0xff]   ;;  %v1808_v10 = vld [vmem:[%s2235_s9 + $0x50] sm:$0xff]  }
   0x4   :  { %1639 = vmatpush3.bf16.msra.mxu1 %v1799_v1  ;;  %1620 = vmatprep.subr.bf16.mxu0 %v1800_v2  ;;  %v1805_v7 = vld [vmem:[%s2235_s9 + $0x20] sm:$0xff]   ;;  %v1807_v9 = vld [vmem:[%s2235_s9 + $0x18] sm:$0xff]   ;;  %v1809_v11 = vld [vmem:[%s2235_s9 + $0x10] sm:$0xff]  }
   0x5   :  { %1640 = vmatprep.subr.bf16.mxu1 %v1801_v3  ;;  %v1814_v12 = vld [vmem:[%s2236_s1] sm:$0xff]   ;;  %v1810_v14 = vld [vmem:[%s2235_s9 + $0x48] sm:$0xff]   ;;  %v1818_v18 = vld [vmem:[%s2235_s9 + $0xb8] sm:$0xff]  }
   0x6   :  { %v1815_v13 = vld [vmem:[%s2237_s0] sm:$0xff]   ;;  %1634 = vmatprep.mubr.bf16.mxu0 %v1814_v12  ;;  %v1811_v15 = vld [vmem:[%s2235_s9 + $0x8] sm:$0xff]   ;;  %v1819_v19 = vld [vmem:[%s2235_s9 + $0xf8] sm:$0xff]  }
   0x7   :  { %1621 = vmatpush3.bf16.msra.mxu0 %v1800_v2  ;;  %1654 = vmatprep.mubr.bf16.mxu1 %v1815_v13  ;;  %v1812_v16 = vld [vmem:[%s2235_s9 + $0x40] sm:$0xff]   ;;  %v1816_v20 = vld [vmem:[%s2236_s1 + $0x8] sm:$0xff]   ;;  %v1820_v22 = vld [vmem:[%s2235_s9 + $0xb0] sm:$0xff]  }
   0x8   :  { %1641 = vmatpush3.bf16.msra.mxu1 %v1801_v3  ;;  %1622 = vmatprep.subr.bf16.mxu0 %v1802_v4  ;;  %v1813_v17 = vld [vmem:[%s2235_s9] sm:$0xff]   ;;  %v1817_v21 = vld [vmem:[%s2237_s0 + $0x8] sm:$0xff]   ;;  %v1821_v23 = vld [vmem:[%s2235_s9 + $0xf0] sm:$0xff]  }
   0x9   :  { %1642 = vmatprep.subr.bf16.mxu1 %v1803_v5  ;;  %v1822_v24 = vld [vmem:[%s2235_s9 + $0xa8] sm:$0xff]   ;;  %v1834_v25 = vld [vmem:[%s2238_s2] sm:$0xff]   ;;  %v1826_v30 = vld [vmem:[%s2235_s9 + $0x98] sm:$0xff]  }
   0xa   :  { %v1823_v26 = vld [vmem:[%s2235_s9 + $0xe8] sm:$0xff]   ;;  %v1837_v27 = vld [vmem:[%s2239_s3] sm:$0xff]   ;;  %v1827_v31 = vld [vmem:[%s2235_s9 + $0xd8] sm:$0xff]  }
   0xb   :  { %1623 = vmatpush3.bf16.msra.mxu0 %v1802_v4  ;;  %v1824_v28 = vld [vmem:[%s2235_s9 + $0xa0] sm:$0xff]   ;;  %v1828_v32 = vld [vmem:[%s2235_s9 + $0x90] sm:$0xff]   ;;  %v1830_v34 = vld [vmem:[%s2235_s9 + $0x88] sm:$0xff]  }
   0xc   :  { %1643 = vmatpush3.bf16.msra.mxu1 %v1803_v5  ;;  %1624 = vmatprep.subr.bf16.mxu0 %v1804_v6  ;;  %v1825_v29 = vld [vmem:[%s2235_s9 + $0xe0] sm:$0xff]   ;;  %v1829_v33 = vld [vmem:[%s2235_s9 + $0xd0] sm:$0xff]   ;;  %v1831_v35 = vld [vmem:[%s2235_s9 + $0xc8] sm:$0xff]  }
   0xd   :  { %1644 = vmatprep.subr.bf16.mxu1 %v1805_v7  ;;  %v1832_v36 = vld [vmem:[%s2235_s9 + $0x80] sm:$0xff]   ;;  %v1835_v38 = vld [vmem:[%s2238_s2 + $0x8] sm:$0xff]   ;;  %v1836_v39 = vld [vmem:[%s2235_s9 + $0x138] sm:$0xff]  }
   0xe   :  { %v1833_v37 = vld [vmem:[%s2235_s9 + $0xc0] sm:$0xff]   ;;  %v1839_v40 = vld [vmem:[%s2235_s9 + $0x178] sm:$0xff]   ;;  %v1838_v41 = vld [vmem:[%s2239_s3 + $0x8] sm:$0xff]  }
   0xf   :  { %1625 = vmatpush3.bf16.msra.mxu0 %v1804_v6  ;;  %v1840_v42 = vld [vmem:[%s2235_s9 + $0x130] sm:$0xff]   ;;  %v1854_v44 = vld [vmem:[%s2240_s4] sm:$0xff]   ;;  %v1842_v46 = vld [vmem:[%s2235_s9 + $0x128] sm:$0xff]  }
  0x10   :  { %1645 = vmatpush3.bf16.msra.mxu1 %v1805_v7  ;;  %1626 = vmatprep.subr.bf16.mxu0 %v1806_v8  ;;  %v1841_v43 = vld [vmem:[%s2235_s9 + $0x170] sm:$0xff]   ;;  %v1857_v45 = vld [vmem:[%s2241_s5] sm:$0xff]   ;;  %v1843_v47 = vld [vmem:[%s2235_s9 + $0x168] sm:$0xff]  }
  0x11   :  { %1646 = vmatprep.subr.bf16.mxu1 %v1807_v9  ;;  %v1844_v48 = vld [vmem:[%s2235_s9 + $0x120] sm:$0xff]   ;;  %v1846_v50 = vld [vmem:[%s2235_s9 + $0x118] sm:$0xff]   ;;  %v1848_v52 = vld [vmem:[%s2235_s9 + $0x110] sm:$0xff]  }
  0x12   :  { %v1845_v49 = vld [vmem:[%s2235_s9 + $0x160] sm:$0xff]   ;;  %v1847_v51 = vld [vmem:[%s2235_s9 + $0x158] sm:$0xff]   ;;  %v1849_v53 = vld [vmem:[%s2235_s9 + $0x150] sm:$0xff]  }
  0x13   :  { %1627 = vmatpush3.bf16.msra.mxu0 %v1806_v8  ;;  %v1850_v54 = vld [vmem:[%s2235_s9 + $0x108] sm:$0xff]   ;;  %v1852_v56 = vld [vmem:[%s2235_s9 + $0x100] sm:$0xff]   ;;  %v1856_v58 = vld [vmem:[%s2235_s9 + $0x1b8] sm:$0xff]  }
  0x14   :  { %1647 = vmatpush3.bf16.msra.mxu1 %v1807_v9  ;;  %1628 = vmatprep.subr.bf16.mxu0 %v1808_v10  ;;  %v1851_v55 = vld [vmem:[%s2235_s9 + $0x148] sm:$0xff]   ;;  %v1853_v57 = vld [vmem:[%s2235_s9 + $0x140] sm:$0xff]   ;;  %v1859_v59 = vld [vmem:[%s2235_s9 + $0x1f8] sm:$0xff]  }
  0x15   :  { %1648 = vmatprep.subr.bf16.mxu1 %v1809_v11  ;;  %v1855_v60 = vld [vmem:[%s2240_s4 + $0x8] sm:$0xff]   ;;  %v1860_v62 = vld [vmem:[%s2235_s9 + $0x1b0] sm:$0xff]   ;;  %v1874_v0 = vld [vmem:[%s2242_s6] sm:$0xff]  }
  0x16   :  { %v1858_v61 = vld [vmem:[%s2241_s5 + $0x8] sm:$0xff]   ;;  %v1861_v63 = vld [vmem:[%s2235_s9 + $0x1f0] sm:$0xff]   ;;  %v1877_v1 = vld [vmem:[%s2243_s7] sm:$0xff]  }
  0x17   :  { %1629 = vmatpush3.bf16.msra.mxu0 %v1808_v10  ;;  %v1862_v2 = vld [vmem:[%s2235_s9 + $0x1a8] sm:$0xff]   ;;  %v1864_v4 = vld [vmem:[%s2235_s9 + $0x1a0] sm:$0xff]   ;;  %v1866_v6 = vld [vmem:[%s2235_s9 + $0x198] sm:$0xff]  }
  0x18   :  { %1649 = vmatpush3.bf16.msra.mxu1 %v1809_v11  ;;  %1630 = vmatprep.subr.bf16.mxu0 %v1810_v14  ;;  %v1863_v3 = vld [vmem:[%s2235_s9 + $0x1e8] sm:$0xff]   ;;  %v1865_v5 = vld [vmem:[%s2235_s9 + $0x1e0] sm:$0xff]   ;;  %v1867_v7 = vld [vmem:[%s2235_s9 + $0x1d8] sm:$0xff]  }
  0x19   :  { %1650 = vmatprep.subr.bf16.mxu1 %v1811_v15  ;;  %v1868_v8 = vld [vmem:[%s2235_s9 + $0x190] sm:$0xff]   ;;  %v1870_v10 = vld [vmem:[%s2235_s9 + $0x188] sm:$0xff]   ;;  %v1872_v12 = vld [vmem:[%s2235_s9 + $0x180] sm:$0xff]  }
  0x1a   :  { %v1869_v9 = vld [vmem:[%s2235_s9 + $0x1d0] sm:$0xff]   ;;  %v1871_v11 = vld [vmem:[%s2235_s9 + $0x1c8] sm:$0xff]   ;;  %v1873_v13 = vld [vmem:[%s2235_s9 + $0x1c0] sm:$0xff]  }
  0x1b   :  { %1631 = vmatpush3.bf16.msra.mxu0 %v1810_v14  ;;  %v1876_v14 = vld [vmem:[%s2235_s9 + $0x238] sm:$0xff]  }
  0x1c   :  { %1651 = vmatpush3.bf16.msra.mxu1 %v1811_v15  ;;  %1632 = vmatprep.subr.bf16.mxu0 %v1812_v16  ;;  %v1875_v15 = vld [vmem:[%s2242_s6 + $0x8] sm:$0xff]  }
  0x1d   :  { %1652 = vmatprep.subr.bf16.mxu1 %v1813_v17 }
  0x1f   :  { %1633 = vmatpush3.bf16.msra.mxu0 %v1812_v16  ;;  %v1878_v16 = vld [vmem:[%s2243_s7 + $0x8] sm:$0xff]  }
  0x20   :  { %1653 = vmatpush3.bf16.msra.mxu1 %v1813_v17  ;;  %1658 = vmatprep.subr.bf16.mxu0 %v1818_v18  ;;  %v1879_v17 = vld [vmem:[%s2235_s9 + $0x230] sm:$0xff]  }
  0x21   :  { %1678 = vmatprep.subr.bf16.mxu1 %v1819_v19 }
  0x22   :  { %1635 = vmatmul.mubr.bf16.vlgmr.msra.gmra.mxu0 %v1816_v20  ;;  %v1881_v20 = vld [vmem:[%s2235_s9 + $0x220] sm:$0xff]  }
  0x23   :  { %1655 = vmatmul.mubr.bf16.vlgmr.msra.gmra.mxu1 %v1817_v21  ;;  %1659 = vmatpush3.bf16.msra.mxu0 %v1818_v18  ;;  %v1886_v18 = vld [vmem:[%s2244_s8] sm:$0xff]   ;;  %v1882_v21 = vld [vmem:[%s2235_s9 + $0x218] sm:$0xff]  }
  0x24   :  { %1679 = vmatpush3.bf16.msra.mxu1 %v1819_v19  ;;  %1660 = vmatprep.subr.bf16.mxu0 %v1820_v22  ;;  %v1880_v19 = vld [vmem:[%s2235_s9 + $0x228] sm:$0xff]  }
  0x25   :  { %1680 = vmatprep.subr.bf16.mxu1 %v1821_v23  ;;  %1674 = vmatprep.mubr.bf16.mxu0 %v1834_v25  ;;  %v1887_v25 = vld [vmem:[%s2244_s8 + $0x8] sm:$0xff]  }
  0x26   :  { %1694 = vmatprep.mubr.bf16.mxu1 %v1837_v27 }
  0x27   :  { %1661 = vmatpush3.bf16.msra.mxu0 %v1820_v22  ;;  %v1883_v22 = vld [vmem:[%s2235_s9 + $0x210] sm:$0xff]  }
  0x28   :  { %1681 = vmatpush3.bf16.msra.mxu1 %v1821_v23  ;;  %1662 = vmatprep.subr.bf16.mxu0 %v1822_v24  ;;  %v1884_v23 = vld [vmem:[%s2235_s9 + $0x208] sm:$0xff]  }
  0x29   :  { %1682 = vmatprep.subr.bf16.mxu1 %v1823_v26 }
  0x2b   :  { %1663 = vmatpush3.bf16.msra.mxu0 %v1822_v24  ;;  %v1885_v24 = vld [vmem:[%s2235_s9 + $0x200] sm:$0xff]  }
  0x2c   :  { %1683 = vmatpush3.bf16.msra.mxu1 %v1823_v26  ;;  %1664 = vmatprep.subr.bf16.mxu0 %v1824_v28 }
  0x2d   :  { %1684 = vmatprep.subr.bf16.mxu1 %v1825_v29 }
  0x2f   :  { %1665 = vmatpush3.bf16.msra.mxu0 %v1824_v28 }
  0x30   :  { %1685 = vmatpush3.bf16.msra.mxu1 %v1825_v29  ;;  %1666 = vmatprep.subr.bf16.mxu0 %v1826_v30 }
  0x31   :  { %1686 = vmatprep.subr.bf16.mxu1 %v1827_v31 }
  0x33   :  { %1667 = vmatpush3.bf16.msra.mxu0 %v1826_v30 }
  0x34   :  { %1687 = vmatpush3.bf16.msra.mxu1 %v1827_v31  ;;  %1668 = vmatprep.subr.bf16.mxu0 %v1828_v32 }
  0x35   :  { %1688 = vmatprep.subr.bf16.mxu1 %v1829_v33 }
  0x37   :  { %1669 = vmatpush3.bf16.msra.mxu0 %v1828_v32 }
  0x38   :  { %1689 = vmatpush3.bf16.msra.mxu1 %v1829_v33  ;;  %1670 = vmatprep.subr.bf16.mxu0 %v1830_v34 }
  0x39   :  { %1690 = vmatprep.subr.bf16.mxu1 %v1831_v35 }
  0x3b   :  { %1671 = vmatpush3.bf16.msra.mxu0 %v1830_v34 }
  0x3c   :  { %1691 = vmatpush3.bf16.msra.mxu1 %v1831_v35  ;;  %1672 = vmatprep.subr.bf16.mxu0 %v1832_v36 }
  0x3d   :  { %1692 = vmatprep.subr.bf16.mxu1 %v1833_v37 }
  0x3f   :  { %1673 = vmatpush3.bf16.msra.mxu0 %v1832_v36 }
  0x40   :  { %1693 = vmatpush3.bf16.msra.mxu1 %v1833_v37  ;;  %1698 = vmatprep.subr.bf16.mxu0 %v1836_v39 }
  0x41   :  { %1718 = vmatprep.subr.bf16.mxu1 %v1839_v40 }
  0x42   :  { %1675 = vmatmul.mubr.bf16.vlgmr.msra.gmra.mxu0 %v1835_v38 }
  0x43   :  { %1699 = vmatpush3.bf16.msra.mxu0 %v1836_v39  ;;  %1695 = vmatmul.mubr.bf16.vlgmr.msra.gmra.mxu1 %v1838_v41 }
  0x44   :  { %1719 = vmatpush3.bf16.msra.mxu1 %v1839_v40  ;;  %1700 = vmatprep.subr.bf16.mxu0 %v1840_v42 }
  0x45   :  { %1720 = vmatprep.subr.bf16.mxu1 %v1841_v43  ;;  %1714 = vmatprep.mubr.bf16.mxu0 %v1854_v44 }
  0x46   :  { %1734 = vmatprep.mubr.bf16.mxu1 %v1857_v45 }
  0x47   :  { %1701 = vmatpush3.bf16.msra.mxu0 %v1840_v42 }
  0x48   :  { %1721 = vmatpush3.bf16.msra.mxu1 %v1841_v43  ;;  %1702 = vmatprep.subr.bf16.mxu0 %v1842_v46 }
  0x49   :  { %1722 = vmatprep.subr.bf16.mxu1 %v1843_v47 }
  0x4b   :  { %1703 = vmatpush3.bf16.msra.mxu0 %v1842_v46 }
  0x4c   :  { %1723 = vmatpush3.bf16.msra.mxu1 %v1843_v47  ;;  %1704 = vmatprep.subr.bf16.mxu0 %v1844_v48 }
  0x4d   :  { %1724 = vmatprep.subr.bf16.mxu1 %v1845_v49 }
  0x4f   :  { %1705 = vmatpush3.bf16.msra.mxu0 %v1844_v48 }
  0x50   :  { %1725 = vmatpush3.bf16.msra.mxu1 %v1845_v49  ;;  %1706 = vmatprep.subr.bf16.mxu0 %v1846_v50 }
  0x51   :  { %1726 = vmatprep.subr.bf16.mxu1 %v1847_v51 }
  0x53   :  { %1707 = vmatpush3.bf16.msra.mxu0 %v1846_v50 }
  0x54   :  { %1727 = vmatpush3.bf16.msra.mxu1 %v1847_v51  ;;  %1708 = vmatprep.subr.bf16.mxu0 %v1848_v52 }
  0x55   :  { %1728 = vmatprep.subr.bf16.mxu1 %v1849_v53 }
  0x57   :  { %1709 = vmatpush3.bf16.msra.mxu0 %v1848_v52 }
  0x58   :  { %1729 = vmatpush3.bf16.msra.mxu1 %v1849_v53  ;;  %1710 = vmatprep.subr.bf16.mxu0 %v1850_v54 }
  0x59   :  { %1730 = vmatprep.subr.bf16.mxu1 %v1851_v55 }
  0x5b   :  { %1711 = vmatpush3.bf16.msra.mxu0 %v1850_v54 }
  0x5c   :  { %1731 = vmatpush3.bf16.msra.mxu1 %v1851_v55  ;;  %1712 = vmatprep.subr.bf16.mxu0 %v1852_v56 }
  0x5d   :  { %1732 = vmatprep.subr.bf16.mxu1 %v1853_v57 }
  0x5f   :  { %1713 = vmatpush3.bf16.msra.mxu0 %v1852_v56 }
  0x60   :  { %1733 = vmatpush3.bf16.msra.mxu1 %v1853_v57  ;;  %1738 = vmatprep.subr.bf16.mxu0 %v1856_v58 }
  0x61   :  { %1758 = vmatprep.subr.bf16.mxu1 %v1859_v59 }
  0x62   :  { %1715 = vmatmul.mubr.bf16.vlgmr.msra.gmra.mxu0 %v1855_v60 }
  0x63   :  { %1739 = vmatpush3.bf16.msra.mxu0 %v1856_v58  ;;  %1735 = vmatmul.mubr.bf16.vlgmr.msra.gmra.mxu1 %v1858_v61 }
  0x64   :  { %1759 = vmatpush3.bf16.msra.mxu1 %v1859_v59  ;;  %1740 = vmatprep.subr.bf16.mxu0 %v1860_v62 }
  0x65   :  { %1760 = vmatprep.subr.bf16.mxu1 %v1861_v63  ;;  %1754 = vmatprep.mubr.bf16.mxu0 %v1874_v0 }
  0x66   :  { %1774 = vmatprep.mubr.bf16.mxu1 %v1877_v1 }
  0x67   :  { %1741 = vmatpush3.bf16.msra.mxu0 %v1860_v62 }
  0x68   :  { %1761 = vmatpush3.bf16.msra.mxu1 %v1861_v63  ;;  %1742 = vmatprep.subr.bf16.mxu0 %v1862_v2 }
  0x69   :  { %1762 = vmatprep.subr.bf16.mxu1 %v1863_v3 }
  0x6b   :  { %1743 = vmatpush3.bf16.msra.mxu0 %v1862_v2 }
  0x6c   :  { %1763 = vmatpush3.bf16.msra.mxu1 %v1863_v3  ;;  %1744 = vmatprep.subr.bf16.mxu0 %v1864_v4 }
  0x6d   :  { %1764 = vmatprep.subr.bf16.mxu1 %v1865_v5 }
  0x6f   :  { %1745 = vmatpush3.bf16.msra.mxu0 %v1864_v4 }
  0x70   :  { %1765 = vmatpush3.bf16.msra.mxu1 %v1865_v5  ;;  %1746 = vmatprep.subr.bf16.mxu0 %v1866_v6 }
  0x71   :  { %1766 = vmatprep.subr.bf16.mxu1 %v1867_v7 }
  0x73   :  { %1747 = vmatpush3.bf16.msra.mxu0 %v1866_v6 }
  0x74   :  { %1767 = vmatpush3.bf16.msra.mxu1 %v1867_v7  ;;  %1748 = vmatprep.subr.bf16.mxu0 %v1868_v8 }
  0x75   :  { %1768 = vmatprep.subr.bf16.mxu1 %v1869_v9 }
  0x77   :  { %1749 = vmatpush3.bf16.msra.mxu0 %v1868_v8 }
  0x78   :  { %1769 = vmatpush3.bf16.msra.mxu1 %v1869_v9  ;;  %1750 = vmatprep.subr.bf16.mxu0 %v1870_v10 }
  0x79   :  { %1770 = vmatprep.subr.bf16.mxu1 %v1871_v11 }
  0x7b   :  { %1751 = vmatpush3.bf16.msra.mxu0 %v1870_v10 }
  0x7c   :  { %1771 = vmatpush3.bf16.msra.mxu1 %v1871_v11  ;;  %1752 = vmatprep.subr.bf16.mxu0 %v1872_v12 }
  0x7d   :  { %1772 = vmatprep.subr.bf16.mxu1 %v1873_v13 }
  0x7f   :  { %1753 = vmatpush3.bf16.msra.mxu0 %v1872_v12 }
  0x80   :  { %1773 = vmatpush3.bf16.msra.mxu1 %v1873_v13  ;;  %1778 = vmatprep.subr.bf16.mxu0 %v1876_v14 }
  0x82   :  { %1755 = vmatmul.mubr.bf16.vlgmr.msra.gmra.mxu0 %v1875_v15 }
  0x83   :  { %1779 = vmatpush3.bf16.msra.mxu0 %v1876_v14  ;;  %1775 = vmatmul.mubr.bf16.vlgmr.msra.gmra.mxu1 %v1878_v16 }
  0x84   :  { %1780 = vmatprep.subr.bf16.mxu0 %v1879_v17  ;;  %1794 = vmatprep.mubr.bf16.mxu0 %v1886_v18  ;;  %v1507_v18 = vld [vmem:[%s2245_s10] ss:$0 sm:$0xff] }
  0x87   :  { %1781 = vmatpush3.bf16.msra.mxu0 %v1879_v17 }
  0x88   :  { %1782 = vmatprep.subr.bf16.mxu0 %v1880_v19 }
  0x8b   :  { %1783 = vmatpush3.bf16.msra.mxu0 %v1880_v19 }
  0x8c   :  { %1784 = vmatprep.subr.bf16.mxu0 %v1881_v20 }
  0x8f   :  { %1785 = vmatpush3.bf16.msra.mxu0 %v1881_v20 }
  0x90   :  { %1786 = vmatprep.subr.bf16.mxu0 %v1882_v21 }
  0x93   :  { %1787 = vmatpush3.bf16.msra.mxu0 %v1882_v21 }
  0x94   :  { %1788 = vmatprep.subr.bf16.mxu0 %v1883_v22 }
  0x97   :  { %1789 = vmatpush3.bf16.msra.mxu0 %v1883_v22 }
  0x98   :  { %1790 = vmatprep.subr.bf16.mxu0 %v1884_v23 }
  0x9b   :  { %1791 = vmatpush3.bf16.msra.mxu0 %v1884_v23 }
  0x9c   :  { %1792 = vmatprep.subr.bf16.mxu0 %v1885_v24 }
  0x9f   :  { %1793 = vmatpush3.bf16.msra.mxu0 %v1885_v24 }
  0xa2   :  { %1795 = vmatmul.mubr.bf16.vlgmr.msra.gmra.mxu0 %v1887_v25 }
  0xe2   :  { %v1636_v26 = vpop.f32.mrf.mxu0 }
  0xe3   :  { %v1656_v27 = vpop.f32.mrf.mxu1 }
  0xe4   :  { %v177_v28 = vpop.f32.mrf.mxu0  ;;  %v295_v47 = vadd.f32 %v1656_v27, %v1636_v26  ;;  %v1508_v27 = vld [vmem:[%s2246_s11] ss:$0 sm:$0xff] }
  0xe5   :  { %v286_v29 = vpop.f32.mrf.mxu1 }
  0xe6   :  { %v1637_v30 = vpop.f32.mrf.mxu0  ;;  %v287_v48 = vadd.f32 %v286_v29, %v177_v28 }
  0xe7   :  { %v1657_v31 = vpop.f32.mrf.mxu1 }
  0xe8   :  { %v180_v32 = vpop.f32.mrf.mxu0  ;;  %v298_v52 = vadd.f32 %v1657_v31, %v1637_v30 }
  0xe9   :  { %v289_v34 = vpop.f32.mrf.mxu1 }
  0xea   :  { %v290_v55 = vadd.f32 %v289_v34, %v180_v32 }
 0x102   :  { %v1676_v33 = vpop.f32.mrf.mxu0 }
 0x103   :  { %v1696_v36 = vpop.f32.mrf.mxu1  ;;  %v433_v49 = vadd.f32 %v1676_v33, %v295_v47 }
 0x104   :  { %v416_v35 = vpop.f32.mrf.mxu0 }
 0x105   :  { %v550_v38 = vpop.f32.mrf.mxu1  ;;  %v431_v53 = vadd.f32 %v416_v35, %v287_v48  ;;  %v567_v56 = vadd.f32 %v1696_v36, %v433_v49 }
 0x106   :  { %v1677_v37 = vpop.f32.mrf.mxu0 }
 0x107   :  { %v1697_v40 = vpop.f32.mrf.mxu1  ;;  %v434_v57 = vadd.f32 %v1677_v37, %v298_v52  ;;  %v565_v59 = vadd.f32 %v550_v38, %v431_v53 }
 0x108   :  { %v419_v39 = vpop.f32.mrf.mxu0 }
 0x109   :  { %v553_v42 = vpop.f32.mrf.mxu1  ;;  %v432_v60 = vadd.f32 %v419_v39, %v290_v55  ;;  %v568_v0 = vadd.f32 %v1697_v40, %v434_v57 }
 0x10b   :  { %v566_v2 = vadd.f32 %v553_v42, %v432_v60 }
 0x122   :  { %v1716_v41 = vpop.f32.mrf.mxu0 }
 0x123   :  { %v1736_v44 = vpop.f32.mrf.mxu1  ;;  %v701_v61 = vadd.f32 %v1716_v41, %v567_v56 }
 0x124   :  { %v684_v43 = vpop.f32.mrf.mxu0 }
 0x125   :  { %v818_v46 = vpop.f32.mrf.mxu1  ;;  %v699_v1 = vadd.f32 %v684_v43, %v565_v59  ;;  %v835_v3 = vadd.f32 %v1736_v44, %v701_v61 }
 0x126   :  { %v1717_v45 = vpop.f32.mrf.mxu0 }
 0x127   :  { %v1737_v51 = vpop.f32.mrf.mxu1  ;;  %v702_v4 = vadd.f32 %v1717_v45, %v568_v0  ;;  %v833_v7 = vadd.f32 %v818_v46, %v699_v1 }
 0x128   :  { %v687_v50 = vpop.f32.mrf.mxu0 }
 0x129   :  { %v821_v58 = vpop.f32.mrf.mxu1  ;;  %v700_v8 = vadd.f32 %v687_v50, %v566_v2  ;;  %v836_v10 = vadd.f32 %v1737_v51, %v702_v4 }
 0x12b   :  { %v834_v14 = vadd.f32 %v821_v58, %v700_v8 }
 0x142   :  { %v1756_v54 = vpop.f32.mrf.mxu0 }
 0x143   :  { %v1776_v63 = vpop.f32.mrf.mxu1  ;;  %v969_v9 = vadd.f32 %v1756_v54, %v835_v3 }
 0x144   :  { %v952_v62 = vpop.f32.mrf.mxu0 }
 0x145   :  { %v1086_v6 = vpop.f32.mrf.mxu1  ;;  %v967_v11 = vadd.f32 %v952_v62, %v833_v7  ;;  %v1103_v15 = vadd.f32 %v1776_v63, %v969_v9 }
 0x146   :  { %v1757_v5 = vpop.f32.mrf.mxu0 }
 0x147   :  { %v1777_v13 = vpop.f32.mrf.mxu1  ;;  %v970_v16 = vadd.f32 %v1757_v5, %v836_v10  ;;  %v1101_v19 = vadd.f32 %v1086_v6, %v967_v11 }
 0x148   :  { %v955_v12 = vpop.f32.mrf.mxu0 }
 0x149   :  { %v968_v20 = vadd.f32 %v955_v12, %v834_v14  ;;  %v1089_v22 = vpop.f32.mrf.mxu1  ;;  %v1104_v24 = vadd.f32 %v1777_v13, %v970_v16 }
 0x14b   :  { %v1102_v29 = vadd.f32 %v1089_v22, %v968_v20 }
 0x162   :  { %v1796_v17 = vpop.f32.mrf.mxu0 }
 0x163   :  { %v1237_v21 = vadd.f32 %v1796_v17, %v1103_v15 }
 0x164   :  { %v1220_v23 = vpop.f32.mrf.mxu0 }
 0x165   :  { %v1248_v25 = vmul.f32 %v1507_v18, %v1237_v21  ;;  %v1235_v26 = vadd.f32 %v1220_v23, %v1101_v19 }
 0x166   :  { %v1797_v28 = vpop.f32.mrf.mxu0 }
 0x167   :  { %v1246_v30 = vmul.f32 %v1507_v18, %v1235_v26  ;;  %v1238_v31 = vadd.f32 %v1797_v28, %v1104_v24  ;;  %v1259_v33 = vadd.f32 %v1508_v27, %v1248_v25 }
 0x168   :  { %v1223_v32 = vpop.f32.mrf.mxu0 }
 0x169   :  { %v1249_v34 = vmul.f32 %v1507_v18, %v1238_v31  ;;  %v1236_v35 = vadd.f32 %v1223_v32, %v1102_v29  ;;  %v1257_v36 = vadd.f32 %v1508_v27, %v1246_v30  ;;  %v1263_v39 = vmax.f32 %v1259_v33, 0.0 }
 0x16b   :  { %v1260_v37 = vadd.f32 %v1508_v27, %v1249_v34  ;;  %v1247_v38 = vmul.f32 %v1507_v18, %v1236_v35  ;;  %v1261_v42 = vmax.f32 %v1257_v36, 0.0 }
 0x16d   :  { %v1264_v40 = vmax.f32 %v1260_v37, 0.0  ;;  %v1258_v41 = vadd.f32 %v1508_v27, %v1247_v38 }
 0x16f   :  { %v1525_v43 = vpack.c.bf16 %v1264_v40, %v1263_v39  ;;  %v1262_v44 = vmax.f32 %v1258_v41, 0.0 }
 0x171   :  { %1527 = vst [vmem:[%s2247_s12 + $0x8] sm:$0xff] %v1525_v43   ;;  %v1520_v45 = vpack.c.bf16 %v1262_v44, %v1261_v42 }
 0x173   :  { %1521 = vst [vmem:[%s2247_s12] sm:$0xff] %v1520_v45  }

// kernel: colorization_net_forward.23
= control target key start
LH: loop header
LB: loop body
LE: loop exit
PB: predicated region body
PF: predicated region fallthrough
CT: control target
= control target key end

     0   :  { %v585_v1 = vmov 0   ;;  %v334_v35 = vlaneseq  ;;  %s795_s1 = inlined_call_operand.vmem [shape: bf16[1,128,512], index: 1, kind: input, shape index: {}]   ;;  %s796_s0 = inlined_call_operand.vmem [shape: bf16[32,128], index: 0, kind: input, shape index: {}]   ;;  %s797_s2 = inlined_call_operand.vmem [shape: f32[1,512], index: 2, kind: input, shape index: {}]   ;;  %s798_s3 = inlined_call_operand.vmem [shape: f32[1,512], index: 3, kind: input, shape index: {}]   ;;  %s799_s4 = inlined_call_operand.vmem [shape: bf16[32,512], index: 4, kind: output, shape index: {}]  }
   0x1   :  { %v535_v0 = vld [vmem:[%s795_s1 + $0xe4] ss:$16 sps:$4 sm:$0xff]   ;;  %258 = vmatprep.mubr.bf16.mxu0 %v585_v1  ;;  %311 = vmatprep.mubr.bf16.mxu1 %v585_v1  ;;  %v537_v2 = vld [vmem:[%s795_s1 + $0xec] ss:$16 sps:$4 sm:$0xff]   ;;  %v539_v3 = vld [vmem:[%s795_s1 + $0xe0] ss:$16 sps:$4 sm:$0xff]  }
   0x2   :  { %226 = vmatprep.subr.bf16.mxu0 %v535_v0  ;;  %v540_v4 = vld [vmem:[%s795_s1 + $0xe8] ss:$16 sps:$4 sm:$0xff]   ;;  %279 = vmatprep.subr.bf16.mxu1 %v537_v2  ;;  %v541_v5 = vld [vmem:[%s795_s1 + $0xc4] ss:$16 sps:$4 sm:$0xff]   ;;  %v543_v6 = vld [vmem:[%s795_s1 + $0xcc] ss:$16 sps:$4 sm:$0xff]  }
   0x3   :  { %227 = vmatpush1.bf16.msra.mxu0 %v539_v3  ;;  %280 = vmatpush1.bf16.msra.mxu1 %v540_v4  ;;  %v545_v7 = vld [vmem:[%s795_s1 + $0xc0] ss:$16 sps:$4 sm:$0xff]   ;;  %v546_v8 = vld [vmem:[%s795_s1 + $0xc8] ss:$16 sps:$4 sm:$0xff]   ;;  %v547_v9 = vld [vmem:[%s795_s1 + $0xa4] ss:$16 sps:$4 sm:$0xff]  }
   0x4   :  { %228 = vmatprep.subr.bf16.mxu0 %v541_v5  ;;  %281 = vmatprep.subr.bf16.mxu1 %v543_v6  ;;  %v549_v10 = vld [vmem:[%s795_s1 + $0xac] ss:$16 sps:$4 sm:$0xff]   ;;  %v551_v11 = vld [vmem:[%s795_s1 + $0xa0] ss:$16 sps:$4 sm:$0xff]   ;;  %v552_v12 = vld [vmem:[%s795_s1 + $0xa8] ss:$16 sps:$4 sm:$0xff]  }
   0x5   :  { %v553_v13 = vld [vmem:[%s795_s1 + $0x84] ss:$16 sps:$4 sm:$0xff]   ;;  %v555_v14 = vld [vmem:[%s795_s1 + $0x8c] ss:$16 sps:$4 sm:$0xff]   ;;  %v557_v15 = vld [vmem:[%s795_s1 + $0x80] ss:$16 sps:$4 sm:$0xff]  }
   0x6   :  { %v558_v16 = vld [vmem:[%s795_s1 + $0x88] ss:$16 sps:$4 sm:$0xff]   ;;  %v559_v17 = vld [vmem:[%s795_s1 + $0x64] ss:$16 sps:$4 sm:$0xff]   ;;  %v561_v18 = vld [vmem:[%s795_s1 + $0x6c] ss:$16 sps:$4 sm:$0xff]  }
   0x7   :  { %229 = vmatpush1.bf16.msra.mxu0 %v545_v7  ;;  %282 = vmatpush1.bf16.msra.mxu1 %v546_v8  ;;  %v563_v19 = vld [vmem:[%s795_s1 + $0x60] ss:$16 sps:$4 sm:$0xff]   ;;  %v564_v20 = vld [vmem:[%s795_s1 + $0x68] ss:$16 sps:$4 sm:$0xff]   ;;  %v565_v21 = vld [vmem:[%s795_s1 + $0x44] ss:$16 sps:$4 sm:$0xff]  }
   0x8   :  { %230 = vmatprep.subr.bf16.mxu0 %v547_v9  ;;  %283 = vmatprep.subr.bf16.mxu1 %v549_v10  ;;  %v567_v22 = vld [vmem:[%s795_s1 + $0x4c] ss:$16 sps:$4 sm:$0xff]   ;;  %v569_v23 = vld [vmem:[%s795_s1 + $0x40] ss:$16 sps:$4 sm:$0xff]   ;;  %v570_v24 = vld [vmem:[%s795_s1 + $0x48] ss:$16 sps:$4 sm:$0xff]  }
   0x9   :  { %v571_v25 = vld [vmem:[%s795_s1 + $0x24] ss:$16 sps:$4 sm:$0xff]   ;;  %v573_v26 = vld [vmem:[%s795_s1 + $0x2c] ss:$16 sps:$4 sm:$0xff]   ;;  %v575_v27 = vld [vmem:[%s795_s1 + $0x20] ss:$16 sps:$4 sm:$0xff]  }
   0xa   :  { %v576_v28 = vld [vmem:[%s795_s1 + $0x28] ss:$16 sps:$4 sm:$0xff]   ;;  %v577_v29 = vld [vmem:[%s795_s1 + $0x4] ss:$16 sps:$4 sm:$0xff]   ;;  %v579_v30 = vld [vmem:[%s795_s1 + $0xc] ss:$16 sps:$4 sm:$0xff]  }
   0xb   :  { %231 = vmatpush1.bf16.msra.mxu0 %v551_v11  ;;  %284 = vmatpush1.bf16.msra.mxu1 %v552_v12  ;;  %v581_v31 = vld [vmem:[%s795_s1] ss:$16 sps:$4 sm:$0xff]   ;;  %v582_v32 = vld [vmem:[%s795_s1 + $0x8] ss:$16 sps:$4 sm:$0xff]   ;;  %v335_v36 = vshrl.u32 %v334_v35, 7 }
   0xc   :  { %232 = vmatprep.subr.bf16.mxu0 %v553_v13  ;;  %285 = vmatprep.subr.bf16.mxu1 %v555_v14  ;;  %v583_v33 = vld [vmem:[%s796_s0] sm:$0xff]   ;;  %v584_v34 = vld [vmem:[%s796_s0 + $0x8] sm:$0xff]  }
   0xd   :  { %v336_v37 = vsub.s32 0, %v335_v36  ;;  %v344_v38 = vsub.s32 2, %v335_v36  ;;  %v332_v39 = vld [vmem:[%s797_s2] sm:$0xf]  ;;  %v340_v40 = vsub.s32 1, %v335_v36  ;;  %v348_v41 = vsub.s32 3, %v335_v36 }
   0xe   :  { %v370_v42 = vld [vmem:[%s798_s3] sm:$0xf] }
   0xf   :  { %233 = vmatpush1.bf16.msra.mxu0 %v557_v15  ;;  %286 = vmatpush1.bf16.msra.mxu1 %v558_v16  ;;  %v723_v43 = vrot.slane %v332_v39, %v336_v37  ;;  %v725_v44 = vrot.slane %v332_v39, %v344_v38  ;;  %v727_v45 = vrot.slane %v370_v42, %v336_v37 }
  0x10   :  { %234 = vmatprep.subr.bf16.mxu0 %v559_v17  ;;  %287 = vmatprep.subr.bf16.mxu1 %v561_v18  ;;  %v729_v46 = vrot.slane %v370_v42, %v344_v38  ;;  %v731_v47 = vrot.slane %v332_v39, %v340_v40  ;;  %v733_v48 = vrot.slane %v332_v39, %v348_v41 }
  0x11   :  { %v737_v53 = vrot.slane %v370_v42, %v340_v40  ;;  %v739_v54 = vrot.slane %v370_v42, %v348_v41 }
  0x13   :  { %235 = vmatpush1.bf16.msra.mxu0 %v563_v19  ;;  %288 = vmatpush1.bf16.msra.mxu1 %v564_v20 }
  0x14   :  { %236 = vmatprep.subr.bf16.mxu0 %v565_v21  ;;  %289 = vmatprep.subr.bf16.mxu1 %v567_v22 }
  0x17   :  { %237 = vmatpush1.bf16.msra.mxu0 %v569_v23  ;;  %290 = vmatpush1.bf16.msra.mxu1 %v570_v24 }
  0x18   :  { %238 = vmatprep.subr.bf16.mxu0 %v571_v25  ;;  %291 = vmatprep.subr.bf16.mxu1 %v573_v26 }
  0x1b   :  { %239 = vmatpush1.bf16.msra.mxu0 %v575_v27  ;;  %292 = vmatpush1.bf16.msra.mxu1 %v576_v28 }
  0x1c   :  { %240 = vmatprep.subr.bf16.mxu0 %v577_v29  ;;  %293 = vmatprep.subr.bf16.mxu1 %v579_v30 }
  0x1f   :  { %241 = vmatpush1.bf16.msra.mxu0 %v581_v31  ;;  %294 = vmatpush1.bf16.msra.mxu1 %v582_v32 }
  0x22   :  { %259 = vmatmul.mubr.bf16.vlgmr.msra.gmra.mxu0 %v583_v33  ;;  %312 = vmatmul.mubr.bf16.vlgmr.msra.gmra.mxu1 %v583_v33 }
  0x23   :  { %268 = vmatprep.mubr.bf16.mxu0 %v585_v1  ;;  %321 = vmatprep.mubr.bf16.mxu1 %v585_v1 }
  0x2a   :  { %269 = vmatmul.mubr.bf16.gmra.mxu0 %v584_v34  ;;  %322 = vmatmul.mubr.bf16.gmra.mxu1 %v584_v34 }
  0xe2   :  { %v260_v49 = vpop.f32.mrf.mxu0  ;;  %v313_v50 = vpop.f32.mrf.mxu1 }
  0xe3   :  { %v354_v51 = vmul.f32 %v723_v43, %v260_v49  ;;  %v356_v52 = vmul.f32 %v725_v44, %v313_v50 }
  0xe4   :  { %v262_v55 = vpop.f32.mrf.mxu0  ;;  %v315_v56 = vpop.f32.mrf.mxu1 }
  0xe5   :  { %v392_v57 = vadd.f32 %v727_v45, %v354_v51  ;;  %v394_v58 = vadd.f32 %v729_v46, %v356_v52  ;;  %v355_v59 = vmul.f32 %v731_v47, %v262_v55  ;;  %v357_v60 = vmul.f32 %v733_v48, %v315_v56 }
  0xe6   :  { %v264_v61 = vpop.f32.mrf.mxu0  ;;  %v317_v62 = vpop.f32.mrf.mxu1 }
  0xe7   :  { %v393_v63 = vadd.f32 %v737_v53, %v355_v59  ;;  %v395_v0 = vadd.f32 %v739_v54, %v357_v60  ;;  %v408_v1 = vmax.f32 %v392_v57, 0.0  ;;  %v410_v2 = vmax.f32 %v394_v58, 0.0 }
  0xe8   :  { %v358_v3 = vmul.f32 %v723_v43, %v264_v61  ;;  %v360_v4 = vmul.f32 %v725_v44, %v317_v62  ;;  %v266_v5 = vpop.f32.mrf.mxu0  ;;  %v319_v6 = vpop.f32.mrf.mxu1 }
  0xe9   :  { %v409_v7 = vmax.f32 %v393_v63, 0.0  ;;  %v411_v8 = vmax.f32 %v395_v0, 0.0  ;;  %v359_v9 = vmul.f32 %v731_v47, %v266_v5  ;;  %v361_v10 = vmul.f32 %v733_v48, %v319_v6 }
  0xea   :  { %v396_v11 = vadd.f32 %v727_v45, %v358_v3  ;;  %v398_v12 = vadd.f32 %v729_v46, %v360_v4  ;;  %v270_v13 = vpop.f32.mrf.mxu0  ;;  %v323_v14 = vpop.f32.mrf.mxu1 }
  0xeb   :  { %v526_v15 = vpack.c.bf16 %v409_v7, %v408_v1  ;;  %v527_v16 = vpack.c.bf16 %v411_v8, %v410_v2  ;;  %v397_v17 = vadd.f32 %v737_v53, %v359_v9  ;;  %v399_v18 = vadd.f32 %v739_v54, %v361_v10 }
  0xec   :  { %v412_v19 = vmax.f32 %v396_v11, 0.0  ;;  %v414_v20 = vmax.f32 %v398_v12, 0.0  ;;  %v362_v21 = vmul.f32 %v723_v43, %v270_v13  ;;  %v364_v22 = vmul.f32 %v725_v44, %v323_v14  ;;  %v272_v23 = vpop.f32.mrf.mxu0  ;;  %v325_v24 = vpop.f32.mrf.mxu1 }
  0xed   :  { %472 = vst [vmem:[%s799_s4] sm:$0xff] %v526_v15  ;;  %473 = vst [vmem:[%s799_s4 + $0x8] sm:$0xff] %v527_v16  ;;  %v413_v25 = vmax.f32 %v397_v17, 0.0  ;;  %v415_v26 = vmax.f32 %v399_v18, 0.0  ;;  %v363_v27 = vmul.f32 %v731_v47, %v272_v23  ;;  %v365_v28 = vmul.f32 %v733_v48, %v325_v24 }
  0xee   :  { %v400_v29 = vadd.f32 %v727_v45, %v362_v21  ;;  %v402_v30 = vadd.f32 %v729_v46, %v364_v22  ;;  %v274_v31 = vpop.f32.mrf.mxu0  ;;  %v327_v32 = vpop.f32.mrf.mxu1 }
  0xef   :  { %v528_v33 = vpack.c.bf16 %v413_v25, %v412_v19  ;;  %v529_v34 = vpack.c.bf16 %v415_v26, %v414_v20  ;;  %v401_v35 = vadd.f32 %v737_v53, %v363_v27  ;;  %v403_v36 = vadd.f32 %v739_v54, %v365_v28 }
  0xf0   :  { %v416_v37 = vmax.f32 %v400_v29, 0.0  ;;  %v418_v38 = vmax.f32 %v402_v30, 0.0  ;;  %v366_v39 = vmul.f32 %v723_v43, %v274_v31  ;;  %v368_v40 = vmul.f32 %v725_v44, %v327_v32  ;;  %v276_v41 = vpop.f32.mrf.mxu0  ;;  %v329_v42 = vpop.f32.mrf.mxu1 }
  0xf1   :  { %474 = vst [vmem:[%s799_s4 + $0x10] sm:$0xff] %v528_v33  ;;  %475 = vst [vmem:[%s799_s4 + $0x18] sm:$0xff] %v529_v34  ;;  %v417_v49 = vmax.f32 %v401_v35, 0.0  ;;  %v419_v50 = vmax.f32 %v403_v36, 0.0  ;;  %v367_v51 = vmul.f32 %v731_v47, %v276_v41  ;;  %v369_v52 = vmul.f32 %v733_v48, %v329_v42 }
  0xf2   :  { %v404_v43 = vadd.f32 %v727_v45, %v366_v39  ;;  %v406_v44 = vadd.f32 %v729_v46, %v368_v40 }
  0xf3   :  { %v530_v55 = vpack.c.bf16 %v417_v49, %v416_v37  ;;  %v531_v56 = vpack.c.bf16 %v419_v50, %v418_v38  ;;  %v405_v57 = vadd.f32 %v737_v53, %v367_v51  ;;  %v407_v58 = vadd.f32 %v739_v54, %v369_v52 }
  0xf4   :  { %v420_v47 = vmax.f32 %v404_v43, 0.0  ;;  %v422_v48 = vmax.f32 %v406_v44, 0.0 }
  0xf5   :  { %476 = vst [vmem:[%s799_s4 + $0x20] sm:$0xff] %v530_v55  ;;  %477 = vst [vmem:[%s799_s4 + $0x28] sm:$0xff] %v531_v56  ;;  %v421_v59 = vmax.f32 %v405_v57, 0.0  ;;  %v423_v45 = vmax.f32 %v407_v58, 0.0 }
  0xf7   :  { %v532_v60 = vpack.c.bf16 %v421_v59, %v420_v47  ;;  %v533_v46 = vpack.c.bf16 %v423_v45, %v422_v48 }
  0xf9   :  { %478 = vst [vmem:[%s799_s4 + $0x30] sm:$0xff] %v532_v60  ;;  %479 = vst [vmem:[%s799_s4 + $0x38] sm:$0xff] %v533_v46 }

// kernel: colorization_net_forward.22
= control target key start
LH: loop header
LB: loop body
LE: loop exit
PB: predicated region body
PF: predicated region fallthrough
CT: control target
= control target key end

     0   :  { %s2270_s9 = inlined_call_operand.vmem [shape: bf16[9,128,128], index: 9, kind: input, shape index: {}]   ;;  %s2271_s1 = inlined_call_operand.vmem [shape: bf16[32,128], index: 1, kind: input, shape index: {}]   ;;  %s2272_s0 = inlined_call_operand.vmem [shape: bf16[32,128], index: 0, kind: input, shape index: {}]   ;;  %s2273_s2 = inlined_call_operand.vmem [shape: bf16[32,128], index: 2, kind: input, shape index: {}]   ;;  %s2274_s3 = inlined_call_operand.vmem [shape: bf16[32,128], index: 3, kind: input, shape index: {}]   ;;  %s2275_s4 = inlined_call_operand.vmem [shape: bf16[32,128], index: 4, kind: input, shape index: {}]   ;;  %s2276_s5 = inlined_call_operand.vmem [shape: bf16[32,128], index: 5, kind: input, shape index: {}]   ;;  %s2277_s6 = inlined_call_operand.vmem [shape: bf16[32,128], index: 6, kind: input, shape index: {}]   ;;  %s2278_s7 = inlined_call_operand.vmem [shape: bf16[32,128], index: 7, kind: input, shape index: {}]   ;;  %s2279_s8 = inlined_call_operand.vmem [shape: bf16[32,128], index: 8, kind: input, shape index: {}]   ;;  %s2280_s10 = inlined_call_operand.vmem [shape: f32[1,128], index: 10, kind: input, shape index: {}]   ;;  %s2281_s12 = inlined_call_operand.vmem [shape: bf16[32,128], index: 12, kind: input, shape index: {}]   ;;  %s2282_s11 = inlined_call_operand.vmem [shape: f32[1,128], index: 11, kind: input, shape index: {}]   ;;  %s2283_s13 = inlined_call_operand.vmem [shape: bf16[32,128], index: 13, kind: output, shape index: {}]  }
   0x1   :  { %v1822_v0 = vld [vmem:[%s2270_s9 + $0x78] sm:$0xff]   ;;  %v1824_v2 = vld [vmem:[%s2270_s9 + $0x70] sm:$0xff]   ;;  %v1826_v4 = vld [vmem:[%s2270_s9 + $0x68] sm:$0xff]  }
   0x2   :  { %v1823_v1 = vld [vmem:[%s2270_s9 + $0x38] sm:$0xff]   ;;  %1642 = vmatprep.subr.bf16.mxu0 %v1822_v0  ;;  %v1825_v3 = vld [vmem:[%s2270_s9 + $0x30] sm:$0xff]   ;;  %v1827_v5 = vld [vmem:[%s2270_s9 + $0x28] sm:$0xff]  }
   0x3   :  { %1662 = vmatprep.subr.bf16.mxu1 %v1823_v1  ;;  %1643 = vmatpush3.bf16.msra.mxu0 %v1822_v0  ;;  %v1828_v6 = vld [vmem:[%s2270_s9 + $0x60] sm:$0xff]   ;;  %v1830_v8 = vld [vmem:[%s2270_s9 + $0x58] sm:$0xff]   ;;  %v1832_v10 = vld [vmem:[%s2270_s9 + $0x50] sm:$0xff]  }
   0x4   :  { %1663 = vmatpush3.bf16.msra.mxu1 %v1823_v1  ;;  %1644 = vmatprep.subr.bf16.mxu0 %v1824_v2  ;;  %v1829_v7 = vld [vmem:[%s2270_s9 + $0x20] sm:$0xff]   ;;  %v1831_v9 = vld [vmem:[%s2270_s9 + $0x18] sm:$0xff]   ;;  %v1833_v11 = vld [vmem:[%s2270_s9 + $0x10] sm:$0xff]  }
   0x5   :  { %1664 = vmatprep.subr.bf16.mxu1 %v1825_v3  ;;  %v1838_v12 = vld [vmem:[%s2271_s1] sm:$0xff]   ;;  %v1834_v14 = vld [vmem:[%s2270_s9 + $0x48] sm:$0xff]   ;;  %v1842_v18 = vld [vmem:[%s2270_s9 + $0xb8] sm:$0xff]  }
   0x6   :  { %v1839_v13 = vld [vmem:[%s2272_s0] sm:$0xff]   ;;  %1658 = vmatprep.mubr.bf16.mxu0 %v1838_v12  ;;  %v1835_v15 = vld [vmem:[%s2270_s9 + $0x8] sm:$0xff]   ;;  %v1843_v19 = vld [vmem:[%s2270_s9 + $0xf8] sm:$0xff]  }
   0x7   :  { %1645 = vmatpush3.bf16.msra.mxu0 %v1824_v2  ;;  %1678 = vmatprep.mubr.bf16.mxu1 %v1839_v13  ;;  %v1836_v16 = vld [vmem:[%s2270_s9 + $0x40] sm:$0xff]   ;;  %v1840_v20 = vld [vmem:[%s2271_s1 + $0x8] sm:$0xff]   ;;  %v1844_v22 = vld [vmem:[%s2270_s9 + $0xb0] sm:$0xff]  }
   0x8   :  { %1665 = vmatpush3.bf16.msra.mxu1 %v1825_v3  ;;  %1646 = vmatprep.subr.bf16.mxu0 %v1826_v4  ;;  %v1837_v17 = vld [vmem:[%s2270_s9] sm:$0xff]   ;;  %v1841_v21 = vld [vmem:[%s2272_s0 + $0x8] sm:$0xff]   ;;  %v1845_v23 = vld [vmem:[%s2270_s9 + $0xf0] sm:$0xff]  }
   0x9   :  { %1666 = vmatprep.subr.bf16.mxu1 %v1827_v5  ;;  %v1846_v24 = vld [vmem:[%s2270_s9 + $0xa8] sm:$0xff]   ;;  %v1858_v25 = vld [vmem:[%s2273_s2] sm:$0xff]   ;;  %v1850_v30 = vld [vmem:[%s2270_s9 + $0x98] sm:$0xff]  }
   0xa   :  { %v1847_v26 = vld [vmem:[%s2270_s9 + $0xe8] sm:$0xff]   ;;  %v1861_v27 = vld [vmem:[%s2274_s3] sm:$0xff]   ;;  %v1851_v31 = vld [vmem:[%s2270_s9 + $0xd8] sm:$0xff]  }
   0xb   :  { %1647 = vmatpush3.bf16.msra.mxu0 %v1826_v4  ;;  %v1848_v28 = vld [vmem:[%s2270_s9 + $0xa0] sm:$0xff]   ;;  %v1852_v32 = vld [vmem:[%s2270_s9 + $0x90] sm:$0xff]   ;;  %v1854_v34 = vld [vmem:[%s2270_s9 + $0x88] sm:$0xff]  }
   0xc   :  { %1667 = vmatpush3.bf16.msra.mxu1 %v1827_v5  ;;  %1648 = vmatprep.subr.bf16.mxu0 %v1828_v6  ;;  %v1849_v29 = vld [vmem:[%s2270_s9 + $0xe0] sm:$0xff]   ;;  %v1853_v33 = vld [vmem:[%s2270_s9 + $0xd0] sm:$0xff]   ;;  %v1855_v35 = vld [vmem:[%s2270_s9 + $0xc8] sm:$0xff]  }
   0xd   :  { %1668 = vmatprep.subr.bf16.mxu1 %v1829_v7  ;;  %v1856_v36 = vld [vmem:[%s2270_s9 + $0x80] sm:$0xff]   ;;  %v1859_v38 = vld [vmem:[%s2273_s2 + $0x8] sm:$0xff]   ;;  %v1860_v39 = vld [vmem:[%s2270_s9 + $0x138] sm:$0xff]  }
   0xe   :  { %v1857_v37 = vld [vmem:[%s2270_s9 + $0xc0] sm:$0xff]   ;;  %v1863_v40 = vld [vmem:[%s2270_s9 + $0x178] sm:$0xff]   ;;  %v1862_v41 = vld [vmem:[%s2274_s3 + $0x8] sm:$0xff]  }
   0xf   :  { %1649 = vmatpush3.bf16.msra.mxu0 %v1828_v6  ;;  %v1864_v42 = vld [vmem:[%s2270_s9 + $0x130] sm:$0xff]   ;;  %v1878_v44 = vld [vmem:[%s2275_s4] sm:$0xff]   ;;  %v1866_v46 = vld [vmem:[%s2270_s9 + $0x128] sm:$0xff]  }
  0x10   :  { %1669 = vmatpush3.bf16.msra.mxu1 %v1829_v7  ;;  %1650 = vmatprep.subr.bf16.mxu0 %v1830_v8  ;;  %v1865_v43 = vld [vmem:[%s2270_s9 + $0x170] sm:$0xff]   ;;  %v1881_v45 = vld [vmem:[%s2276_s5] sm:$0xff]   ;;  %v1867_v47 = vld [vmem:[%s2270_s9 + $0x168] sm:$0xff]  }
  0x11   :  { %1670 = vmatprep.subr.bf16.mxu1 %v1831_v9  ;;  %v1868_v48 = vld [vmem:[%s2270_s9 + $0x120] sm:$0xff]   ;;  %v1870_v50 = vld [vmem:[%s2270_s9 + $0x118] sm:$0xff]   ;;  %v1872_v52 = vld [vmem:[%s2270_s9 + $0x110] sm:$0xff]  }
  0x12   :  { %v1869_v49 = vld [vmem:[%s2270_s9 + $0x160] sm:$0xff]   ;;  %v1871_v51 = vld [vmem:[%s2270_s9 + $0x158] sm:$0xff]   ;;  %v1873_v53 = vld [vmem:[%s2270_s9 + $0x150] sm:$0xff]  }
  0x13   :  { %1651 = vmatpush3.bf16.msra.mxu0 %v1830_v8  ;;  %v1874_v54 = vld [vmem:[%s2270_s9 + $0x108] sm:$0xff]   ;;  %v1876_v56 = vld [vmem:[%s2270_s9 + $0x100] sm:$0xff]   ;;  %v1880_v58 = vld [vmem:[%s2270_s9 + $0x1b8] sm:$0xff]  }
  0x14   :  { %1671 = vmatpush3.bf16.msra.mxu1 %v1831_v9  ;;  %1652 = vmatprep.subr.bf16.mxu0 %v1832_v10  ;;  %v1875_v55 = vld [vmem:[%s2270_s9 + $0x148] sm:$0xff]   ;;  %v1877_v57 = vld [vmem:[%s2270_s9 + $0x140] sm:$0xff]   ;;  %v1883_v59 = vld [vmem:[%s2270_s9 + $0x1f8] sm:$0xff]  }
  0x15   :  { %1672 = vmatprep.subr.bf16.mxu1 %v1833_v11  ;;  %v1879_v60 = vld [vmem:[%s2275_s4 + $0x8] sm:$0xff]   ;;  %v1884_v62 = vld [vmem:[%s2270_s9 + $0x1b0] sm:$0xff]   ;;  %v1898_v0 = vld [vmem:[%s2277_s6] sm:$0xff]  }
  0x16   :  { %v1882_v61 = vld [vmem:[%s2276_s5 + $0x8] sm:$0xff]   ;;  %v1885_v63 = vld [vmem:[%s2270_s9 + $0x1f0] sm:$0xff]   ;;  %v1901_v1 = vld [vmem:[%s2278_s7] sm:$0xff]  }
  0x17   :  { %1653 = vmatpush3.bf16.msra.mxu0 %v1832_v10  ;;  %v1886_v2 = vld [vmem:[%s2270_s9 + $0x1a8] sm:$0xff]   ;;  %v1888_v4 = vld [vmem:[%s2270_s9 + $0x1a0] sm:$0xff]   ;;  %v1890_v6 = vld [vmem:[%s2270_s9 + $0x198] sm:$0xff]  }
  0x18   :  { %1673 = vmatpush3.bf16.msra.mxu1 %v1833_v11  ;;  %1654 = vmatprep.subr.bf16.mxu0 %v1834_v14  ;;  %v1887_v3 = vld [vmem:[%s2270_s9 + $0x1e8] sm:$0xff]   ;;  %v1889_v5 = vld [vmem:[%s2270_s9 + $0x1e0] sm:$0xff]   ;;  %v1891_v7 = vld [vmem:[%s2270_s9 + $0x1d8] sm:$0xff]  }
  0x19   :  { %1674 = vmatprep.subr.bf16.mxu1 %v1835_v15  ;;  %v1892_v8 = vld [vmem:[%s2270_s9 + $0x190] sm:$0xff]   ;;  %v1894_v10 = vld [vmem:[%s2270_s9 + $0x188] sm:$0xff]   ;;  %v1896_v12 = vld [vmem:[%s2270_s9 + $0x180] sm:$0xff]  }
  0x1a   :  { %v1893_v9 = vld [vmem:[%s2270_s9 + $0x1d0] sm:$0xff]   ;;  %v1895_v11 = vld [vmem:[%s2270_s9 + $0x1c8] sm:$0xff]   ;;  %v1897_v13 = vld [vmem:[%s2270_s9 + $0x1c0] sm:$0xff]  }
  0x1b   :  { %1655 = vmatpush3.bf16.msra.mxu0 %v1834_v14  ;;  %v1900_v14 = vld [vmem:[%s2270_s9 + $0x238] sm:$0xff]  }
  0x1c   :  { %1675 = vmatpush3.bf16.msra.mxu1 %v1835_v15  ;;  %1656 = vmatprep.subr.bf16.mxu0 %v1836_v16  ;;  %v1899_v15 = vld [vmem:[%s2277_s6 + $0x8] sm:$0xff]  }
  0x1d   :  { %1676 = vmatprep.subr.bf16.mxu1 %v1837_v17 }
  0x1f   :  { %1657 = vmatpush3.bf16.msra.mxu0 %v1836_v16  ;;  %v1902_v16 = vld [vmem:[%s2278_s7 + $0x8] sm:$0xff]  }
  0x20   :  { %1677 = vmatpush3.bf16.msra.mxu1 %v1837_v17  ;;  %1682 = vmatprep.subr.bf16.mxu0 %v1842_v18  ;;  %v1903_v17 = vld [vmem:[%s2270_s9 + $0x230] sm:$0xff]  }
  0x21   :  { %1702 = vmatprep.subr.bf16.mxu1 %v1843_v19 }
  0x22   :  { %1659 = vmatmul.mubr.bf16.vlgmr.msra.gmra.mxu0 %v1840_v20  ;;  %v1905_v20 = vld [vmem:[%s2270_s9 + $0x220] sm:$0xff]  }
  0x23   :  { %1679 = vmatmul.mubr.bf16.vlgmr.msra.gmra.mxu1 %v1841_v21  ;;  %1683 = vmatpush3.bf16.msra.mxu0 %v1842_v18  ;;  %v1910_v18 = vld [vmem:[%s2279_s8] sm:$0xff]   ;;  %v1906_v21 = vld [vmem:[%s2270_s9 + $0x218] sm:$0xff]  }
  0x24   :  { %1703 = vmatpush3.bf16.msra.mxu1 %v1843_v19  ;;  %1684 = vmatprep.subr.bf16.mxu0 %v1844_v22  ;;  %v1904_v19 = vld [vmem:[%s2270_s9 + $0x228] sm:$0xff]  }
  0x25   :  { %1704 = vmatprep.subr.bf16.mxu1 %v1845_v23  ;;  %1698 = vmatprep.mubr.bf16.mxu0 %v1858_v25  ;;  %v1911_v25 = vld [vmem:[%s2279_s8 + $0x8] sm:$0xff]  }
  0x26   :  { %1718 = vmatprep.mubr.bf16.mxu1 %v1861_v27 }
  0x27   :  { %1685 = vmatpush3.bf16.msra.mxu0 %v1844_v22  ;;  %v1907_v22 = vld [vmem:[%s2270_s9 + $0x210] sm:$0xff]  }
  0x28   :  { %1705 = vmatpush3.bf16.msra.mxu1 %v1845_v23  ;;  %1686 = vmatprep.subr.bf16.mxu0 %v1846_v24  ;;  %v1908_v23 = vld [vmem:[%s2270_s9 + $0x208] sm:$0xff]  }
  0x29   :  { %1706 = vmatprep.subr.bf16.mxu1 %v1847_v26 }
  0x2b   :  { %1687 = vmatpush3.bf16.msra.mxu0 %v1846_v24  ;;  %v1909_v24 = vld [vmem:[%s2270_s9 + $0x200] sm:$0xff]  }
  0x2c   :  { %1707 = vmatpush3.bf16.msra.mxu1 %v1847_v26  ;;  %1688 = vmatprep.subr.bf16.mxu0 %v1848_v28 }
  0x2d   :  { %1708 = vmatprep.subr.bf16.mxu1 %v1849_v29 }
  0x2f   :  { %1689 = vmatpush3.bf16.msra.mxu0 %v1848_v28 }
  0x30   :  { %1709 = vmatpush3.bf16.msra.mxu1 %v1849_v29  ;;  %1690 = vmatprep.subr.bf16.mxu0 %v1850_v30 }
  0x31   :  { %1710 = vmatprep.subr.bf16.mxu1 %v1851_v31 }
  0x33   :  { %1691 = vmatpush3.bf16.msra.mxu0 %v1850_v30 }
  0x34   :  { %1711 = vmatpush3.bf16.msra.mxu1 %v1851_v31  ;;  %1692 = vmatprep.subr.bf16.mxu0 %v1852_v32 }
  0x35   :  { %1712 = vmatprep.subr.bf16.mxu1 %v1853_v33 }
  0x37   :  { %1693 = vmatpush3.bf16.msra.mxu0 %v1852_v32 }
  0x38   :  { %1713 = vmatpush3.bf16.msra.mxu1 %v1853_v33  ;;  %1694 = vmatprep.subr.bf16.mxu0 %v1854_v34 }
  0x39   :  { %1714 = vmatprep.subr.bf16.mxu1 %v1855_v35 }
  0x3b   :  { %1695 = vmatpush3.bf16.msra.mxu0 %v1854_v34 }
  0x3c   :  { %1715 = vmatpush3.bf16.msra.mxu1 %v1855_v35  ;;  %1696 = vmatprep.subr.bf16.mxu0 %v1856_v36 }
  0x3d   :  { %1716 = vmatprep.subr.bf16.mxu1 %v1857_v37 }
  0x3f   :  { %1697 = vmatpush3.bf16.msra.mxu0 %v1856_v36 }
  0x40   :  { %1717 = vmatpush3.bf16.msra.mxu1 %v1857_v37  ;;  %1722 = vmatprep.subr.bf16.mxu0 %v1860_v39 }
  0x41   :  { %1742 = vmatprep.subr.bf16.mxu1 %v1863_v40 }
  0x42   :  { %1699 = vmatmul.mubr.bf16.vlgmr.msra.gmra.mxu0 %v1859_v38 }
  0x43   :  { %1723 = vmatpush3.bf16.msra.mxu0 %v1860_v39  ;;  %1719 = vmatmul.mubr.bf16.vlgmr.msra.gmra.mxu1 %v1862_v41 }
  0x44   :  { %1743 = vmatpush3.bf16.msra.mxu1 %v1863_v40  ;;  %1724 = vmatprep.subr.bf16.mxu0 %v1864_v42 }
  0x45   :  { %1744 = vmatprep.subr.bf16.mxu1 %v1865_v43  ;;  %1738 = vmatprep.mubr.bf16.mxu0 %v1878_v44 }
  0x46   :  { %1758 = vmatprep.mubr.bf16.mxu1 %v1881_v45 }
  0x47   :  { %1725 = vmatpush3.bf16.msra.mxu0 %v1864_v42 }
  0x48   :  { %1745 = vmatpush3.bf16.msra.mxu1 %v1865_v43  ;;  %1726 = vmatprep.subr.bf16.mxu0 %v1866_v46 }
  0x49   :  { %1746 = vmatprep.subr.bf16.mxu1 %v1867_v47 }
  0x4b   :  { %1727 = vmatpush3.bf16.msra.mxu0 %v1866_v46 }
  0x4c   :  { %1747 = vmatpush3.bf16.msra.mxu1 %v1867_v47  ;;  %1728 = vmatprep.subr.bf16.mxu0 %v1868_v48 }
  0x4d   :  { %1748 = vmatprep.subr.bf16.mxu1 %v1869_v49 }
  0x4f   :  { %1729 = vmatpush3.bf16.msra.mxu0 %v1868_v48 }
  0x50   :  { %1749 = vmatpush3.bf16.msra.mxu1 %v1869_v49  ;;  %1730 = vmatprep.subr.bf16.mxu0 %v1870_v50 }
  0x51   :  { %1750 = vmatprep.subr.bf16.mxu1 %v1871_v51 }
  0x53   :  { %1731 = vmatpush3.bf16.msra.mxu0 %v1870_v50 }
  0x54   :  { %1751 = vmatpush3.bf16.msra.mxu1 %v1871_v51  ;;  %1732 = vmatprep.subr.bf16.mxu0 %v1872_v52 }
  0x55   :  { %1752 = vmatprep.subr.bf16.mxu1 %v1873_v53 }
  0x57   :  { %1733 = vmatpush3.bf16.msra.mxu0 %v1872_v52 }
  0x58   :  { %1753 = vmatpush3.bf16.msra.mxu1 %v1873_v53  ;;  %1734 = vmatprep.subr.bf16.mxu0 %v1874_v54 }
  0x59   :  { %1754 = vmatprep.subr.bf16.mxu1 %v1875_v55 }
  0x5b   :  { %1735 = vmatpush3.bf16.msra.mxu0 %v1874_v54 }
  0x5c   :  { %1755 = vmatpush3.bf16.msra.mxu1 %v1875_v55  ;;  %1736 = vmatprep.subr.bf16.mxu0 %v1876_v56 }
  0x5d   :  { %1756 = vmatprep.subr.bf16.mxu1 %v1877_v57 }
  0x5f   :  { %1737 = vmatpush3.bf16.msra.mxu0 %v1876_v56 }
  0x60   :  { %1757 = vmatpush3.bf16.msra.mxu1 %v1877_v57  ;;  %1762 = vmatprep.subr.bf16.mxu0 %v1880_v58 }
  0x61   :  { %1782 = vmatprep.subr.bf16.mxu1 %v1883_v59 }
  0x62   :  { %1739 = vmatmul.mubr.bf16.vlgmr.msra.gmra.mxu0 %v1879_v60 }
  0x63   :  { %1763 = vmatpush3.bf16.msra.mxu0 %v1880_v58  ;;  %1759 = vmatmul.mubr.bf16.vlgmr.msra.gmra.mxu1 %v1882_v61 }
  0x64   :  { %1783 = vmatpush3.bf16.msra.mxu1 %v1883_v59  ;;  %1764 = vmatprep.subr.bf16.mxu0 %v1884_v62 }
  0x65   :  { %1784 = vmatprep.subr.bf16.mxu1 %v1885_v63  ;;  %1778 = vmatprep.mubr.bf16.mxu0 %v1898_v0 }
  0x66   :  { %1798 = vmatprep.mubr.bf16.mxu1 %v1901_v1 }
  0x67   :  { %1765 = vmatpush3.bf16.msra.mxu0 %v1884_v62 }
  0x68   :  { %1785 = vmatpush3.bf16.msra.mxu1 %v1885_v63  ;;  %1766 = vmatprep.subr.bf16.mxu0 %v1886_v2 }
  0x69   :  { %1786 = vmatprep.subr.bf16.mxu1 %v1887_v3 }
  0x6b   :  { %1767 = vmatpush3.bf16.msra.mxu0 %v1886_v2 }
  0x6c   :  { %1787 = vmatpush3.bf16.msra.mxu1 %v1887_v3  ;;  %1768 = vmatprep.subr.bf16.mxu0 %v1888_v4 }
  0x6d   :  { %1788 = vmatprep.subr.bf16.mxu1 %v1889_v5 }
  0x6f   :  { %1769 = vmatpush3.bf16.msra.mxu0 %v1888_v4 }
  0x70   :  { %1789 = vmatpush3.bf16.msra.mxu1 %v1889_v5  ;;  %1770 = vmatprep.subr.bf16.mxu0 %v1890_v6 }
  0x71   :  { %1790 = vmatprep.subr.bf16.mxu1 %v1891_v7 }
  0x73   :  { %1771 = vmatpush3.bf16.msra.mxu0 %v1890_v6 }
  0x74   :  { %1791 = vmatpush3.bf16.msra.mxu1 %v1891_v7  ;;  %1772 = vmatprep.subr.bf16.mxu0 %v1892_v8 }
  0x75   :  { %1792 = vmatprep.subr.bf16.mxu1 %v1893_v9 }
  0x77   :  { %1773 = vmatpush3.bf16.msra.mxu0 %v1892_v8 }
  0x78   :  { %1793 = vmatpush3.bf16.msra.mxu1 %v1893_v9  ;;  %1774 = vmatprep.subr.bf16.mxu0 %v1894_v10 }
  0x79   :  { %1794 = vmatprep.subr.bf16.mxu1 %v1895_v11 }
  0x7b   :  { %1775 = vmatpush3.bf16.msra.mxu0 %v1894_v10 }
  0x7c   :  { %1795 = vmatpush3.bf16.msra.mxu1 %v1895_v11  ;;  %1776 = vmatprep.subr.bf16.mxu0 %v1896_v12 }
  0x7d   :  { %1796 = vmatprep.subr.bf16.mxu1 %v1897_v13 }
  0x7f   :  { %1777 = vmatpush3.bf16.msra.mxu0 %v1896_v12 }
  0x80   :  { %1797 = vmatpush3.bf16.msra.mxu1 %v1897_v13  ;;  %1802 = vmatprep.subr.bf16.mxu0 %v1900_v14 }
  0x82   :  { %1779 = vmatmul.mubr.bf16.vlgmr.msra.gmra.mxu0 %v1899_v15 }
  0x83   :  { %1803 = vmatpush3.bf16.msra.mxu0 %v1900_v14  ;;  %1799 = vmatmul.mubr.bf16.vlgmr.msra.gmra.mxu1 %v1902_v16 }
  0x84   :  { %1804 = vmatprep.subr.bf16.mxu0 %v1903_v17  ;;  %1818 = vmatprep.mubr.bf16.mxu0 %v1910_v18  ;;  %v1522_v18 = vld [vmem:[%s2280_s10] ss:$0 sm:$0xff] }
  0x87   :  { %1805 = vmatpush3.bf16.msra.mxu0 %v1903_v17 }
  0x88   :  { %1806 = vmatprep.subr.bf16.mxu0 %v1904_v19 }
  0x8b   :  { %1807 = vmatpush3.bf16.msra.mxu0 %v1904_v19 }
  0x8c   :  { %1808 = vmatprep.subr.bf16.mxu0 %v1905_v20 }
  0x8f   :  { %1809 = vmatpush3.bf16.msra.mxu0 %v1905_v20 }
  0x90   :  { %1810 = vmatprep.subr.bf16.mxu0 %v1906_v21 }
  0x93   :  { %1811 = vmatpush3.bf16.msra.mxu0 %v1906_v21 }
  0x94   :  { %1812 = vmatprep.subr.bf16.mxu0 %v1907_v22 }
  0x97   :  { %1813 = vmatpush3.bf16.msra.mxu0 %v1907_v22  ;;  %v1550_v22 = vld [vmem:[%s2281_s12 + $0x8] sm:$0xff]  }
  0x98   :  { %1814 = vmatprep.subr.bf16.mxu0 %v1908_v23 }
  0x9b   :  { %1815 = vmatpush3.bf16.msra.mxu0 %v1908_v23 }
  0x9c   :  { %1816 = vmatprep.subr.bf16.mxu0 %v1909_v24 }
  0x9f   :  { %1817 = vmatpush3.bf16.msra.mxu0 %v1909_v24  ;;  %v1523_v24 = vld [vmem:[%s2282_s11] ss:$0 sm:$0xff] }
  0xa2   :  { %1819 = vmatmul.mubr.bf16.vlgmr.msra.gmra.mxu0 %v1911_v25 }
  0xe2   :  { %v1660_v26 = vpop.f32.mrf.mxu0 }
  0xe3   :  { %v1680_v27 = vpop.f32.mrf.mxu1 }
  0xe4   :  { %v180_v28 = vpop.f32.mrf.mxu0  ;;  %v298_v47 = vadd.f32 %v1680_v27, %v1660_v26 }
  0xe5   :  { %v289_v29 = vpop.f32.mrf.mxu1 }
  0xe6   :  { %v1661_v30 = vpop.f32.mrf.mxu0  ;;  %v290_v48 = vadd.f32 %v289_v29, %v180_v28  ;;  %v1533_v29 = vld [vmem:[%s2281_s12] sm:$0xff]  }
  0xe7   :  { %v1681_v31 = vpop.f32.mrf.mxu1 }
  0xe8   :  { %v183_v32 = vpop.f32.mrf.mxu0  ;;  %v301_v52 = vadd.f32 %v1681_v31, %v1661_v30  ;;  %v1538_v30 = vunpack.c.l.bf16 %v1550_v22 }
  0xe9   :  { %v292_v34 = vpop.f32.mrf.mxu1 }
  0xea   :  { %v293_v55 = vadd.f32 %v292_v34, %v183_v32 }
 0x102   :  { %v1700_v33 = vpop.f32.mrf.mxu0 }
 0x103   :  { %v1720_v36 = vpop.f32.mrf.mxu1  ;;  %v436_v49 = vadd.f32 %v1700_v33, %v298_v47 }
 0x104   :  { %v419_v35 = vpop.f32.mrf.mxu0 }
 0x105   :  { %v553_v38 = vpop.f32.mrf.mxu1  ;;  %v434_v53 = vadd.f32 %v419_v35, %v290_v48  ;;  %v570_v56 = vadd.f32 %v1720_v36, %v436_v49  ;;  %v1534_v36 = vunpack.c.l.bf16 %v1533_v29 }
 0x106   :  { %v1701_v37 = vpop.f32.mrf.mxu0 }
 0x107   :  { %v1721_v40 = vpop.f32.mrf.mxu1  ;;  %v437_v57 = vadd.f32 %v1701_v37, %v301_v52  ;;  %v568_v59 = vadd.f32 %v553_v38, %v434_v53 }
 0x108   :  { %v422_v39 = vpop.f32.mrf.mxu0 }
 0x109   :  { %v556_v42 = vpop.f32.mrf.mxu1  ;;  %v435_v60 = vadd.f32 %v422_v39, %v293_v55  ;;  %v571_v0 = vadd.f32 %v1721_v40, %v437_v57  ;;  %v1539_v40 = vunpack.c.h.bf16 %v1550_v22 }
 0x10b   :  { %v569_v2 = vadd.f32 %v556_v42, %v435_v60 }
 0x122   :  { %v1740_v41 = vpop.f32.mrf.mxu0 }
 0x123   :  { %v1760_v44 = vpop.f32.mrf.mxu1  ;;  %v704_v61 = vadd.f32 %v1740_v41, %v570_v56 }
 0x124   :  { %v687_v43 = vpop.f32.mrf.mxu0 }
 0x125   :  { %v821_v46 = vpop.f32.mrf.mxu1  ;;  %v702_v1 = vadd.f32 %v687_v43, %v568_v59  ;;  %v838_v3 = vadd.f32 %v1760_v44, %v704_v61 }
 0x126   :  { %v1741_v45 = vpop.f32.mrf.mxu0 }
 0x127   :  { %v1761_v51 = vpop.f32.mrf.mxu1  ;;  %v705_v4 = vadd.f32 %v1741_v45, %v571_v0  ;;  %v836_v7 = vadd.f32 %v821_v46, %v702_v1  ;;  %v1535_v45 = vunpack.c.h.bf16 %v1533_v29 }
 0x128   :  { %v690_v50 = vpop.f32.mrf.mxu0 }
 0x129   :  { %v824_v58 = vpop.f32.mrf.mxu1  ;;  %v703_v8 = vadd.f32 %v690_v50, %v569_v2  ;;  %v839_v10 = vadd.f32 %v1761_v51, %v705_v4 }
 0x12b   :  { %v837_v14 = vadd.f32 %v824_v58, %v703_v8 }
 0x142   :  { %v1780_v54 = vpop.f32.mrf.mxu0 }
 0x143   :  { %v1800_v63 = vpop.f32.mrf.mxu1  ;;  %v972_v9 = vadd.f32 %v1780_v54, %v838_v3 }
 0x144   :  { %v955_v62 = vpop.f32.mrf.mxu0 }
 0x145   :  { %v1089_v6 = vpop.f32.mrf.mxu1  ;;  %v970_v11 = vadd.f32 %v955_v62, %v836_v7  ;;  %v1106_v15 = vadd.f32 %v1800_v63, %v972_v9 }
 0x146   :  { %v1781_v5 = vpop.f32.mrf.mxu0 }
 0x147   :  { %v1801_v13 = vpop.f32.mrf.mxu1  ;;  %v973_v16 = vadd.f32 %v1781_v5, %v839_v10  ;;  %v1104_v19 = vadd.f32 %v1089_v6, %v970_v11 }
 0x148   :  { %v958_v12 = vpop.f32.mrf.mxu0 }
 0x149   :  { %v971_v20 = vadd.f32 %v958_v12, %v837_v14  ;;  %v1092_v23 = vpop.f32.mrf.mxu1  ;;  %v1107_v26 = vadd.f32 %v1801_v13, %v973_v16 }
 0x14b   :  { %v1105_v32 = vadd.f32 %v1092_v23, %v971_v20 }
 0x162   :  { %v1820_v17 = vpop.f32.mrf.mxu0 }
 0x163   :  { %v1240_v21 = vadd.f32 %v1820_v17, %v1106_v15 }
 0x164   :  { %v1223_v25 = vpop.f32.mrf.mxu0 }
 0x165   :  { %v1251_v27 = vmul.f32 %v1522_v18, %v1240_v21  ;;  %v1238_v28 = vadd.f32 %v1223_v25, %v1104_v19 }
 0x166   :  { %v1821_v31 = vpop.f32.mrf.mxu0 }
 0x167   :  { %v1262_v33 = vadd.f32 %v1523_v24, %v1251_v27  ;;  %v1249_v34 = vmul.f32 %v1522_v18, %v1238_v28  ;;  %v1241_v35 = vadd.f32 %v1821_v31, %v1107_v26 }
 0x168   :  { %v1226_v37 = vpop.f32.mrf.mxu0 }
 0x169   :  { %v1260_v38 = vadd.f32 %v1523_v24, %v1249_v34  ;;  %v1252_v39 = vmul.f32 %v1522_v18, %v1241_v35  ;;  %v1239_v41 = vadd.f32 %v1226_v37, %v1105_v32  ;;  %v1274_v42 = vadd.f32 %v1538_v30, %v1262_v33 }
 0x16b   :  { %v1263_v43 = vadd.f32 %v1523_v24, %v1252_v39  ;;  %v1250_v44 = vmul.f32 %v1522_v18, %v1239_v41  ;;  %v1272_v46 = vadd.f32 %v1534_v36, %v1260_v38  ;;  %v1278_v49 = vmax.f32 %v1274_v42, 0.0 }
 0x16d   :  { %v1275_v47 = vadd.f32 %v1539_v40, %v1263_v43  ;;  %v1261_v48 = vadd.f32 %v1523_v24, %v1250_v44  ;;  %v1276_v52 = vmax.f32 %v1272_v46, 0.0 }
 0x16f   :  { %v1279_v50 = vmax.f32 %v1275_v47, 0.0  ;;  %v1273_v51 = vadd.f32 %v1535_v45, %v1261_v48 }
 0x171   :  { %v1548_v53 = vpack.c.bf16 %v1279_v50, %v1278_v49  ;;  %v1277_v54 = vmax.f32 %v1273_v51, 0.0 }
 0x173   :  { %1551 = vst [vmem:[%s2283_s13 + $0x8] sm:$0xff] %v1548_v53   ;;  %v1543_v55 = vpack.c.bf16 %v1277_v54, %v1276_v52 }
 0x175   :  { %1544 = vst [vmem:[%s2283_s13] sm:$0xff] %v1543_v55  }

// kernel: colorization_net_forward.20
= control target key start
LH: loop header
LB: loop body
LE: loop exit
PB: predicated region body
PF: predicated region fallthrough
CT: control target
= control target key end

     0   :  { %s2510_s9 = inlined_call_operand.vmem [shape: bf16[9,128,128], index: 9, kind: input, shape index: {}]   ;;  %s2511_s1 = inlined_call_operand.vmem [shape: bf16[32,128], index: 1, kind: input, shape index: {}]   ;;  %s2512_s0 = inlined_call_operand.vmem [shape: bf16[32,128], index: 0, kind: input, shape index: {}]   ;;  %s2513_s2 = inlined_call_operand.vmem [shape: bf16[32,128], index: 2, kind: input, shape index: {}]   ;;  %s2514_s3 = inlined_call_operand.vmem [shape: bf16[32,128], index: 3, kind: input, shape index: {}]   ;;  %s2515_s4 = inlined_call_operand.vmem [shape: bf16[32,128], index: 4, kind: input, shape index: {}]   ;;  %s2516_s5 = inlined_call_operand.vmem [shape: bf16[32,128], index: 5, kind: input, shape index: {}]   ;;  %s2517_s6 = inlined_call_operand.vmem [shape: bf16[32,128], index: 6, kind: input, shape index: {}]   ;;  %s2518_s7 = inlined_call_operand.vmem [shape: bf16[32,128], index: 7, kind: input, shape index: {}]   ;;  %s2519_s13 = inlined_call_operand.vmem [shape: bf16[128,128], index: 13, kind: input, shape index: {}]   ;;  %s2520_s8 = inlined_call_operand.vmem [shape: bf16[32,128], index: 8, kind: input, shape index: {}]   ;;  %s2521_s12 = inlined_call_operand.vmem [shape: bf16[32,128], index: 12, kind: input, shape index: {}]   ;;  %s2522_s10 = inlined_call_operand.vmem [shape: f32[1,128], index: 10, kind: input, shape index: {}]   ;;  %s2523_s14 = inlined_call_operand.vmem [shape: f32[1,128], index: 14, kind: input, shape index: {}]   ;;  %s2524_s11 = inlined_call_operand.vmem [shape: f32[1,128], index: 11, kind: input, shape index: {}]   ;;  %s2525_s15 = inlined_call_operand.vmem [shape: f32[1,128], index: 15, kind: input, shape index: {}]   ;;  %s2526_s16 = inlined_call_operand.vmem [shape: bf16[32,128], index: 16, kind: output, shape index: {}]  }
   0x1   :  { %2528 = sst [smem:[#allocation2_spill]] %s2510_s9  ;;  %v2023_v12 = vld [vmem:[%s2511_s1] sm:$0xff]   ;;  %v2025_v20 = vld [vmem:[%s2511_s1 + $0x8] sm:$0xff]  }
   0x2   :  { %s2529_s23 = sld [smem:[#allocation2_spill]]  ;;  %v2024_v13 = vld [vmem:[%s2512_s0] sm:$0xff]   ;;  %1823 = vmatprep.mubr.bf16.mxu0 %v2023_v12  ;;  %v2026_v21 = vld [vmem:[%s2512_s0 + $0x8] sm:$0xff]  }
   0x3   :  { %1843 = vmatprep.mubr.bf16.mxu1 %v2024_v13  ;;  %v2043_v26 = vld [vmem:[%s2513_s2] sm:$0xff]   ;;  %v2045_v38 = vld [vmem:[%s2513_s2 + $0x8] sm:$0xff]  }
   0x4   :  { %v2044_v27 = vld [vmem:[%s2514_s3] sm:$0xff]   ;;  %v2046_v41 = vld [vmem:[%s2514_s3 + $0x8] sm:$0xff]  }
   0x5   :  { %v2063_v44 = vld [vmem:[%s2515_s4] sm:$0xff]   ;;  %v2065_v58 = vld [vmem:[%s2515_s4 + $0x8] sm:$0xff]  }
   0x6   :  { %v2064_v45 = vld [vmem:[%s2516_s5] sm:$0xff]   ;;  %v2066_v61 = vld [vmem:[%s2516_s5 + $0x8] sm:$0xff]  }
   0x8   :  { %v2007_v0 = vld [vmem:[%s2529_s23 + $0x78] sm:$0xff]   ;;  %v2009_v2 = vld [vmem:[%s2529_s23 + $0x70] sm:$0xff]   ;;  %v2011_v4 = vld [vmem:[%s2529_s23 + $0x68] sm:$0xff]  }
   0x9   :  { %v2008_v1 = vld [vmem:[%s2529_s23 + $0x38] sm:$0xff]   ;;  %1807 = vmatprep.subr.bf16.mxu0 %v2007_v0  ;;  %v2010_v3 = vld [vmem:[%s2529_s23 + $0x30] sm:$0xff]   ;;  %v2012_v5 = vld [vmem:[%s2529_s23 + $0x28] sm:$0xff]  }
   0xa   :  { %1827 = vmatprep.subr.bf16.mxu1 %v2008_v1  ;;  %1808 = vmatpush3.bf16.msra.mxu0 %v2007_v0  ;;  %v2013_v6 = vld [vmem:[%s2529_s23 + $0x60] sm:$0xff]   ;;  %v2015_v8 = vld [vmem:[%s2529_s23 + $0x58] sm:$0xff]   ;;  %v2017_v10 = vld [vmem:[%s2529_s23 + $0x50] sm:$0xff]  }
   0xb   :  { %1828 = vmatpush3.bf16.msra.mxu1 %v2008_v1  ;;  %1809 = vmatprep.subr.bf16.mxu0 %v2009_v2  ;;  %v2014_v7 = vld [vmem:[%s2529_s23 + $0x20] sm:$0xff]   ;;  %v2016_v9 = vld [vmem:[%s2529_s23 + $0x18] sm:$0xff]   ;;  %v2018_v11 = vld [vmem:[%s2529_s23 + $0x10] sm:$0xff]  }
   0xc   :  { %1829 = vmatprep.subr.bf16.mxu1 %v2010_v3  ;;  %v2019_v14 = vld [vmem:[%s2529_s23 + $0x48] sm:$0xff]   ;;  %v2021_v16 = vld [vmem:[%s2529_s23 + $0x40] sm:$0xff]   ;;  %v2027_v18 = vld [vmem:[%s2529_s23 + $0xb8] sm:$0xff]  }
   0xd   :  { %v2020_v15 = vld [vmem:[%s2529_s23 + $0x8] sm:$0xff]   ;;  %v2022_v17 = vld [vmem:[%s2529_s23] sm:$0xff]   ;;  %v2028_v19 = vld [vmem:[%s2529_s23 + $0xf8] sm:$0xff]  }
   0xe   :  { %1810 = vmatpush3.bf16.msra.mxu0 %v2009_v2  ;;  %v2029_v22 = vld [vmem:[%s2529_s23 + $0xb0] sm:$0xff]   ;;  %v2031_v24 = vld [vmem:[%s2529_s23 + $0xa8] sm:$0xff]   ;;  %v2033_v28 = vld [vmem:[%s2529_s23 + $0xa0] sm:$0xff]  }
   0xf   :  { %1830 = vmatpush3.bf16.msra.mxu1 %v2010_v3  ;;  %1811 = vmatprep.subr.bf16.mxu0 %v2011_v4  ;;  %v2030_v23 = vld [vmem:[%s2529_s23 + $0xf0] sm:$0xff]   ;;  %v2032_v25 = vld [vmem:[%s2529_s23 + $0xe8] sm:$0xff]   ;;  %v2034_v29 = vld [vmem:[%s2529_s23 + $0xe0] sm:$0xff]  }
  0x10   :  { %1831 = vmatprep.subr.bf16.mxu1 %v2012_v5  ;;  %v2035_v30 = vld [vmem:[%s2529_s23 + $0x98] sm:$0xff]   ;;  %v2037_v32 = vld [vmem:[%s2529_s23 + $0x90] sm:$0xff]   ;;  %v2039_v34 = vld [vmem:[%s2529_s23 + $0x88] sm:$0xff]  }
  0x11   :  { %v2036_v31 = vld [vmem:[%s2529_s23 + $0xd8] sm:$0xff]   ;;  %v2038_v33 = vld [vmem:[%s2529_s23 + $0xd0] sm:$0xff]   ;;  %v2040_v35 = vld [vmem:[%s2529_s23 + $0xc8] sm:$0xff]  }
  0x12   :  { %1812 = vmatpush3.bf16.msra.mxu0 %v2011_v4  ;;  %v2041_v36 = vld [vmem:[%s2529_s23 + $0x80] sm:$0xff]   ;;  %v2047_v39 = vld [vmem:[%s2529_s23 + $0x138] sm:$0xff]   ;;  %v2049_v42 = vld [vmem:[%s2529_s23 + $0x130] sm:$0xff]  }
  0x13   :  { %1832 = vmatpush3.bf16.msra.mxu1 %v2012_v5  ;;  %1813 = vmatprep.subr.bf16.mxu0 %v2013_v6  ;;  %v2042_v37 = vld [vmem:[%s2529_s23 + $0xc0] sm:$0xff]   ;;  %v2048_v40 = vld [vmem:[%s2529_s23 + $0x178] sm:$0xff]   ;;  %v2050_v43 = vld [vmem:[%s2529_s23 + $0x170] sm:$0xff]  }
  0x14   :  { %1833 = vmatprep.subr.bf16.mxu1 %v2014_v7  ;;  %v2051_v46 = vld [vmem:[%s2529_s23 + $0x128] sm:$0xff]   ;;  %v2053_v48 = vld [vmem:[%s2529_s23 + $0x120] sm:$0xff]   ;;  %v2055_v50 = vld [vmem:[%s2529_s23 + $0x118] sm:$0xff]  }
  0x15   :  { %v2052_v47 = vld [vmem:[%s2529_s23 + $0x168] sm:$0xff]   ;;  %v2054_v49 = vld [vmem:[%s2529_s23 + $0x160] sm:$0xff]   ;;  %v2056_v51 = vld [vmem:[%s2529_s23 + $0x158] sm:$0xff]  }
  0x16   :  { %1814 = vmatpush3.bf16.msra.mxu0 %v2013_v6  ;;  %v2057_v52 = vld [vmem:[%s2529_s23 + $0x110] sm:$0xff]   ;;  %v2059_v54 = vld [vmem:[%s2529_s23 + $0x108] sm:$0xff]   ;;  %v2061_v56 = vld [vmem:[%s2529_s23 + $0x100] sm:$0xff]  }
  0x17   :  { %1834 = vmatpush3.bf16.msra.mxu1 %v2014_v7  ;;  %1815 = vmatprep.subr.bf16.mxu0 %v2015_v8  ;;  %v2058_v53 = vld [vmem:[%s2529_s23 + $0x150] sm:$0xff]   ;;  %v2060_v55 = vld [vmem:[%s2529_s23 + $0x148] sm:$0xff]   ;;  %v2062_v57 = vld [vmem:[%s2529_s23 + $0x140] sm:$0xff]  }
  0x18   :  { %1835 = vmatprep.subr.bf16.mxu1 %v2016_v9  ;;  %v2067_v59 = vld [vmem:[%s2529_s23 + $0x1b8] sm:$0xff]   ;;  %v2069_v62 = vld [vmem:[%s2529_s23 + $0x1b0] sm:$0xff]   ;;  %v2083_v0 = vld [vmem:[%s2517_s6] sm:$0xff]  }
  0x19   :  { %v2068_v60 = vld [vmem:[%s2529_s23 + $0x1f8] sm:$0xff]   ;;  %v2070_v63 = vld [vmem:[%s2529_s23 + $0x1f0] sm:$0xff]   ;;  %v2084_v1 = vld [vmem:[%s2518_s7] sm:$0xff]  }
  0x1a   :  { %1816 = vmatpush3.bf16.msra.mxu0 %v2015_v8  ;;  %v2071_v2 = vld [vmem:[%s2529_s23 + $0x1a8] sm:$0xff]   ;;  %v2073_v4 = vld [vmem:[%s2529_s23 + $0x1a0] sm:$0xff]   ;;  %v2075_v6 = vld [vmem:[%s2529_s23 + $0x198] sm:$0xff]  }
  0x1b   :  { %1836 = vmatpush3.bf16.msra.mxu1 %v2016_v9  ;;  %1817 = vmatprep.subr.bf16.mxu0 %v2017_v10  ;;  %v2072_v3 = vld [vmem:[%s2529_s23 + $0x1e8] sm:$0xff]   ;;  %v2074_v5 = vld [vmem:[%s2529_s23 + $0x1e0] sm:$0xff]   ;;  %v2076_v7 = vld [vmem:[%s2529_s23 + $0x1d8] sm:$0xff]  }
  0x1c   :  { %1837 = vmatprep.subr.bf16.mxu1 %v2018_v11  ;;  %v2077_v8 = vld [vmem:[%s2529_s23 + $0x190] sm:$0xff]   ;;  %v2081_v12 = vld [vmem:[%s2529_s23 + $0x180] sm:$0xff]  }
  0x1d   :  { %v2078_v9 = vld [vmem:[%s2529_s23 + $0x1d0] sm:$0xff]   ;;  %v2082_v13 = vld [vmem:[%s2529_s23 + $0x1c0] sm:$0xff]  }
  0x1e   :  { %1818 = vmatpush3.bf16.msra.mxu0 %v2017_v10  ;;  %v2079_v10 = vld [vmem:[%s2529_s23 + $0x188] sm:$0xff]  }
  0x1f   :  { %1838 = vmatpush3.bf16.msra.mxu1 %v2018_v11  ;;  %1819 = vmatprep.subr.bf16.mxu0 %v2019_v14  ;;  %v2080_v11 = vld [vmem:[%s2529_s23 + $0x1c8] sm:$0xff]  }
  0x20   :  { %1839 = vmatprep.subr.bf16.mxu1 %v2020_v15 }
  0x22   :  { %1820 = vmatpush3.bf16.msra.mxu0 %v2019_v14  ;;  %v2087_v14 = vld [vmem:[%s2529_s23 + $0x238] sm:$0xff]  }
  0x23   :  { %1840 = vmatpush3.bf16.msra.mxu1 %v2020_v15  ;;  %1821 = vmatprep.subr.bf16.mxu0 %v2021_v16  ;;  %v2088_v15 = vld [vmem:[%s2519_s13 + $0x38] sm:$0xff]  }
  0x24   :  { %1841 = vmatprep.subr.bf16.mxu1 %v2022_v17 }
  0x26   :  { %1822 = vmatpush3.bf16.msra.mxu0 %v2021_v16  ;;  %v2085_v16 = vld [vmem:[%s2517_s6 + $0x8] sm:$0xff]  }
  0x27   :  { %1842 = vmatpush3.bf16.msra.mxu1 %v2022_v17  ;;  %1847 = vmatprep.subr.bf16.mxu0 %v2027_v18  ;;  %v2086_v17 = vld [vmem:[%s2518_s7 + $0x8] sm:$0xff]  }
  0x28   :  { %1867 = vmatprep.subr.bf16.mxu1 %v2028_v19 }
  0x29   :  { %1824 = vmatmul.mubr.bf16.vlgmr.msra.gmra.mxu0 %v2025_v20  ;;  %v2103_v20 = vld [vmem:[%s2520_s8] sm:$0xff]  }
  0x2a   :  { %1844 = vmatmul.mubr.bf16.vlgmr.msra.gmra.mxu1 %v2026_v21  ;;  %1848 = vmatpush3.bf16.msra.mxu0 %v2027_v18  ;;  %v2089_v18 = vld [vmem:[%s2529_s23 + $0x230] sm:$0xff]   ;;  %v2104_v21 = vld [vmem:[%s2521_s12] sm:$0xff]  }
  0x2b   :  { %1868 = vmatpush3.bf16.msra.mxu1 %v2028_v19  ;;  %1849 = vmatprep.subr.bf16.mxu0 %v2029_v22  ;;  %v2090_v19 = vld [vmem:[%s2519_s13 + $0x30] sm:$0xff]  }
  0x2c   :  { %1869 = vmatprep.subr.bf16.mxu1 %v2030_v23  ;;  %1863 = vmatprep.mubr.bf16.mxu0 %v2043_v26  ;;  %v2095_v26 = vld [vmem:[%s2529_s23 + $0x218] sm:$0xff]  }
  0x2d   :  { %1883 = vmatprep.mubr.bf16.mxu1 %v2044_v27  ;;  %v2096_v27 = vld [vmem:[%s2519_s13 + $0x18] sm:$0xff]  }
  0x2e   :  { %1850 = vmatpush3.bf16.msra.mxu0 %v2029_v22  ;;  %v2091_v22 = vld [vmem:[%s2529_s23 + $0x228] sm:$0xff]  }
  0x2f   :  { %1870 = vmatpush3.bf16.msra.mxu1 %v2030_v23  ;;  %1851 = vmatprep.subr.bf16.mxu0 %v2031_v24  ;;  %v2092_v23 = vld [vmem:[%s2519_s13 + $0x28] sm:$0xff]  }
  0x30   :  { %1871 = vmatprep.subr.bf16.mxu1 %v2032_v25 }
  0x32   :  { %1852 = vmatpush3.bf16.msra.mxu0 %v2031_v24  ;;  %v2093_v24 = vld [vmem:[%s2529_s23 + $0x220] sm:$0xff]  }
  0x33   :  { %1872 = vmatpush3.bf16.msra.mxu1 %v2032_v25  ;;  %1853 = vmatprep.subr.bf16.mxu0 %v2033_v28  ;;  %v2094_v25 = vld [vmem:[%s2519_s13 + $0x20] sm:$0xff]  }
  0x34   :  { %1873 = vmatprep.subr.bf16.mxu1 %v2034_v29 }
  0x36   :  { %1854 = vmatpush3.bf16.msra.mxu0 %v2033_v28  ;;  %v2097_v28 = vld [vmem:[%s2529_s23 + $0x210] sm:$0xff]  }
  0x37   :  { %1874 = vmatpush3.bf16.msra.mxu1 %v2034_v29  ;;  %1855 = vmatprep.subr.bf16.mxu0 %v2035_v30  ;;  %v2098_v29 = vld [vmem:[%s2519_s13 + $0x10] sm:$0xff]  }
  0x38   :  { %1875 = vmatprep.subr.bf16.mxu1 %v2036_v31 }
  0x3a   :  { %1856 = vmatpush3.bf16.msra.mxu0 %v2035_v30  ;;  %v2099_v30 = vld [vmem:[%s2529_s23 + $0x208] sm:$0xff]  }
  0x3b   :  { %1876 = vmatpush3.bf16.msra.mxu1 %v2036_v31  ;;  %1857 = vmatprep.subr.bf16.mxu0 %v2037_v32  ;;  %v2100_v31 = vld [vmem:[%s2519_s13 + $0x8] sm:$0xff]  }
  0x3c   :  { %1877 = vmatprep.subr.bf16.mxu1 %v2038_v33 }
  0x3e   :  { %1858 = vmatpush3.bf16.msra.mxu0 %v2037_v32  ;;  %v2101_v32 = vld [vmem:[%s2529_s23 + $0x200] sm:$0xff]  }
  0x3f   :  { %1878 = vmatpush3.bf16.msra.mxu1 %v2038_v33  ;;  %1859 = vmatprep.subr.bf16.mxu0 %v2039_v34  ;;  %v2102_v33 = vld [vmem:[%s2519_s13] sm:$0xff]  }
  0x40   :  { %1879 = vmatprep.subr.bf16.mxu1 %v2040_v35 }
  0x42   :  { %1860 = vmatpush3.bf16.msra.mxu0 %v2039_v34  ;;  %v2105_v34 = vld [vmem:[%s2520_s8 + $0x8] sm:$0xff]  }
  0x43   :  { %1880 = vmatpush3.bf16.msra.mxu1 %v2040_v35  ;;  %1861 = vmatprep.subr.bf16.mxu0 %v2041_v36  ;;  %v2106_v35 = vld [vmem:[%s2521_s12 + $0x8] sm:$0xff]  }
  0x44   :  { %1881 = vmatprep.subr.bf16.mxu1 %v2042_v37 }
  0x46   :  { %1862 = vmatpush3.bf16.msra.mxu0 %v2041_v36 }
  0x47   :  { %1882 = vmatpush3.bf16.msra.mxu1 %v2042_v37  ;;  %1887 = vmatprep.subr.bf16.mxu0 %v2047_v39 }
  0x48   :  { %1907 = vmatprep.subr.bf16.mxu1 %v2048_v40 }
  0x49   :  { %1864 = vmatmul.mubr.bf16.vlgmr.msra.gmra.mxu0 %v2045_v38 }
  0x4a   :  { %1884 = vmatmul.mubr.bf16.vlgmr.msra.gmra.mxu1 %v2046_v41  ;;  %1888 = vmatpush3.bf16.msra.mxu0 %v2047_v39 }
  0x4b   :  { %1908 = vmatpush3.bf16.msra.mxu1 %v2048_v40  ;;  %1889 = vmatprep.subr.bf16.mxu0 %v2049_v42 }
  0x4c   :  { %1909 = vmatprep.subr.bf16.mxu1 %v2050_v43  ;;  %1903 = vmatprep.mubr.bf16.mxu0 %v2063_v44 }
  0x4d   :  { %1923 = vmatprep.mubr.bf16.mxu1 %v2064_v45 }
  0x4e   :  { %1890 = vmatpush3.bf16.msra.mxu0 %v2049_v42 }
  0x4f   :  { %1910 = vmatpush3.bf16.msra.mxu1 %v2050_v43  ;;  %1891 = vmatprep.subr.bf16.mxu0 %v2051_v46 }
  0x50   :  { %1911 = vmatprep.subr.bf16.mxu1 %v2052_v47 }
  0x52   :  { %1892 = vmatpush3.bf16.msra.mxu0 %v2051_v46 }
  0x53   :  { %1912 = vmatpush3.bf16.msra.mxu1 %v2052_v47  ;;  %1893 = vmatprep.subr.bf16.mxu0 %v2053_v48 }
  0x54   :  { %1913 = vmatprep.subr.bf16.mxu1 %v2054_v49 }
  0x56   :  { %1894 = vmatpush3.bf16.msra.mxu0 %v2053_v48 }
  0x57   :  { %1914 = vmatpush3.bf16.msra.mxu1 %v2054_v49  ;;  %1895 = vmatprep.subr.bf16.mxu0 %v2055_v50 }
  0x58   :  { %1915 = vmatprep.subr.bf16.mxu1 %v2056_v51 }
  0x5a   :  { %1896 = vmatpush3.bf16.msra.mxu0 %v2055_v50 }
  0x5b   :  { %1916 = vmatpush3.bf16.msra.mxu1 %v2056_v51  ;;  %1897 = vmatprep.subr.bf16.mxu0 %v2057_v52 }
  0x5c   :  { %1917 = vmatprep.subr.bf16.mxu1 %v2058_v53 }
  0x5e   :  { %1898 = vmatpush3.bf16.msra.mxu0 %v2057_v52 }
  0x5f   :  { %1918 = vmatpush3.bf16.msra.mxu1 %v2058_v53  ;;  %1899 = vmatprep.subr.bf16.mxu0 %v2059_v54 }
  0x60   :  { %1919 = vmatprep.subr.bf16.mxu1 %v2060_v55 }
  0x62   :  { %1900 = vmatpush3.bf16.msra.mxu0 %v2059_v54 }
  0x63   :  { %1920 = vmatpush3.bf16.msra.mxu1 %v2060_v55  ;;  %1901 = vmatprep.subr.bf16.mxu0 %v2061_v56 }
  0x64   :  { %1921 = vmatprep.subr.bf16.mxu1 %v2062_v57 }
  0x66   :  { %1902 = vmatpush3.bf16.msra.mxu0 %v2061_v56 }
  0x67   :  { %1922 = vmatpush3.bf16.msra.mxu1 %v2062_v57  ;;  %1927 = vmatprep.subr.bf16.mxu0 %v2067_v59 }
  0x68   :  { %1947 = vmatprep.subr.bf16.mxu1 %v2068_v60 }
  0x69   :  { %1904 = vmatmul.mubr.bf16.vlgmr.msra.gmra.mxu0 %v2065_v58 }
  0x6a   :  { %1924 = vmatmul.mubr.bf16.vlgmr.msra.gmra.mxu1 %v2066_v61  ;;  %1928 = vmatpush3.bf16.msra.mxu0 %v2067_v59 }
  0x6b   :  { %1948 = vmatpush3.bf16.msra.mxu1 %v2068_v60  ;;  %1929 = vmatprep.subr.bf16.mxu0 %v2069_v62 }
  0x6c   :  { %1949 = vmatprep.subr.bf16.mxu1 %v2070_v63  ;;  %1943 = vmatprep.mubr.bf16.mxu0 %v2083_v0 }
  0x6d   :  { %1963 = vmatprep.mubr.bf16.mxu1 %v2084_v1 }
  0x6e   :  { %1930 = vmatpush3.bf16.msra.mxu0 %v2069_v62 }
  0x6f   :  { %1950 = vmatpush3.bf16.msra.mxu1 %v2070_v63  ;;  %1931 = vmatprep.subr.bf16.mxu0 %v2071_v2 }
  0x70   :  { %1951 = vmatprep.subr.bf16.mxu1 %v2072_v3 }
  0x72   :  { %1932 = vmatpush3.bf16.msra.mxu0 %v2071_v2 }
  0x73   :  { %1952 = vmatpush3.bf16.msra.mxu1 %v2072_v3  ;;  %1933 = vmatprep.subr.bf16.mxu0 %v2073_v4 }
  0x74   :  { %1953 = vmatprep.subr.bf16.mxu1 %v2074_v5 }
  0x76   :  { %1934 = vmatpush3.bf16.msra.mxu0 %v2073_v4 }
  0x77   :  { %1954 = vmatpush3.bf16.msra.mxu1 %v2074_v5  ;;  %1935 = vmatprep.subr.bf16.mxu0 %v2075_v6 }
  0x78   :  { %1955 = vmatprep.subr.bf16.mxu1 %v2076_v7 }
  0x7a   :  { %1936 = vmatpush3.bf16.msra.mxu0 %v2075_v6 }
  0x7b   :  { %1956 = vmatpush3.bf16.msra.mxu1 %v2076_v7  ;;  %1937 = vmatprep.subr.bf16.mxu0 %v2077_v8 }
  0x7c   :  { %1957 = vmatprep.subr.bf16.mxu1 %v2078_v9 }
  0x7e   :  { %1938 = vmatpush3.bf16.msra.mxu0 %v2077_v8 }
  0x7f   :  { %1958 = vmatpush3.bf16.msra.mxu1 %v2078_v9  ;;  %1939 = vmatprep.subr.bf16.mxu0 %v2079_v10 }
  0x80   :  { %1959 = vmatprep.subr.bf16.mxu1 %v2080_v11 }
  0x82   :  { %1940 = vmatpush3.bf16.msra.mxu0 %v2079_v10 }
  0x83   :  { %1960 = vmatpush3.bf16.msra.mxu1 %v2080_v11  ;;  %1941 = vmatprep.subr.bf16.mxu0 %v2081_v12 }
  0x84   :  { %1961 = vmatprep.subr.bf16.mxu1 %v2082_v13 }
  0x86   :  { %1942 = vmatpush3.bf16.msra.mxu0 %v2081_v12 }
  0x87   :  { %1962 = vmatpush3.bf16.msra.mxu1 %v2082_v13  ;;  %1967 = vmatprep.subr.bf16.mxu0 %v2087_v14 }
  0x88   :  { %1987 = vmatprep.subr.bf16.mxu1 %v2088_v15 }
  0x89   :  { %1944 = vmatmul.mubr.bf16.vlgmr.msra.gmra.mxu0 %v2085_v16 }
  0x8a   :  { %1964 = vmatmul.mubr.bf16.vlgmr.msra.gmra.mxu1 %v2086_v17  ;;  %1968 = vmatpush3.bf16.msra.mxu0 %v2087_v14 }
  0x8b   :  { %1988 = vmatpush3.bf16.msra.mxu1 %v2088_v15  ;;  %1969 = vmatprep.subr.bf16.mxu0 %v2089_v18 }
  0x8c   :  { %1989 = vmatprep.subr.bf16.mxu1 %v2090_v19  ;;  %1983 = vmatprep.mubr.bf16.mxu0 %v2103_v20 }
  0x8d   :  { %2003 = vmatprep.mubr.bf16.mxu1 %v2104_v21 }
  0x8e   :  { %1970 = vmatpush3.bf16.msra.mxu0 %v2089_v18 }
  0x8f   :  { %1990 = vmatpush3.bf16.msra.mxu1 %v2090_v19  ;;  %1971 = vmatprep.subr.bf16.mxu0 %v2091_v22 }
  0x90   :  { %1991 = vmatprep.subr.bf16.mxu1 %v2092_v23 }
  0x92   :  { %1972 = vmatpush3.bf16.msra.mxu0 %v2091_v22 }
  0x93   :  { %1992 = vmatpush3.bf16.msra.mxu1 %v2092_v23  ;;  %1973 = vmatprep.subr.bf16.mxu0 %v2093_v24 }
  0x94   :  { %1993 = vmatprep.subr.bf16.mxu1 %v2094_v25 }
  0x96   :  { %1974 = vmatpush3.bf16.msra.mxu0 %v2093_v24 }
  0x97   :  { %1994 = vmatpush3.bf16.msra.mxu1 %v2094_v25  ;;  %1975 = vmatprep.subr.bf16.mxu0 %v2095_v26 }
  0x98   :  { %1995 = vmatprep.subr.bf16.mxu1 %v2096_v27 }
  0x9a   :  { %1976 = vmatpush3.bf16.msra.mxu0 %v2095_v26 }
  0x9b   :  { %1996 = vmatpush3.bf16.msra.mxu1 %v2096_v27  ;;  %1977 = vmatprep.subr.bf16.mxu0 %v2097_v28 }
  0x9c   :  { %1997 = vmatprep.subr.bf16.mxu1 %v2098_v29 }
  0x9e   :  { %1978 = vmatpush3.bf16.msra.mxu0 %v2097_v28 }
  0x9f   :  { %1998 = vmatpush3.bf16.msra.mxu1 %v2098_v29  ;;  %1979 = vmatprep.subr.bf16.mxu0 %v2099_v30  ;;  %v1674_v29 = vld [vmem:[%s2522_s10] ss:$0 sm:$0xff] }
  0xa0   :  { %1999 = vmatprep.subr.bf16.mxu1 %v2100_v31 }
  0xa2   :  { %1980 = vmatpush3.bf16.msra.mxu0 %v2099_v30  ;;  %v1686_v30 = vld [vmem:[%s2523_s14] ss:$0 sm:$0xff] }
  0xa3   :  { %2000 = vmatpush3.bf16.msra.mxu1 %v2100_v31  ;;  %1981 = vmatprep.subr.bf16.mxu0 %v2101_v32 }
  0xa4   :  { %2001 = vmatprep.subr.bf16.mxu1 %v2102_v33 }
  0xa6   :  { %1982 = vmatpush3.bf16.msra.mxu0 %v2101_v32 }
  0xa7   :  { %2002 = vmatpush3.bf16.msra.mxu1 %v2102_v33 }
  0xa9   :  { %1984 = vmatmul.mubr.bf16.vlgmr.msra.gmra.mxu0 %v2105_v34 }
  0xaa   :  { %2004 = vmatmul.mubr.bf16.vlgmr.msra.gmra.mxu1 %v2106_v35  ;;  %v1675_v35 = vld [vmem:[%s2524_s11] ss:$0 sm:$0xff] }
  0xe9   :  { %v1825_v36 = vpop.f32.mrf.mxu0 }
  0xea   :  { %v1845_v37 = vpop.f32.mrf.mxu1 }
  0xeb   :  { %v189_v38 = vpop.f32.mrf.mxu0  ;;  %v307_v57 = vadd.f32 %v1845_v37, %v1825_v36 }
  0xec   :  { %v298_v39 = vpop.f32.mrf.mxu1 }
  0xed   :  { %v1826_v40 = vpop.f32.mrf.mxu0  ;;  %v299_v59 = vadd.f32 %v298_v39, %v189_v38 }
  0xee   :  { %v1846_v41 = vpop.f32.mrf.mxu1 }
  0xef   :  { %v192_v42 = vpop.f32.mrf.mxu0  ;;  %v310_v62 = vadd.f32 %v1846_v41, %v1826_v40 }
  0xf0   :  { %v301_v43 = vpop.f32.mrf.mxu1 }
  0xf1   :  { %v302_v2 = vadd.f32 %v301_v43, %v192_v42 }
 0x109   :  { %v1865_v44 = vpop.f32.mrf.mxu0 }
 0x10a   :  { %v1885_v45 = vpop.f32.mrf.mxu1  ;;  %v445_v60 = vadd.f32 %v1865_v44, %v307_v57 }
 0x10b   :  { %v428_v46 = vpop.f32.mrf.mxu0 }
 0x10c   :  { %v562_v47 = vpop.f32.mrf.mxu1  ;;  %v443_v63 = vadd.f32 %v428_v46, %v299_v59  ;;  %v579_v3 = vadd.f32 %v1885_v45, %v445_v60 }
 0x10d   :  { %v1866_v48 = vpop.f32.mrf.mxu0 }
 0x10e   :  { %v1886_v49 = vpop.f32.mrf.mxu1  ;;  %v446_v4 = vadd.f32 %v1866_v48, %v310_v62  ;;  %v577_v6 = vadd.f32 %v562_v47, %v443_v63 }
 0x10f   :  { %v431_v50 = vpop.f32.mrf.mxu0 }
 0x110   :  { %v565_v51 = vpop.f32.mrf.mxu1  ;;  %v444_v7 = vadd.f32 %v431_v50, %v302_v2  ;;  %v580_v10 = vadd.f32 %v1886_v49, %v446_v4 }
 0x112   :  { %v578_v13 = vadd.f32 %v565_v51, %v444_v7 }
 0x129   :  { %v1905_v52 = vpop.f32.mrf.mxu0 }
 0x12a   :  { %v1925_v53 = vpop.f32.mrf.mxu1  ;;  %v713_v8 = vadd.f32 %v1905_v52, %v579_v3 }
 0x12b   :  { %v696_v54 = vpop.f32.mrf.mxu0 }
 0x12c   :  { %v830_v55 = vpop.f32.mrf.mxu1  ;;  %v711_v11 = vadd.f32 %v696_v54, %v577_v6  ;;  %v847_v14 = vadd.f32 %v1925_v53, %v713_v8  ;;  %v1687_v54 = vld [vmem:[%s2525_s15] ss:$0 sm:$0xff] }
 0x12d   :  { %v1906_v56 = vpop.f32.mrf.mxu0 }
 0x12e   :  { %v1926_v58 = vpop.f32.mrf.mxu1  ;;  %v714_v15 = vadd.f32 %v1906_v56, %v580_v10  ;;  %v845_v17 = vadd.f32 %v830_v55, %v711_v11 }
 0x12f   :  { %v699_v61 = vpop.f32.mrf.mxu0 }
 0x130   :  { %v833_v0 = vpop.f32.mrf.mxu1  ;;  %v712_v18 = vadd.f32 %v699_v61, %v578_v13  ;;  %v848_v21 = vadd.f32 %v1926_v58, %v714_v15 }
 0x132   :  { %v846_v24 = vadd.f32 %v833_v0, %v712_v18 }
 0x149   :  { %v1945_v1 = vpop.f32.mrf.mxu0 }
 0x14a   :  { %v1965_v5 = vpop.f32.mrf.mxu1  ;;  %v981_v19 = vadd.f32 %v1945_v1, %v847_v14 }
 0x14b   :  { %v964_v9 = vpop.f32.mrf.mxu0 }
 0x14c   :  { %v1098_v12 = vpop.f32.mrf.mxu1  ;;  %v979_v22 = vadd.f32 %v964_v9, %v845_v17  ;;  %v1115_v25 = vadd.f32 %v1965_v5, %v981_v19 }
 0x14d   :  { %v1946_v16 = vpop.f32.mrf.mxu0 }
 0x14e   :  { %v1966_v20 = vpop.f32.mrf.mxu1  ;;  %v982_v26 = vadd.f32 %v1946_v16, %v848_v21  ;;  %v1113_v31 = vadd.f32 %v1098_v12, %v979_v22 }
 0x14f   :  { %v967_v23 = vpop.f32.mrf.mxu0 }
 0x150   :  { %v1101_v27 = vpop.f32.mrf.mxu1  ;;  %v980_v32 = vadd.f32 %v967_v23, %v846_v24  ;;  %v1116_v37 = vadd.f32 %v1966_v20, %v982_v26 }
 0x152   :  { %v1114_v43 = vadd.f32 %v1101_v27, %v980_v32 }
 0x169   :  { %v1985_v28 = vpop.f32.mrf.mxu0 }
 0x16a   :  { %v1249_v33 = vadd.f32 %v1985_v28, %v1115_v25  ;;  %v2005_v34 = vpop.f32.mrf.mxu1 }
 0x16b   :  { %v1232_v36 = vpop.f32.mrf.mxu0  ;;  %v1411_v39 = vmul.f32 %v2005_v34, %v1686_v30 }
 0x16c   :  { %v1260_v38 = vmul.f32 %v1674_v29, %v1249_v33  ;;  %v1247_v40 = vadd.f32 %v1232_v36, %v1113_v31  ;;  %v1387_v41 = vpop.f32.mrf.mxu1 }
 0x16d   :  { %v1986_v42 = vpop.f32.mrf.mxu0  ;;  %v1409_v48 = vmul.f32 %v1686_v30, %v1387_v41 }
 0x16e   :  { %v1271_v44 = vadd.f32 %v1675_v35, %v1260_v38  ;;  %v1258_v45 = vmul.f32 %v1674_v29, %v1247_v40  ;;  %v1250_v46 = vadd.f32 %v1986_v42, %v1116_v37  ;;  %v2006_v47 = vpop.f32.mrf.mxu1 }
 0x16f   :  { %v1235_v49 = vpop.f32.mrf.mxu0  ;;  %v1412_v58 = vmul.f32 %v2006_v47, %v1686_v30 }
 0x170   :  { %v1415_v50 = vadd.f32 %v1411_v39, %v1271_v44  ;;  %v1269_v51 = vadd.f32 %v1675_v35, %v1258_v45  ;;  %v1261_v52 = vmul.f32 %v1674_v29, %v1250_v46  ;;  %v1248_v53 = vadd.f32 %v1235_v49, %v1114_v43  ;;  %v1390_v55 = vpop.f32.mrf.mxu1 }
 0x171   :  { %v1410_v63 = vmul.f32 %v1686_v30, %v1390_v55 }
 0x172   :  { %v1413_v56 = vadd.f32 %v1409_v48, %v1269_v51  ;;  %v1272_v57 = vadd.f32 %v1675_v35, %v1261_v52  ;;  %v1259_v59 = vmul.f32 %v1674_v29, %v1248_v53  ;;  %v1426_v60 = vadd.f32 %v1687_v54, %v1415_v50 }
 0x174   :  { %v1416_v61 = vadd.f32 %v1412_v58, %v1272_v57  ;;  %v1270_v62 = vadd.f32 %v1675_v35, %v1259_v59  ;;  %v1424_v0 = vadd.f32 %v1687_v54, %v1413_v56  ;;  %v1430_v3 = vmax.f32 %v1426_v60, 0.0 }
 0x176   :  { %v1427_v1 = vadd.f32 %v1687_v54, %v1416_v61  ;;  %v1414_v2 = vadd.f32 %v1410_v63, %v1270_v62  ;;  %v1428_v6 = vmax.f32 %v1424_v0, 0.0 }
 0x178   :  { %v1431_v4 = vmax.f32 %v1427_v1, 0.0  ;;  %v1425_v5 = vadd.f32 %v1687_v54, %v1414_v2 }
 0x17a   :  { %v1704_v7 = vpack.c.bf16 %v1431_v4, %v1430_v3  ;;  %v1429_v8 = vmax.f32 %v1425_v5, 0.0 }
 0x17c   :  { %1706 = vst [vmem:[%s2526_s16 + $0x8] sm:$0xff] %v1704_v7   ;;  %v1699_v9 = vpack.c.bf16 %v1429_v8, %v1428_v6 }
 0x17e   :  { %1700 = vst [vmem:[%s2526_s16] sm:$0xff] %v1699_v9  }

// kernel: colorization_net_forward.24
= control target key start
LH: loop header
LB: loop body
LE: loop exit
PB: predicated region body
PF: predicated region fallthrough
CT: control target
= control target key end

     0   :  { %s1060_s15 = smov 0   ;;  %s1295_s0 = inlined_call_operand.vmem [shape: bf16[128,128], index: 0, kind: input, shape index: {}]   ;;  %s1296_s1 = inlined_call_operand.vmem [shape: bf16[1,128,512], index: 1, kind: input, shape index: {}]   ;;  %s1297_s2 = inlined_call_operand.vmem [shape: f32[1,512], index: 2, kind: input, shape index: {}]   ;;  %s1298_s3 = inlined_call_operand.vmem [shape: f32[1,512], index: 3, kind: input, shape index: {}]   ;;  %s1299_s4 = inlined_call_operand.vmem [shape: bf16[128,512], index: 4, kind: output, shape index: {}]  }
   0x1 LB: > { %s884_s16 = sadd.s32 4294967295, %s1032_s15   ;;  %p888_p0 = scmp.ge.s32.totalorder %s1032_s15, 1  ;;  %s1032_s15 = sphi %s1060_s15, %s14_s15  }
   0x2   : > { %p163_p1 = scmp.lt.s32.totalorder %s1032_s15, 3 }
   0x4   : > { %p164_p2 = pnand %p888_p0, %p163_p1 }
   0x5   : > { %s889_s9 = sshll.u32 (!%p164_p2), %s884_s16, 3 }
   0x6   : > { %167 = sbr.rel (%p164_p2) target bundleno = 277 (0x115), region = 36  ;;  %p191_p3 = scmp.lt.s32.totalorder (!%p164_p2), %s889_s9, 15 }
   0xb   : > { %v974_v0 = vld [vmem:[%s1296_s1 + $0xe4] ss:$16 sps:$4 sm:$0xff]   ;;  %v976_v1 = vld [vmem:[%s1296_s1 + $0xec] ss:$16 sps:$4 sm:$0xff]   ;;  %v1034_v2 = vmov 0   ;;  %s1301_s9 = smov (!%p191_p3, %s889_s9), 15  ;;  %v576_v37 = vlaneseq }
   0xc   : > { %460 = vmatprep.mubr.bf16.mxu0 %v1034_v2  ;;  %533 = vmatprep.mubr.bf16.mxu1 %v1034_v2  ;;  %v978_v3 = vld [vmem:[%s1296_s1 + $0xe0] ss:$16 sps:$4 sm:$0xff]   ;;  %v979_v4 = vld [vmem:[%s1296_s1 + $0xe8] ss:$16 sps:$4 sm:$0xff]   ;;  %v980_v5 = vld [vmem:[%s1296_s1 + $0xc4] ss:$16 sps:$4 sm:$0xff]  }
   0xd   : > { %428 = vmatprep.subr.bf16.mxu0 %v974_v0  ;;  %501 = vmatprep.subr.bf16.mxu1 %v976_v1  ;;  %v982_v6 = vld [vmem:[%s1296_s1 + $0xcc] ss:$16 sps:$4 sm:$0xff]   ;;  %v984_v7 = vld [vmem:[%s1296_s1 + $0xc0] ss:$16 sps:$4 sm:$0xff]   ;;  %v985_v8 = vld [vmem:[%s1296_s1 + $0xc8] ss:$16 sps:$4 sm:$0xff]  }
   0xe   : > { %429 = vmatpush1.bf16.msra.mxu0 %v978_v3  ;;  %502 = vmatpush1.bf16.msra.mxu1 %v979_v4  ;;  %v986_v9 = vld [vmem:[%s1296_s1 + $0xa4] ss:$16 sps:$4 sm:$0xff]   ;;  %v988_v10 = vld [vmem:[%s1296_s1 + $0xac] ss:$16 sps:$4 sm:$0xff]   ;;  %v990_v11 = vld [vmem:[%s1296_s1 + $0xa0] ss:$16 sps:$4 sm:$0xff]  }
   0xf   : > { %430 = vmatprep.subr.bf16.mxu0 %v980_v5  ;;  %503 = vmatprep.subr.bf16.mxu1 %v982_v6  ;;  %v991_v12 = vld [vmem:[%s1296_s1 + $0xa8] ss:$16 sps:$4 sm:$0xff]   ;;  %v992_v13 = vld [vmem:[%s1296_s1 + $0x84] ss:$16 sps:$4 sm:$0xff]   ;;  %v994_v14 = vld [vmem:[%s1296_s1 + $0x8c] ss:$16 sps:$4 sm:$0xff]  }
  0x10   : > { %v996_v15 = vld [vmem:[%s1296_s1 + $0x80] ss:$16 sps:$4 sm:$0xff]   ;;  %v997_v16 = vld [vmem:[%s1296_s1 + $0x88] ss:$16 sps:$4 sm:$0xff]   ;;  %v998_v17 = vld [vmem:[%s1296_s1 + $0x64] ss:$16 sps:$4 sm:$0xff]  }
  0x11   : > { %v1000_v18 = vld [vmem:[%s1296_s1 + $0x6c] ss:$16 sps:$4 sm:$0xff]   ;;  %v1002_v19 = vld [vmem:[%s1296_s1 + $0x60] ss:$16 sps:$4 sm:$0xff]   ;;  %v1003_v20 = vld [vmem:[%s1296_s1 + $0x68] ss:$16 sps:$4 sm:$0xff]  }
  0x12   : > { %431 = vmatpush1.bf16.msra.mxu0 %v984_v7  ;;  %504 = vmatpush1.bf16.msra.mxu1 %v985_v8  ;;  %v1004_v21 = vld [vmem:[%s1296_s1 + $0x44] ss:$16 sps:$4 sm:$0xff]   ;;  %v1006_v22 = vld [vmem:[%s1296_s1 + $0x4c] ss:$16 sps:$4 sm:$0xff]   ;;  %s890_s12 = sshll.u32 %s1301_s9, 2  ;;  %v577_v38 = vshrl.u32 %v576_v37, 7 }
  0x13   : > { %432 = vmatprep.subr.bf16.mxu0 %v986_v9  ;;  %505 = vmatprep.subr.bf16.mxu1 %v988_v10  ;;  %v1008_v23 = vld [vmem:[%s1296_s1 + $0x40] ss:$16 sps:$4 sm:$0xff]   ;;  %v1009_v24 = vld [vmem:[%s1296_s1 + $0x48] ss:$16 sps:$4 sm:$0xff]   ;;  %v1010_v25 = vld [vmem:[%s1296_s1 + $0x24] ss:$16 sps:$4 sm:$0xff]   ;;  %s1151_s22 = scalar_lea.vmem %s1295_s0, %s890_s12 }
  0x14   : > { %v1012_v26 = vld [vmem:[%s1296_s1 + $0x2c] ss:$16 sps:$4 sm:$0xff]   ;;  %v1014_v27 = vld [vmem:[%s1296_s1 + $0x20] ss:$16 sps:$4 sm:$0xff]   ;;  %v1015_v28 = vld [vmem:[%s1296_s1 + $0x28] ss:$16 sps:$4 sm:$0xff]  }
  0x15   : > { %v1016_v29 = vld [vmem:[%s1296_s1 + $0x4] ss:$16 sps:$4 sm:$0xff]   ;;  %v1018_v30 = vld [vmem:[%s1296_s1 + $0xc] ss:$16 sps:$4 sm:$0xff]   ;;  %v1020_v31 = vld [vmem:[%s1296_s1] ss:$16 sps:$4 sm:$0xff]  }
  0x16   : > { %433 = vmatpush1.bf16.msra.mxu0 %v990_v11  ;;  %506 = vmatpush1.bf16.msra.mxu1 %v991_v12  ;;  %v1021_v32 = vld [vmem:[%s1296_s1 + $0x8] ss:$16 sps:$4 sm:$0xff]   ;;  %v1022_v33 = vld [vmem:[%s1151_s22] sm:$0xff]   ;;  %v1024_v35 = vld [vmem:[%s1151_s22 + $0x10] sm:$0xff]   ;;  %v578_v39 = vsub.s32 0, %v577_v38  ;;  %v586_v40 = vsub.s32 2, %v577_v38 }
  0x17   : > { %434 = vmatprep.subr.bf16.mxu0 %v992_v13  ;;  %507 = vmatprep.subr.bf16.mxu1 %v994_v14  ;;  %v1023_v34 = vld [vmem:[%s1151_s22 + $0x8] sm:$0xff]   ;;  %v1025_v36 = vld [vmem:[%s1151_s22 + $0x18] sm:$0xff]   ;;  %v574_v41 = vld [vmem:[%s1297_s2] sm:$0xf]  ;;  %v582_v42 = vsub.s32 1, %v577_v38  ;;  %v590_v43 = vsub.s32 3, %v577_v38 }
  0x18   : > { %v628_v44 = vld [vmem:[%s1298_s3] sm:$0xf]  ;;  %v1190_v45 = vrot.slane %v574_v41, %v578_v39  ;;  %v1192_v46 = vrot.slane %v574_v41, %v586_v40  ;;  %s948_s18 = sshll.u32 %s1301_s9, 4 }
  0x19   : > { %v1194_v47 = vrot.slane %v628_v44, %v578_v39  ;;  %v1196_v48 = vrot.slane %v628_v44, %v586_v40  ;;  %v1198_v49 = vrot.slane %v574_v41, %v582_v42  ;;  %v1200_v50 = vrot.slane %v574_v41, %v590_v43  ;;  %s1222_s16 = scalar_lea.vmem %s1299_s4, %s948_s18 }
  0x1a   : > { %435 = vmatpush1.bf16.msra.mxu0 %v996_v15  ;;  %508 = vmatpush1.bf16.msra.mxu1 %v997_v16  ;;  %v1204_v55 = vrot.slane %v628_v44, %v582_v42  ;;  %v1206_v56 = vrot.slane %v628_v44, %v590_v43 }
  0x1b   : > { %436 = vmatprep.subr.bf16.mxu0 %v998_v17  ;;  %509 = vmatprep.subr.bf16.mxu1 %v1000_v18 }
  0x1e   : > { %437 = vmatpush1.bf16.msra.mxu0 %v1002_v19  ;;  %510 = vmatpush1.bf16.msra.mxu1 %v1003_v20 }
  0x1f   : > { %438 = vmatprep.subr.bf16.mxu0 %v1004_v21  ;;  %511 = vmatprep.subr.bf16.mxu1 %v1006_v22 }
  0x22   : > { %439 = vmatpush1.bf16.msra.mxu0 %v1008_v23  ;;  %512 = vmatpush1.bf16.msra.mxu1 %v1009_v24 }
  0x23   : > { %440 = vmatprep.subr.bf16.mxu0 %v1010_v25  ;;  %513 = vmatprep.subr.bf16.mxu1 %v1012_v26 }
  0x26   : > { %441 = vmatpush1.bf16.msra.mxu0 %v1014_v27  ;;  %514 = vmatpush1.bf16.msra.mxu1 %v1015_v28 }
  0x27   : > { %442 = vmatprep.subr.bf16.mxu0 %v1016_v29  ;;  %515 = vmatprep.subr.bf16.mxu1 %v1018_v30 }
  0x2a   : > { %443 = vmatpush1.bf16.msra.mxu0 %v1020_v31  ;;  %516 = vmatpush1.bf16.msra.mxu1 %v1021_v32 }
  0x2d   : > { %461 = vmatmul.mubr.bf16.vlgmr.msra.gmra.mxu0 %v1022_v33  ;;  %534 = vmatmul.mubr.bf16.vlgmr.msra.gmra.mxu1 %v1022_v33 }
  0x2e   : > { %470 = vmatprep.mubr.bf16.mxu0 %v1034_v2  ;;  %543 = vmatprep.mubr.bf16.mxu1 %v1034_v2 }
  0x35   : > { %471 = vmatmul.mubr.bf16.gmra.mxu0 %v1023_v34  ;;  %544 = vmatmul.mubr.bf16.gmra.mxu1 %v1023_v34 }
  0x36   : > { %480 = vmatprep.mubr.bf16.mxu0 %v1034_v2  ;;  %553 = vmatprep.mubr.bf16.mxu1 %v1034_v2 }
  0x3d   : > { %481 = vmatmul.mubr.bf16.gmra.mxu0 %v1024_v35  ;;  %554 = vmatmul.mubr.bf16.gmra.mxu1 %v1024_v35 }
  0x3e   : > { %490 = vmatprep.mubr.bf16.mxu0 %v1034_v2  ;;  %563 = vmatprep.mubr.bf16.mxu1 %v1034_v2 }
  0x45   : > { %491 = vmatmul.mubr.bf16.gmra.mxu0 %v1025_v36  ;;  %564 = vmatmul.mubr.bf16.gmra.mxu1 %v1025_v36 }
  0xed   : > { %v462_v51 = vpop.f32.mrf.mxu0  ;;  %v535_v52 = vpop.f32.mrf.mxu1 }
  0xee   : > { %v596_v53 = vmul.f32 %v1190_v45, %v462_v51  ;;  %v598_v54 = vmul.f32 %v1192_v46, %v535_v52 }
  0xef   : > { %v464_v57 = vpop.f32.mrf.mxu0  ;;  %v537_v58 = vpop.f32.mrf.mxu1 }
  0xf0   : > { %v650_v59 = vadd.f32 %v1194_v47, %v596_v53  ;;  %v652_v60 = vadd.f32 %v1196_v48, %v598_v54  ;;  %v597_v61 = vmul.f32 %v1198_v49, %v464_v57  ;;  %v599_v62 = vmul.f32 %v1200_v50, %v537_v58 }
  0xf1   : > { %v466_v63 = vpop.f32.mrf.mxu0  ;;  %v539_v0 = vpop.f32.mrf.mxu1 }
  0xf2   : > { %v651_v1 = vadd.f32 %v1204_v55, %v597_v61  ;;  %v653_v2 = vadd.f32 %v1206_v56, %v599_v62  ;;  %v682_v3 = vmax.f32 %v650_v59, 0.0  ;;  %v684_v4 = vmax.f32 %v652_v60, 0.0 }
  0xf3   : > { %v600_v5 = vmul.f32 %v1190_v45, %v466_v63  ;;  %v602_v6 = vmul.f32 %v1192_v46, %v539_v0  ;;  %v468_v7 = vpop.f32.mrf.mxu0  ;;  %v541_v8 = vpop.f32.mrf.mxu1 }
  0xf4   : > { %v683_v9 = vmax.f32 %v651_v1, 0.0  ;;  %v685_v10 = vmax.f32 %v653_v2, 0.0  ;;  %v601_v11 = vmul.f32 %v1198_v49, %v468_v7  ;;  %v603_v12 = vmul.f32 %v1200_v50, %v541_v8 }
  0xf5   : > { %v654_v13 = vadd.f32 %v1194_v47, %v600_v5  ;;  %v656_v14 = vadd.f32 %v1196_v48, %v602_v6  ;;  %v472_v15 = vpop.f32.mrf.mxu0  ;;  %v545_v16 = vpop.f32.mrf.mxu1 }
  0xf6   : > { %v949_v17 = vpack.c.bf16 %v683_v9, %v682_v3  ;;  %v950_v18 = vpack.c.bf16 %v685_v10, %v684_v4  ;;  %v655_v19 = vadd.f32 %v1204_v55, %v601_v11  ;;  %v657_v20 = vadd.f32 %v1206_v56, %v603_v12 }
  0xf7   : > { %v686_v21 = vmax.f32 %v654_v13, 0.0  ;;  %v688_v22 = vmax.f32 %v656_v14, 0.0  ;;  %v604_v23 = vmul.f32 %v1190_v45, %v472_v15  ;;  %v606_v24 = vmul.f32 %v1192_v46, %v545_v16  ;;  %v474_v25 = vpop.f32.mrf.mxu0  ;;  %v547_v26 = vpop.f32.mrf.mxu1 }
  0xf8   : > { %810 = vst [vmem:[%s1222_s16] sm:$0xff] %v949_v17  ;;  %811 = vst [vmem:[%s1222_s16 + $0x8] sm:$0xff] %v950_v18  ;;  %v687_v27 = vmax.f32 %v655_v19, 0.0  ;;  %v689_v28 = vmax.f32 %v657_v20, 0.0  ;;  %v605_v29 = vmul.f32 %v1198_v49, %v474_v25  ;;  %v607_v30 = vmul.f32 %v1200_v50, %v547_v26 }
  0xf9   : > { %v658_v31 = vadd.f32 %v1194_v47, %v604_v23  ;;  %v660_v32 = vadd.f32 %v1196_v48, %v606_v24  ;;  %v476_v33 = vpop.f32.mrf.mxu0  ;;  %v549_v34 = vpop.f32.mrf.mxu1 }
  0xfa   : > { %v951_v35 = vpack.c.bf16 %v687_v27, %v686_v21  ;;  %v952_v36 = vpack.c.bf16 %v689_v28, %v688_v22  ;;  %v659_v37 = vadd.f32 %v1204_v55, %v605_v29  ;;  %v661_v38 = vadd.f32 %v1206_v56, %v607_v30 }
  0xfb   : > { %v690_v39 = vmax.f32 %v658_v31, 0.0  ;;  %v692_v40 = vmax.f32 %v660_v32, 0.0  ;;  %v608_v41 = vmul.f32 %v1190_v45, %v476_v33  ;;  %v610_v42 = vmul.f32 %v1192_v46, %v549_v34  ;;  %v478_v43 = vpop.f32.mrf.mxu0  ;;  %v551_v44 = vpop.f32.mrf.mxu1 }
  0xfc   : > { %812 = vst [vmem:[%s1222_s16 + $0x10] sm:$0xff] %v951_v35  ;;  %813 = vst [vmem:[%s1222_s16 + $0x18] sm:$0xff] %v952_v36  ;;  %v691_v51 = vmax.f32 %v659_v37, 0.0  ;;  %v693_v52 = vmax.f32 %v661_v38, 0.0  ;;  %v609_v53 = vmul.f32 %v1198_v49, %v478_v43  ;;  %v611_v54 = vmul.f32 %v1200_v50, %v551_v44 }
  0xfd   : > { %v662_v57 = vadd.f32 %v1194_v47, %v608_v41  ;;  %v664_v58 = vadd.f32 %v1196_v48, %v610_v42  ;;  %v482_v59 = vpop.f32.mrf.mxu0  ;;  %v555_v60 = vpop.f32.mrf.mxu1 }
  0xfe   : > { %v953_v61 = vpack.c.bf16 %v691_v51, %v690_v39  ;;  %v954_v62 = vpack.c.bf16 %v693_v52, %v692_v40  ;;  %v663_v63 = vadd.f32 %v1204_v55, %v609_v53  ;;  %v665_v0 = vadd.f32 %v1206_v56, %v611_v54 }
  0xff   : > { %v694_v1 = vmax.f32 %v662_v57, 0.0  ;;  %v696_v2 = vmax.f32 %v664_v58, 0.0  ;;  %v612_v3 = vmul.f32 %v1190_v45, %v482_v59  ;;  %v614_v4 = vmul.f32 %v1192_v46, %v555_v60  ;;  %v484_v5 = vpop.f32.mrf.mxu0  ;;  %v557_v6 = vpop.f32.mrf.mxu1 }
 0x100   : > { %814 = vst [vmem:[%s1222_s16 + $0x20] sm:$0xff] %v953_v61  ;;  %815 = vst [vmem:[%s1222_s16 + $0x28] sm:$0xff] %v954_v62  ;;  %v695_v7 = vmax.f32 %v663_v63, 0.0  ;;  %v697_v8 = vmax.f32 %v665_v0, 0.0  ;;  %v613_v9 = vmul.f32 %v1198_v49, %v484_v5  ;;  %v615_v10 = vmul.f32 %v1200_v50, %v557_v6 }
 0x101   : > { %v666_v11 = vadd.f32 %v1194_v47, %v612_v3  ;;  %v668_v12 = vadd.f32 %v1196_v48, %v614_v4  ;;  %v486_v13 = vpop.f32.mrf.mxu0  ;;  %v559_v14 = vpop.f32.mrf.mxu1 }
 0x102   : > { %v955_v15 = vpack.c.bf16 %v695_v7, %v694_v1  ;;  %v956_v16 = vpack.c.bf16 %v697_v8, %v696_v2  ;;  %v667_v17 = vadd.f32 %v1204_v55, %v613_v9  ;;  %v669_v18 = vadd.f32 %v1206_v56, %v615_v10 }
 0x103   : > { %v698_v19 = vmax.f32 %v666_v11, 0.0  ;;  %v700_v20 = vmax.f32 %v668_v12, 0.0  ;;  %v616_v21 = vmul.f32 %v1190_v45, %v486_v13  ;;  %v618_v22 = vmul.f32 %v1192_v46, %v559_v14  ;;  %v488_v23 = vpop.f32.mrf.mxu0  ;;  %v561_v24 = vpop.f32.mrf.mxu1 }
 0x104   : > { %816 = vst [vmem:[%s1222_s16 + $0x30] sm:$0xff] %v955_v15  ;;  %817 = vst [vmem:[%s1222_s16 + $0x38] sm:$0xff] %v956_v16  ;;  %v699_v25 = vmax.f32 %v667_v17, 0.0  ;;  %v701_v26 = vmax.f32 %v669_v18, 0.0  ;;  %v617_v27 = vmul.f32 %v1198_v49, %v488_v23  ;;  %v619_v28 = vmul.f32 %v1200_v50, %v561_v24 }
 0x105   : > { %v670_v29 = vadd.f32 %v1194_v47, %v616_v21  ;;  %v672_v30 = vadd.f32 %v1196_v48, %v618_v22  ;;  %v492_v31 = vpop.f32.mrf.mxu0  ;;  %v565_v32 = vpop.f32.mrf.mxu1 }
 0x106   : > { %v957_v33 = vpack.c.bf16 %v699_v25, %v698_v19  ;;  %v958_v34 = vpack.c.bf16 %v701_v26, %v700_v20  ;;  %v671_v35 = vadd.f32 %v1204_v55, %v617_v27  ;;  %v673_v36 = vadd.f32 %v1206_v56, %v619_v28 }
 0x107   : > { %v702_v37 = vmax.f32 %v670_v29, 0.0  ;;  %v704_v38 = vmax.f32 %v672_v30, 0.0  ;;  %v620_v39 = vmul.f32 %v1190_v45, %v492_v31  ;;  %v622_v40 = vmul.f32 %v1192_v46, %v565_v32  ;;  %v494_v41 = vpop.f32.mrf.mxu0  ;;  %v567_v42 = vpop.f32.mrf.mxu1 }
 0x108   : > { %818 = vst [vmem:[%s1222_s16 + $0x40] sm:$0xff] %v957_v33  ;;  %819 = vst [vmem:[%s1222_s16 + $0x48] sm:$0xff] %v958_v34  ;;  %v703_v43 = vmax.f32 %v671_v35, 0.0  ;;  %v705_v44 = vmax.f32 %v673_v36, 0.0  ;;  %v621_v51 = vmul.f32 %v1198_v49, %v494_v41  ;;  %v623_v52 = vmul.f32 %v1200_v50, %v567_v42 }
 0x109   : > { %v674_v53 = vadd.f32 %v1194_v47, %v620_v39  ;;  %v676_v54 = vadd.f32 %v1196_v48, %v622_v40  ;;  %v496_v57 = vpop.f32.mrf.mxu0  ;;  %v569_v58 = vpop.f32.mrf.mxu1 }
 0x10a   : > { %v959_v59 = vpack.c.bf16 %v703_v43, %v702_v37  ;;  %v960_v60 = vpack.c.bf16 %v705_v44, %v704_v38  ;;  %v675_v61 = vadd.f32 %v1204_v55, %v621_v51  ;;  %v677_v62 = vadd.f32 %v1206_v56, %v623_v52 }
 0x10b   : > { %v706_v63 = vmax.f32 %v674_v53, 0.0  ;;  %v708_v0 = vmax.f32 %v676_v54, 0.0  ;;  %v624_v1 = vmul.f32 %v1190_v45, %v496_v57  ;;  %v626_v2 = vmul.f32 %v1192_v46, %v569_v58  ;;  %v498_v3 = vpop.f32.mrf.mxu0  ;;  %v571_v4 = vpop.f32.mrf.mxu1 }
 0x10c   : > { %820 = vst [vmem:[%s1222_s16 + $0x50] sm:$0xff] %v959_v59  ;;  %821 = vst [vmem:[%s1222_s16 + $0x58] sm:$0xff] %v960_v60  ;;  %v707_v5 = vmax.f32 %v675_v61, 0.0  ;;  %v709_v6 = vmax.f32 %v677_v62, 0.0  ;;  %v625_v7 = vmul.f32 %v1198_v49, %v498_v3  ;;  %v627_v8 = vmul.f32 %v1200_v50, %v571_v4 }
 0x10d   : > { %v678_v9 = vadd.f32 %v1194_v47, %v624_v1  ;;  %v680_v45 = vadd.f32 %v1196_v48, %v626_v2 }
 0x10e   : > { %v961_v10 = vpack.c.bf16 %v707_v5, %v706_v63  ;;  %v962_v11 = vpack.c.bf16 %v709_v6, %v708_v0  ;;  %v679_v46 = vadd.f32 %v1204_v55, %v625_v7  ;;  %v681_v12 = vadd.f32 %v1206_v56, %v627_v8 }
 0x10f   : > { %v710_v13 = vmax.f32 %v678_v9, 0.0  ;;  %v712_v14 = vmax.f32 %v680_v45, 0.0 }
 0x110   : > { %822 = vst [vmem:[%s1222_s16 + $0x60] sm:$0xff] %v961_v10  ;;  %823 = vst [vmem:[%s1222_s16 + $0x68] sm:$0xff] %v962_v11  ;;  %v711_v15 = vmax.f32 %v679_v46, 0.0  ;;  %v713_v49 = vmax.f32 %v681_v12, 0.0 }
 0x112   : > { %v963_v16 = vpack.c.bf16 %v711_v15, %v710_v13  ;;  %v964_v17 = vpack.c.bf16 %v713_v49, %v712_v14 }
 0x114   : > { %824 = vst [vmem:[%s1222_s16 + $0x70] sm:$0xff] %v963_v16  ;;  %825 = vst [vmem:[%s1222_s16 + $0x78] sm:$0xff] %v964_v17 }
 0x115 PF: > { %s14_s15 = sadd.s32 1, %s1032_s15  }
 0x116   : > { %p11_p4 = scmp.ge.s32.totalorder %s14_s15, 4  }
 0x118   :  { %13 = sbr.rel (!%p11_p4) target bundleno = 1 (0x1), region = 66 }

// kernel: colorization_net_forward.25
= control target key start
LH: loop header
LB: loop body
LE: loop exit
PB: predicated region body
PF: predicated region fallthrough
CT: control target
= control target key end

     0   :  { %s911_s15 = smov 0   ;;  %s1082_s0 = inlined_call_operand.vmem [shape: bf16[512,128], index: 0, kind: input, shape index: {}]   ;;  %s1083_s1 = inlined_call_operand.vmem [shape: bf16[1,128,128], index: 1, kind: input, shape index: {}]   ;;  %s1084_s2 = inlined_call_operand.vmem [shape: f32[1,128], index: 2, kind: input, shape index: {}]   ;;  %s1085_s3 = inlined_call_operand.vmem [shape: f32[1,128], index: 3, kind: input, shape index: {}]   ;;  %s1086_s4 = inlined_call_operand.vmem [shape: f32[512,128], index: 4, kind: output, shape index: {}]  }
   0x1 LB: > { %s721_s16 = sadd.s32 4294967295, %s884_s15   ;;  %p725_p0 = scmp.ge.s32.totalorder %s884_s15, 1  ;;  %s884_s15 = sphi %s911_s15, %s14_s15  }
   0x2   : > { %p163_p1 = scmp.lt.s32.totalorder %s884_s15, 3 }
   0x4   : > { %p164_p2 = pnand %p725_p0, %p163_p1 }
   0x5   : > { %s726_s19 = sshll.u32 (!%p164_p2), %s721_s16, 5 }
   0x6   : > { %167 = sbr.rel (%p164_p2) target bundleno = 272 (0x110), region = 36  ;;  %p190_p3 = scmp.lt.s32.totalorder (!%p164_p2), %s726_s19, 63 }
   0xb   : > { %v854_v0 = vld [vmem:[%s1083_s1 + $0x38] sm:$0xff]   ;;  %v855_v1 = vld [vmem:[%s1083_s1 + $0x30] sm:$0xff]   ;;  %s1088_s19 = smov (!%p190_p3, %s726_s19), 63  ;;  %v856_v2 = vld [vmem:[%s1083_s1 + $0x28] sm:$0xff]  }
   0xc   : > { %782 = vmatprep.subr.bf16.mxu0 %v854_v0  ;;  %830 = vmatprep.subr.bf16.mxu1 %v854_v0  ;;  %s727_s24 = sshll.u32 %s1088_s19, 2  ;;  %v857_v3 = vld [vmem:[%s1083_s1 + $0x20] sm:$0xff]   ;;  %v858_v6 = vld [vmem:[%s1083_s1 + $0x18] sm:$0xff]   ;;  %v859_v7 = vld [vmem:[%s1083_s1 + $0x10] sm:$0xff]   ;;  %s729_s14 = sshll.u32 %s1088_s19, 3 }
   0xd   : > { %783 = vmatpush3.bf16.msra.mxu0 %v854_v0  ;;  %838 = vmatpush3.bf16.msra.mxu1 %v854_v0  ;;  %s934_s27 = scalar_lea.vmem %s1082_s0, %s727_s24  ;;  %v860_v8 = vld [vmem:[%s1083_s1 + $0x8] sm:$0xff]   ;;  %v861_v9 = vld [vmem:[%s1083_s1] sm:$0xff]   ;;  %s983_s21 = scalar_lea.vmem %s1086_s4, %s729_s14 }
   0xe   : > { %784 = vmatprep.subr.bf16.mxu0 %v855_v1  ;;  %831 = vmatprep.subr.bf16.mxu1 %v855_v1  ;;  %v862_v4 = vld [vmem:[%s934_s27] sm:$0xff]   ;;  %v864_v10 = vld [vmem:[%s934_s27 + $0x8] sm:$0xff]   ;;  %v866_v12 = vld [vmem:[%s934_s27 + $0x10] sm:$0xff]  }
   0xf   : > { %v863_v5 = vld [vmem:[%s934_s27 + $0x40] sm:$0xff]   ;;  %798 = vmatprep.mubr.bf16.mxu0 %v862_v4  ;;  %v865_v11 = vld [vmem:[%s934_s27 + $0x48] sm:$0xff]   ;;  %v867_v13 = vld [vmem:[%s934_s27 + $0x50] sm:$0xff]  }
  0x10   : > { %814 = vmatprep.mubr.bf16.mxu1 %v863_v5  ;;  %v868_v14 = vld [vmem:[%s934_s27 + $0x18] sm:$0xff]   ;;  %v870_v16 = vld [vmem:[%s934_s27 + $0x20] sm:$0xff]   ;;  %v872_v18 = vld [vmem:[%s934_s27 + $0x28] sm:$0xff]  }
  0x11   : > { %785 = vmatpush3.bf16.msra.mxu0 %v855_v1  ;;  %839 = vmatpush3.bf16.msra.mxu1 %v855_v1  ;;  %v869_v15 = vld [vmem:[%s934_s27 + $0x58] sm:$0xff]   ;;  %v871_v17 = vld [vmem:[%s934_s27 + $0x60] sm:$0xff]   ;;  %v873_v19 = vld [vmem:[%s934_s27 + $0x68] sm:$0xff]  }
  0x12   : > { %786 = vmatprep.subr.bf16.mxu0 %v856_v2  ;;  %832 = vmatprep.subr.bf16.mxu1 %v856_v2  ;;  %v874_v20 = vld [vmem:[%s934_s27 + $0x30] sm:$0xff]   ;;  %v876_v22 = vld [vmem:[%s934_s27 + $0x38] sm:$0xff]   ;;  %v970_v24 = vld [vmem:[%s1084_s2] ss:$0 sm:$0xff] }
  0x13   : > { %v875_v21 = vld [vmem:[%s934_s27 + $0x70] sm:$0xff]   ;;  %v877_v23 = vld [vmem:[%s934_s27 + $0x78] sm:$0xff]   ;;  %v976_v26 = vld [vmem:[%s1085_s3] ss:$0 sm:$0xff] }
  0x15   : > { %787 = vmatpush3.bf16.msra.mxu0 %v856_v2  ;;  %840 = vmatpush3.bf16.msra.mxu1 %v856_v2 }
  0x16   : > { %788 = vmatprep.subr.bf16.mxu0 %v857_v3  ;;  %833 = vmatprep.subr.bf16.mxu1 %v857_v3 }
  0x19   : > { %789 = vmatpush3.bf16.msra.mxu0 %v857_v3  ;;  %841 = vmatpush3.bf16.msra.mxu1 %v857_v3 }
  0x1a   : > { %790 = vmatprep.subr.bf16.mxu0 %v858_v6  ;;  %834 = vmatprep.subr.bf16.mxu1 %v858_v6 }
  0x1d   : > { %791 = vmatpush3.bf16.msra.mxu0 %v858_v6  ;;  %842 = vmatpush3.bf16.msra.mxu1 %v858_v6 }
  0x1e   : > { %792 = vmatprep.subr.bf16.mxu0 %v859_v7  ;;  %835 = vmatprep.subr.bf16.mxu1 %v859_v7 }
  0x21   : > { %793 = vmatpush3.bf16.msra.mxu0 %v859_v7  ;;  %843 = vmatpush3.bf16.msra.mxu1 %v859_v7 }
  0x22   : > { %794 = vmatprep.subr.bf16.mxu0 %v860_v8  ;;  %836 = vmatprep.subr.bf16.mxu1 %v860_v8 }
  0x25   : > { %795 = vmatpush3.bf16.msra.mxu0 %v860_v8  ;;  %844 = vmatpush3.bf16.msra.mxu1 %v860_v8 }
  0x26   : > { %796 = vmatprep.subr.bf16.mxu0 %v861_v9  ;;  %837 = vmatprep.subr.bf16.mxu1 %v861_v9 }
  0x29   : > { %797 = vmatpush3.bf16.msra.mxu0 %v861_v9  ;;  %845 = vmatpush3.bf16.msra.mxu1 %v861_v9 }
  0x2c   : > { %799 = vmatmul.mubr.bf16.vlgmr.msra.gmra.mxu0 %v864_v10  ;;  %815 = vmatmul.mubr.bf16.vlgmr.msra.gmra.mxu1 %v865_v11 }
  0x2d   : > { %802 = vmatprep.mubr.bf16.mxu0 %v866_v12  ;;  %818 = vmatprep.mubr.bf16.mxu1 %v867_v13 }
  0x34   : > { %803 = vmatmul.mubr.bf16.gmra.mxu0 %v868_v14  ;;  %819 = vmatmul.mubr.bf16.gmra.mxu1 %v869_v15 }
  0x35   : > { %806 = vmatprep.mubr.bf16.mxu0 %v870_v16  ;;  %822 = vmatprep.mubr.bf16.mxu1 %v871_v17 }
  0x3c   : > { %807 = vmatmul.mubr.bf16.gmra.mxu0 %v872_v18  ;;  %823 = vmatmul.mubr.bf16.gmra.mxu1 %v873_v19 }
  0x3d   : > { %810 = vmatprep.mubr.bf16.mxu0 %v874_v20  ;;  %826 = vmatprep.mubr.bf16.mxu1 %v875_v21 }
  0x44   : > { %811 = vmatmul.mubr.bf16.gmra.mxu0 %v876_v22  ;;  %827 = vmatmul.mubr.bf16.gmra.mxu1 %v877_v23 }
  0xec   : > { %v800_v25 = vpop.f32.mrf.mxu0  ;;  %v816_v27 = vpop.f32.mrf.mxu1 }
  0xed   : > { %v564_v28 = vmul.f32 %v800_v25, %v970_v24  ;;  %v580_v29 = vmul.f32 %v816_v27, %v970_v24 }
  0xee   : > { %v428_v30 = vpop.f32.mrf.mxu0  ;;  %v492_v31 = vpop.f32.mrf.mxu1 }
  0xef   : > { %v603_v32 = vadd.f32 %v976_v26, %v564_v28  ;;  %v619_v33 = vadd.f32 %v976_v26, %v580_v29  ;;  %v562_v34 = vmul.f32 %v970_v24, %v428_v30  ;;  %v578_v35 = vmul.f32 %v970_v24, %v492_v31 }
  0xf0   : > { %v801_v36 = vpop.f32.mrf.mxu0  ;;  %v817_v37 = vpop.f32.mrf.mxu1 }
  0xf1   : > { %635 = vst [vmem:[%s983_s21 + $0x10] sm:$0xff] %v603_v32  ;;  %651 = vst [vmem:[%s983_s21 + $0x90] sm:$0xff] %v619_v33  ;;  %v601_v38 = vadd.f32 %v976_v26, %v562_v34  ;;  %v617_v39 = vadd.f32 %v976_v26, %v578_v35  ;;  %v565_v40 = vmul.f32 %v801_v36, %v970_v24 }
  0xf2   : > { %v581_v41 = vmul.f32 %v817_v37, %v970_v24  ;;  %v431_v42 = vpop.f32.mrf.mxu0  ;;  %v495_v43 = vpop.f32.mrf.mxu1 }
  0xf3   : > { %633 = vst [vmem:[%s983_s21] sm:$0xff] %v601_v38  ;;  %649 = vst [vmem:[%s983_s21 + $0x80] sm:$0xff] %v617_v39  ;;  %v604_v44 = vadd.f32 %v976_v26, %v565_v40  ;;  %v563_v46 = vmul.f32 %v970_v24, %v431_v42  ;;  %v579_v47 = vmul.f32 %v970_v24, %v495_v43 }
  0xf4   : > { %v620_v45 = vadd.f32 %v976_v26, %v581_v41  ;;  %v804_v48 = vpop.f32.mrf.mxu0  ;;  %v820_v49 = vpop.f32.mrf.mxu1 }
  0xf5   : > { %636 = vst [vmem:[%s983_s21 + $0x18] sm:$0xff] %v604_v44  ;;  %v602_v50 = vadd.f32 %v976_v26, %v563_v46  ;;  %v618_v51 = vadd.f32 %v976_v26, %v579_v47  ;;  %v568_v52 = vmul.f32 %v804_v48, %v970_v24  ;;  %v584_v53 = vmul.f32 %v820_v49, %v970_v24 }
  0xf6   : > { %652 = vst [vmem:[%s983_s21 + $0x98] sm:$0xff] %v620_v45  ;;  %v444_v54 = vpop.f32.mrf.mxu0  ;;  %v508_v55 = vpop.f32.mrf.mxu1 }
  0xf7   : > { %634 = vst [vmem:[%s983_s21 + $0x8] sm:$0xff] %v602_v50  ;;  %650 = vst [vmem:[%s983_s21 + $0x88] sm:$0xff] %v618_v51  ;;  %v607_v56 = vadd.f32 %v976_v26, %v568_v52  ;;  %v623_v57 = vadd.f32 %v976_v26, %v584_v53  ;;  %v566_v58 = vmul.f32 %v970_v24, %v444_v54 }
  0xf8   : > { %v582_v59 = vmul.f32 %v970_v24, %v508_v55  ;;  %v805_v60 = vpop.f32.mrf.mxu0  ;;  %v821_v61 = vpop.f32.mrf.mxu1 }
  0xf9   : > { %639 = vst [vmem:[%s983_s21 + $0x30] sm:$0xff] %v607_v56  ;;  %655 = vst [vmem:[%s983_s21 + $0xb0] sm:$0xff] %v623_v57  ;;  %v605_v62 = vadd.f32 %v976_v26, %v566_v58  ;;  %v569_v0 = vmul.f32 %v805_v60, %v970_v24  ;;  %v585_v1 = vmul.f32 %v821_v61, %v970_v24 }
  0xfa   : > { %v621_v63 = vadd.f32 %v976_v26, %v582_v59  ;;  %v447_v2 = vpop.f32.mrf.mxu0  ;;  %v511_v3 = vpop.f32.mrf.mxu1 }
  0xfb   : > { %637 = vst [vmem:[%s983_s21 + $0x20] sm:$0xff] %v605_v62  ;;  %v608_v4 = vadd.f32 %v976_v26, %v569_v0  ;;  %v624_v5 = vadd.f32 %v976_v26, %v585_v1  ;;  %v567_v6 = vmul.f32 %v970_v24, %v447_v2  ;;  %v583_v7 = vmul.f32 %v970_v24, %v511_v3 }
  0xfc   : > { %653 = vst [vmem:[%s983_s21 + $0xa0] sm:$0xff] %v621_v63  ;;  %v808_v8 = vpop.f32.mrf.mxu0  ;;  %v824_v9 = vpop.f32.mrf.mxu1 }
  0xfd   : > { %640 = vst [vmem:[%s983_s21 + $0x38] sm:$0xff] %v608_v4  ;;  %656 = vst [vmem:[%s983_s21 + $0xb8] sm:$0xff] %v624_v5  ;;  %v606_v10 = vadd.f32 %v976_v26, %v567_v6  ;;  %v622_v11 = vadd.f32 %v976_v26, %v583_v7  ;;  %v572_v12 = vmul.f32 %v808_v8, %v970_v24 }
  0xfe   : > { %v588_v13 = vmul.f32 %v824_v9, %v970_v24  ;;  %v460_v14 = vpop.f32.mrf.mxu0  ;;  %v524_v15 = vpop.f32.mrf.mxu1 }
  0xff   : > { %638 = vst [vmem:[%s983_s21 + $0x28] sm:$0xff] %v606_v10  ;;  %654 = vst [vmem:[%s983_s21 + $0xa8] sm:$0xff] %v622_v11  ;;  %v611_v16 = vadd.f32 %v976_v26, %v572_v12  ;;  %v570_v18 = vmul.f32 %v970_v24, %v460_v14  ;;  %v586_v19 = vmul.f32 %v970_v24, %v524_v15 }
 0x100   : > { %v627_v17 = vadd.f32 %v976_v26, %v588_v13  ;;  %v809_v20 = vpop.f32.mrf.mxu0  ;;  %v825_v21 = vpop.f32.mrf.mxu1 }
 0x101   : > { %643 = vst [vmem:[%s983_s21 + $0x50] sm:$0xff] %v611_v16  ;;  %v609_v22 = vadd.f32 %v976_v26, %v570_v18  ;;  %v625_v23 = vadd.f32 %v976_v26, %v586_v19  ;;  %v573_v25 = vmul.f32 %v809_v20, %v970_v24  ;;  %v589_v27 = vmul.f32 %v825_v21, %v970_v24 }
 0x102   : > { %659 = vst [vmem:[%s983_s21 + $0xd0] sm:$0xff] %v627_v17  ;;  %v463_v28 = vpop.f32.mrf.mxu0  ;;  %v527_v29 = vpop.f32.mrf.mxu1 }
 0x103   : > { %641 = vst [vmem:[%s983_s21 + $0x40] sm:$0xff] %v609_v22  ;;  %657 = vst [vmem:[%s983_s21 + $0xc0] sm:$0xff] %v625_v23  ;;  %v612_v30 = vadd.f32 %v976_v26, %v573_v25  ;;  %v628_v31 = vadd.f32 %v976_v26, %v589_v27  ;;  %v571_v32 = vmul.f32 %v970_v24, %v463_v28 }
 0x104   : > { %v587_v33 = vmul.f32 %v970_v24, %v527_v29  ;;  %v812_v34 = vpop.f32.mrf.mxu0  ;;  %v828_v35 = vpop.f32.mrf.mxu1 }
 0x105   : > { %644 = vst [vmem:[%s983_s21 + $0x58] sm:$0xff] %v612_v30  ;;  %660 = vst [vmem:[%s983_s21 + $0xd8] sm:$0xff] %v628_v31  ;;  %v610_v36 = vadd.f32 %v976_v26, %v571_v32  ;;  %v576_v38 = vmul.f32 %v812_v34, %v970_v24  ;;  %v592_v39 = vmul.f32 %v828_v35, %v970_v24 }
 0x106   : > { %v626_v37 = vadd.f32 %v976_v26, %v587_v33  ;;  %v476_v40 = vpop.f32.mrf.mxu0  ;;  %v540_v41 = vpop.f32.mrf.mxu1 }
 0x107   : > { %642 = vst [vmem:[%s983_s21 + $0x48] sm:$0xff] %v610_v36  ;;  %v615_v42 = vadd.f32 %v976_v26, %v576_v38  ;;  %v631_v43 = vadd.f32 %v976_v26, %v592_v39  ;;  %v574_v44 = vmul.f32 %v970_v24, %v476_v40  ;;  %v590_v45 = vmul.f32 %v970_v24, %v540_v41 }
 0x108   : > { %658 = vst [vmem:[%s983_s21 + $0xc8] sm:$0xff] %v626_v37  ;;  %v813_v46 = vpop.f32.mrf.mxu0  ;;  %v829_v47 = vpop.f32.mrf.mxu1 }
 0x109   : > { %647 = vst [vmem:[%s983_s21 + $0x70] sm:$0xff] %v615_v42  ;;  %663 = vst [vmem:[%s983_s21 + $0xf0] sm:$0xff] %v631_v43  ;;  %v613_v48 = vadd.f32 %v976_v26, %v574_v44  ;;  %v629_v49 = vadd.f32 %v976_v26, %v590_v45  ;;  %v577_v50 = vmul.f32 %v813_v46, %v970_v24 }
 0x10a   : > { %v593_v51 = vmul.f32 %v829_v47, %v970_v24  ;;  %v479_v52 = vpop.f32.mrf.mxu0  ;;  %v543_v53 = vpop.f32.mrf.mxu1 }
 0x10b   : > { %645 = vst [vmem:[%s983_s21 + $0x60] sm:$0xff] %v613_v48  ;;  %661 = vst [vmem:[%s983_s21 + $0xe0] sm:$0xff] %v629_v49  ;;  %v616_v54 = vadd.f32 %v976_v26, %v577_v50  ;;  %v575_v56 = vmul.f32 %v970_v24, %v479_v52  ;;  %v591_v57 = vmul.f32 %v970_v24, %v543_v53 }
 0x10c   : > { %v632_v55 = vadd.f32 %v976_v26, %v593_v51 }
 0x10d   : > { %648 = vst [vmem:[%s983_s21 + $0x78] sm:$0xff] %v616_v54  ;;  %v614_v58 = vadd.f32 %v976_v26, %v575_v56  ;;  %v630_v59 = vadd.f32 %v976_v26, %v591_v57 }
 0x10e   : > { %664 = vst [vmem:[%s983_s21 + $0xf8] sm:$0xff] %v632_v55 }
 0x10f   : > { %646 = vst [vmem:[%s983_s21 + $0x68] sm:$0xff] %v614_v58  ;;  %662 = vst [vmem:[%s983_s21 + $0xe8] sm:$0xff] %v630_v59 }
 0x110 PF: > { %s14_s15 = sadd.s32 1, %s884_s15  }
 0x111   : > { %p11_p4 = scmp.ge.s32.totalorder %s14_s15, 4  }
 0x113   :  { %13 = sbr.rel (!%p11_p4) target bundleno = 1 (0x1), region = 66 }

</bundles_post_ra>
